<compile_context>
chip_gen: v7x
topology: tpu7x:2x2x1
jax: 0.10.0
libtpu: 0.0.40
codegen_flags: <defaults>
</compile_context>

<pallas_src>
import numpy as np
import jax
import jax.numpy as jnp
from jax.experimental import pallas as pl
from jax.experimental.pallas import tpu as pltpu


# --------------------------------------------------------------------------
# Static one-hot "row gather" matrices (built once on the host).
#   G2: gathers conv2's 16 taps from the 20x20 conv1 grid   -> (16*81, 400)
#   G3: gathers conv3's  9 taps from the  9x9 conv2 grid    -> ( 9*49,  81)
# --------------------------------------------------------------------------
def _make_selection_matrices():
    g2 = np.zeros((16 * 81, 400), np.float32)      # conv2: k=4, s=2, 20x20->9x9
    for i in range(4):
        for j in range(4):
            t = i * 4 + j
            for oh in range(9):
                for ow in range(9):
                    g2[t * 81 + oh * 9 + ow, (2 * oh + i) * 20 + (2 * ow + j)] = 1.0
    g3 = np.zeros((9 * 49, 81), np.float32)        # conv3: k=3, s=1, 9x9->7x7
    for i in range(3):
        for j in range(3):
            t = i * 3 + j
            for oh in range(7):
                for ow in range(7):
                    g3[t * 49 + oh * 7 + ow, (oh + i) * 9 + (ow + j)] = 1.0
    return g2, g3


# --------------------------------------------------------------------------
# Fused kernel: one grid step == one batch element, everything stays in VMEM.
# --------------------------------------------------------------------------
def _convnet_kernel(p1_ref, g2_ref, g3_ref,
                    w1_ref, b1_ref, w2_ref, b2_ref,
                    w3_ref, b3_ref, w4_ref, b4_ref, o_ref):
    f32 = jnp.float32
    bf16 = jnp.bfloat16

    # ---- conv1: single MXU matmul on the externally built im2col patches ----
    a1 = jnp.dot(p1_ref[...], w1_ref[...], preferred_element_type=f32)
    a1 = jnp.maximum(a1 + b1_ref[...], 0.0)                      # (400, 32), rows = 20x20

    # ---- conv2: one-hot selection matmul gathers all 16 taps, tap-sum matmuls ----
    q2 = jnp.dot(g2_ref[...], a1.astype(bf16),
                 preferred_element_type=f32)                     # (16*81, 32)
    acc2 = jnp.zeros((81, 64), f32)
    for t in range(16):
        qt = q2[t * 81:(t + 1) * 81, :].astype(bf16)             # (81, 32)
        wt = w2_ref[t * 32:(t + 1) * 32, :]                      # (32, 64)
        acc2 = acc2 + jnp.dot(qt, wt, preferred_element_type=f32)
    a2 = jnp.maximum(acc2 + b2_ref[...], 0.0)                    # (81, 64), rows = 9x9

    # ---- conv3: same pattern (9 taps) ----
    q3 = jnp.dot(g3_ref[...], a2.astype(bf16),
                 preferred_element_type=f32)                     # (9*49, 64)
    acc3 = jnp.zeros((49, 64), f32)
    for t in range(9):
        qt = q3[t * 49:(t + 1) * 49, :].astype(bf16)             # (49, 64)
        wt = w3_ref[t * 64:(t + 1) * 64, :]                      # (64, 64)
        acc3 = acc3 + jnp.dot(qt, wt, preferred_element_type=f32)
    a3 = jnp.maximum(acc3 + b3_ref[...], 0.0)                    # (49, 64), rows = 7x7

    # ---- conv4 (1x1 output == FC over the 7x7x64 volume), consumed from VMEM ----
    # Per kernel row h: (7, 64) @ (64, 7*512); keep only the diagonal 512-blocks.
    acc4 = jnp.zeros((1, 512), f32)
    for h in range(7):
        ah = a3[h * 7:(h + 1) * 7, :].astype(bf16)               # (7, 64)
        th = jnp.dot(ah, w4_ref[h], preferred_element_type=f32)  # (7, 3584)
        for wi in range(7):
            acc4 = acc4 + th[wi:wi + 1, wi * 512:(wi + 1) * 512]
    y = jnp.maximum(acc4 + b4_ref[...], 0.0)                     # (1, 512)
    o_ref[...] = y.reshape(1, 1, 512)


# --------------------------------------------------------------------------
# Parameter prep (done once): bf16 weights in the exact K-orders the kernel uses.
# --------------------------------------------------------------------------
def prepare_params(params):
    (w1, b1), (w2, b2), (w3, b3), (w4, b4) = params
    bf16 = jnp.bfloat16
    g2, g3 = _make_selection_matrices()
    return dict(
        g2=jnp.asarray(g2, bf16),                                          # (1296, 400)
        g3=jnp.asarray(g3, bf16),                                          # (441, 81)
        w1=jnp.asarray(w1.reshape(32, 256).T, bf16),                       # (256, 32)  rows=(c,kh,kw)
        w2=jnp.asarray(jnp.transpose(w2, (2, 3, 1, 0)).reshape(512, 64), bf16),   # rows=(kh,kw,c)
        w3=jnp.asarray(jnp.transpose(w3, (2, 3, 1, 0)).reshape(576, 64), bf16),   # rows=(kh,kw,c)
        w4=jnp.asarray(jnp.transpose(w4, (2, 1, 3, 0)).reshape(7, 64, 7 * 512), bf16),  # (h, c, w*512+n)
        b1=b1.reshape(1, 32).astype(jnp.float32),
        b2=b2.reshape(1, 64).astype(jnp.float32),
        b3=b3.reshape(1, 64).astype(jnp.float32),
        b4=b4.reshape(1, 512).astype(jnp.float32),
    )


# --------------------------------------------------------------------------
# Forward pass (matches the PyTorch module's semantics).
# --------------------------------------------------------------------------
@jax.jit
def convnet_forward(x, prep):
    if x.ndim != 4:
        x = x[None]                                  # unsqueeze(0)
    B, C1, H, W = x.shape
    assert C1 == 4 and H == 84 and W == 84, "module's conv chain implies 4x84x84 inputs"

    # conv1 im2col as ONE XLA op; output features ordered (c, kh, kw).
    patches = jax.lax.conv_general_dilated_patches(
        x, filter_shape=(8, 8), window_strides=(4, 4), padding='VALID',
        dimension_numbers=('NCHW', 'OIHW', 'NHWC'))              # (B, 20, 20, 256)
    m1 = patches.shape[1] * patches.shape[2]                     # 400
    p1 = patches.reshape(B * m1, 256).astype(jnp.bfloat16)

    out = pl.pallas_call(
        _convnet_kernel,
        out_shape=jax.ShapeDtypeStruct((B, 1, 512), jnp.float32),
        grid=(B,),
        in_specs=[
            pl.BlockSpec((m1, 256), lambda b: (b, 0)),           # per-batch patch block
            pl.BlockSpec(prep['g2'].shape, lambda b: (0, 0)),
            pl.BlockSpec(prep['g3'].shape, lambda b: (0, 0)),
            pl.BlockSpec(prep['w1'].shape, lambda b: (0, 0)),
            pl.BlockSpec(prep['b1'].shape, lambda b: (0, 0)),
            pl.BlockSpec(prep['w2'].shape, lambda b: (0, 0)),
            pl.BlockSpec(prep['b2'].shape, lambda b: (0, 0)),
            pl.BlockSpec(prep['w3'].shape, lambda b: (0, 0)),
            pl.BlockSpec(prep['b3'].shape, lambda b: (0, 0)),
            pl.BlockSpec((7, 64, 3584), lambda b: (0, 0, 0)),
            pl.BlockSpec(prep['b4'].shape, lambda b: (0, 0)),
        ],
        out_specs=pl.BlockSpec((1, 1, 512), lambda b: (b, 0, 0)),
        compiler_params=pltpu.CompilerParams(
            dimension_semantics=("parallel",),       # v7x: one batch element per core
            vmem_limit_bytes=32 * 1024 * 1024),
    )(p1, prep['g2'], prep['g3'], prep['w1'], prep['b1'],
      prep['w2'], prep['b2'], prep['w3'], prep['b3'],
      prep['w4'], prep['b4'])

    # PyTorch: x.view(input_.size(1) * input_.size(0) // 4, -1)
    return out.reshape(C1 * B // 4, -1)


# --------------------------------------------------------------------------
# Deterministic params (kaiming_normal_ weights, zero bias) + f32 reference.
# --------------------------------------------------------------------------
def init_params(key):
    specs = [(32, 4, 8, 8), (64, 32, 4, 4), (64, 64, 3, 3), (512, 64, 7, 7)]
    params = []
    for i, s in enumerate(specs):
        k = jax.random.fold_in(key, i)
        fan_in = s[1] * s[2] * s[3]
        std = (2.0 / fan_in) ** 0.5
        w = std * jax.random.normal(k, s, dtype=jnp.float32)
        b = jnp.zeros((s[0],), dtype=jnp.float32)
        params.append((w, b))
    return params


def reference_forward(x, params):
    if x.ndim != 4:
        x = x[None]
    B, C1 = x.shape[0], x.shape[1]
    h = x
    for (w, b), s in zip(params, [4, 2, 1, 1]):
        h = jax.lax.conv_general_dilated(
            h, w, window_strides=(s, s), padding='VALID',
            dimension_numbers=('NCHW', 'OIHW', 'NCHW'))
        h = jnp.maximum(h + b.reshape(1, -1, 1, 1), 0.0)
    return h.reshape(C1 * B // 4, -1)


if __name__ == "__main__":
    key = jax.random.PRNGKey(0)
    x = jax.random.normal(jax.random.fold_in(key, 100), (2, 4, 84, 84), dtype=jnp.float32)
    params = init_params(key)
    prep = prepare_params(params)

    out = convnet_forward(x, prep)
    out = jax.block_until_ready(out)

    # Shape / ReLU sanity (B=2, C1=4 -> view(4*2//4, -1) = (2, 512)).
    assert out.shape == (2, 512), out.shape
    assert bool(jnp.all(out >= 0.0))

    # Numerical check against a plain-XLA f32 reference (bf16 MXU tolerance).
    ref = jax.block_until_ready(reference_forward(x, params))
    rel_err = float(jnp.max(jnp.abs(out - ref)) / (jnp.max(jnp.abs(ref)) + 1e-6))
    assert rel_err < 8e-2, f"relative error too large: {rel_err}"

    print("KERNEL_OK")
</pallas_src>

<mosaic_0001>
module attributes {stable_mosaic.version = 11 : i64} {
  func.func @_convnet_kernel(%arg0: i32, %arg1: memref<400x256xbf16, #tpu.memory_space<vmem>>, %arg2: memref<1296x400xbf16, #tpu.memory_space<vmem>>, %arg3: memref<441x81xbf16, #tpu.memory_space<vmem>>, %arg4: memref<256x32xbf16, #tpu.memory_space<vmem>>, %arg5: memref<1x32xf32, #tpu.memory_space<vmem>>, %arg6: memref<512x64xbf16, #tpu.memory_space<vmem>>, %arg7: memref<1x64xf32, #tpu.memory_space<vmem>>, %arg8: memref<576x64xbf16, #tpu.memory_space<vmem>>, %arg9: memref<1x64xf32, #tpu.memory_space<vmem>>, %arg10: memref<7x64x3584xbf16, #tpu.memory_space<vmem>>, %arg11: memref<1x512xf32, #tpu.memory_space<vmem>>, %arg12: memref<1x1x512xf32, #tpu.memory_space<vmem>>) attributes {dimension_semantics = [#tpu.dimension_semantics<parallel>], iteration_bounds = array<i64: 2>, scalar_prefetch = 0 : i64, scratch_operands = 0 : i64, tpu.core_type = #tpu.core_type<tc>, window_params = [{transform_indices = @transform_0, window_bounds = array<i64: 400, 256>}, {pipeline_mode = #tpu.pipeline_mode<synchronous>, transform_indices = @transform_1, window_bounds = array<i64: 1296, 400>}, {pipeline_mode = #tpu.pipeline_mode<synchronous>, transform_indices = @transform_2, window_bounds = array<i64: 441, 81>}, {pipeline_mode = #tpu.pipeline_mode<synchronous>, transform_indices = @transform_3, window_bounds = array<i64: 256, 32>}, {pipeline_mode = #tpu.pipeline_mode<synchronous>, transform_indices = @transform_4, window_bounds = array<i64: 1, 32>}, {pipeline_mode = #tpu.pipeline_mode<synchronous>, transform_indices = @transform_5, window_bounds = array<i64: 512, 64>}, {pipeline_mode = #tpu.pipeline_mode<synchronous>, transform_indices = @transform_6, window_bounds = array<i64: 1, 64>}, {pipeline_mode = #tpu.pipeline_mode<synchronous>, transform_indices = @transform_7, window_bounds = array<i64: 576, 64>}, {pipeline_mode = #tpu.pipeline_mode<synchronous>, transform_indices = @transform_8, window_bounds = array<i64: 1, 64>}, {pipeline_mode = #tpu.pipeline_mode<synchronous>, transform_indices = @transform_9, window_bounds = array<i64: 7, 64, 3584>}, {pipeline_mode = #tpu.pipeline_mode<synchronous>, transform_indices = @transform_10, window_bounds = array<i64: 1, 512>}, {transform_indices = @transform_11, window_bounds = array<i64: 1, 1, 512>}]} {
    %c0 = arith.constant 0 : index
    %c0_0 = arith.constant 0 : index
    %0 = vector.load %arg1[%c0, %c0_0] : memref<400x256xbf16, #tpu.memory_space<vmem>>, vector<400x256xbf16>
    %c0_1 = arith.constant 0 : index
    %c0_2 = arith.constant 0 : index
    %1 = vector.load %arg4[%c0_1, %c0_2] : memref<256x32xbf16, #tpu.memory_space<vmem>>, vector<256x32xbf16>
    %cst = arith.constant dense<0.000000e+00> : vector<400x32xf32>
    %2 = tpu.matmul %0, %1, %cst {dimension_numbers = #tpu.dot_dimension_numbers<[1], [0], [0], [1], [0, 0, 1, 1], [], []>} : vector<400x256xbf16>, vector<256x32xbf16>, vector<400x32xf32> -> vector<400x32xf32>
    %c0_3 = arith.constant 0 : index
    %c0_4 = arith.constant 0 : index
    %3 = vector.load %arg5[%c0_3, %c0_4] : memref<1x32xf32, #tpu.memory_space<vmem>>, vector<1x32xf32>
    %4 = vector.broadcast %3 : vector<1x32xf32> to vector<400x32xf32>
    %5 = arith.addf %2, %4 : vector<400x32xf32>
    %cst_5 = arith.constant 0.000000e+00 : f32
    %6 = vector.broadcast %cst_5 : f32 to vector<400x32xf32>
    %7 = arith.maximumf %5, %6 : vector<400x32xf32>
    %c0_6 = arith.constant 0 : index
    %c0_7 = arith.constant 0 : index
    %8 = vector.load %arg2[%c0_6, %c0_7] : memref<1296x400xbf16, #tpu.memory_space<vmem>>, vector<1296x400xbf16>
    %9 = arith.truncf %7 : vector<400x32xf32> to vector<400x32xbf16>
    %cst_8 = arith.constant dense<0.000000e+00> : vector<1296x32xf32>
    %10 = tpu.matmul %8, %9, %cst_8 {dimension_numbers = #tpu.dot_dimension_numbers<[1], [0], [0], [1], [0, 0, 1, 1], [], []>} : vector<1296x400xbf16>, vector<400x32xbf16>, vector<1296x32xf32> -> vector<1296x32xf32>
    %cst_9 = arith.constant 0.000000e+00 : f32
    %11 = vector.broadcast %cst_9 : f32 to vector<81x64xf32>
    %12 = vector.extract_strided_slice %10 {offsets = [0, 0], sizes = [81, 32], strides = [1, 1]} : vector<1296x32xf32> to vector<81x32xf32>
    %13 = arith.truncf %12 : vector<81x32xf32> to vector<81x32xbf16>
    %c0_10 = arith.constant 0 : index
    %c0_11 = arith.constant 0 : index
    %14 = vector.load %arg6[%c0_10, %c0_11] : memref<512x64xbf16, #tpu.memory_space<vmem>>, vector<32x64xbf16>
    %cst_12 = arith.constant dense<0.000000e+00> : vector<81x64xf32>
    %15 = tpu.matmul %13, %14, %cst_12 {dimension_numbers = #tpu.dot_dimension_numbers<[1], [0], [0], [1], [0, 0, 1, 1], [], []>} : vector<81x32xbf16>, vector<32x64xbf16>, vector<81x64xf32> -> vector<81x64xf32>
    %16 = arith.addf %11, %15 : vector<81x64xf32>
    %17 = vector.extract_strided_slice %10 {offsets = [81, 0], sizes = [81, 32], strides = [1, 1]} : vector<1296x32xf32> to vector<81x32xf32>
    %18 = arith.truncf %17 : vector<81x32xf32> to vector<81x32xbf16>
    %c32 = arith.constant 32 : index
    %c0_13 = arith.constant 0 : index
    %19 = vector.load %arg6[%c32, %c0_13] : memref<512x64xbf16, #tpu.memory_space<vmem>>, vector<32x64xbf16>
    %cst_14 = arith.constant dense<0.000000e+00> : vector<81x64xf32>
    %20 = tpu.matmul %18, %19, %cst_14 {dimension_numbers = #tpu.dot_dimension_numbers<[1], [0], [0], [1], [0, 0, 1, 1], [], []>} : vector<81x32xbf16>, vector<32x64xbf16>, vector<81x64xf32> -> vector<81x64xf32>
    %21 = arith.addf %16, %20 : vector<81x64xf32>
    %22 = vector.extract_strided_slice %10 {offsets = [162, 0], sizes = [81, 32], strides = [1, 1]} : vector<1296x32xf32> to vector<81x32xf32>
    %23 = arith.truncf %22 : vector<81x32xf32> to vector<81x32xbf16>
    %c64 = arith.constant 64 : index
    %c0_15 = arith.constant 0 : index
    %24 = vector.load %arg6[%c64, %c0_15] : memref<512x64xbf16, #tpu.memory_space<vmem>>, vector<32x64xbf16>
    %cst_16 = arith.constant dense<0.000000e+00> : vector<81x64xf32>
    %25 = tpu.matmul %23, %24, %cst_16 {dimension_numbers = #tpu.dot_dimension_numbers<[1], [0], [0], [1], [0, 0, 1, 1], [], []>} : vector<81x32xbf16>, vector<32x64xbf16>, vector<81x64xf32> -> vector<81x64xf32>
    %26 = arith.addf %21, %25 : vector<81x64xf32>
    %27 = vector.extract_strided_slice %10 {offsets = [243, 0], sizes = [81, 32], strides = [1, 1]} : vector<1296x32xf32> to vector<81x32xf32>
    %28 = arith.truncf %27 : vector<81x32xf32> to vector<81x32xbf16>
    %c96 = arith.constant 96 : index
    %c0_17 = arith.constant 0 : index
    %29 = vector.load %arg6[%c96, %c0_17] : memref<512x64xbf16, #tpu.memory_space<vmem>>, vector<32x64xbf16>
    %cst_18 = arith.constant dense<0.000000e+00> : vector<81x64xf32>
    %30 = tpu.matmul %28, %29, %cst_18 {dimension_numbers = #tpu.dot_dimension_numbers<[1], [0], [0], [1], [0, 0, 1, 1], [], []>} : vector<81x32xbf16>, vector<32x64xbf16>, vector<81x64xf32> -> vector<81x64xf32>
    %31 = arith.addf %26, %30 : vector<81x64xf32>
    %32 = vector.extract_strided_slice %10 {offsets = [324, 0], sizes = [81, 32], strides = [1, 1]} : vector<1296x32xf32> to vector<81x32xf32>
    %33 = arith.truncf %32 : vector<81x32xf32> to vector<81x32xbf16>
    %c128 = arith.constant 128 : index
    %c0_19 = arith.constant 0 : index
    %34 = vector.load %arg6[%c128, %c0_19] : memref<512x64xbf16, #tpu.memory_space<vmem>>, vector<32x64xbf16>
    %cst_20 = arith.constant dense<0.000000e+00> : vector<81x64xf32>
    %35 = tpu.matmul %33, %34, %cst_20 {dimension_numbers = #tpu.dot_dimension_numbers<[1], [0], [0], [1], [0, 0, 1, 1], [], []>} : vector<81x32xbf16>, vector<32x64xbf16>, vector<81x64xf32> -> vector<81x64xf32>
    %36 = arith.addf %31, %35 : vector<81x64xf32>
    %37 = vector.extract_strided_slice %10 {offsets = [405, 0], sizes = [81, 32], strides = [1, 1]} : vector<1296x32xf32> to vector<81x32xf32>
    %38 = arith.truncf %37 : vector<81x32xf32> to vector<81x32xbf16>
    %c160 = arith.constant 160 : index
    %c0_21 = arith.constant 0 : index
    %39 = vector.load %arg6[%c160, %c0_21] : memref<512x64xbf16, #tpu.memory_space<vmem>>, vector<32x64xbf16>
    %cst_22 = arith.constant dense<0.000000e+00> : vector<81x64xf32>
    %40 = tpu.matmul %38, %39, %cst_22 {dimension_numbers = #tpu.dot_dimension_numbers<[1], [0], [0], [1], [0, 0, 1, 1], [], []>} : vector<81x32xbf16>, vector<32x64xbf16>, vector<81x64xf32> -> vector<81x64xf32>
    %41 = arith.addf %36, %40 : vector<81x64xf32>
    %42 = vector.extract_strided_slice %10 {offsets = [486, 0], sizes = [81, 32], strides = [1, 1]} : vector<1296x32xf32> to vector<81x32xf32>
    %43 = arith.truncf %42 : vector<81x32xf32> to vector<81x32xbf16>
    %c192 = arith.constant 192 : index
    %c0_23 = arith.constant 0 : index
    %44 = vector.load %arg6[%c192, %c0_23] : memref<512x64xbf16, #tpu.memory_space<vmem>>, vector<32x64xbf16>
    %cst_24 = arith.constant dense<0.000000e+00> : vector<81x64xf32>
    %45 = tpu.matmul %43, %44, %cst_24 {dimension_numbers = #tpu.dot_dimension_numbers<[1], [0], [0], [1], [0, 0, 1, 1], [], []>} : vector<81x32xbf16>, vector<32x64xbf16>, vector<81x64xf32> -> vector<81x64xf32>
    %46 = arith.addf %41, %45 : vector<81x64xf32>
    %47 = vector.extract_strided_slice %10 {offsets = [567, 0], sizes = [81, 32], strides = [1, 1]} : vector<1296x32xf32> to vector<81x32xf32>
    %48 = arith.truncf %47 : vector<81x32xf32> to vector<81x32xbf16>
    %c224 = arith.constant 224 : index
    %c0_25 = arith.constant 0 : index
    %49 = vector.load %arg6[%c224, %c0_25] : memref<512x64xbf16, #tpu.memory_space<vmem>>, vector<32x64xbf16>
    %cst_26 = arith.constant dense<0.000000e+00> : vector<81x64xf32>
    %50 = tpu.matmul %48, %49, %cst_26 {dimension_numbers = #tpu.dot_dimension_numbers<[1], [0], [0], [1], [0, 0, 1, 1], [], []>} : vector<81x32xbf16>, vector<32x64xbf16>, vector<81x64xf32> -> vector<81x64xf32>
    %51 = arith.addf %46, %50 : vector<81x64xf32>
    %52 = vector.extract_strided_slice %10 {offsets = [648, 0], sizes = [81, 32], strides = [1, 1]} : vector<1296x32xf32> to vector<81x32xf32>
    %53 = arith.truncf %52 : vector<81x32xf32> to vector<81x32xbf16>
    %c256 = arith.constant 256 : index
    %c0_27 = arith.constant 0 : index
    %54 = vector.load %arg6[%c256, %c0_27] : memref<512x64xbf16, #tpu.memory_space<vmem>>, vector<32x64xbf16>
    %cst_28 = arith.constant dense<0.000000e+00> : vector<81x64xf32>
    %55 = tpu.matmul %53, %54, %cst_28 {dimension_numbers = #tpu.dot_dimension_numbers<[1], [0], [0], [1], [0, 0, 1, 1], [], []>} : vector<81x32xbf16>, vector<32x64xbf16>, vector<81x64xf32> -> vector<81x64xf32>
    %56 = arith.addf %51, %55 : vector<81x64xf32>
    %57 = vector.extract_strided_slice %10 {offsets = [729, 0], sizes = [81, 32], strides = [1, 1]} : vector<1296x32xf32> to vector<81x32xf32>
    %58 = arith.truncf %57 : vector<81x32xf32> to vector<81x32xbf16>
    %c288 = arith.constant 288 : index
    %c0_29 = arith.constant 0 : index
    %59 = vector.load %arg6[%c288, %c0_29] : memref<512x64xbf16, #tpu.memory_space<vmem>>, vector<32x64xbf16>
    %cst_30 = arith.constant dense<0.000000e+00> : vector<81x64xf32>
    %60 = tpu.matmul %58, %59, %cst_30 {dimension_numbers = #tpu.dot_dimension_numbers<[1], [0], [0], [1], [0, 0, 1, 1], [], []>} : vector<81x32xbf16>, vector<32x64xbf16>, vector<81x64xf32> -> vector<81x64xf32>
    %61 = arith.addf %56, %60 : vector<81x64xf32>
    %62 = vector.extract_strided_slice %10 {offsets = [810, 0], sizes = [81, 32], strides = [1, 1]} : vector<1296x32xf32> to vector<81x32xf32>
    %63 = arith.truncf %62 : vector<81x32xf32> to vector<81x32xbf16>
    %c320 = arith.constant 320 : index
    %c0_31 = arith.constant 0 : index
    %64 = vector.load %arg6[%c320, %c0_31] : memref<512x64xbf16, #tpu.memory_space<vmem>>, vector<32x64xbf16>
    %cst_32 = arith.constant dense<0.000000e+00> : vector<81x64xf32>
    %65 = tpu.matmul %63, %64, %cst_32 {dimension_numbers = #tpu.dot_dimension_numbers<[1], [0], [0], [1], [0, 0, 1, 1], [], []>} : vector<81x32xbf16>, vector<32x64xbf16>, vector<81x64xf32> -> vector<81x64xf32>
    %66 = arith.addf %61, %65 : vector<81x64xf32>
    %67 = vector.extract_strided_slice %10 {offsets = [891, 0], sizes = [81, 32], strides = [1, 1]} : vector<1296x32xf32> to vector<81x32xf32>
    %68 = arith.truncf %67 : vector<81x32xf32> to vector<81x32xbf16>
    %c352 = arith.constant 352 : index
    %c0_33 = arith.constant 0 : index
    %69 = vector.load %arg6[%c352, %c0_33] : memref<512x64xbf16, #tpu.memory_space<vmem>>, vector<32x64xbf16>
    %cst_34 = arith.constant dense<0.000000e+00> : vector<81x64xf32>
    %70 = tpu.matmul %68, %69, %cst_34 {dimension_numbers = #tpu.dot_dimension_numbers<[1], [0], [0], [1], [0, 0, 1, 1], [], []>} : vector<81x32xbf16>, vector<32x64xbf16>, vector<81x64xf32> -> vector<81x64xf32>
    %71 = arith.addf %66, %70 : vector<81x64xf32>
    %72 = vector.extract_strided_slice %10 {offsets = [972, 0], sizes = [81, 32], strides = [1, 1]} : vector<1296x32xf32> to vector<81x32xf32>
    %73 = arith.truncf %72 : vector<81x32xf32> to vector<81x32xbf16>
    %c384 = arith.constant 384 : index
    %c0_35 = arith.constant 0 : index
    %74 = vector.load %arg6[%c384, %c0_35] : memref<512x64xbf16, #tpu.memory_space<vmem>>, vector<32x64xbf16>
    %cst_36 = arith.constant dense<0.000000e+00> : vector<81x64xf32>
    %75 = tpu.matmul %73, %74, %cst_36 {dimension_numbers = #tpu.dot_dimension_numbers<[1], [0], [0], [1], [0, 0, 1, 1], [], []>} : vector<81x32xbf16>, vector<32x64xbf16>, vector<81x64xf32> -> vector<81x64xf32>
    %76 = arith.addf %71, %75 : vector<81x64xf32>
    %77 = vector.extract_strided_slice %10 {offsets = [1053, 0], sizes = [81, 32], strides = [1, 1]} : vector<1296x32xf32> to vector<81x32xf32>
    %78 = arith.truncf %77 : vector<81x32xf32> to vector<81x32xbf16>
    %c416 = arith.constant 416 : index
    %c0_37 = arith.constant 0 : index
    %79 = vector.load %arg6[%c416, %c0_37] : memref<512x64xbf16, #tpu.memory_space<vmem>>, vector<32x64xbf16>
    %cst_38 = arith.constant dense<0.000000e+00> : vector<81x64xf32>
    %80 = tpu.matmul %78, %79, %cst_38 {dimension_numbers = #tpu.dot_dimension_numbers<[1], [0], [0], [1], [0, 0, 1, 1], [], []>} : vector<81x32xbf16>, vector<32x64xbf16>, vector<81x64xf32> -> vector<81x64xf32>
    %81 = arith.addf %76, %80 : vector<81x64xf32>
    %82 = vector.extract_strided_slice %10 {offsets = [1134, 0], sizes = [81, 32], strides = [1, 1]} : vector<1296x32xf32> to vector<81x32xf32>
    %83 = arith.truncf %82 : vector<81x32xf32> to vector<81x32xbf16>
    %c448 = arith.constant 448 : index
    %c0_39 = arith.constant 0 : index
    %84 = vector.load %arg6[%c448, %c0_39] : memref<512x64xbf16, #tpu.memory_space<vmem>>, vector<32x64xbf16>
    %cst_40 = arith.constant dense<0.000000e+00> : vector<81x64xf32>
    %85 = tpu.matmul %83, %84, %cst_40 {dimension_numbers = #tpu.dot_dimension_numbers<[1], [0], [0], [1], [0, 0, 1, 1], [], []>} : vector<81x32xbf16>, vector<32x64xbf16>, vector<81x64xf32> -> vector<81x64xf32>
    %86 = arith.addf %81, %85 : vector<81x64xf32>
    %87 = vector.extract_strided_slice %10 {offsets = [1215, 0], sizes = [81, 32], strides = [1, 1]} : vector<1296x32xf32> to vector<81x32xf32>
    %88 = arith.truncf %87 : vector<81x32xf32> to vector<81x32xbf16>
    %c480 = arith.constant 480 : index
    %c0_41 = arith.constant 0 : index
    %89 = vector.load %arg6[%c480, %c0_41] : memref<512x64xbf16, #tpu.memory_space<vmem>>, vector<32x64xbf16>
    %cst_42 = arith.constant dense<0.000000e+00> : vector<81x64xf32>
    %90 = tpu.matmul %88, %89, %cst_42 {dimension_numbers = #tpu.dot_dimension_numbers<[1], [0], [0], [1], [0, 0, 1, 1], [], []>} : vector<81x32xbf16>, vector<32x64xbf16>, vector<81x64xf32> -> vector<81x64xf32>
    %91 = arith.addf %86, %90 : vector<81x64xf32>
    %c0_43 = arith.constant 0 : index
    %c0_44 = arith.constant 0 : index
    %92 = vector.load %arg7[%c0_43, %c0_44] : memref<1x64xf32, #tpu.memory_space<vmem>>, vector<1x64xf32>
    %93 = vector.broadcast %92 : vector<1x64xf32> to vector<81x64xf32>
    %94 = arith.addf %91, %93 : vector<81x64xf32>
    %cst_45 = arith.constant 0.000000e+00 : f32
    %95 = vector.broadcast %cst_45 : f32 to vector<81x64xf32>
    %96 = arith.maximumf %94, %95 : vector<81x64xf32>
    %c0_46 = arith.constant 0 : index
    %c0_47 = arith.constant 0 : index
    %97 = vector.load %arg3[%c0_46, %c0_47] : memref<441x81xbf16, #tpu.memory_space<vmem>>, vector<441x81xbf16>
    %98 = arith.truncf %96 : vector<81x64xf32> to vector<81x64xbf16>
    %cst_48 = arith.constant dense<0.000000e+00> : vector<441x64xf32>
    %99 = tpu.matmul %97, %98, %cst_48 {dimension_numbers = #tpu.dot_dimension_numbers<[1], [0], [0], [1], [0, 0, 1, 1], [], []>} : vector<441x81xbf16>, vector<81x64xbf16>, vector<441x64xf32> -> vector<441x64xf32>
    %cst_49 = arith.constant 0.000000e+00 : f32
    %100 = vector.broadcast %cst_49 : f32 to vector<49x64xf32>
    %101 = vector.extract_strided_slice %99 {offsets = [0, 0], sizes = [49, 64], strides = [1, 1]} : vector<441x64xf32> to vector<49x64xf32>
    %102 = arith.truncf %101 : vector<49x64xf32> to vector<49x64xbf16>
    %c0_50 = arith.constant 0 : index
    %c0_51 = arith.constant 0 : index
    %103 = vector.load %arg8[%c0_50, %c0_51] : memref<576x64xbf16, #tpu.memory_space<vmem>>, vector<64x64xbf16>
    %cst_52 = arith.constant dense<0.000000e+00> : vector<49x64xf32>
    %104 = tpu.matmul %102, %103, %cst_52 {dimension_numbers = #tpu.dot_dimension_numbers<[1], [0], [0], [1], [0, 0, 1, 1], [], []>} : vector<49x64xbf16>, vector<64x64xbf16>, vector<49x64xf32> -> vector<49x64xf32>
    %105 = arith.addf %100, %104 : vector<49x64xf32>
    %106 = vector.extract_strided_slice %99 {offsets = [49, 0], sizes = [49, 64], strides = [1, 1]} : vector<441x64xf32> to vector<49x64xf32>
    %107 = arith.truncf %106 : vector<49x64xf32> to vector<49x64xbf16>
    %c64_53 = arith.constant 64 : index
    %c0_54 = arith.constant 0 : index
    %108 = vector.load %arg8[%c64_53, %c0_54] : memref<576x64xbf16, #tpu.memory_space<vmem>>, vector<64x64xbf16>
    %cst_55 = arith.constant dense<0.000000e+00> : vector<49x64xf32>
    %109 = tpu.matmul %107, %108, %cst_55 {dimension_numbers = #tpu.dot_dimension_numbers<[1], [0], [0], [1], [0, 0, 1, 1], [], []>} : vector<49x64xbf16>, vector<64x64xbf16>, vector<49x64xf32> -> vector<49x64xf32>
    %110 = arith.addf %105, %109 : vector<49x64xf32>
    %111 = vector.extract_strided_slice %99 {offsets = [98, 0], sizes = [49, 64], strides = [1, 1]} : vector<441x64xf32> to vector<49x64xf32>
    %112 = arith.truncf %111 : vector<49x64xf32> to vector<49x64xbf16>
    %c128_56 = arith.constant 128 : index
    %c0_57 = arith.constant 0 : index
    %113 = vector.load %arg8[%c128_56, %c0_57] : memref<576x64xbf16, #tpu.memory_space<vmem>>, vector<64x64xbf16>
    %cst_58 = arith.constant dense<0.000000e+00> : vector<49x64xf32>
    %114 = tpu.matmul %112, %113, %cst_58 {dimension_numbers = #tpu.dot_dimension_numbers<[1], [0], [0], [1], [0, 0, 1, 1], [], []>} : vector<49x64xbf16>, vector<64x64xbf16>, vector<49x64xf32> -> vector<49x64xf32>
    %115 = arith.addf %110, %114 : vector<49x64xf32>
    %116 = vector.extract_strided_slice %99 {offsets = [147, 0], sizes = [49, 64], strides = [1, 1]} : vector<441x64xf32> to vector<49x64xf32>
    %117 = arith.truncf %116 : vector<49x64xf32> to vector<49x64xbf16>
    %c192_59 = arith.constant 192 : index
    %c0_60 = arith.constant 0 : index
    %118 = vector.load %arg8[%c192_59, %c0_60] : memref<576x64xbf16, #tpu.memory_space<vmem>>, vector<64x64xbf16>
    %cst_61 = arith.constant dense<0.000000e+00> : vector<49x64xf32>
    %119 = tpu.matmul %117, %118, %cst_61 {dimension_numbers = #tpu.dot_dimension_numbers<[1], [0], [0], [1], [0, 0, 1, 1], [], []>} : vector<49x64xbf16>, vector<64x64xbf16>, vector<49x64xf32> -> vector<49x64xf32>
    %120 = arith.addf %115, %119 : vector<49x64xf32>
    %121 = vector.extract_strided_slice %99 {offsets = [196, 0], sizes = [49, 64], strides = [1, 1]} : vector<441x64xf32> to vector<49x64xf32>
    %122 = arith.truncf %121 : vector<49x64xf32> to vector<49x64xbf16>
    %c256_62 = arith.constant 256 : index
    %c0_63 = arith.constant 0 : index
    %123 = vector.load %arg8[%c256_62, %c0_63] : memref<576x64xbf16, #tpu.memory_space<vmem>>, vector<64x64xbf16>
    %cst_64 = arith.constant dense<0.000000e+00> : vector<49x64xf32>
    %124 = tpu.matmul %122, %123, %cst_64 {dimension_numbers = #tpu.dot_dimension_numbers<[1], [0], [0], [1], [0, 0, 1, 1], [], []>} : vector<49x64xbf16>, vector<64x64xbf16>, vector<49x64xf32> -> vector<49x64xf32>
    %125 = arith.addf %120, %124 : vector<49x64xf32>
    %126 = vector.extract_strided_slice %99 {offsets = [245, 0], sizes = [49, 64], strides = [1, 1]} : vector<441x64xf32> to vector<49x64xf32>
    %127 = arith.truncf %126 : vector<49x64xf32> to vector<49x64xbf16>
    %c320_65 = arith.constant 320 : index
    %c0_66 = arith.constant 0 : index
    %128 = vector.load %arg8[%c320_65, %c0_66] : memref<576x64xbf16, #tpu.memory_space<vmem>>, vector<64x64xbf16>
    %cst_67 = arith.constant dense<0.000000e+00> : vector<49x64xf32>
    %129 = tpu.matmul %127, %128, %cst_67 {dimension_numbers = #tpu.dot_dimension_numbers<[1], [0], [0], [1], [0, 0, 1, 1], [], []>} : vector<49x64xbf16>, vector<64x64xbf16>, vector<49x64xf32> -> vector<49x64xf32>
    %130 = arith.addf %125, %129 : vector<49x64xf32>
    %131 = vector.extract_strided_slice %99 {offsets = [294, 0], sizes = [49, 64], strides = [1, 1]} : vector<441x64xf32> to vector<49x64xf32>
    %132 = arith.truncf %131 : vector<49x64xf32> to vector<49x64xbf16>
    %c384_68 = arith.constant 384 : index
    %c0_69 = arith.constant 0 : index
    %133 = vector.load %arg8[%c384_68, %c0_69] : memref<576x64xbf16, #tpu.memory_space<vmem>>, vector<64x64xbf16>
    %cst_70 = arith.constant dense<0.000000e+00> : vector<49x64xf32>
    %134 = tpu.matmul %132, %133, %cst_70 {dimension_numbers = #tpu.dot_dimension_numbers<[1], [0], [0], [1], [0, 0, 1, 1], [], []>} : vector<49x64xbf16>, vector<64x64xbf16>, vector<49x64xf32> -> vector<49x64xf32>
    %135 = arith.addf %130, %134 : vector<49x64xf32>
    %136 = vector.extract_strided_slice %99 {offsets = [343, 0], sizes = [49, 64], strides = [1, 1]} : vector<441x64xf32> to vector<49x64xf32>
    %137 = arith.truncf %136 : vector<49x64xf32> to vector<49x64xbf16>
    %c448_71 = arith.constant 448 : index
    %c0_72 = arith.constant 0 : index
    %138 = vector.load %arg8[%c448_71, %c0_72] : memref<576x64xbf16, #tpu.memory_space<vmem>>, vector<64x64xbf16>
    %cst_73 = arith.constant dense<0.000000e+00> : vector<49x64xf32>
    %139 = tpu.matmul %137, %138, %cst_73 {dimension_numbers = #tpu.dot_dimension_numbers<[1], [0], [0], [1], [0, 0, 1, 1], [], []>} : vector<49x64xbf16>, vector<64x64xbf16>, vector<49x64xf32> -> vector<49x64xf32>
    %140 = arith.addf %135, %139 : vector<49x64xf32>
    %141 = vector.extract_strided_slice %99 {offsets = [392, 0], sizes = [49, 64], strides = [1, 1]} : vector<441x64xf32> to vector<49x64xf32>
    %142 = arith.truncf %141 : vector<49x64xf32> to vector<49x64xbf16>
    %c512 = arith.constant 512 : index
    %c0_74 = arith.constant 0 : index
    %143 = vector.load %arg8[%c512, %c0_74] : memref<576x64xbf16, #tpu.memory_space<vmem>>, vector<64x64xbf16>
    %cst_75 = arith.constant dense<0.000000e+00> : vector<49x64xf32>
    %144 = tpu.matmul %142, %143, %cst_75 {dimension_numbers = #tpu.dot_dimension_numbers<[1], [0], [0], [1], [0, 0, 1, 1], [], []>} : vector<49x64xbf16>, vector<64x64xbf16>, vector<49x64xf32> -> vector<49x64xf32>
    %145 = arith.addf %140, %144 : vector<49x64xf32>
    %c0_76 = arith.constant 0 : index
    %c0_77 = arith.constant 0 : index
    %146 = vector.load %arg9[%c0_76, %c0_77] : memref<1x64xf32, #tpu.memory_space<vmem>>, vector<1x64xf32>
    %147 = vector.broadcast %146 : vector<1x64xf32> to vector<49x64xf32>
    %148 = arith.addf %145, %147 : vector<49x64xf32>
    %cst_78 = arith.constant 0.000000e+00 : f32
    %149 = vector.broadcast %cst_78 : f32 to vector<49x64xf32>
    %150 = arith.maximumf %148, %149 : vector<49x64xf32>
    %cst_79 = arith.constant 0.000000e+00 : f32
    %151 = vector.broadcast %cst_79 : f32 to vector<1x512xf32>
    %152 = vector.extract_strided_slice %150 {offsets = [0, 0], sizes = [7, 64], strides = [1, 1]} : vector<49x64xf32> to vector<7x64xf32>
    %153 = arith.truncf %152 : vector<7x64xf32> to vector<7x64xbf16>
    %c0_80 = arith.constant 0 : index
    %c0_81 = arith.constant 0 : index
    %c0_82 = arith.constant 0 : index
    %154 = vector.load %arg10[%c0_80, %c0_81, %c0_82] : memref<7x64x3584xbf16, #tpu.memory_space<vmem>>, vector<1x64x3584xbf16>
    %155 = vector.shape_cast %154 : vector<1x64x3584xbf16> to vector<64x3584xbf16>
    %cst_83 = arith.constant dense<0.000000e+00> : vector<7x3584xf32>
    %156 = tpu.matmul %153, %155, %cst_83 {dimension_numbers = #tpu.dot_dimension_numbers<[1], [0], [0], [1], [0, 0, 1, 1], [], []>} : vector<7x64xbf16>, vector<64x3584xbf16>, vector<7x3584xf32> -> vector<7x3584xf32>
    %157 = vector.extract_strided_slice %156 {offsets = [0, 0], sizes = [1, 512], strides = [1, 1]} : vector<7x3584xf32> to vector<1x512xf32>
    %158 = arith.addf %151, %157 : vector<1x512xf32>
    %159 = vector.extract_strided_slice %156 {offsets = [1, 512], sizes = [1, 512], strides = [1, 1]} : vector<7x3584xf32> to vector<1x512xf32>
    %160 = arith.addf %158, %159 : vector<1x512xf32>
    %161 = vector.extract_strided_slice %156 {offsets = [2, 1024], sizes = [1, 512], strides = [1, 1]} : vector<7x3584xf32> to vector<1x512xf32>
    %162 = arith.addf %160, %161 : vector<1x512xf32>
    %163 = vector.extract_strided_slice %156 {offsets = [3, 1536], sizes = [1, 512], strides = [1, 1]} : vector<7x3584xf32> to vector<1x512xf32>
    %164 = arith.addf %162, %163 : vector<1x512xf32>
    %165 = vector.extract_strided_slice %156 {offsets = [4, 2048], sizes = [1, 512], strides = [1, 1]} : vector<7x3584xf32> to vector<1x512xf32>
    %166 = arith.addf %164, %165 : vector<1x512xf32>
    %167 = vector.extract_strided_slice %156 {offsets = [5, 2560], sizes = [1, 512], strides = [1, 1]} : vector<7x3584xf32> to vector<1x512xf32>
    %168 = arith.addf %166, %167 : vector<1x512xf32>
    %169 = vector.extract_strided_slice %156 {offsets = [6, 3072], sizes = [1, 512], strides = [1, 1]} : vector<7x3584xf32> to vector<1x512xf32>
    %170 = arith.addf %168, %169 : vector<1x512xf32>
    %171 = vector.extract_strided_slice %150 {offsets = [7, 0], sizes = [7, 64], strides = [1, 1]} : vector<49x64xf32> to vector<7x64xf32>
    %172 = arith.truncf %171 : vector<7x64xf32> to vector<7x64xbf16>
    %c1 = arith.constant 1 : index
    %c0_84 = arith.constant 0 : index
    %c0_85 = arith.constant 0 : index
    %173 = vector.load %arg10[%c1, %c0_84, %c0_85] : memref<7x64x3584xbf16, #tpu.memory_space<vmem>>, vector<1x64x3584xbf16>
    %174 = vector.shape_cast %173 : vector<1x64x3584xbf16> to vector<64x3584xbf16>
    %cst_86 = arith.constant dense<0.000000e+00> : vector<7x3584xf32>
    %175 = tpu.matmul %172, %174, %cst_86 {dimension_numbers = #tpu.dot_dimension_numbers<[1], [0], [0], [1], [0, 0, 1, 1], [], []>} : vector<7x64xbf16>, vector<64x3584xbf16>, vector<7x3584xf32> -> vector<7x3584xf32>
    %176 = vector.extract_strided_slice %175 {offsets = [0, 0], sizes = [1, 512], strides = [1, 1]} : vector<7x3584xf32> to vector<1x512xf32>
    %177 = arith.addf %170, %176 : vector<1x512xf32>
    %178 = vector.extract_strided_slice %175 {offsets = [1, 512], sizes = [1, 512], strides = [1, 1]} : vector<7x3584xf32> to vector<1x512xf32>
    %179 = arith.addf %177, %178 : vector<1x512xf32>
    %180 = vector.extract_strided_slice %175 {offsets = [2, 1024], sizes = [1, 512], strides = [1, 1]} : vector<7x3584xf32> to vector<1x512xf32>
    %181 = arith.addf %179, %180 : vector<1x512xf32>
    %182 = vector.extract_strided_slice %175 {offsets = [3, 1536], sizes = [1, 512], strides = [1, 1]} : vector<7x3584xf32> to vector<1x512xf32>
    %183 = arith.addf %181, %182 : vector<1x512xf32>
    %184 = vector.extract_strided_slice %175 {offsets = [4, 2048], sizes = [1, 512], strides = [1, 1]} : vector<7x3584xf32> to vector<1x512xf32>
    %185 = arith.addf %183, %184 : vector<1x512xf32>
    %186 = vector.extract_strided_slice %175 {offsets = [5, 2560], sizes = [1, 512], strides = [1, 1]} : vector<7x3584xf32> to vector<1x512xf32>
    %187 = arith.addf %185, %186 : vector<1x512xf32>
    %188 = vector.extract_strided_slice %175 {offsets = [6, 3072], sizes = [1, 512], strides = [1, 1]} : vector<7x3584xf32> to vector<1x512xf32>
    %189 = arith.addf %187, %188 : vector<1x512xf32>
    %190 = vector.extract_strided_slice %150 {offsets = [14, 0], sizes = [7, 64], strides = [1, 1]} : vector<49x64xf32> to vector<7x64xf32>
    %191 = arith.truncf %190 : vector<7x64xf32> to vector<7x64xbf16>
    %c2 = arith.constant 2 : index
    %c0_87 = arith.constant 0 : index
    %c0_88 = arith.constant 0 : index
    %192 = vector.load %arg10[%c2, %c0_87, %c0_88] : memref<7x64x3584xbf16, #tpu.memory_space<vmem>>, vector<1x64x3584xbf16>
    %193 = vector.shape_cast %192 : vector<1x64x3584xbf16> to vector<64x3584xbf16>
    %cst_89 = arith.constant dense<0.000000e+00> : vector<7x3584xf32>
    %194 = tpu.matmul %191, %193, %cst_89 {dimension_numbers = #tpu.dot_dimension_numbers<[1], [0], [0], [1], [0, 0, 1, 1], [], []>} : vector<7x64xbf16>, vector<64x3584xbf16>, vector<7x3584xf32> -> vector<7x3584xf32>
    %195 = vector.extract_strided_slice %194 {offsets = [0, 0], sizes = [1, 512], strides = [1, 1]} : vector<7x3584xf32> to vector<1x512xf32>
    %196 = arith.addf %189, %195 : vector<1x512xf32>
    %197 = vector.extract_strided_slice %194 {offsets = [1, 512], sizes = [1, 512], strides = [1, 1]} : vector<7x3584xf32> to vector<1x512xf32>
    %198 = arith.addf %196, %197 : vector<1x512xf32>
    %199 = vector.extract_strided_slice %194 {offsets = [2, 1024], sizes = [1, 512], strides = [1, 1]} : vector<7x3584xf32> to vector<1x512xf32>
    %200 = arith.addf %198, %199 : vector<1x512xf32>
    %201 = vector.extract_strided_slice %194 {offsets = [3, 1536], sizes = [1, 512], strides = [1, 1]} : vector<7x3584xf32> to vector<1x512xf32>
    %202 = arith.addf %200, %201 : vector<1x512xf32>
    %203 = vector.extract_strided_slice %194 {offsets = [4, 2048], sizes = [1, 512], strides = [1, 1]} : vector<7x3584xf32> to vector<1x512xf32>
    %204 = arith.addf %202, %203 : vector<1x512xf32>
    %205 = vector.extract_strided_slice %194 {offsets = [5, 2560], sizes = [1, 512], strides = [1, 1]} : vector<7x3584xf32> to vector<1x512xf32>
    %206 = arith.addf %204, %205 : vector<1x512xf32>
    %207 = vector.extract_strided_slice %194 {offsets = [6, 3072], sizes = [1, 512], strides = [1, 1]} : vector<7x3584xf32> to vector<1x512xf32>
    %208 = arith.addf %206, %207 : vector<1x512xf32>
    %209 = vector.extract_strided_slice %150 {offsets = [21, 0], sizes = [7, 64], strides = [1, 1]} : vector<49x64xf32> to vector<7x64xf32>
    %210 = arith.truncf %209 : vector<7x64xf32> to vector<7x64xbf16>
    %c3 = arith.constant 3 : index
    %c0_90 = arith.constant 0 : index
    %c0_91 = arith.constant 0 : index
    %211 = vector.load %arg10[%c3, %c0_90, %c0_91] : memref<7x64x3584xbf16, #tpu.memory_space<vmem>>, vector<1x64x3584xbf16>
    %212 = vector.shape_cast %211 : vector<1x64x3584xbf16> to vector<64x3584xbf16>
    %cst_92 = arith.constant dense<0.000000e+00> : vector<7x3584xf32>
    %213 = tpu.matmul %210, %212, %cst_92 {dimension_numbers = #tpu.dot_dimension_numbers<[1], [0], [0], [1], [0, 0, 1, 1], [], []>} : vector<7x64xbf16>, vector<64x3584xbf16>, vector<7x3584xf32> -> vector<7x3584xf32>
    %214 = vector.extract_strided_slice %213 {offsets = [0, 0], sizes = [1, 512], strides = [1, 1]} : vector<7x3584xf32> to vector<1x512xf32>
    %215 = arith.addf %208, %214 : vector<1x512xf32>
    %216 = vector.extract_strided_slice %213 {offsets = [1, 512], sizes = [1, 512], strides = [1, 1]} : vector<7x3584xf32> to vector<1x512xf32>
    %217 = arith.addf %215, %216 : vector<1x512xf32>
    %218 = vector.extract_strided_slice %213 {offsets = [2, 1024], sizes = [1, 512], strides = [1, 1]} : vector<7x3584xf32> to vector<1x512xf32>
    %219 = arith.addf %217, %218 : vector<1x512xf32>
    %220 = vector.extract_strided_slice %213 {offsets = [3, 1536], sizes = [1, 512], strides = [1, 1]} : vector<7x3584xf32> to vector<1x512xf32>
    %221 = arith.addf %219, %220 : vector<1x512xf32>
    %222 = vector.extract_strided_slice %213 {offsets = [4, 2048], sizes = [1, 512], strides = [1, 1]} : vector<7x3584xf32> to vector<1x512xf32>
    %223 = arith.addf %221, %222 : vector<1x512xf32>
    %224 = vector.extract_strided_slice %213 {offsets = [5, 2560], sizes = [1, 512], strides = [1, 1]} : vector<7x3584xf32> to vector<1x512xf32>
    %225 = arith.addf %223, %224 : vector<1x512xf32>
    %226 = vector.extract_strided_slice %213 {offsets = [6, 3072], sizes = [1, 512], strides = [1, 1]} : vector<7x3584xf32> to vector<1x512xf32>
    %227 = arith.addf %225, %226 : vector<1x512xf32>
    %228 = vector.extract_strided_slice %150 {offsets = [28, 0], sizes = [7, 64], strides = [1, 1]} : vector<49x64xf32> to vector<7x64xf32>
    %229 = arith.truncf %228 : vector<7x64xf32> to vector<7x64xbf16>
    %c4 = arith.constant 4 : index
    %c0_93 = arith.constant 0 : index
    %c0_94 = arith.constant 0 : index
    %230 = vector.load %arg10[%c4, %c0_93, %c0_94] : memref<7x64x3584xbf16, #tpu.memory_space<vmem>>, vector<1x64x3584xbf16>
    %231 = vector.shape_cast %230 : vector<1x64x3584xbf16> to vector<64x3584xbf16>
    %cst_95 = arith.constant dense<0.000000e+00> : vector<7x3584xf32>
    %232 = tpu.matmul %229, %231, %cst_95 {dimension_numbers = #tpu.dot_dimension_numbers<[1], [0], [0], [1], [0, 0, 1, 1], [], []>} : vector<7x64xbf16>, vector<64x3584xbf16>, vector<7x3584xf32> -> vector<7x3584xf32>
    %233 = vector.extract_strided_slice %232 {offsets = [0, 0], sizes = [1, 512], strides = [1, 1]} : vector<7x3584xf32> to vector<1x512xf32>
    %234 = arith.addf %227, %233 : vector<1x512xf32>
    %235 = vector.extract_strided_slice %232 {offsets = [1, 512], sizes = [1, 512], strides = [1, 1]} : vector<7x3584xf32> to vector<1x512xf32>
    %236 = arith.addf %234, %235 : vector<1x512xf32>
    %237 = vector.extract_strided_slice %232 {offsets = [2, 1024], sizes = [1, 512], strides = [1, 1]} : vector<7x3584xf32> to vector<1x512xf32>
    %238 = arith.addf %236, %237 : vector<1x512xf32>
    %239 = vector.extract_strided_slice %232 {offsets = [3, 1536], sizes = [1, 512], strides = [1, 1]} : vector<7x3584xf32> to vector<1x512xf32>
    %240 = arith.addf %238, %239 : vector<1x512xf32>
    %241 = vector.extract_strided_slice %232 {offsets = [4, 2048], sizes = [1, 512], strides = [1, 1]} : vector<7x3584xf32> to vector<1x512xf32>
    %242 = arith.addf %240, %241 : vector<1x512xf32>
    %243 = vector.extract_strided_slice %232 {offsets = [5, 2560], sizes = [1, 512], strides = [1, 1]} : vector<7x3584xf32> to vector<1x512xf32>
    %244 = arith.addf %242, %243 : vector<1x512xf32>
    %245 = vector.extract_strided_slice %232 {offsets = [6, 3072], sizes = [1, 512], strides = [1, 1]} : vector<7x3584xf32> to vector<1x512xf32>
    %246 = arith.addf %244, %245 : vector<1x512xf32>
    %247 = vector.extract_strided_slice %150 {offsets = [35, 0], sizes = [7, 64], strides = [1, 1]} : vector<49x64xf32> to vector<7x64xf32>
    %248 = arith.truncf %247 : vector<7x64xf32> to vector<7x64xbf16>
    %c5 = arith.constant 5 : index
    %c0_96 = arith.constant 0 : index
    %c0_97 = arith.constant 0 : index
    %249 = vector.load %arg10[%c5, %c0_96, %c0_97] : memref<7x64x3584xbf16, #tpu.memory_space<vmem>>, vector<1x64x3584xbf16>
    %250 = vector.shape_cast %249 : vector<1x64x3584xbf16> to vector<64x3584xbf16>
    %cst_98 = arith.constant dense<0.000000e+00> : vector<7x3584xf32>
    %251 = tpu.matmul %248, %250, %cst_98 {dimension_numbers = #tpu.dot_dimension_numbers<[1], [0], [0], [1], [0, 0, 1, 1], [], []>} : vector<7x64xbf16>, vector<64x3584xbf16>, vector<7x3584xf32> -> vector<7x3584xf32>
    %252 = vector.extract_strided_slice %251 {offsets = [0, 0], sizes = [1, 512], strides = [1, 1]} : vector<7x3584xf32> to vector<1x512xf32>
    %253 = arith.addf %246, %252 : vector<1x512xf32>
    %254 = vector.extract_strided_slice %251 {offsets = [1, 512], sizes = [1, 512], strides = [1, 1]} : vector<7x3584xf32> to vector<1x512xf32>
    %255 = arith.addf %253, %254 : vector<1x512xf32>
    %256 = vector.extract_strided_slice %251 {offsets = [2, 1024], sizes = [1, 512], strides = [1, 1]} : vector<7x3584xf32> to vector<1x512xf32>
    %257 = arith.addf %255, %256 : vector<1x512xf32>
    %258 = vector.extract_strided_slice %251 {offsets = [3, 1536], sizes = [1, 512], strides = [1, 1]} : vector<7x3584xf32> to vector<1x512xf32>
    %259 = arith.addf %257, %258 : vector<1x512xf32>
    %260 = vector.extract_strided_slice %251 {offsets = [4, 2048], sizes = [1, 512], strides = [1, 1]} : vector<7x3584xf32> to vector<1x512xf32>
    %261 = arith.addf %259, %260 : vector<1x512xf32>
    %262 = vector.extract_strided_slice %251 {offsets = [5, 2560], sizes = [1, 512], strides = [1, 1]} : vector<7x3584xf32> to vector<1x512xf32>
    %263 = arith.addf %261, %262 : vector<1x512xf32>
    %264 = vector.extract_strided_slice %251 {offsets = [6, 3072], sizes = [1, 512], strides = [1, 1]} : vector<7x3584xf32> to vector<1x512xf32>
    %265 = arith.addf %263, %264 : vector<1x512xf32>
    %266 = vector.extract_strided_slice %150 {offsets = [42, 0], sizes = [7, 64], strides = [1, 1]} : vector<49x64xf32> to vector<7x64xf32>
    %267 = arith.truncf %266 : vector<7x64xf32> to vector<7x64xbf16>
    %c6 = arith.constant 6 : index
    %c0_99 = arith.constant 0 : index
    %c0_100 = arith.constant 0 : index
    %268 = vector.load %arg10[%c6, %c0_99, %c0_100] : memref<7x64x3584xbf16, #tpu.memory_space<vmem>>, vector<1x64x3584xbf16>
    %269 = vector.shape_cast %268 : vector<1x64x3584xbf16> to vector<64x3584xbf16>
    %cst_101 = arith.constant dense<0.000000e+00> : vector<7x3584xf32>
    %270 = tpu.matmul %267, %269, %cst_101 {dimension_numbers = #tpu.dot_dimension_numbers<[1], [0], [0], [1], [0, 0, 1, 1], [], []>} : vector<7x64xbf16>, vector<64x3584xbf16>, vector<7x3584xf32> -> vector<7x3584xf32>
    %271 = vector.extract_strided_slice %270 {offsets = [0, 0], sizes = [1, 512], strides = [1, 1]} : vector<7x3584xf32> to vector<1x512xf32>
    %272 = arith.addf %265, %271 : vector<1x512xf32>
    %273 = vector.extract_strided_slice %270 {offsets = [1, 512], sizes = [1, 512], strides = [1, 1]} : vector<7x3584xf32> to vector<1x512xf32>
    %274 = arith.addf %272, %273 : vector<1x512xf32>
    %275 = vector.extract_strided_slice %270 {offsets = [2, 1024], sizes = [1, 512], strides = [1, 1]} : vector<7x3584xf32> to vector<1x512xf32>
    %276 = arith.addf %274, %275 : vector<1x512xf32>
    %277 = vector.extract_strided_slice %270 {offsets = [3, 1536], sizes = [1, 512], strides = [1, 1]} : vector<7x3584xf32> to vector<1x512xf32>
    %278 = arith.addf %276, %277 : vector<1x512xf32>
    %279 = vector.extract_strided_slice %270 {offsets = [4, 2048], sizes = [1, 512], strides = [1, 1]} : vector<7x3584xf32> to vector<1x512xf32>
    %280 = arith.addf %278, %279 : vector<1x512xf32>
    %281 = vector.extract_strided_slice %270 {offsets = [5, 2560], sizes = [1, 512], strides = [1, 1]} : vector<7x3584xf32> to vector<1x512xf32>
    %282 = arith.addf %280, %281 : vector<1x512xf32>
    %283 = vector.extract_strided_slice %270 {offsets = [6, 3072], sizes = [1, 512], strides = [1, 1]} : vector<7x3584xf32> to vector<1x512xf32>
    %284 = arith.addf %282, %283 : vector<1x512xf32>
    %c0_102 = arith.constant 0 : index
    %c0_103 = arith.constant 0 : index
    %285 = vector.load %arg11[%c0_102, %c0_103] : memref<1x512xf32, #tpu.memory_space<vmem>>, vector<1x512xf32>
    %286 = arith.addf %284, %285 : vector<1x512xf32>
    %cst_104 = arith.constant 0.000000e+00 : f32
    %287 = vector.broadcast %cst_104 : f32 to vector<1x512xf32>
    %288 = arith.maximumf %286, %287 : vector<1x512xf32>
    %289 = vector.shape_cast %288 : vector<1x512xf32> to vector<1x1x512xf32>
    %c0_105 = arith.constant 0 : index
    %c0_106 = arith.constant 0 : index
    %c0_107 = arith.constant 0 : index
    %290 = vector.load %arg12[%c0_105, %c0_106, %c0_107] : memref<1x1x512xf32, #tpu.memory_space<vmem>>, vector<1x1x512xf32>
    tpu.vector_store %arg12[%c0_105, %c0_106, %c0_107], %289 {strides = array<i32>} : memref<1x1x512xf32, #tpu.memory_space<vmem>>, vector<1x1x512xf32>,
    return
  }
  func.func @transform_0(%arg0: i32) -> (i32, i32) {
    %c0_i32 = arith.constant 0 : i32
    %c0_i32_0 = arith.constant 0 : i32
    return %arg0, %c0_i32 : i32, i32
  }
  func.func @transform_1(%arg0: i32) -> (i32, i32) {
    %c0_i32 = arith.constant 0 : i32
    %c0_i32_0 = arith.constant 0 : i32
    %c0_i32_1 = arith.constant 0 : i32
    return %c0_i32, %c0_i32_0 : i32, i32
  }
  func.func @transform_2(%arg0: i32) -> (i32, i32) {
    %c0_i32 = arith.constant 0 : i32
    %c0_i32_0 = arith.constant 0 : i32
    %c0_i32_1 = arith.constant 0 : i32
    return %c0_i32, %c0_i32_0 : i32, i32
  }
  func.func @transform_3(%arg0: i32) -> (i32, i32) {
    %c0_i32 = arith.constant 0 : i32
    %c0_i32_0 = arith.constant 0 : i32
    %c0_i32_1 = arith.constant 0 : i32
    return %c0_i32, %c0_i32_0 : i32, i32
  }
  func.func @transform_4(%arg0: i32) -> (i32, i32) {
    %c0_i32 = arith.constant 0 : i32
    %c0_i32_0 = arith.constant 0 : i32
    %c0_i32_1 = arith.constant 0 : i32
    return %c0_i32, %c0_i32_0 : i32, i32
  }
  func.func @transform_5(%arg0: i32) -> (i32, i32) {
    %c0_i32 = arith.constant 0 : i32
    %c0_i32_0 = arith.constant 0 : i32
    %c0_i32_1 = arith.constant 0 : i32
    return %c0_i32, %c0_i32_0 : i32, i32
  }
  func.func @transform_6(%arg0: i32) -> (i32, i32) {
    %c0_i32 = arith.constant 0 : i32
    %c0_i32_0 = arith.constant 0 : i32
    %c0_i32_1 = arith.constant 0 : i32
    return %c0_i32, %c0_i32_0 : i32, i32
  }
  func.func @transform_7(%arg0: i32) -> (i32, i32) {
    %c0_i32 = arith.constant 0 : i32
    %c0_i32_0 = arith.constant 0 : i32
    %c0_i32_1 = arith.constant 0 : i32
    return %c0_i32, %c0_i32_0 : i32, i32
  }
  func.func @transform_8(%arg0: i32) -> (i32, i32) {
    %c0_i32 = arith.constant 0 : i32
    %c0_i32_0 = arith.constant 0 : i32
    %c0_i32_1 = arith.constant 0 : i32
    return %c0_i32, %c0_i32_0 : i32, i32
  }
  func.func @transform_9(%arg0: i32) -> (i32, i32, i32) {
    %c0_i32 = arith.constant 0 : i32
    %c0_i32_0 = arith.constant 0 : i32
    %c0_i32_1 = arith.constant 0 : i32
    %c0_i32_2 = arith.constant 0 : i32
    return %c0_i32, %c0_i32_0, %c0_i32_1 : i32, i32, i32
  }
  func.func @transform_10(%arg0: i32) -> (i32, i32) {
    %c0_i32 = arith.constant 0 : i32
    %c0_i32_0 = arith.constant 0 : i32
    %c0_i32_1 = arith.constant 0 : i32
    return %c0_i32, %c0_i32_0 : i32, i32
  }
  func.func @transform_11(%arg0: i32) -> (i32, i32, i32) {
    %c0_i32 = arith.constant 0 : i32
    %c0_i32_0 = arith.constant 0 : i32
    %c0_i32_1 = arith.constant 0 : i32
    return %arg0, %c0_i32, %c0_i32_0 : i32, i32, i32
  }
}

</mosaic_0001>

<bundles_post_ra>
// kernel: convnet_forward.1
= control target key start
LH: loop header
LB: loop body
LE: loop exit
PB: predicated region body
PF: predicated region fallthrough
CT: control target
= control target key end

     0   :  { %s23996_s17 = smov 0   ;;  %s29208_s0 = inlined_call_operand.vmem [shape: bf16[800,256], index: 0, kind: input, shape index: {}]   ;;  %s29209_s1 = inlined_call_operand.vmem [shape: bf16[1296,400], index: 1, kind: input, shape index: {}]   ;;  %s29210_s2 = inlined_call_operand.vmem [shape: bf16[441,81], index: 2, kind: input, shape index: {}]   ;;  %s29211_s3 = inlined_call_operand.vmem [shape: bf16[256,32], index: 3, kind: input, shape index: {}]   ;;  %s29212_s4 = inlined_call_operand.vmem [shape: f32[1,32], index: 4, kind: input, shape index: {}]   ;;  %s29213_s5 = inlined_call_operand.vmem [shape: bf16[512,64], index: 5, kind: input, shape index: {}]   ;;  %s29214_s6 = inlined_call_operand.vmem [shape: f32[1,64], index: 6, kind: input, shape index: {}]   ;;  %s29215_s7 = inlined_call_operand.vmem [shape: bf16[576,64], index: 7, kind: input, shape index: {}]   ;;  %s29216_s8 = inlined_call_operand.vmem [shape: f32[1,64], index: 8, kind: input, shape index: {}]   ;;  %s29217_s9 = inlined_call_operand.vmem [shape: bf16[7,64,3584], index: 9, kind: input, shape index: {}]   ;;  %s29218_s10 = inlined_call_operand.vmem [shape: f32[1,512], index: 10, kind: input, shape index: {}]   ;;  %s29219_s11 = inlined_call_operand.vmem [shape: f32[2,1,512], index: 11, kind: output, shape index: {}]  }
   0x1 LB: > { %s24002_s18 = sadd.s32 4294967295, %s23932_s17   ;;  %p18630_p0 = scmp.ge.s32.totalorder %s23932_s17, 1  ;;  %s23932_s17 = sphi %s23996_s17, %s21_s17  }
   0x2   : > { %p339_p1 = scmp.lt.s32.totalorder %s23932_s17, 3 }
   0x4   : > { %p340_p2 = pnand %p18630_p0, %p339_p1 }
   0x6   : > { %343 = sbr.rel (%p340_p2) target bundleno = 3978 (0xf8a), region = 64 }
   0xd   : > { %v22075_v0 = vld [vmem:[%s29211_s3] sm:$0xff]   ;;  %v29220_v1 = vmov 0   ;;  %s379_s21 = smul.u32 50, %s24002_s18  ;;  %v22076_v2 = vld [vmem:[%s29211_s3 + $0x8] sm:$0xff]   ;;  %v22077_v3 = vld [vmem:[%s29211_s3 + $0x10] sm:$0xff]   ;;  %vm2997_vm0 = vcmask 130048  }
   0xe   : > { %826 = vmatprep.subr.bf16.mxu0 %v29220_v1  ;;  %3241 = vmatprep.subr.bf16.mxu1 %v29220_v1  ;;  %v22078_v4 = vld [vmem:[%s29211_s3 + $0x18] sm:$0xff]   ;;  %v22079_v5 = vld [vmem:[%s29211_s3 + $0x20] sm:$0xff]   ;;  %v22080_v7 = vld [vmem:[%s29211_s3 + $0x28] sm:$0xff]   ;;  %vm4623_vm1 = vsmask.f32 7424  ;;  %vm4682_vm2 = vcmask 261120  }
   0xf   : > { %827 = vmatpush1.bf16.msra.mxu0 %v22075_v0  ;;  %p380_p3 = scmp.lt.s32.totalorder %s379_s21, 99  ;;  %v22081_v8 = vld [vmem:[%s29211_s3 + $0x30] sm:$0xff]   ;;  %v22082_v9 = vld [vmem:[%s29211_s3 + $0x38] sm:$0xff]   ;;  %v22083_v10 = vld [vmem:[%s29211_s3 + $0x40] sm:$0xff]   ;;  %vm4907_vm3 = vcmask 1046528   ;;  %vm5241_vm5 = vcmask 1045504  }
  0x10   : > { %828 = vmatprep.subr.bf16.mxu0 %v29220_v1  ;;  %v22084_v11 = vld [vmem:[%s29211_s3 + $0x48] sm:$0xff]   ;;  %v22085_v12 = vld [vmem:[%s29211_s3 + $0x50] sm:$0xff]   ;;  %v22086_v13 = vld [vmem:[%s29211_s3 + $0x58] sm:$0xff]   ;;  %vm5050_vm4 = vsmask.f32 6400  ;;  %vm5575_vm7 = vcmask 1044480  }
  0x11   : > { %s29259_s21 = smov (!%p380_p3, %s379_s21), 99  ;;  %v22087_v14 = vld [vmem:[%s29211_s3 + $0x60] sm:$0xff]   ;;  %v22088_v15 = vld [vmem:[%s29211_s3 + $0x68] sm:$0xff]   ;;  %v22089_v16 = vld [vmem:[%s29211_s3 + $0x70] sm:$0xff]   ;;  %vm5384_vm6 = vsmask.f32 5376 }
  0x12   : > { %s20920_s28 = sshll.u32 %s29259_s21, 3  ;;  %v22090_v17 = vld [vmem:[%s29211_s3 + $0x78] sm:$0xff]   ;;  %v24118_v55 = vld [vmem:[%s29212_s4] ss:$0 sm:$0xff]  ;;  %v22153_v59 = vld [vmem:[%s29209_s1 + $0x4] ss:$16 sps:$4 sm:$0xff]  }
  0x13   : > { %829 = vmatpush1.bf16.msra.mxu0 %v22076_v2  ;;  %s24030_s14 = scalar_lea.vmem %s29208_s0, %s20920_s28  ;;  %3273 = vmatprep.mubr.bf16.mxu1 %v22153_v59  ;;  %vm5718_vm8 = vsmask.f32 4352  ;;  %vm7428_vm9 = vcmask 662528   ;;  %vm7513_vm10 = vcmask 1040384   ;;  %vm7854_vm11 = vcmask 523264   ;;  %p386_p4 = scmp.lt.s32.totalorder %s24002_s18, 1 }
  0x14   : > { %830 = vmatprep.subr.bf16.mxu0 %v29220_v1  ;;  %v22093_v6 = vld [vmem:[%s24030_s14 + $0x4] ss:$8 sps:$4 sm:$0xff]   ;;  %v22091_v18 = vld [vmem:[%s24030_s14] ss:$8 sps:$4 sm:$0xff]   ;;  %v22094_v19 = vld [vmem:[%s24030_s14 + $0x14] ss:$8 sps:$4 sm:$0xff]  }
  0x15   : > { %858 = vmatprep.mubr.bf16.mxu0 %v22093_v6  ;;  %v22096_v20 = vld [vmem:[%s24030_s14 + $0x10] ss:$8 sps:$4 sm:$0xff]   ;;  %v22097_v21 = vld [vmem:[%s24030_s14 + $0x24] ss:$8 sps:$4 sm:$0xff]   ;;  %v22099_v22 = vld [vmem:[%s24030_s14 + $0x20] ss:$8 sps:$4 sm:$0xff]  }
  0x16   : > { %v22100_v23 = vld [vmem:[%s24030_s14 + $0x34] ss:$8 sps:$4 sm:$0xff]   ;;  %v22102_v24 = vld [vmem:[%s24030_s14 + $0x30] ss:$8 sps:$4 sm:$0xff]   ;;  %v22103_v25 = vld [vmem:[%s24030_s14 + $0x44] ss:$8 sps:$4 sm:$0xff]  }
  0x17   : > { %831 = vmatpush1.bf16.msra.mxu0 %v22077_v3  ;;  %v22105_v26 = vld [vmem:[%s24030_s14 + $0x40] ss:$8 sps:$4 sm:$0xff]   ;;  %v22106_v27 = vld [vmem:[%s24030_s14 + $0x54] ss:$8 sps:$4 sm:$0xff]   ;;  %v22108_v28 = vld [vmem:[%s24030_s14 + $0x50] ss:$8 sps:$4 sm:$0xff]  }
  0x18   : > { %832 = vmatprep.subr.bf16.mxu0 %v29220_v1  ;;  %v22109_v29 = vld [vmem:[%s24030_s14 + $0x64] ss:$8 sps:$4 sm:$0xff]   ;;  %v22111_v30 = vld [vmem:[%s24030_s14 + $0x60] ss:$8 sps:$4 sm:$0xff]   ;;  %v22112_v31 = vld [vmem:[%s24030_s14 + $0x74] ss:$8 sps:$4 sm:$0xff]  }
  0x19   : > { %v22114_v32 = vld [vmem:[%s24030_s14 + $0x70] ss:$8 sps:$4 sm:$0xff]   ;;  %v22115_v33 = vld [vmem:[%s24030_s14 + $0x84] ss:$8 sps:$4 sm:$0xff]   ;;  %v22117_v34 = vld [vmem:[%s24030_s14 + $0x80] ss:$8 sps:$4 sm:$0xff]  }
  0x1a   : > { %v22118_v35 = vld [vmem:[%s24030_s14 + $0x94] ss:$8 sps:$4 sm:$0xff]   ;;  %v22120_v36 = vld [vmem:[%s24030_s14 + $0x90] ss:$8 sps:$4 sm:$0xff]   ;;  %v22121_v37 = vld [vmem:[%s24030_s14 + $0xa4] ss:$8 sps:$4 sm:$0xff]  }
  0x1b   : > { %833 = vmatpush1.bf16.msra.mxu0 %v22078_v4  ;;  %v22123_v38 = vld [vmem:[%s24030_s14 + $0xa0] ss:$8 sps:$4 sm:$0xff]   ;;  %v22124_v39 = vld [vmem:[%s24030_s14 + $0xb4] ss:$8 sps:$4 sm:$0xff]   ;;  %v22126_v40 = vld [vmem:[%s24030_s14 + $0xb0] ss:$8 sps:$4 sm:$0xff]  }
  0x1c   : > { %834 = vmatprep.subr.bf16.mxu0 %v29220_v1  ;;  %v22127_v41 = vld [vmem:[%s24030_s14 + $0xc4] ss:$8 sps:$4 sm:$0xff]   ;;  %v22129_v42 = vld [vmem:[%s24030_s14 + $0xc0] ss:$8 sps:$4 sm:$0xff]   ;;  %v22130_v43 = vld [vmem:[%s24030_s14 + $0xd4] ss:$8 sps:$4 sm:$0xff]  }
  0x1d   : > { %v22132_v44 = vld [vmem:[%s24030_s14 + $0xd0] ss:$8 sps:$4 sm:$0xff]   ;;  %v22133_v45 = vld [vmem:[%s24030_s14 + $0xe4] ss:$8 sps:$4 sm:$0xff]   ;;  %v22135_v46 = vld [vmem:[%s24030_s14 + $0xe0] ss:$8 sps:$4 sm:$0xff]  }
  0x1e   : > { %v22136_v47 = vld [vmem:[%s24030_s14 + $0xf4] ss:$8 sps:$4 sm:$0xff]   ;;  %v22138_v48 = vld [vmem:[%s24030_s14 + $0xf0] ss:$8 sps:$4 sm:$0xff]   ;;  %v22139_v49 = vld [vmem:[%s24030_s14 + $0x104] ss:$8 sps:$4 sm:$0xff]  }
  0x1f   : > { %835 = vmatpush1.bf16.msra.mxu0 %v22079_v5  ;;  %v22141_v50 = vld [vmem:[%s24030_s14 + $0x100] ss:$8 sps:$4 sm:$0xff]   ;;  %v22142_v51 = vld [vmem:[%s24030_s14 + $0x114] ss:$8 sps:$4 sm:$0xff]   ;;  %v22144_v52 = vld [vmem:[%s24030_s14 + $0x110] ss:$8 sps:$4 sm:$0xff]  }
  0x20   : > { %836 = vmatprep.subr.bf16.mxu0 %v29220_v1  ;;  %v22145_v53 = vld [vmem:[%s24030_s14 + $0x124] ss:$8 sps:$4 sm:$0xff]   ;;  %v22147_v54 = vld [vmem:[%s24030_s14 + $0x120] ss:$8 sps:$4 sm:$0xff]   ;;  %v22148_v63 = vld [vmem:[%s24030_s14 + $0x134] ss:$8 sps:$4 sm:$0xff]  }
  0x21   : > { %v22150_v4 = vld [vmem:[%s24030_s14 + $0x130] ss:$8 sps:$4 sm:$0xff]   ;;  %s29261_s18 = smov (!%p386_p4, %s24002_s18), 1 }
  0x22   : > { %s18633_s20 = sshll.u32 %s29261_s18, 2 }
  0x23   : > { %837 = vmatpush1.bf16.msra.mxu0 %v22080_v7  ;;  %s389_s22 = scalar_lea.vmem %s29219_s11, %s18633_s20 }
  0x24   : > { %838 = vmatprep.subr.bf16.mxu0 %v29220_v1 }
  0x27   : > { %839 = vmatpush1.bf16.msra.mxu0 %v22081_v8 }
  0x28   : > { %840 = vmatprep.subr.bf16.mxu0 %v29220_v1 }
  0x2b   : > { %841 = vmatpush1.bf16.msra.mxu0 %v22082_v9 }
  0x2c   : > { %842 = vmatprep.subr.bf16.mxu0 %v29220_v1 }
  0x2f   : > { %843 = vmatpush1.bf16.msra.mxu0 %v22083_v10 }
  0x30   : > { %844 = vmatprep.subr.bf16.mxu0 %v29220_v1 }
  0x33   : > { %845 = vmatpush1.bf16.msra.mxu0 %v22084_v11 }
  0x34   : > { %846 = vmatprep.subr.bf16.mxu0 %v29220_v1 }
  0x37   : > { %847 = vmatpush1.bf16.msra.mxu0 %v22085_v12 }
  0x38   : > { %848 = vmatprep.subr.bf16.mxu0 %v29220_v1 }
  0x3b   : > { %849 = vmatpush1.bf16.msra.mxu0 %v22086_v13 }
  0x3c   : > { %850 = vmatprep.subr.bf16.mxu0 %v29220_v1 }
  0x3f   : > { %851 = vmatpush1.bf16.msra.mxu0 %v22087_v14 }
  0x40   : > { %852 = vmatprep.subr.bf16.mxu0 %v29220_v1 }
  0x43   : > { %853 = vmatpush1.bf16.msra.mxu0 %v22088_v15 }
  0x44   : > { %854 = vmatprep.subr.bf16.mxu0 %v29220_v1 }
  0x47   : > { %855 = vmatpush1.bf16.msra.mxu0 %v22089_v16 }
  0x48   : > { %856 = vmatprep.subr.bf16.mxu0 %v29220_v1 }
  0x4b   : > { %857 = vmatpush1.bf16.msra.mxu0 %v22090_v17 }
  0x4e   : > { %859 = vmatmul.mubr.bf16.vlgmr.msra.gmra.mrb[0].mxu0 %v22091_v18 }
  0x4f   : > { %866 = vmatprep.mubr.bf16.mxu0 %v22094_v19 }
  0x56   : > { %867 = vmatmul.mubr.bf16.gmra.mrb[4].mxu0 %v22096_v20 }
  0x57   : > { %874 = vmatprep.mubr.bf16.mxu0 %v22097_v21 }
  0x5e   : > { %875 = vmatmul.mubr.bf16.gmra.mrb[8].mxu0 %v22099_v22 }
  0x5f   : > { %882 = vmatprep.mubr.bf16.mxu0 %v22100_v23 }
  0x66   : > { %883 = vmatmul.mubr.bf16.gmra.mrb[12].mxu0 %v22102_v24 }
  0x67   : > { %890 = vmatprep.mubr.bf16.mxu0 %v22103_v25 }
  0x6e   : > { %891 = vmatmul.mubr.bf16.gmra.mrb[16].mxu0 %v22105_v26 }
  0x6f   : > { %898 = vmatprep.mubr.bf16.mxu0 %v22106_v27 }
  0x76   : > { %899 = vmatmul.mubr.bf16.gmra.mrb[20].mxu0 %v22108_v28 }
  0x77   : > { %906 = vmatprep.mubr.bf16.mxu0 %v22109_v29 }
  0x7e   : > { %907 = vmatmul.mubr.bf16.gmra.mrb[24].mxu0 %v22111_v30 }
  0x7f   : > { %914 = vmatprep.mubr.bf16.mxu0 %v22112_v31 }
  0x86   : > { %915 = vmatmul.mubr.bf16.gmra.mrb[28].mxu0 %v22114_v32 }
  0x87   : > { %922 = vmatprep.mubr.bf16.mxu0 %v22115_v33 }
  0x8e   : > { %923 = vmatmul.mubr.bf16.gmra.mrb[32].mxu0 %v22117_v34 }
  0x8f   : > { %930 = vmatprep.mubr.bf16.mxu0 %v22118_v35 }
  0x96   : > { %931 = vmatmul.mubr.bf16.gmra.mrb[36].mxu0 %v22120_v36 }
  0x97   : > { %938 = vmatprep.mubr.bf16.mxu0 %v22121_v37 }
  0x9e   : > { %939 = vmatmul.mubr.bf16.gmra.mrb[40].mxu0 %v22123_v38 }
  0x9f   : > { %946 = vmatprep.mubr.bf16.mxu0 %v22124_v39 }
  0xa6   : > { %947 = vmatmul.mubr.bf16.gmra.mrb[44].mxu0 %v22126_v40 }
  0xa7   : > { %954 = vmatprep.mubr.bf16.mxu0 %v22127_v41 }
  0xae   : > { %955 = vmatmul.mubr.bf16.gmra.mrb[48].mxu0 %v22129_v42 }
  0xaf   : > { %962 = vmatprep.mubr.bf16.mxu0 %v22130_v43 }
  0xb6   : > { %963 = vmatmul.mubr.bf16.gmra.mrb[52].mxu0 %v22132_v44 }
  0xb7   : > { %970 = vmatprep.mubr.bf16.mxu0 %v22133_v45 }
  0xbe   : > { %971 = vmatmul.mubr.bf16.gmra.mrb[56].mxu0 %v22135_v46 }
  0xbf   : > { %978 = vmatprep.mubr.bf16.mxu0 %v22136_v47 }
  0xc6   : > { %979 = vmatmul.mubr.bf16.gmra.mrb[60].mxu0 %v22138_v48 }
  0xc7   : > { %986 = vmatprep.mubr.bf16.mxu0 %v22139_v49 }
  0xce   : > { %987 = vmatmul.mubr.bf16.gmra.mrb[64].mxu0 %v22141_v50 }
  0xcf   : > { %994 = vmatprep.mubr.bf16.mxu0 %v22142_v51 }
  0xd6   : > { %995 = vmatmul.mubr.bf16.gmra.mrb[68].mxu0 %v22144_v52 }
  0xd7   : > { %1002 = vmatprep.mubr.bf16.mxu0 %v22145_v53 }
  0xde   : > { %1003 = vmatmul.mubr.bf16.gmra.mrb[72].mxu0 %v22147_v54 }
  0xdf   : > { %1010 = vmatprep.mubr.bf16.mxu0 %v22148_v63 }
  0xe6   : > { %1011 = vmatmul.mubr.bf16.gmra.mrb[76].mxu0 %v22150_v4 }
 0x121   : > { %v860_v56 = vpop.f32.mrb[0].mxu0 }
 0x122   : > { %v861_v57 = vadd.f32 %v24118_v55, %v860_v56  ;;  %v862_v58 = vpop.f32.mrb[1].mxu0 }
 0x123   : > { %v863_v60 = vpop.f32.mrb[2].mxu0 }
 0x124   : > { %v864_v61 = vadd.f32 %v24118_v55, %v863_v60  ;;  %v865_v62 = vpop.f32.mrb[3].mxu0  ;;  %v1059_v0 = vmax.f32 %v861_v57, 0.0 }
 0x126   : > { %v1060_v2 = vmax.f32 %v864_v61, 0.0 }
 0x128   : > { %v1433_v3 = vpack.c.bf16 %v1060_v2, %v1059_v0 }
 0x129   : > { %v868_v5 = vpop.f32.mrb[4].mxu0 }
 0x12a   : > { %v869_v6 = vadd.f32 %v24118_v55, %v868_v5  ;;  %v870_v7 = vpop.f32.mrb[5].mxu0  ;;  %3242 = vmatpush1.bf16.msra.mxu1 %v1433_v3 }
 0x12b   : > { %v871_v8 = vpop.f32.mrb[6].mxu0  ;;  %3243 = vmatprep.subr.bf16.mxu1 %v29220_v1 }
 0x12c   : > { %v872_v9 = vadd.f32 %v24118_v55, %v871_v8  ;;  %v873_v10 = vpop.f32.mrb[7].mxu0  ;;  %v1061_v11 = vmax.f32 %v869_v6, 0.0 }
 0x12e   : > { %v1062_v12 = vmax.f32 %v872_v9, 0.0 }
 0x130   : > { %v1434_v13 = vpack.c.bf16 %v1062_v12, %v1061_v11  ;;  %v22178_v12 = vld [vmem:[%s24030_s14 + $0x144] ss:$8 sps:$4 sm:$0xff]  }
 0x131   : > { %v876_v14 = vpop.f32.mrb[8].mxu0  ;;  %1018 = vmatprep.mubr.bf16.mxu0 %v22178_v12 }
 0x132   : > { %v877_v15 = vadd.f32 %v24118_v55, %v876_v14  ;;  %v878_v16 = vpop.f32.mrb[9].mxu0  ;;  %3244 = vmatpush1.bf16.msra.mxu1 %v1434_v13  ;;  %v22180_v13 = vld [vmem:[%s24030_s14 + $0x140] ss:$8 sps:$4 sm:$0xff]  }
 0x133   : > { %v879_v17 = vpop.f32.mrb[10].mxu0  ;;  %3245 = vmatprep.subr.bf16.mxu1 %v29220_v1  ;;  %1019 = vmatmul.mubr.bf16.gmra.mrb[80].mxu0 %v22180_v13 }
 0x134   : > { %v880_v18 = vadd.f32 %v24118_v55, %v879_v17  ;;  %v881_v19 = vpop.f32.mrb[11].mxu0  ;;  %v1063_v20 = vmax.f32 %v877_v15, 0.0 }
 0x136   : > { %v1064_v21 = vmax.f32 %v880_v18, 0.0 }
 0x138   : > { %v1435_v22 = vpack.c.bf16 %v1064_v21, %v1063_v20 }
 0x139   : > { %v884_v23 = vpop.f32.mrb[12].mxu0 }
 0x13a   : > { %v885_v24 = vadd.f32 %v24118_v55, %v884_v23  ;;  %v886_v25 = vpop.f32.mrb[13].mxu0  ;;  %3246 = vmatpush1.bf16.msra.mxu1 %v1435_v22 }
 0x13b   : > { %v887_v26 = vpop.f32.mrb[14].mxu0  ;;  %3247 = vmatprep.subr.bf16.mxu1 %v29220_v1 }
 0x13c   : > { %v888_v27 = vadd.f32 %v24118_v55, %v887_v26  ;;  %v889_v28 = vpop.f32.mrb[15].mxu0  ;;  %v1065_v29 = vmax.f32 %v885_v24, 0.0 }
 0x13e   : > { %v1066_v30 = vmax.f32 %v888_v27, 0.0 }
 0x140   : > { %v1436_v31 = vpack.c.bf16 %v1066_v30, %v1065_v29 }
 0x141   : > { %v892_v32 = vpop.f32.mrb[16].mxu0 }
 0x142   : > { %v893_v33 = vadd.f32 %v24118_v55, %v892_v32  ;;  %v894_v34 = vpop.f32.mrb[17].mxu0  ;;  %3248 = vmatpush1.bf16.msra.mxu1 %v1436_v31 }
 0x143   : > { %v895_v35 = vpop.f32.mrb[18].mxu0  ;;  %3249 = vmatprep.subr.bf16.mxu1 %v29220_v1 }
 0x144   : > { %v896_v36 = vadd.f32 %v24118_v55, %v895_v35  ;;  %v897_v37 = vpop.f32.mrb[19].mxu0  ;;  %v1067_v38 = vmax.f32 %v893_v33, 0.0 }
 0x146   : > { %v1068_v39 = vmax.f32 %v896_v36, 0.0 }
 0x148   : > { %v1437_v40 = vpack.c.bf16 %v1068_v39, %v1067_v38 }
 0x149   : > { %v900_v41 = vpop.f32.mrb[20].mxu0 }
 0x14a   : > { %v901_v42 = vadd.f32 %v24118_v55, %v900_v41  ;;  %v902_v43 = vpop.f32.mrb[21].mxu0  ;;  %3250 = vmatpush1.bf16.msra.mxu1 %v1437_v40 }
 0x14b   : > { %v903_v44 = vpop.f32.mrb[22].mxu0  ;;  %3251 = vmatprep.subr.bf16.mxu1 %v29220_v1 }
 0x14c   : > { %v904_v45 = vadd.f32 %v24118_v55, %v903_v44  ;;  %v905_v46 = vpop.f32.mrb[23].mxu0  ;;  %v1069_v47 = vmax.f32 %v901_v42, 0.0 }
 0x14e   : > { %v1070_v48 = vmax.f32 %v904_v45, 0.0 }
 0x150   : > { %v1438_v49 = vpack.c.bf16 %v1070_v48, %v1069_v47 }
 0x151   : > { %v908_v50 = vpop.f32.mrb[24].mxu0 }
 0x152   : > { %v909_v51 = vadd.f32 %v24118_v55, %v908_v50  ;;  %v910_v52 = vpop.f32.mrb[25].mxu0  ;;  %3252 = vmatpush1.bf16.msra.mxu1 %v1438_v49 }
 0x153   : > { %v911_v53 = vpop.f32.mrb[26].mxu0  ;;  %3253 = vmatprep.subr.bf16.mxu1 %v29220_v1 }
 0x154   : > { %v912_v54 = vadd.f32 %v24118_v55, %v911_v53  ;;  %v913_v56 = vpop.f32.mrb[27].mxu0  ;;  %v1071_v57 = vmax.f32 %v909_v51, 0.0 }
 0x156   : > { %v1072_v58 = vmax.f32 %v912_v54, 0.0 }
 0x158   : > { %v1439_v59 = vpack.c.bf16 %v1072_v58, %v1071_v57 }
 0x159   : > { %v916_v60 = vpop.f32.mrb[28].mxu0 }
 0x15a   : > { %v917_v61 = vadd.f32 %v24118_v55, %v916_v60  ;;  %v918_v62 = vpop.f32.mrb[29].mxu0  ;;  %3254 = vmatpush1.bf16.msra.mxu1 %v1439_v59 }
 0x15b   : > { %v919_v63 = vpop.f32.mrb[30].mxu0  ;;  %3255 = vmatprep.subr.bf16.mxu1 %v29220_v1 }
 0x15c   : > { %v920_v0 = vadd.f32 %v24118_v55, %v919_v63  ;;  %v921_v2 = vpop.f32.mrb[31].mxu0  ;;  %v1073_v3 = vmax.f32 %v917_v61, 0.0 }
 0x15e   : > { %v1074_v4 = vmax.f32 %v920_v0, 0.0 }
 0x160   : > { %v1440_v5 = vpack.c.bf16 %v1074_v4, %v1073_v3 }
 0x161   : > { %v924_v6 = vpop.f32.mrb[32].mxu0 }
 0x162   : > { %v925_v7 = vadd.f32 %v24118_v55, %v924_v6  ;;  %v926_v8 = vpop.f32.mrb[33].mxu0  ;;  %3256 = vmatpush1.bf16.msra.mxu1 %v1440_v5 }
 0x163   : > { %v927_v9 = vpop.f32.mrb[34].mxu0  ;;  %3257 = vmatprep.subr.bf16.mxu1 %v29220_v1 }
 0x164   : > { %v928_v10 = vadd.f32 %v24118_v55, %v927_v9  ;;  %v929_v11 = vpop.f32.mrb[35].mxu0  ;;  %v1075_v14 = vmax.f32 %v925_v7, 0.0 }
 0x166   : > { %v1076_v15 = vmax.f32 %v928_v10, 0.0  ;;  %v24174_v10 = vld [vmem:[%s29212_s4] ss:$0 sm:$0xff] }
 0x168   : > { %v1441_v16 = vpack.c.bf16 %v1076_v15, %v1075_v14 }
 0x169   : > { %v932_v17 = vpop.f32.mrb[36].mxu0 }
 0x16a   : > { %v933_v18 = vadd.f32 %v24118_v55, %v932_v17  ;;  %v934_v19 = vpop.f32.mrb[37].mxu0  ;;  %3258 = vmatpush1.bf16.msra.mxu1 %v1441_v16  ;;  %v22151_v17 = vld [vmem:[%s29209_s1] ss:$16 sps:$4 sm:$0xff]  }
 0x16b   : > { %v935_v20 = vpop.f32.mrb[38].mxu0  ;;  %3259 = vmatprep.subr.bf16.mxu1 %v29220_v1  ;;  %v22154_v19 = vld [vmem:[%s29209_s1 + $0x24] ss:$16 sps:$4 sm:$0xff]  }
 0x16c   : > { %v936_v21 = vadd.f32 %v24118_v55, %v935_v20  ;;  %v937_v22 = vpop.f32.mrb[39].mxu0  ;;  %v1077_v23 = vmax.f32 %v933_v18, 0.0 }
 0x16e   : > { %v1078_v24 = vmax.f32 %v936_v21, 0.0 }
 0x170   : > { %v1442_v25 = vpack.c.bf16 %v1078_v24, %v1077_v23 }
 0x171   : > { %v940_v26 = vpop.f32.mrb[40].mxu0 }
 0x172   : > { %v941_v27 = vadd.f32 %v24118_v55, %v940_v26  ;;  %v942_v28 = vpop.f32.mrb[41].mxu0  ;;  %3260 = vmatpush1.bf16.msra.mxu1 %v1442_v25 }
 0x173   : > { %v943_v29 = vpop.f32.mrb[42].mxu0  ;;  %3261 = vmatprep.subr.bf16.mxu1 %v29220_v1  ;;  %v22156_v28 = vld [vmem:[%s29209_s1 + $0x20] ss:$16 sps:$4 sm:$0xff]  }
 0x174   : > { %v944_v30 = vadd.f32 %v24118_v55, %v943_v29  ;;  %v945_v31 = vpop.f32.mrb[43].mxu0  ;;  %v1079_v32 = vmax.f32 %v941_v27, 0.0 }
 0x176   : > { %v1080_v33 = vmax.f32 %v944_v30, 0.0  ;;  %v22157_v30 = vld [vmem:[%s29209_s1 + $0x44] ss:$16 sps:$4 sm:$0xff]  }
 0x178   : > { %v1443_v34 = vpack.c.bf16 %v1080_v33, %v1079_v32 }
 0x179   : > { %v948_v35 = vpop.f32.mrb[44].mxu0 }
 0x17a   : > { %v949_v36 = vadd.f32 %v24118_v55, %v948_v35  ;;  %v950_v37 = vpop.f32.mrb[45].mxu0  ;;  %3262 = vmatpush1.bf16.msra.mxu1 %v1443_v34 }
 0x17b   : > { %v951_v38 = vpop.f32.mrb[46].mxu0  ;;  %3263 = vmatprep.subr.bf16.mxu1 %v29220_v1 }
 0x17c   : > { %v952_v39 = vadd.f32 %v24118_v55, %v951_v38  ;;  %v953_v40 = vpop.f32.mrb[47].mxu0  ;;  %v1081_v41 = vmax.f32 %v949_v36, 0.0  ;;  %v22208_v38 = vld [vmem:[%s24030_s14 + $0x154] ss:$8 sps:$4 sm:$0xff]  }
 0x17d   : > { %1026 = vmatprep.mubr.bf16.mxu0 %v22208_v38  ;;  %v22270_v38 = vld [vmem:[%s24030_s14 + $0x170] ss:$8 sps:$4 sm:$0xff]  }
 0x17e   : > { %v1082_v42 = vmax.f32 %v952_v39, 0.0  ;;  %v22210_v39 = vld [vmem:[%s24030_s14 + $0x150] ss:$8 sps:$4 sm:$0xff]  }
 0x17f   : > { %1027 = vmatmul.mubr.bf16.gmra.mrb[84].mxu0 %v22210_v39 }
 0x180   : > { %v1444_v43 = vpack.c.bf16 %v1082_v42, %v1081_v41  ;;  %v22159_v41 = vld [vmem:[%s29209_s1 + $0x40] ss:$16 sps:$4 sm:$0xff]   ;;  %v22160_v42 = vld [vmem:[%s29209_s1 + $0x64] ss:$16 sps:$4 sm:$0xff]  }
 0x181   : > { %v956_v44 = vpop.f32.mrb[48].mxu0 }
 0x182   : > { %v957_v45 = vadd.f32 %v24118_v55, %v956_v44  ;;  %v958_v46 = vpop.f32.mrb[49].mxu0  ;;  %3264 = vmatpush1.bf16.msra.mxu1 %v1444_v43 }
 0x183   : > { %v959_v47 = vpop.f32.mrb[50].mxu0  ;;  %3265 = vmatprep.subr.bf16.mxu1 %v29220_v1 }
 0x184   : > { %v960_v48 = vadd.f32 %v24118_v55, %v959_v47  ;;  %v961_v49 = vpop.f32.mrb[51].mxu0  ;;  %v1083_v50 = vmax.f32 %v957_v45, 0.0 }
 0x186   : > { %v1084_v51 = vmax.f32 %v960_v48, 0.0 }
 0x188   : > { %v1445_v52 = vpack.c.bf16 %v1084_v51, %v1083_v50  ;;  %v22162_v51 = vld [vmem:[%s29209_s1 + $0x60] ss:$16 sps:$4 sm:$0xff]  }
 0x189   : > { %v964_v53 = vpop.f32.mrb[52].mxu0 }
 0x18a   : > { %v965_v54 = vadd.f32 %v24118_v55, %v964_v53  ;;  %v966_v56 = vpop.f32.mrb[53].mxu0  ;;  %3266 = vmatpush1.bf16.msra.mxu1 %v1445_v52  ;;  %v22163_v52 = vld [vmem:[%s29209_s1 + $0x84] ss:$16 sps:$4 sm:$0xff]  }
 0x18b   : > { %v967_v57 = vpop.f32.mrb[54].mxu0  ;;  %3267 = vmatprep.subr.bf16.mxu1 %v29220_v1  ;;  %v22165_v56 = vld [vmem:[%s29209_s1 + $0x80] ss:$16 sps:$4 sm:$0xff]  }
 0x18c   : > { %v968_v58 = vadd.f32 %v24118_v55, %v967_v57  ;;  %v969_v59 = vpop.f32.mrb[55].mxu0  ;;  %v1085_v60 = vmax.f32 %v965_v54, 0.0  ;;  %v22166_v57 = vld [vmem:[%s29209_s1 + $0xa4] ss:$16 sps:$4 sm:$0xff]  }
 0x18d   : > { %v22169_v59 = vld [vmem:[%s29209_s1 + $0xc4] ss:$16 sps:$4 sm:$0xff]  }
 0x18e   : > { %v1086_v61 = vmax.f32 %v968_v58, 0.0  ;;  %v22168_v58 = vld [vmem:[%s29209_s1 + $0xa0] ss:$16 sps:$4 sm:$0xff]  }
 0x190   : > { %v1446_v62 = vpack.c.bf16 %v1086_v61, %v1085_v60  ;;  %v22171_v60 = vld [vmem:[%s29209_s1 + $0xc0] ss:$16 sps:$4 sm:$0xff]   ;;  %v22172_v61 = vld [vmem:[%s29209_s1 + $0xe4] ss:$16 sps:$4 sm:$0xff]  }
 0x191   : > { %v972_v63 = vpop.f32.mrb[56].mxu0 }
 0x192   : > { %v973_v0 = vadd.f32 %v24118_v55, %v972_v63  ;;  %v974_v2 = vpop.f32.mrb[57].mxu0  ;;  %3268 = vmatpush1.bf16.msra.mxu1 %v1446_v62  ;;  %v22174_v62 = vld [vmem:[%s29209_s1 + $0xe0] ss:$16 sps:$4 sm:$0xff]   ;;  %v22175_v63 = vld [vmem:[%s29209_s1 + $0x104] ss:$16 sps:$4 sm:$0xff]  }
 0x193   : > { %v975_v3 = vpop.f32.mrb[58].mxu0  ;;  %3269 = vmatprep.subr.bf16.mxu1 %v29220_v1  ;;  %v22181_v2 = vld [vmem:[%s29209_s1 + $0x124] ss:$16 sps:$4 sm:$0xff]  }
 0x194   : > { %v976_v4 = vadd.f32 %v24118_v55, %v975_v3  ;;  %v977_v5 = vpop.f32.mrb[59].mxu0  ;;  %v1087_v6 = vmax.f32 %v973_v0, 0.0  ;;  %v22177_v0 = vld [vmem:[%s29209_s1 + $0x100] ss:$16 sps:$4 sm:$0xff]  }
 0x195   : > { %v22183_v3 = vld [vmem:[%s29209_s1 + $0x120] ss:$16 sps:$4 sm:$0xff]  }
 0x196   : > { %v1088_v7 = vmax.f32 %v976_v4, 0.0  ;;  %v22184_v4 = vld [vmem:[%s29209_s1 + $0x144] ss:$16 sps:$4 sm:$0xff]   ;;  %v22186_v5 = vld [vmem:[%s29209_s1 + $0x140] ss:$16 sps:$4 sm:$0xff]  }
 0x198   : > { %v1447_v8 = vpack.c.bf16 %v1088_v7, %v1087_v6  ;;  %v22187_v6 = vld [vmem:[%s29209_s1 + $0x164] ss:$16 sps:$4 sm:$0xff]  }
 0x199   : > { %v980_v9 = vpop.f32.mrb[60].mxu0  ;;  %v22238_v7 = vld [vmem:[%s24030_s14 + $0x164] ss:$8 sps:$4 sm:$0xff]  }
 0x19a   : > { %v981_v11 = vadd.f32 %v24174_v10, %v980_v9  ;;  %v982_v12 = vpop.f32.mrb[61].mxu0  ;;  %3270 = vmatpush1.bf16.msra.mxu1 %v1447_v8  ;;  %v22240_v8 = vld [vmem:[%s24030_s14 + $0x160] ss:$8 sps:$4 sm:$0xff]   ;;  %1034 = vmatprep.mubr.bf16.mxu0 %v22238_v7 }
 0x19b   : > { %v983_v13 = vpop.f32.mrb[62].mxu0  ;;  %3271 = vmatprep.subr.bf16.mxu1 %v29220_v1  ;;  %v22189_v9 = vld [vmem:[%s29209_s1 + $0x160] ss:$16 sps:$4 sm:$0xff]   ;;  %1035 = vmatmul.mubr.bf16.gmra.mrb[88].mxu0 %v22240_v8 }
 0x19c   : > { %v984_v14 = vadd.f32 %v24174_v10, %v983_v13  ;;  %v985_v55 = vpop.f32.mrb[63].mxu0  ;;  %v1089_v15 = vmax.f32 %v981_v11, 0.0  ;;  %v22190_v11 = vld [vmem:[%s29209_s1 + $0x184] ss:$16 sps:$4 sm:$0xff]  }
 0x19d   : > { %v22192_v55 = vld [vmem:[%s29209_s1 + $0x180] ss:$16 sps:$4 sm:$0xff]  }
 0x19e   : > { %v1090_v16 = vmax.f32 %v984_v14, 0.0 }
 0x1a0   : > { %v1448_v18 = vpack.c.bf16 %v1090_v16, %v1089_v15 }
 0x1a1   : > { %v988_v20 = vpop.f32.mrb[64].mxu0 }
 0x1a2   : > { %v989_v21 = vadd.f32 %v24174_v10, %v988_v20  ;;  %v990_v22 = vpop.f32.mrb[65].mxu0  ;;  %3272 = vmatpush1.bf16.msra.mxu1 %v1448_v18 }
 0x1a3   : > { %v991_v23 = vpop.f32.mrb[66].mxu0  ;;  %3922 = vmatprep.subr.bf16.mxu1 %v29220_v1  ;;  %v22195_v22 = vld [vmem:[%s29209_s1 + $0x1a0] ss:$16 sps:$4 sm:$0xff]  }
 0x1a4   : > { %v1091_v24 = vmax.f32 %v989_v21, 0.0  ;;  %v992_v25 = vadd.f32 %v24174_v10, %v991_v23  ;;  %v993_v26 = vpop.f32.mrb[67].mxu0  ;;  %v22196_v23 = vld [vmem:[%s29209_s1 + $0x1c4] ss:$16 sps:$4 sm:$0xff]  }
 0x1a5   : > { %3274 = vmatmul.mubr.bf16.vlgmr.msra.gmra.mrb[0].mxu1 %v22151_v17  ;;  %v22201_v26 = vld [vmem:[%s29209_s1 + $0x1e0] ss:$16 sps:$4 sm:$0xff]  }
 0x1a6   : > { %v1092_v27 = vmax.f32 %v992_v25, 0.0  ;;  %3281 = vmatprep.mubr.bf16.mxu1 %v22154_v19  ;;  %v22193_v19 = vld [vmem:[%s29209_s1 + $0x1a4] ss:$16 sps:$4 sm:$0xff]  }
 0x1a7   : > { %v22199_v25 = vld [vmem:[%s29209_s1 + $0x1e4] ss:$16 sps:$4 sm:$0xff]  }
 0x1a8   : > { %v1449_v29 = vpack.c.bf16 %v1092_v27, %v1091_v24  ;;  %v22198_v24 = vld [vmem:[%s29209_s1 + $0x1c0] ss:$16 sps:$4 sm:$0xff]   ;;  %v22202_v27 = vld [vmem:[%s29209_s1 + $0x204] ss:$16 sps:$4 sm:$0xff]  }
 0x1a9   : > { %v996_v31 = vpop.f32.mrb[68].mxu0 }
 0x1aa   : > { %3923 = vmatpush1.bf16.msra.mxu1 %v1449_v29  ;;  %v997_v32 = vadd.f32 %v24174_v10, %v996_v31  ;;  %v998_v33 = vpop.f32.mrb[69].mxu0  ;;  %v22205_v29 = vld [vmem:[%s29209_s1 + $0x224] ss:$16 sps:$4 sm:$0xff]  }
 0x1ab   : > { %v999_v34 = vpop.f32.mrb[70].mxu0  ;;  %3924 = vmatprep.subr.bf16.mxu1 %v29220_v1  ;;  %v22211_v31 = vld [vmem:[%s29209_s1 + $0x244] ss:$16 sps:$4 sm:$0xff]  }
 0x1ac   : > { %v1093_v35 = vmax.f32 %v997_v32, 0.0  ;;  %v1000_v36 = vadd.f32 %v24174_v10, %v999_v34  ;;  %v1001_v37 = vpop.f32.mrb[71].mxu0  ;;  %v22213_v32 = vld [vmem:[%s29209_s1 + $0x240] ss:$16 sps:$4 sm:$0xff]   ;;  %v22214_v33 = vld [vmem:[%s29209_s1 + $0x264] ss:$16 sps:$4 sm:$0xff]  }
 0x1ad   : > { %3282 = vmatmul.mubr.bf16.gmra.mrb[4].mxu1 %v22156_v28  ;;  %v22204_v28 = vld [vmem:[%s29209_s1 + $0x200] ss:$16 sps:$4 sm:$0xff]   ;;  %v22268_v37 = vld [vmem:[%s24030_s14 + $0x174] ss:$8 sps:$4 sm:$0xff]  }
 0x1ae   : > { %3289 = vmatprep.mubr.bf16.mxu1 %v22157_v30  ;;  %v1094_v40 = vmax.f32 %v1000_v36, 0.0  ;;  %v22207_v30 = vld [vmem:[%s29209_s1 + $0x220] ss:$16 sps:$4 sm:$0xff]   ;;  %1042 = vmatprep.mubr.bf16.mxu0 %v22268_v37 }
 0x1af   : > { %v22216_v34 = vld [vmem:[%s29209_s1 + $0x260] ss:$16 sps:$4 sm:$0xff]   ;;  %1043 = vmatmul.mubr.bf16.gmra.mrb[92].mxu0 %v22270_v38 }
 0x1b0   : > { %v1450_v43 = vpack.c.bf16 %v1094_v40, %v1093_v35  ;;  %v22217_v35 = vld [vmem:[%s29209_s1 + $0x284] ss:$16 sps:$4 sm:$0xff]  }
 0x1b1   : > { %v1004_v44 = vpop.f32.mrb[72].mxu0 }
 0x1b2   : > { %3925 = vmatpush1.bf16.msra.mxu1 %v1450_v43  ;;  %v1005_v45 = vadd.f32 %v24174_v10, %v1004_v44  ;;  %v1006_v46 = vpop.f32.mrb[73].mxu0 }
 0x1b3   : > { %3926 = vmatprep.subr.bf16.mxu1 %v29220_v1  ;;  %v1007_v47 = vpop.f32.mrb[74].mxu0  ;;  %v22220_v46 = vld [vmem:[%s29209_s1 + $0x2a4] ss:$16 sps:$4 sm:$0xff]  }
 0x1b4   : > { %v1095_v48 = vmax.f32 %v1005_v45, 0.0  ;;  %v1008_v49 = vadd.f32 %v24174_v10, %v1007_v47  ;;  %v1009_v50 = vpop.f32.mrb[75].mxu0  ;;  %v22219_v45 = vld [vmem:[%s29209_s1 + $0x280] ss:$16 sps:$4 sm:$0xff]  }
 0x1b5   : > { %3290 = vmatmul.mubr.bf16.gmra.mrb[8].mxu1 %v22159_v41  ;;  %v22223_v50 = vld [vmem:[%s29209_s1 + $0x2c4] ss:$16 sps:$4 sm:$0xff]  }
 0x1b6   : > { %3297 = vmatprep.mubr.bf16.mxu1 %v22160_v42  ;;  %v1096_v53 = vmax.f32 %v1008_v49, 0.0  ;;  %v22222_v49 = vld [vmem:[%s29209_s1 + $0x2a0] ss:$16 sps:$4 sm:$0xff]  }
 0x1b8   : > { %v1451_v54 = vpack.c.bf16 %v1096_v53, %v1095_v48  ;;  %v22228_v53 = vld [vmem:[%s29209_s1 + $0x2e0] ss:$16 sps:$4 sm:$0xff]  }
 0x1b9   : > { %v1012_v12 = vpop.f32.mrb[76].mxu0 }
 0x1ba   : > { %3927 = vmatpush1.bf16.msra.mxu1 %v1451_v54  ;;  %v1013_v13 = vadd.f32 %v24174_v10, %v1012_v12  ;;  %v1014_v14 = vpop.f32.mrb[77].mxu0  ;;  %v22229_v54 = vld [vmem:[%s29209_s1 + $0x304] ss:$16 sps:$4 sm:$0xff]  }
 0x1bb   : > { %3928 = vmatprep.subr.bf16.mxu1 %v29220_v1  ;;  %v1015_v15 = vpop.f32.mrb[78].mxu0  ;;  %v22250_v14 = vld [vmem:[%s29209_s1 + $0x3c4] ss:$16 sps:$4 sm:$0xff]  }
 0x1bc   : > { %v1097_v16 = vmax.f32 %v1013_v13, 0.0  ;;  %v1016_v17 = vadd.f32 %v24174_v10, %v1015_v15  ;;  %v1017_v18 = vpop.f32.mrb[79].mxu0  ;;  %v22249_v13 = vld [vmem:[%s29209_s1 + $0x3a0] ss:$16 sps:$4 sm:$0xff]  }
 0x1bd   : > { %3298 = vmatmul.mubr.bf16.gmra.mrb[12].mxu1 %v22162_v51  ;;  %v22225_v51 = vld [vmem:[%s29209_s1 + $0x2c0] ss:$16 sps:$4 sm:$0xff]   ;;  %v22256_v18 = vld [vmem:[%s29209_s1 + $0x404] ss:$16 sps:$4 sm:$0xff]  }
 0x1be   : > { %3305 = vmatprep.mubr.bf16.mxu1 %v22163_v52  ;;  %v1098_v20 = vmax.f32 %v1016_v17, 0.0  ;;  %v22226_v52 = vld [vmem:[%s29209_s1 + $0x2e4] ss:$16 sps:$4 sm:$0xff]   ;;  %v22255_v17 = vld [vmem:[%s29209_s1 + $0x3e0] ss:$16 sps:$4 sm:$0xff]  }
 0x1c0   : > { %v1452_v21 = vpack.c.bf16 %v1098_v20, %v1097_v16  ;;  %v22253_v16 = vld [vmem:[%s29209_s1 + $0x3e4] ss:$16 sps:$4 sm:$0xff]  }
 0x1c1   : > { %v22259_v20 = vld [vmem:[%s29209_s1 + $0x424] ss:$16 sps:$4 sm:$0xff]  }
 0x1c2   : > { %3929 = vmatpush1.bf16.msra.mxu1 %v1452_v21  ;;  %v22261_v21 = vld [vmem:[%s29209_s1 + $0x420] ss:$16 sps:$4 sm:$0xff]  }
 0x1c3   : > { %3930 = vmatprep.subr.bf16.mxu1 %v29220_v1 }
 0x1c5   : > { %3306 = vmatmul.mubr.bf16.gmra.mrb[16].mxu1 %v22165_v56  ;;  %v22231_v56 = vld [vmem:[%s29209_s1 + $0x300] ss:$16 sps:$4 sm:$0xff]  }
 0x1c6   : > { %3313 = vmatprep.mubr.bf16.mxu1 %v22166_v57  ;;  %v22232_v57 = vld [vmem:[%s29209_s1 + $0x324] ss:$16 sps:$4 sm:$0xff]  }
 0x1cd   : > { %3314 = vmatmul.mubr.bf16.gmra.mrb[20].mxu1 %v22168_v58  ;;  %v22234_v58 = vld [vmem:[%s29209_s1 + $0x320] ss:$16 sps:$4 sm:$0xff]  }
 0x1ce   : > { %3321 = vmatprep.mubr.bf16.mxu1 %v22169_v59  ;;  %v22235_v59 = vld [vmem:[%s29209_s1 + $0x344] ss:$16 sps:$4 sm:$0xff]  }
 0x1d5   : > { %3322 = vmatmul.mubr.bf16.gmra.mrb[24].mxu1 %v22171_v60  ;;  %v22237_v60 = vld [vmem:[%s29209_s1 + $0x340] ss:$16 sps:$4 sm:$0xff]  }
 0x1d6   : > { %3329 = vmatprep.mubr.bf16.mxu1 %v22172_v61  ;;  %v22241_v61 = vld [vmem:[%s29209_s1 + $0x364] ss:$16 sps:$4 sm:$0xff]  }
 0x1dd   : > { %3330 = vmatmul.mubr.bf16.gmra.mrb[28].mxu1 %v22174_v62  ;;  %v22243_v62 = vld [vmem:[%s29209_s1 + $0x360] ss:$16 sps:$4 sm:$0xff]  }
 0x1de   : > { %3337 = vmatprep.mubr.bf16.mxu1 %v22175_v63  ;;  %v22244_v63 = vld [vmem:[%s29209_s1 + $0x384] ss:$16 sps:$4 sm:$0xff]  }
 0x1e5   : > { %3338 = vmatmul.mubr.bf16.gmra.mrb[32].mxu1 %v22177_v0  ;;  %v22246_v0 = vld [vmem:[%s29209_s1 + $0x380] ss:$16 sps:$4 sm:$0xff]  }
 0x1e6   : > { %3345 = vmatprep.mubr.bf16.mxu1 %v22181_v2  ;;  %v22247_v2 = vld [vmem:[%s29209_s1 + $0x3a4] ss:$16 sps:$4 sm:$0xff]  }
 0x1ed   : > { %3346 = vmatmul.mubr.bf16.gmra.mrb[36].mxu1 %v22183_v3 }
 0x1ee   : > { %3353 = vmatprep.mubr.bf16.mxu1 %v22184_v4  ;;  %v22298_v4 = vld [vmem:[%s24030_s14 + $0x184] ss:$8 sps:$4 sm:$0xff]  }
 0x1ef   : > { %1050 = vmatprep.mubr.bf16.mxu0 %v22298_v4  ;;  %v22309_v4 = vld [vmem:[%s29209_s1 + $0x5e0] ss:$16 sps:$4 sm:$0xff]  }
 0x1f5   : > { %3354 = vmatmul.mubr.bf16.gmra.mrb[40].mxu1 %v22186_v5  ;;  %v22300_v5 = vld [vmem:[%s24030_s14 + $0x180] ss:$8 sps:$4 sm:$0xff]  }
 0x1f6   : > { %3361 = vmatprep.mubr.bf16.mxu1 %v22187_v6  ;;  %1051 = vmatmul.mubr.bf16.gmra.mrb[96].mxu0 %v22300_v5  ;;  %v22310_v5 = vld [vmem:[%s29209_s1 + $0x604] ss:$16 sps:$4 sm:$0xff]  }
 0x1fd   : > { %3362 = vmatmul.mubr.bf16.gmra.mrb[44].mxu1 %v22189_v9 }
 0x1fe   : > { %3369 = vmatprep.mubr.bf16.mxu1 %v22190_v11 }
 0x205   : > { %3370 = vmatmul.mubr.bf16.gmra.mrb[48].mxu1 %v22192_v55 }
 0x206   : > { %3377 = vmatprep.mubr.bf16.mxu1 %v22193_v19  ;;  %v1020_v36 = vpop.f32.mrb[80].mxu0  ;;  %v22258_v19 = vld [vmem:[%s29209_s1 + $0x400] ss:$16 sps:$4 sm:$0xff]  }
 0x207   : > { %v1021_v39 = vadd.f32 %v24174_v10, %v1020_v36  ;;  %v1022_v40 = vpop.f32.mrb[81].mxu0 }
 0x208   : > { %v1023_v41 = vpop.f32.mrb[82].mxu0  ;;  %v22280_v40 = vld [vmem:[%s29209_s1 + $0x4e4] ss:$16 sps:$4 sm:$0xff]  }
 0x209   : > { %v1099_v42 = vmax.f32 %v1021_v39, 0.0  ;;  %v1024_v43 = vadd.f32 %v24174_v10, %v1023_v41  ;;  %v1025_v44 = vpop.f32.mrb[83].mxu0  ;;  %v22279_v39 = vld [vmem:[%s29209_s1 + $0x4c0] ss:$16 sps:$4 sm:$0xff]  }
 0x20a   : > { %v22283_v44 = vld [vmem:[%s29209_s1 + $0x504] ss:$16 sps:$4 sm:$0xff]  }
 0x20b   : > { %v1100_v47 = vmax.f32 %v1024_v43, 0.0  ;;  %v22282_v43 = vld [vmem:[%s29209_s1 + $0x4e0] ss:$16 sps:$4 sm:$0xff]  }
 0x20d   : > { %3378 = vmatmul.mubr.bf16.gmra.mrb[52].mxu1 %v22195_v22  ;;  %v1453_v48 = vpack.c.bf16 %v1100_v47, %v1099_v42  ;;  %v22262_v22 = vld [vmem:[%s29209_s1 + $0x444] ss:$16 sps:$4 sm:$0xff]   ;;  %v22288_v47 = vld [vmem:[%s29209_s1 + $0x520] ss:$16 sps:$4 sm:$0xff]  }
 0x20e   : > { %3385 = vmatprep.mubr.bf16.mxu1 %v22196_v23  ;;  %v22264_v23 = vld [vmem:[%s29209_s1 + $0x440] ss:$16 sps:$4 sm:$0xff]  }
 0x20f   : > { %3931 = vmatpush1.bf16.msra.mxu1 %v1453_v48  ;;  %v22289_v48 = vld [vmem:[%s29209_s1 + $0x544] ss:$16 sps:$4 sm:$0xff]  }
 0x210   : > { %3932 = vmatprep.subr.bf16.mxu1 %v29220_v1 }
 0x215   : > { %3386 = vmatmul.mubr.bf16.gmra.mrb[56].mxu1 %v22198_v24  ;;  %v22265_v24 = vld [vmem:[%s29209_s1 + $0x464] ss:$16 sps:$4 sm:$0xff]  }
 0x216   : > { %3393 = vmatprep.mubr.bf16.mxu1 %v22199_v25  ;;  %v22267_v25 = vld [vmem:[%s29209_s1 + $0x460] ss:$16 sps:$4 sm:$0xff]  }
 0x21d   : > { %3394 = vmatmul.mubr.bf16.gmra.mrb[60].mxu1 %v22201_v26  ;;  %v22271_v26 = vld [vmem:[%s29209_s1 + $0x484] ss:$16 sps:$4 sm:$0xff]  }
 0x21e   : > { %3401 = vmatprep.mubr.bf16.mxu1 %v22202_v27  ;;  %v22273_v27 = vld [vmem:[%s29209_s1 + $0x480] ss:$16 sps:$4 sm:$0xff]  }
 0x225   : > { %3402 = vmatmul.mubr.bf16.gmra.mrb[64].mxu1 %v22204_v28  ;;  %v22274_v28 = vld [vmem:[%s29209_s1 + $0x4a4] ss:$16 sps:$4 sm:$0xff]  }
 0x226   : > { %3409 = vmatprep.mubr.bf16.mxu1 %v22205_v29  ;;  %v22276_v29 = vld [vmem:[%s29209_s1 + $0x4a0] ss:$16 sps:$4 sm:$0xff]  }
 0x22d   : > { %3410 = vmatmul.mubr.bf16.gmra.mrb[68].mxu1 %v22207_v30  ;;  %v22277_v30 = vld [vmem:[%s29209_s1 + $0x4c4] ss:$16 sps:$4 sm:$0xff]  }
 0x22e   : > { %3417 = vmatprep.mubr.bf16.mxu1 %v22211_v31 }
 0x235   : > { %3418 = vmatmul.mubr.bf16.gmra.mrb[72].mxu1 %v22213_v32  ;;  %v24437_v32 = vld [vmem:[%s29212_s4] ss:$0 sm:$0xff] }
 0x236   : > { %3425 = vmatprep.mubr.bf16.mxu1 %v22214_v33 }
 0x23d   : > { %3426 = vmatmul.mubr.bf16.gmra.mrb[76].mxu1 %v22216_v34 }
 0x23e   : > { %3433 = vmatprep.mubr.bf16.mxu1 %v22217_v35 }
 0x245   : > { %3434 = vmatmul.mubr.bf16.gmra.mrb[80].mxu1 %v22219_v45  ;;  %v22285_v45 = vld [vmem:[%s29209_s1 + $0x500] ss:$16 sps:$4 sm:$0xff]  }
 0x246   : > { %3441 = vmatprep.mubr.bf16.mxu1 %v22220_v46  ;;  %v22286_v46 = vld [vmem:[%s29209_s1 + $0x524] ss:$16 sps:$4 sm:$0xff]  }
 0x24d   : > { %3442 = vmatmul.mubr.bf16.gmra.mrb[84].mxu1 %v22222_v49  ;;  %v22291_v49 = vld [vmem:[%s29209_s1 + $0x540] ss:$16 sps:$4 sm:$0xff]  }
 0x24e   : > { %3449 = vmatprep.mubr.bf16.mxu1 %v22223_v50  ;;  %v22292_v50 = vld [vmem:[%s29209_s1 + $0x564] ss:$16 sps:$4 sm:$0xff]  }
 0x252   : > { %v1028_v3 = vpop.f32.mrb[84].mxu0 }
 0x253   : > { %v1029_v6 = vadd.f32 %v24174_v10, %v1028_v3  ;;  %v1030_v7 = vpop.f32.mrb[85].mxu0 }
 0x254   : > { %v1031_v8 = vpop.f32.mrb[86].mxu0 }
 0x255   : > { %3450 = vmatmul.mubr.bf16.gmra.mrb[88].mxu1 %v22225_v51  ;;  %v1101_v9 = vmax.f32 %v1029_v6, 0.0  ;;  %v1032_v11 = vadd.f32 %v24174_v10, %v1031_v8  ;;  %v1033_v12 = vpop.f32.mrb[87].mxu0  ;;  %v22252_v10 = vld [vmem:[%s29209_s1 + $0x3c0] ss:$16 sps:$4 sm:$0xff]  }
 0x256   : > { %3457 = vmatprep.mubr.bf16.mxu1 %v22226_v52  ;;  %v22294_v51 = vld [vmem:[%s29209_s1 + $0x560] ss:$16 sps:$4 sm:$0xff]   ;;  %v22295_v52 = vld [vmem:[%s29209_s1 + $0x584] ss:$16 sps:$4 sm:$0xff]  }
 0x257   : > { %v1102_v55 = vmax.f32 %v1032_v11, 0.0  ;;  %v22312_v8 = vld [vmem:[%s29209_s1 + $0x600] ss:$16 sps:$4 sm:$0xff]   ;;  %v22316_v12 = vld [vmem:[%s29209_s1 + $0x644] ss:$16 sps:$4 sm:$0xff]  }
 0x258   : > { %v22315_v11 = vld [vmem:[%s29209_s1 + $0x620] ss:$16 sps:$4 sm:$0xff]  }
 0x259   : > { %v1454_v15 = vpack.c.bf16 %v1102_v55, %v1101_v9  ;;  %v22313_v9 = vld [vmem:[%s29209_s1 + $0x624] ss:$16 sps:$4 sm:$0xff]   ;;  %v22321_v55 = vld [vmem:[%s29209_s1 + $0x660] ss:$16 sps:$4 sm:$0xff]  }
 0x25b   : > { %3933 = vmatpush1.bf16.msra.mxu1 %v1454_v15  ;;  %v22322_v15 = vld [vmem:[%s29209_s1 + $0x684] ss:$16 sps:$4 sm:$0xff]  }
 0x25c   : > { %3934 = vmatprep.subr.bf16.mxu1 %v29220_v1 }
 0x25d   : > { %3458 = vmatmul.mubr.bf16.gmra.mrb[92].mxu1 %v22228_v53  ;;  %v22297_v53 = vld [vmem:[%s29209_s1 + $0x580] ss:$16 sps:$4 sm:$0xff]  }
 0x25e   : > { %3465 = vmatprep.mubr.bf16.mxu1 %v22229_v54  ;;  %v22301_v54 = vld [vmem:[%s29209_s1 + $0x5a4] ss:$16 sps:$4 sm:$0xff]  }
 0x265   : > { %3466 = vmatmul.mubr.bf16.gmra.mrb[96].mxu1 %v22231_v56  ;;  %v22303_v56 = vld [vmem:[%s29209_s1 + $0x5a0] ss:$16 sps:$4 sm:$0xff]  }
 0x266   : > { %3473 = vmatprep.mubr.bf16.mxu1 %v22232_v57  ;;  %v22304_v57 = vld [vmem:[%s29209_s1 + $0x5c4] ss:$16 sps:$4 sm:$0xff]  }
 0x26d   : > { %3474 = vmatmul.mubr.bf16.gmra.mrb[100].mxu1 %v22234_v58  ;;  %v22306_v58 = vld [vmem:[%s29209_s1 + $0x5c0] ss:$16 sps:$4 sm:$0xff]  }
 0x26e   : > { %3481 = vmatprep.mubr.bf16.mxu1 %v22235_v59  ;;  %v1036_v31 = vpop.f32.mrb[88].mxu0  ;;  %v22307_v59 = vld [vmem:[%s29209_s1 + $0x5e4] ss:$16 sps:$4 sm:$0xff]  }
 0x26f   : > { %v1037_v33 = vadd.f32 %v24437_v32, %v1036_v31  ;;  %v1038_v34 = vpop.f32.mrb[89].mxu0  ;;  %v22337_v31 = vld [vmem:[%s29209_s1 + $0x724] ss:$16 sps:$4 sm:$0xff]  }
 0x270   : > { %v1039_v35 = vpop.f32.mrb[90].mxu0 }
 0x271   : > { %v1103_v36 = vmax.f32 %v1037_v33, 0.0  ;;  %v1040_v37 = vadd.f32 %v24437_v32, %v1039_v35  ;;  %v1041_v38 = vpop.f32.mrb[91].mxu0  ;;  %v22339_v35 = vld [vmem:[%s29209_s1 + $0x720] ss:$16 sps:$4 sm:$0xff]  }
 0x272   : > { %v22345_v38 = vld [vmem:[%s29209_s1 + $0x760] ss:$16 sps:$4 sm:$0xff]  }
 0x273   : > { %v1104_v41 = vmax.f32 %v1040_v37, 0.0  ;;  %v22343_v37 = vld [vmem:[%s29209_s1 + $0x764] ss:$16 sps:$4 sm:$0xff]  }
 0x275   : > { %3482 = vmatmul.mubr.bf16.gmra.mrb[104].mxu1 %v22237_v60  ;;  %v1455_v42 = vpack.c.bf16 %v1104_v41, %v1103_v36  ;;  %v22342_v36 = vld [vmem:[%s29209_s1 + $0x740] ss:$16 sps:$4 sm:$0xff]   ;;  %v22349_v41 = vld [vmem:[%s29209_s1 + $0x7a4] ss:$16 sps:$4 sm:$0xff]  }
 0x276   : > { %3489 = vmatprep.mubr.bf16.mxu1 %v22241_v61 }
 0x277   : > { %3935 = vmatpush1.bf16.msra.mxu1 %v1455_v42  ;;  %v22351_v42 = vld [vmem:[%s29209_s1 + $0x7a0] ss:$16 sps:$4 sm:$0xff]  }
 0x278   : > { %3936 = vmatprep.subr.bf16.mxu1 %v29220_v1 }
 0x27d   : > { %3490 = vmatmul.mubr.bf16.gmra.mrb[108].mxu1 %v22243_v62 }
 0x27e   : > { %3497 = vmatprep.mubr.bf16.mxu1 %v22244_v63 }
 0x282   : > { %v1044_v60 = vpop.f32.mrb[92].mxu0 }
 0x283   : > { %v1045_v61 = vadd.f32 %v24437_v32, %v1044_v60  ;;  %v1046_v62 = vpop.f32.mrb[93].mxu0 }
 0x284   : > { %v1047_v63 = vpop.f32.mrb[94].mxu0 }
 0x285   : > { %3498 = vmatmul.mubr.bf16.gmra.mrb[112].mxu1 %v22246_v0  ;;  %v1105_v0 = vmax.f32 %v1045_v61, 0.0  ;;  %v1049_v3 = vpop.f32.mrb[95].mxu0 }
 0x286   : > { %3505 = vmatprep.mubr.bf16.mxu1 %v22247_v2  ;;  %v1048_v2 = vadd.f32 %v24437_v32, %v1047_v63  ;;  %v22364_v63 = vld [vmem:[%s29209_s1 + $0x840] ss:$16 sps:$4 sm:$0xff]  }
 0x288   : > { %v1106_v6 = vmax.f32 %v1048_v2, 0.0  ;;  %v22369_v2 = vld [vmem:[%s29209_s1 + $0x864] ss:$16 sps:$4 sm:$0xff]  }
 0x28a   : > { %v1456_v7 = vpack.c.bf16 %v1106_v6, %v1105_v0  ;;  %v22367_v6 = vld [vmem:[%s29209_s1 + $0x860] ss:$16 sps:$4 sm:$0xff]  }
 0x28c   : > { %3937 = vmatpush1.bf16.msra.mxu1 %v1456_v7 }
 0x28d   : > { %3506 = vmatmul.mubr.bf16.gmra.mrb[116].mxu1 %v22249_v13  ;;  %3938 = vmatprep.subr.bf16.mxu1 %v29220_v1  ;;  %v22318_v13 = vld [vmem:[%s29209_s1 + $0x640] ss:$16 sps:$4 sm:$0xff]  }
 0x28e   : > { %3513 = vmatprep.mubr.bf16.mxu1 %v22250_v14  ;;  %v22319_v14 = vld [vmem:[%s29209_s1 + $0x664] ss:$16 sps:$4 sm:$0xff]  }
 0x295   : > { %3514 = vmatmul.mubr.bf16.gmra.mrb[120].mxu1 %v22252_v10  ;;  %v22324_v10 = vld [vmem:[%s29209_s1 + $0x680] ss:$16 sps:$4 sm:$0xff]  }
 0x296   : > { %3521 = vmatprep.mubr.bf16.mxu1 %v22253_v16  ;;  %v22325_v16 = vld [vmem:[%s29209_s1 + $0x6a4] ss:$16 sps:$4 sm:$0xff]  }
 0x29d   : > { %3522 = vmatmul.mubr.bf16.gmra.mrb[124].mxu1 %v22255_v17  ;;  %v22327_v17 = vld [vmem:[%s29209_s1 + $0x6a0] ss:$16 sps:$4 sm:$0xff]  }
 0x29e   : > { %3529 = vmatprep.mubr.bf16.mxu1 %v22256_v18  ;;  %v22328_v18 = vld [vmem:[%s29209_s1 + $0x6c4] ss:$16 sps:$4 sm:$0xff]  }
 0x2a5   : > { %3530 = vmatmul.mubr.bf16.gmra.mrb[128].mxu1 %v22258_v19  ;;  %v22330_v19 = vld [vmem:[%s29209_s1 + $0x6c0] ss:$16 sps:$4 sm:$0xff]  }
 0x2a6   : > { %3537 = vmatprep.mubr.bf16.mxu1 %v22259_v20  ;;  %v22331_v20 = vld [vmem:[%s29209_s1 + $0x6e4] ss:$16 sps:$4 sm:$0xff]  }
 0x2ad   : > { %3538 = vmatmul.mubr.bf16.gmra.mrb[132].mxu1 %v22261_v21  ;;  %v22333_v21 = vld [vmem:[%s29209_s1 + $0x6e0] ss:$16 sps:$4 sm:$0xff]  }
 0x2ae   : > { %3545 = vmatprep.mubr.bf16.mxu1 %v22262_v22  ;;  %v22334_v22 = vld [vmem:[%s29209_s1 + $0x704] ss:$16 sps:$4 sm:$0xff]  }
 0x2b5   : > { %3546 = vmatmul.mubr.bf16.gmra.mrb[136].mxu1 %v22264_v23 }
 0x2b6   : > { %3553 = vmatprep.mubr.bf16.mxu1 %v22265_v24 }
 0x2bd   : > { %3554 = vmatmul.mubr.bf16.gmra.mrb[140].mxu1 %v22267_v25 }
 0x2be   : > { %3561 = vmatprep.mubr.bf16.mxu1 %v22271_v26 }
 0x2c5   : > { %3562 = vmatmul.mubr.bf16.gmra.mrb[144].mxu1 %v22273_v27 }
 0x2c6   : > { %3569 = vmatprep.mubr.bf16.mxu1 %v22274_v28 }
 0x2c9   : > { %v1052_v23 = vpop.f32.mrb[96].mxu0 }
 0x2ca   : > { %v1053_v24 = vadd.f32 %v24437_v32, %v1052_v23  ;;  %v1054_v25 = vpop.f32.mrb[97].mxu0  ;;  %v22376_v23 = vld [vmem:[%s29209_s1 + $0x8c0] ss:$16 sps:$4 sm:$0xff]  }
 0x2cb   : > { %v1055_v26 = vpop.f32.mrb[98].mxu0  ;;  %v22381_v25 = vld [vmem:[%s29209_s1 + $0x8e4] ss:$16 sps:$4 sm:$0xff]  }
 0x2cc   : > { %v1107_v27 = vmax.f32 %v1053_v24, 0.0  ;;  %v1056_v28 = vadd.f32 %v24437_v32, %v1055_v26  ;;  %v22340_v32 = vld [vmem:[%s29209_s1 + $0x744] ss:$16 sps:$4 sm:$0xff]  }
 0x2cd   : > { %3570 = vmatmul.mubr.bf16.gmra.mrb[148].mxu1 %v22276_v29  ;;  %v1057_v29 = vpop.f32.mrb[99].mxu0 }
 0x2ce   : > { %3577 = vmatprep.mubr.bf16.mxu1 %v22277_v30  ;;  %v22336_v30 = vld [vmem:[%s29209_s1 + $0x700] ss:$16 sps:$4 sm:$0xff]   ;;  %v1108_v33 = vmax.f32 %v1056_v28, 0.0 }
 0x2cf   : > { %v22379_v29 = vld [vmem:[%s29209_s1 + $0x8e0] ss:$16 sps:$4 sm:$0xff]  }
 0x2d0   : > { %v1457_v34 = vpack.c.bf16 %v1108_v33, %v1107_v27 }
 0x2d2   : > { %3939 = vmatpush1.bf16.msra.mxu1 %v1457_v34 }
 0x2d5   : > { %3578 = vmatmul.mubr.bf16.gmra.mrb[152].mxu1 %v22279_v39  ;;  %v22346_v39 = vld [vmem:[%s29209_s1 + $0x784] ss:$16 sps:$4 sm:$0xff]  }
 0x2d6   : > { %3585 = vmatprep.mubr.bf16.mxu1 %v22280_v40  ;;  %v22348_v40 = vld [vmem:[%s29209_s1 + $0x780] ss:$16 sps:$4 sm:$0xff]  }
 0x2dd   : > { %3586 = vmatmul.mubr.bf16.gmra.mrb[156].mxu1 %v22282_v43  ;;  %v22352_v43 = vld [vmem:[%s29209_s1 + $0x7c4] ss:$16 sps:$4 sm:$0xff]  }
 0x2de   : > { %3593 = vmatprep.mubr.bf16.mxu1 %v22283_v44  ;;  %v22354_v44 = vld [vmem:[%s29209_s1 + $0x7c0] ss:$16 sps:$4 sm:$0xff]  }
 0x2e5   : > { %3594 = vmatmul.mubr.bf16.gmra.mrb[160].mxu1 %v22285_v45  ;;  %v22355_v45 = vld [vmem:[%s29209_s1 + $0x7e4] ss:$16 sps:$4 sm:$0xff]  }
 0x2e6   : > { %3601 = vmatprep.mubr.bf16.mxu1 %v22286_v46  ;;  %v22357_v46 = vld [vmem:[%s29209_s1 + $0x7e0] ss:$16 sps:$4 sm:$0xff]  }
 0x2ed   : > { %3602 = vmatmul.mubr.bf16.gmra.mrb[164].mxu1 %v22288_v47  ;;  %v22360_v47 = vld [vmem:[%s29209_s1 + $0x804] ss:$16 sps:$4 sm:$0xff]  }
 0x2ee   : > { %3609 = vmatprep.mubr.bf16.mxu1 %v22289_v48 }
 0x2f5   : > { %3610 = vmatmul.mubr.bf16.gmra.mrb[168].mxu1 %v22291_v49 }
 0x2f6   : > { %3617 = vmatprep.mubr.bf16.mxu1 %v22292_v50  ;;  %v22358_v50 = vld [vmem:[%s29209_s1 + $0x800] ss:$16 sps:$4 sm:$0xff]  }
 0x2fd   : > { %3618 = vmatmul.mubr.bf16.gmra.mrb[172].mxu1 %v22294_v51 }
 0x2fe   : > { %3625 = vmatprep.mubr.bf16.mxu1 %v22295_v52  ;;  %v22363_v52 = vld [vmem:[%s29209_s1 + $0x824] ss:$16 sps:$4 sm:$0xff]  }
 0x305   : > { %3626 = vmatmul.mubr.bf16.gmra.mrb[176].mxu1 %v22297_v53 }
 0x306   : > { %3633 = vmatprep.mubr.bf16.mxu1 %v22301_v54 }
 0x30d   : > { %3634 = vmatmul.mubr.bf16.gmra.mrb[180].mxu1 %v22303_v56 }
 0x30e   : > { %3641 = vmatprep.mubr.bf16.mxu1 %v22304_v57  ;;  %v22361_v57 = vld [vmem:[%s29209_s1 + $0x820] ss:$16 sps:$4 sm:$0xff]  }
 0x315   : > { %3642 = vmatmul.mubr.bf16.gmra.mrb[184].mxu1 %v22306_v58 }
 0x316   : > { %3649 = vmatprep.mubr.bf16.mxu1 %v22307_v59  ;;  %v22366_v59 = vld [vmem:[%s29209_s1 + $0x844] ss:$16 sps:$4 sm:$0xff]  }
 0x31d   : > { %3650 = vmatmul.mubr.bf16.gmra.mrb[188].mxu1 %v22309_v4 }
 0x31e   : > { %3657 = vmatprep.mubr.bf16.mxu1 %v22310_v5 }
 0x325   : > { %3658 = vmatmul.mubr.bf16.gmra.mrb[192].mxu1 %v22312_v8  ;;  %v22372_v8 = vld [vmem:[%s29209_s1 + $0x884] ss:$16 sps:$4 sm:$0xff]  }
 0x326   : > { %3665 = vmatprep.mubr.bf16.mxu1 %v22313_v9 }
 0x32d   : > { %3666 = vmatmul.mubr.bf16.gmra.mrb[196].mxu1 %v22315_v11 }
 0x32e   : > { %3673 = vmatprep.mubr.bf16.mxu1 %v22316_v12 }
 0x335   : > { %3674 = vmatmul.mubr.bf16.gmra.mrb[200].mxu1 %v22318_v13  ;;  %v22370_v13 = vld [vmem:[%s29209_s1 + $0x880] ss:$16 sps:$4 sm:$0xff]  }
 0x336   : > { %3681 = vmatprep.mubr.bf16.mxu1 %v22319_v14 }
 0x33d   : > { %3682 = vmatmul.mubr.bf16.gmra.mrb[204].mxu1 %v22321_v55  ;;  %v22375_v55 = vld [vmem:[%s29209_s1 + $0x8a4] ss:$16 sps:$4 sm:$0xff]  }
 0x33e   : > { %3689 = vmatprep.mubr.bf16.mxu1 %v22322_v15 }
 0x345   : > { %3690 = vmatmul.mubr.bf16.gmra.mrb[208].mxu1 %v22324_v10 }
 0x346   : > { %3697 = vmatprep.mubr.bf16.mxu1 %v22325_v16 }
 0x34d   : > { %3698 = vmatmul.mubr.bf16.gmra.mrb[212].mxu1 %v22327_v17  ;;  %v22373_v17 = vld [vmem:[%s29209_s1 + $0x8a0] ss:$16 sps:$4 sm:$0xff]  }
 0x34e   : > { %3705 = vmatprep.mubr.bf16.mxu1 %v22328_v18 }
 0x355   : > { %3706 = vmatmul.mubr.bf16.gmra.mrb[216].mxu1 %v22330_v19  ;;  %v22378_v19 = vld [vmem:[%s29209_s1 + $0x8c4] ss:$16 sps:$4 sm:$0xff]  }
 0x356   : > { %3713 = vmatprep.mubr.bf16.mxu1 %v22331_v20 }
 0x35d   : > { %3714 = vmatmul.mubr.bf16.gmra.mrb[220].mxu1 %v22333_v21 }
 0x35e   : > { %3721 = vmatprep.mubr.bf16.mxu1 %v22334_v22 }
 0x365   : > { %3722 = vmatmul.mubr.bf16.gmra.mrb[224].mxu1 %v22336_v30 }
 0x366   : > { %3729 = vmatprep.mubr.bf16.mxu1 %v22337_v31  ;;  %v22384_v31 = vld [vmem:[%s29209_s1 + $0x904] ss:$16 sps:$4 sm:$0xff]  }
 0x36d   : > { %3730 = vmatmul.mubr.bf16.gmra.mrb[228].mxu1 %v22339_v35 }
 0x36e   : > { %3737 = vmatprep.mubr.bf16.mxu1 %v22340_v32  ;;  %v22382_v32 = vld [vmem:[%s29209_s1 + $0x900] ss:$16 sps:$4 sm:$0xff]  }
 0x375   : > { %3738 = vmatmul.mubr.bf16.gmra.mrb[232].mxu1 %v22342_v36 }
 0x376   : > { %3745 = vmatprep.mubr.bf16.mxu1 %v22343_v37  ;;  %v22387_v37 = vld [vmem:[%s29209_s1 + $0x924] ss:$16 sps:$4 sm:$0xff]  }
 0x37d   : > { %3746 = vmatmul.mubr.bf16.gmra.mrb[236].mxu1 %v22345_v38 }
 0x37e   : > { %3753 = vmatprep.mubr.bf16.mxu1 %v22346_v39 }
 0x385   : > { %3754 = vmatmul.mubr.bf16.gmra.mrb[240].mxu1 %v22348_v40 }
 0x386   : > { %3761 = vmatprep.mubr.bf16.mxu1 %v22349_v41  ;;  %v22385_v41 = vld [vmem:[%s29209_s1 + $0x920] ss:$16 sps:$4 sm:$0xff]  }
 0x38d   : > { %3762 = vmatmul.mubr.bf16.gmra.mrb[244].mxu1 %v22351_v42 }
 0x38e   : > { %3769 = vmatprep.mubr.bf16.mxu1 %v22352_v43  ;;  %v22390_v43 = vld [vmem:[%s29209_s1 + $0x944] ss:$16 sps:$4 sm:$0xff]  }
 0x395   : > { %3770 = vmatmul.mubr.bf16.gmra.mrb[248].mxu1 %v22354_v44 }
 0x396   : > { %3777 = vmatprep.mubr.bf16.mxu1 %v22355_v45 }
 0x39d   : > { %3778 = vmatmul.mubr.bf16.gmra.mrb[252].mxu1 %v22357_v46 }
 0x39e   : > { %3785 = vmatprep.mubr.bf16.mxu1 %v22360_v47  ;;  %v22388_v47 = vld [vmem:[%s29209_s1 + $0x940] ss:$16 sps:$4 sm:$0xff]  }
 0x3a0   : > { %v24603_v48 = vpop.f32.mrb[148].mxu1 }
 0x3a1   : > { %v3573_v49 = vpop.f32.mrb[149].mxu1 }
 0x3a2   : > { %v24608_v51 = vpop.f32.mrb[150].mxu1 }
 0x3a3   : > { %v3576_v53 = vpop.f32.mrb[151].mxu1 }
 0x3a5   : > { %3786 = vmatmul.mubr.bf16.gmra.mrb[148].mxu1 %v22358_v50  ;;  %v22393_v50 = vld [vmem:[%s29209_s1 + $0x964] ss:$16 sps:$4 sm:$0xff]  }
 0x3a6   : > { %3793 = vmatprep.mubr.bf16.mxu1 %v22363_v52 }
 0x3a8   : > { %v24613_v54 = vpop.f32.mrb[152].mxu1 }
 0x3a9   : > { %v3581_v56 = vpop.f32.mrb[153].mxu1 }
 0x3aa   : > { %v24618_v58 = vpop.f32.mrb[154].mxu1 }
 0x3ab   : > { %v3584_v60 = vpop.f32.mrb[155].mxu1 }
 0x3ac   : > { %v22396_v60 = vld [vmem:[%s29209_s1 + $0x984] ss:$16 sps:$4 sm:$0xff]  }
 0x3ad   : > { %3794 = vmatmul.mubr.bf16.gmra.mrb[152].mxu1 %v22361_v57  ;;  %v22391_v57 = vld [vmem:[%s29209_s1 + $0x960] ss:$16 sps:$4 sm:$0xff]  }
 0x3ae   : > { %3801 = vmatprep.mubr.bf16.mxu1 %v22366_v59 }
 0x3b0   : > { %v24623_v61 = vpop.f32.mrb[156].mxu1 }
 0x3b1   : > { %v3589_v62 = vpop.f32.mrb[157].mxu1 }
 0x3b2   : > { %v24628_v0 = vpop.f32.mrb[158].mxu1 }
 0x3b3   : > { %v3592_v3 = vpop.f32.mrb[159].mxu1 }
 0x3b4   : > { %v22394_v3 = vld [vmem:[%s29209_s1 + $0x980] ss:$16 sps:$4 sm:$0xff]  }
 0x3b5   : > { %3802 = vmatmul.mubr.bf16.gmra.mrb[156].mxu1 %v22364_v63 }
 0x3b6   : > { %3809 = vmatprep.mubr.bf16.mxu1 %v22369_v2 }
 0x3b8   : > { %v24633_v4 = vpop.f32.mrb[160].mxu1 }
 0x3b9   : > { %v3597_v5 = vpop.f32.mrb[161].mxu1 }
 0x3ba   : > { %v24638_v7 = vpop.f32.mrb[162].mxu1 }
 0x3bb   : > { %v3600_v9 = vpop.f32.mrb[163].mxu1 }
 0x3bd   : > { %3810 = vmatmul.mubr.bf16.gmra.mrb[160].mxu1 %v22367_v6  ;;  %v22399_v6 = vld [vmem:[%s29209_s1 + $0x9a4] ss:$16 sps:$4 sm:$0xff]  }
 0x3be   : > { %3817 = vmatprep.mubr.bf16.mxu1 %v22372_v8 }
 0x3c0   : > { %v24643_v11 = vpop.f32.mrb[164].mxu1 }
 0x3c1   : > { %v3605_v12 = vpop.f32.mrb[165].mxu1 }
 0x3c2   : > { %v24648_v14 = vpop.f32.mrb[166].mxu1 }
 0x3c3   : > { %v3608_v15 = vpop.f32.mrb[167].mxu1 }
 0x3c4   : > { %v22402_v15 = vld [vmem:[%s29209_s1 + $0x9c4] ss:$16 sps:$4 sm:$0xff]  }
 0x3c5   : > { %3818 = vmatmul.mubr.bf16.gmra.mrb[164].mxu1 %v22370_v13  ;;  %v22397_v13 = vld [vmem:[%s29209_s1 + $0x9a0] ss:$16 sps:$4 sm:$0xff]  }
 0x3c6   : > { %3825 = vmatprep.mubr.bf16.mxu1 %v22375_v55 }
 0x3c8   : > { %v24653_v10 = vpop.f32.mrb[168].mxu1 }
 0x3c9   : > { %v3613_v16 = vpop.f32.mrb[169].mxu1 }
 0x3ca   : > { %v24658_v18 = vpop.f32.mrb[170].mxu1 }
 0x3cb   : > { %v3616_v20 = vpop.f32.mrb[171].mxu1 }
 0x3cc   : > { %v22400_v20 = vld [vmem:[%s29209_s1 + $0x9c0] ss:$16 sps:$4 sm:$0xff]  }
 0x3cd   : > { %3826 = vmatmul.mubr.bf16.gmra.mrb[168].mxu1 %v22373_v17 }
 0x3ce   : > { %3833 = vmatprep.mubr.bf16.mxu1 %v22378_v19 }
 0x3d0   : > { %v24663_v21 = vpop.f32.mrb[172].mxu1 }
 0x3d1   : > { %v3621_v22 = vpop.f32.mrb[173].mxu1 }
 0x3d2   : > { %v24668_v24 = vpop.f32.mrb[174].mxu1 }
 0x3d3   : > { %v3624_v26 = vpop.f32.mrb[175].mxu1 }
 0x3d5   : > { %3834 = vmatmul.mubr.bf16.gmra.mrb[172].mxu1 %v22376_v23  ;;  %v22405_v23 = vld [vmem:[%s29209_s1 + $0x9e4] ss:$16 sps:$4 sm:$0xff]  }
 0x3d6   : > { %3841 = vmatprep.mubr.bf16.mxu1 %v22381_v25 }
 0x3d8   : > { %v24673_v27 = vpop.f32.mrb[176].mxu1 }
 0x3d9   : > { %v3629_v28 = vpop.f32.mrb[177].mxu1 }
 0x3da   : > { %v24678_v30 = vpop.f32.mrb[178].mxu1 }
 0x3db   : > { %v3632_v33 = vpop.f32.mrb[179].mxu1 }
 0x3dc   : > { %v22408_v33 = vld [vmem:[%s29209_s1 + $0xa04] ss:$16 sps:$4 sm:$0xff]  }
 0x3dd   : > { %3842 = vmatmul.mubr.bf16.gmra.mrb[176].mxu1 %v22379_v29  ;;  %v22403_v29 = vld [vmem:[%s29209_s1 + $0x9e0] ss:$16 sps:$4 sm:$0xff]  }
 0x3de   : > { %3849 = vmatprep.mubr.bf16.mxu1 %v22384_v31 }
 0x3e0   : > { %v24683_v34 = vpop.f32.mrb[180].mxu1 }
 0x3e1   : > { %v3637_v35 = vpop.f32.mrb[181].mxu1 }
 0x3e2   : > { %v24688_v36 = vpop.f32.mrb[182].mxu1 }
 0x3e3   : > { %v3640_v38 = vpop.f32.mrb[183].mxu1 }
 0x3e4   : > { %v22406_v38 = vld [vmem:[%s29209_s1 + $0xa00] ss:$16 sps:$4 sm:$0xff]  }
 0x3e5   : > { %3850 = vmatmul.mubr.bf16.gmra.mrb[180].mxu1 %v22382_v32 }
 0x3e6   : > { %3857 = vmatprep.mubr.bf16.mxu1 %v22387_v37 }
 0x3e8   : > { %v24693_v39 = vpop.f32.mrb[184].mxu1 }
 0x3e9   : > { %v3645_v40 = vpop.f32.mrb[185].mxu1 }
 0x3ea   : > { %v24698_v42 = vpop.f32.mrb[186].mxu1 }
 0x3eb   : > { %v3648_v44 = vpop.f32.mrb[187].mxu1 }
 0x3ec   : > { %v22409_v44 = vld [vmem:[%s29209_s1 + $0x8] ss:$16 sps:$4 sm:$0xff]  }
 0x3ed   : > { %3858 = vmatmul.mubr.bf16.gmra.mrb[184].mxu1 %v22385_v41  ;;  %v22411_v41 = vld [vmem:[%s29209_s1 + $0xc] ss:$16 sps:$4 sm:$0xff]  }
 0x3ee   : > { %3865 = vmatprep.mubr.bf16.mxu1 %v22390_v43 }
 0x3f0   : > { %v24703_v45 = vpop.f32.mrb[188].mxu1 }
 0x3f1   : > { %v3653_v46 = vpop.f32.mrb[189].mxu1 }
 0x3f2   : > { %v24708_v49 = vpop.f32.mrb[190].mxu1  ;;  %v22412_v46 = vld [vmem:[%s29209_s1 + $0x2c] ss:$16 sps:$4 sm:$0xff]  }
 0x3f3   : > { %v3656_v52 = vpop.f32.mrb[191].mxu1 }
 0x3f4   : > { %v22417_v52 = vld [vmem:[%s29209_s1 + $0x48] ss:$16 sps:$4 sm:$0xff]  }
 0x3f5   : > { %3866 = vmatmul.mubr.bf16.gmra.mrb[188].mxu1 %v22388_v47  ;;  %v22414_v47 = vld [vmem:[%s29209_s1 + $0x28] ss:$16 sps:$4 sm:$0xff]  }
 0x3f6   : > { %3873 = vmatprep.mubr.bf16.mxu1 %v22393_v50  ;;  %v22415_v50 = vld [vmem:[%s29209_s1 + $0x4c] ss:$16 sps:$4 sm:$0xff]  }
 0x3f8   : > { %v24713_v53 = vpop.f32.mrb[192].mxu1 }
 0x3f9   : > { %v3661_v56 = vpop.f32.mrb[193].mxu1 }
 0x3fa   : > { %v24718_v59 = vpop.f32.mrb[194].mxu1  ;;  %v22418_v56 = vld [vmem:[%s29209_s1 + $0x6c] ss:$16 sps:$4 sm:$0xff]  }
 0x3fb   : > { %v3664_v62 = vpop.f32.mrb[195].mxu1 }
 0x3fc   : > { %v22423_v62 = vld [vmem:[%s29209_s1 + $0x88] ss:$16 sps:$4 sm:$0xff]  }
 0x3fd   : > { %3874 = vmatmul.mubr.bf16.gmra.mrb[192].mxu1 %v22391_v57  ;;  %v22420_v57 = vld [vmem:[%s29209_s1 + $0x68] ss:$16 sps:$4 sm:$0xff]  }
 0x3fe   : > { %3881 = vmatprep.mubr.bf16.mxu1 %v22396_v60  ;;  %v22421_v60 = vld [vmem:[%s29209_s1 + $0x8c] ss:$16 sps:$4 sm:$0xff]  }
 0x400   : > { %v24723_v63 = vpop.f32.mrb[196].mxu1 }
 0x401   : > { %v3669_v2 = vpop.f32.mrb[197].mxu1 }
 0x402   : > { %v24728_v5 = vpop.f32.mrb[198].mxu1  ;;  %v22424_v2 = vld [vmem:[%s29209_s1 + $0xac] ss:$16 sps:$4 sm:$0xff]  }
 0x403   : > { %v3672_v8 = vpop.f32.mrb[199].mxu1 }
 0x404   : > { %v22429_v8 = vld [vmem:[%s29209_s1 + $0xc8] ss:$16 sps:$4 sm:$0xff]  }
 0x405   : > { %3882 = vmatmul.mubr.bf16.gmra.mrb[196].mxu1 %v22394_v3  ;;  %v22426_v3 = vld [vmem:[%s29209_s1 + $0xa8] ss:$16 sps:$4 sm:$0xff]  }
 0x406   : > { %3889 = vmatprep.mubr.bf16.mxu1 %v22399_v6  ;;  %v22427_v6 = vld [vmem:[%s29209_s1 + $0xcc] ss:$16 sps:$4 sm:$0xff]  }
 0x408   : > { %v24733_v9 = vpop.f32.mrb[200].mxu1 }
 0x409   : > { %v3677_v12 = vpop.f32.mrb[201].mxu1 }
 0x40a   : > { %v24738_v55 = vpop.f32.mrb[202].mxu1  ;;  %v22430_v12 = vld [vmem:[%s29209_s1 + $0xec] ss:$16 sps:$4 sm:$0xff]  }
 0x40b   : > { %v3680_v16 = vpop.f32.mrb[203].mxu1 }
 0x40c   : > { %v22435_v16 = vld [vmem:[%s29209_s1 + $0x108] ss:$16 sps:$4 sm:$0xff]  }
 0x40d   : > { %3890 = vmatmul.mubr.bf16.gmra.mrb[200].mxu1 %v22397_v13  ;;  %v22432_v13 = vld [vmem:[%s29209_s1 + $0xe8] ss:$16 sps:$4 sm:$0xff]  }
 0x40e   : > { %3897 = vmatprep.mubr.bf16.mxu1 %v22402_v15  ;;  %v22433_v15 = vld [vmem:[%s29209_s1 + $0x10c] ss:$16 sps:$4 sm:$0xff]  }
 0x410   : > { %v24743_v17 = vpop.f32.mrb[204].mxu1 }
 0x411   : > { %v3685_v19 = vpop.f32.mrb[205].mxu1 }
 0x412   : > { %v24748_v22 = vpop.f32.mrb[206].mxu1  ;;  %v22436_v19 = vld [vmem:[%s29209_s1 + $0x12c] ss:$16 sps:$4 sm:$0xff]  }
 0x413   : > { %v3688_v25 = vpop.f32.mrb[207].mxu1 }
 0x414   : > { %v22441_v25 = vld [vmem:[%s29209_s1 + $0x148] ss:$16 sps:$4 sm:$0xff]  }
 0x415   : > { %3898 = vmatmul.mubr.bf16.gmra.mrb[204].mxu1 %v22400_v20  ;;  %v22438_v20 = vld [vmem:[%s29209_s1 + $0x128] ss:$16 sps:$4 sm:$0xff]  }
 0x416   : > { %3905 = vmatprep.mubr.bf16.mxu1 %v22405_v23  ;;  %v22439_v23 = vld [vmem:[%s29209_s1 + $0x14c] ss:$16 sps:$4 sm:$0xff]  }
 0x418   : > { %v24753_v26 = vpop.f32.mrb[208].mxu1 }
 0x419   : > { %v3693_v28 = vpop.f32.mrb[209].mxu1 }
 0x41a   : > { %v24758_v31 = vpop.f32.mrb[210].mxu1  ;;  %v22442_v28 = vld [vmem:[%s29209_s1 + $0x16c] ss:$16 sps:$4 sm:$0xff]  }
 0x41b   : > { %v3696_v35 = vpop.f32.mrb[211].mxu1 }
 0x41c   : > { %v22447_v35 = vld [vmem:[%s29209_s1 + $0x188] ss:$16 sps:$4 sm:$0xff]  }
 0x41d   : > { %3906 = vmatmul.mubr.bf16.gmra.mrb[208].mxu1 %v22403_v29  ;;  %v22444_v29 = vld [vmem:[%s29209_s1 + $0x168] ss:$16 sps:$4 sm:$0xff]  }
 0x41e   : > { %3913 = vmatprep.mubr.bf16.mxu1 %v22408_v33  ;;  %v22445_v33 = vld [vmem:[%s29209_s1 + $0x18c] ss:$16 sps:$4 sm:$0xff]  }
 0x420   : > { %v24763_v32 = vpop.f32.mrb[212].mxu1 }
 0x421   : > { %v3701_v37 = vpop.f32.mrb[213].mxu1 }
 0x422   : > { %v24768_v40 = vpop.f32.mrb[214].mxu1  ;;  %v22448_v37 = vld [vmem:[%s29209_s1 + $0x1ac] ss:$16 sps:$4 sm:$0xff]  }
 0x423   : > { %v3704_v43 = vpop.f32.mrb[215].mxu1 }
 0x424   : > { %v22453_v43 = vld [vmem:[%s29209_s1 + $0x1c8] ss:$16 sps:$4 sm:$0xff]  }
 0x425   : > { %3914 = vmatmul.mubr.bf16.gmra.mrb[212].mxu1 %v22406_v38  ;;  %v22450_v38 = vld [vmem:[%s29209_s1 + $0x1a8] ss:$16 sps:$4 sm:$0xff]  }
 0x426   : > { %19025 = vmatprep.mubr.msk.bf16.mxu1 %vm2997_vm0, %v22411_v41  ;;  %v22451_v41 = vld [vmem:[%s29209_s1 + $0x1cc] ss:$16 sps:$4 sm:$0xff]  }
 0x42d   : > { %3955 = vmatmul.mubr.bf16.vlgmr.msra.gmra.mrb[0].mxu1 %v22409_v44  ;;  %v22454_v44 = vld [vmem:[%s29209_s1 + $0x1ec] ss:$16 sps:$4 sm:$0xff]  }
 0x42e   : > { %19026 = vmatprep.mubr.msk.bf16.mxu1 %vm2997_vm0, %v22412_v46  ;;  %v22456_v46 = vld [vmem:[%s29209_s1 + $0x1e8] ss:$16 sps:$4 sm:$0xff]  }
 0x435   : > { %3963 = vmatmul.mubr.bf16.gmra.mrb[4].mxu1 %v22414_v47  ;;  %v22457_v47 = vld [vmem:[%s29209_s1 + $0x20c] ss:$16 sps:$4 sm:$0xff]  }
 0x436   : > { %19027 = vmatprep.mubr.msk.bf16.mxu1 %vm2997_vm0, %v22415_v50  ;;  %v22459_v50 = vld [vmem:[%s29209_s1 + $0x208] ss:$16 sps:$4 sm:$0xff]  }
 0x43d   : > { %3971 = vmatmul.mubr.bf16.gmra.mrb[8].mxu1 %v22417_v52  ;;  %v22460_v52 = vld [vmem:[%s29209_s1 + $0x22c] ss:$16 sps:$4 sm:$0xff]  }
 0x43e   : > { %19028 = vmatprep.mubr.msk.bf16.mxu1 %vm2997_vm0, %v22418_v56  ;;  %v22462_v56 = vld [vmem:[%s29209_s1 + $0x228] ss:$16 sps:$4 sm:$0xff]  }
 0x445   : > { %3979 = vmatmul.mubr.bf16.gmra.mrb[12].mxu1 %v22420_v57  ;;  %v22463_v57 = vld [vmem:[%s29209_s1 + $0x24c] ss:$16 sps:$4 sm:$0xff]  }
 0x446   : > { %19029 = vmatprep.mubr.msk.bf16.mxu1 %vm2997_vm0, %v22421_v60  ;;  %v22511_v60 = vld [vmem:[%s29213_s5 + $0x10] sm:$0xff]  }
 0x447   : > { %21155 = vmatprep.subr.bf16.mxu0 %v22511_v60 }
 0x448   : > { %21156 = vmatpush3.bf16.msra.mxu0 %v22511_v60 }
 0x44d   : > { %3987 = vmatmul.mubr.bf16.gmra.mrb[16].mxu1 %v22423_v62  ;;  %v22465_v62 = vld [vmem:[%s29209_s1 + $0x248] ss:$16 sps:$4 sm:$0xff]  }
 0x44e   : > { %19030 = vmatprep.mubr.msk.bf16.mxu1 %vm2997_vm0, %v22424_v2  ;;  %v22466_v2 = vld [vmem:[%s29209_s1 + $0x26c] ss:$16 sps:$4 sm:$0xff]  }
 0x455   : > { %3995 = vmatmul.mubr.bf16.gmra.mrb[20].mxu1 %v22426_v3  ;;  %v22515_v3 = vld [vmem:[%s29213_s5 + $0x18] sm:$0xff]  }
 0x456   : > { %19031 = vmatprep.mubr.msk.bf16.mxu1 %vm2997_vm0, %v22427_v6  ;;  %21157 = vmatprep.subr.bf16.mxu0 %v22515_v3  ;;  %v22468_v6 = vld [vmem:[%s29209_s1 + $0x268] ss:$16 sps:$4 sm:$0xff]  }
 0x457   : > { %21158 = vmatpush3.bf16.msra.mxu0 %v22515_v3  ;;  %v22496_v3 = vld [vmem:[%s29209_s1 + $0x3ac] ss:$16 sps:$4 sm:$0xff]  }
 0x45d   : > { %4003 = vmatmul.mubr.bf16.gmra.mrb[24].mxu1 %v22429_v8  ;;  %v22469_v8 = vld [vmem:[%s29209_s1 + $0x28c] ss:$16 sps:$4 sm:$0xff]  }
 0x45e   : > { %19032 = vmatprep.mubr.msk.bf16.mxu1 %vm2997_vm0, %v22430_v12  ;;  %v22471_v12 = vld [vmem:[%s29209_s1 + $0x288] ss:$16 sps:$4 sm:$0xff]  }
 0x465   : > { %4011 = vmatmul.mubr.bf16.gmra.mrb[28].mxu1 %v22432_v13  ;;  %v22472_v13 = vld [vmem:[%s29209_s1 + $0x2ac] ss:$16 sps:$4 sm:$0xff]  }
 0x466   : > { %19033 = vmatprep.mubr.msk.bf16.mxu1 %vm2997_vm0, %v22433_v15  ;;  %v22474_v15 = vld [vmem:[%s29209_s1 + $0x2a8] ss:$16 sps:$4 sm:$0xff]  }
 0x46d   : > { %4019 = vmatmul.mubr.bf16.gmra.mrb[32].mxu1 %v22435_v16  ;;  %v22475_v16 = vld [vmem:[%s29209_s1 + $0x2cc] ss:$16 sps:$4 sm:$0xff]  }
 0x46e   : > { %19034 = vmatprep.mubr.msk.bf16.mxu1 %vm2997_vm0, %v22436_v19  ;;  %v24937_v19 = vld [vmem:[%s29213_s5] sm:$0xff]  }
 0x46f   : > { %21171 = vmatprep.subr.bf16.mxu0 %v24937_v19 }
 0x475   : > { %4027 = vmatmul.mubr.bf16.gmra.mrb[36].mxu1 %v22438_v20  ;;  %v22477_v20 = vld [vmem:[%s29209_s1 + $0x2c8] ss:$16 sps:$4 sm:$0xff]  }
 0x476   : > { %19035 = vmatprep.mubr.msk.bf16.mxu1 %vm2997_vm0, %v22439_v23  ;;  %v22478_v23 = vld [vmem:[%s29209_s1 + $0x2ec] ss:$16 sps:$4 sm:$0xff]  }
 0x47d   : > { %4035 = vmatmul.mubr.bf16.gmra.mrb[40].mxu1 %v22441_v25  ;;  %v22480_v25 = vld [vmem:[%s29209_s1 + $0x2e8] ss:$16 sps:$4 sm:$0xff]  }
 0x47e   : > { %19036 = vmatprep.mubr.msk.bf16.mxu1 %vm2997_vm0, %v22442_v28  ;;  %v22481_v28 = vld [vmem:[%s29209_s1 + $0x30c] ss:$16 sps:$4 sm:$0xff]  }
 0x485   : > { %4043 = vmatmul.mubr.bf16.gmra.mrb[44].mxu1 %v22444_v29  ;;  %v22483_v29 = vld [vmem:[%s29209_s1 + $0x308] ss:$16 sps:$4 sm:$0xff]  }
 0x486   : > { %19037 = vmatprep.mubr.msk.bf16.mxu1 %vm2997_vm0, %v22445_v33  ;;  %v22484_v33 = vld [vmem:[%s29209_s1 + $0x32c] ss:$16 sps:$4 sm:$0xff]  }
 0x48d   : > { %4051 = vmatmul.mubr.bf16.gmra.mrb[48].mxu1 %v22447_v35  ;;  %v22486_v35 = vld [vmem:[%s29209_s1 + $0x328] ss:$16 sps:$4 sm:$0xff]  }
 0x48e   : > { %19038 = vmatprep.mubr.msk.bf16.mxu1 %vm2997_vm0, %v22448_v37  ;;  %v22487_v37 = vld [vmem:[%s29209_s1 + $0x34c] ss:$16 sps:$4 sm:$0xff]  }
 0x495   : > { %4059 = vmatmul.mubr.bf16.gmra.mrb[52].mxu1 %v22450_v38  ;;  %v22489_v38 = vld [vmem:[%s29209_s1 + $0x348] ss:$16 sps:$4 sm:$0xff]  }
 0x496   : > { %19039 = vmatprep.mubr.msk.bf16.mxu1 %vm2997_vm0, %v22451_v41  ;;  %v22490_v41 = vld [vmem:[%s29209_s1 + $0x36c] ss:$16 sps:$4 sm:$0xff]  }
 0x49d   : > { %4067 = vmatmul.mubr.bf16.gmra.mrb[56].mxu1 %v22453_v43 }
 0x49e   : > { %19040 = vmatprep.mubr.msk.bf16.mxu1 %vm2997_vm0, %v22454_v44 }
 0x4a5   : > { %4075 = vmatmul.mubr.bf16.gmra.mrb[60].mxu1 %v22456_v46  ;;  %v22492_v46 = vld [vmem:[%s29209_s1 + $0x368] ss:$16 sps:$4 sm:$0xff]  }
 0x4a6   : > { %19041 = vmatprep.mubr.msk.bf16.mxu1 %vm2997_vm0, %v22457_v47 }
 0x4ad   : > { %4083 = vmatmul.mubr.bf16.gmra.mrb[64].mxu1 %v22459_v50  ;;  %v22493_v50 = vld [vmem:[%s29209_s1 + $0x38c] ss:$16 sps:$4 sm:$0xff]  }
 0x4ae   : > { %19042 = vmatprep.mubr.msk.bf16.mxu1 %vm2997_vm0, %v22460_v52 }
 0x4b5   : > { %4091 = vmatmul.mubr.bf16.gmra.mrb[68].mxu1 %v22462_v56 }
 0x4b6   : > { %19043 = vmatprep.mubr.msk.bf16.mxu1 %vm2997_vm0, %v22463_v57 }
 0x4bd   : > { %4099 = vmatmul.mubr.bf16.gmra.mrb[72].mxu1 %v22465_v62  ;;  %v22495_v62 = vld [vmem:[%s29209_s1 + $0x388] ss:$16 sps:$4 sm:$0xff]  }
 0x4be   : > { %19044 = vmatprep.mubr.msk.bf16.mxu1 %vm2997_vm0, %v22466_v2 }
 0x4c5   : > { %4107 = vmatmul.mubr.bf16.gmra.mrb[76].mxu1 %v22468_v6  ;;  %v22514_v6 = vld [vmem:[%s29209_s1 + $0x448] ss:$16 sps:$4 sm:$0xff]  }
 0x4c6   : > { %19045 = vmatprep.mubr.msk.bf16.mxu1 %vm2997_vm0, %v22469_v8 }
 0x4cd   : > { %4115 = vmatmul.mubr.bf16.gmra.mrb[80].mxu1 %v22471_v12 }
 0x4ce   : > { %19046 = vmatprep.mubr.msk.bf16.mxu1 %vm2997_vm0, %v22472_v13 }
 0x4d5   : > { %4123 = vmatmul.mubr.bf16.gmra.mrb[84].mxu1 %v22474_v15  ;;  %v22498_v15 = vld [vmem:[%s29209_s1 + $0x3a8] ss:$16 sps:$4 sm:$0xff]  }
 0x4d6   : > { %19047 = vmatprep.mubr.msk.bf16.mxu1 %vm2997_vm0, %v22475_v16 }
 0x4dd   : > { %4131 = vmatmul.mubr.bf16.gmra.mrb[88].mxu1 %v22477_v20  ;;  %v22499_v20 = vld [vmem:[%s29209_s1 + $0x3cc] ss:$16 sps:$4 sm:$0xff]  }
 0x4de   : > { %19048 = vmatprep.mubr.msk.bf16.mxu1 %vm2997_vm0, %v22478_v23 }
 0x4e5   : > { %4139 = vmatmul.mubr.bf16.gmra.mrb[92].mxu1 %v22480_v25 }
 0x4e6   : > { %19049 = vmatprep.mubr.msk.bf16.mxu1 %vm2997_vm0, %v22481_v28 }
 0x4ed   : > { %4147 = vmatmul.mubr.bf16.gmra.mrb[96].mxu1 %v22483_v29 }
 0x4ee   : > { %19050 = vmatprep.mubr.msk.bf16.mxu1 %vm2997_vm0, %v22484_v33  ;;  %v22501_v33 = vld [vmem:[%s29209_s1 + $0x3c8] ss:$16 sps:$4 sm:$0xff]  }
 0x4f5   : > { %4155 = vmatmul.mubr.bf16.gmra.mrb[100].mxu1 %v22486_v35 }
 0x4f6   : > { %19051 = vmatprep.mubr.msk.bf16.mxu1 %vm2997_vm0, %v22487_v37  ;;  %v22502_v37 = vld [vmem:[%s29209_s1 + $0x3ec] ss:$16 sps:$4 sm:$0xff]  }
 0x4fd   : > { %4163 = vmatmul.mubr.bf16.gmra.mrb[104].mxu1 %v22489_v38 }
 0x4fe   : > { %19052 = vmatprep.mubr.msk.bf16.mxu1 %vm2997_vm0, %v22490_v41 }
 0x500   : > { %v24975_v43 = vpop.f32.mrb[0].mxu1 }
 0x501   : > { %v3958_v44 = vpop.f32.mrb[1].mxu1 }
 0x502   : > { %v24980_v47 = vpop.f32.mrb[2].mxu1 }
 0x503   : > { %v3961_v56 = vpop.f32.mrb[3].mxu1 }
 0x505   : > { %4171 = vmatmul.mubr.bf16.gmra.mrb[108].mxu1 %v22492_v46 }
 0x506   : > { %19053 = vmatprep.mubr.msk.bf16.mxu1 %vm2997_vm0, %v22493_v50  ;;  %v22504_v50 = vld [vmem:[%s29209_s1 + $0x3e8] ss:$16 sps:$4 sm:$0xff]  }
 0x508   : > { %v24988_v57 = vpop.f32.mrb[4].mxu1 }
 0x509   : > { %v3966_v60 = vpop.f32.mrb[5].mxu1 }
 0x50a   : > { %v24993_v2 = vpop.f32.mrb[6].mxu1  ;;  %v22505_v60 = vld [vmem:[%s29209_s1 + $0x40c] ss:$16 sps:$4 sm:$0xff]  }
 0x50b   : > { %v3969_v8 = vpop.f32.mrb[7].mxu1 }
 0x50d   : > { %4179 = vmatmul.mubr.bf16.gmra.mrb[112].mxu1 %v22495_v62 }
 0x50e   : > { %19054 = vmatprep.mubr.msk.bf16.mxu1 %vm2997_vm0, %v22496_v3 }
 0x510   : > { %v25001_v12 = vpop.f32.mrb[8].mxu1 }
 0x511   : > { %v3974_v13 = vpop.f32.mrb[9].mxu1 }
 0x512   : > { %v25006_v16 = vpop.f32.mrb[10].mxu1 }
 0x513   : > { %v3977_v25 = vpop.f32.mrb[11].mxu1 }
 0x514   : > { %v22508_v25 = vld [vmem:[%s29209_s1 + $0x42c] ss:$16 sps:$4 sm:$0xff]  }
 0x515   : > { %4187 = vmatmul.mubr.bf16.gmra.mrb[116].mxu1 %v22498_v15  ;;  %v22507_v15 = vld [vmem:[%s29209_s1 + $0x408] ss:$16 sps:$4 sm:$0xff]  }
 0x516   : > { %19055 = vmatprep.mubr.msk.bf16.mxu1 %vm2997_vm0, %v22499_v20 }
 0x518   : > { %v25014_v28 = vpop.f32.mrb[12].mxu1 }
 0x519   : > { %v3982_v29 = vpop.f32.mrb[13].mxu1 }
 0x51a   : > { %v25019_v35 = vpop.f32.mrb[14].mxu1 }
 0x51b   : > { %v3985_v41 = vpop.f32.mrb[15].mxu1 }
 0x51d   : > { %4195 = vmatmul.mubr.bf16.gmra.mrb[120].mxu1 %v22501_v33 }
 0x51e   : > { %19056 = vmatprep.mubr.msk.bf16.mxu1 %vm2997_vm0, %v22502_v37 }
 0x520   : > { %v25027_v44 = vpop.f32.mrb[16].mxu1 }
 0x521   : > { %v3990_v46 = vpop.f32.mrb[17].mxu1 }
 0x522   : > { %v25032_v56 = vpop.f32.mrb[18].mxu1 }
 0x523   : > { %v3993_v3 = vpop.f32.mrb[19].mxu1 }
 0x524   : > { %v22512_v3 = vld [vmem:[%s29209_s1 + $0x44c] ss:$16 sps:$4 sm:$0xff]  }
 0x525   : > { %4203 = vmatmul.mubr.bf16.gmra.mrb[124].mxu1 %v22504_v50  ;;  %v22510_v50 = vld [vmem:[%s29209_s1 + $0x428] ss:$16 sps:$4 sm:$0xff]  }
 0x526   : > { %19057 = vmatprep.mubr.msk.bf16.mxu1 %vm2997_vm0, %v22505_v60 }
 0x528   : > { %v25040_v8 = vpop.f32.mrb[20].mxu1 }
 0x529   : > { %v3998_v13 = vpop.f32.mrb[21].mxu1 }
 0x52a   : > { %v3999_v20 = vpop.f32.mrb[22].mxu1 }
 0x52b   : > { %v4613_v29 = vpack.c.bf16 %v3999_v20, %v25040_v8  ;;  %v4001_v33 = vpop.f32.mrb[23].mxu1 }
 0x52d   : > { %4211 = vmatmul.mubr.bf16.gmra.mrb[128].mxu1 %v22507_v15  ;;  %v4627_v37 = vshll.u32 %v4613_v29, 16  ;;  %v4625_v20 = vshrl.u32 %v4613_v29, 16 }
 0x52e   : > { %19058 = vmatprep.mubr.msk.bf16.mxu1 %vm2997_vm0, %v22508_v25 }
 0x52f   : > { %v4629_v13 = vrot.slane %v4627_v37, 1 }
 0x530   : > { %v4004_v41 = vpop.f32.mrb[24].mxu1 }
 0x531   : > { %v4006_v46 = vpop.f32.mrb[25].mxu1  ;;  %v4630_v15 = vor.u32 %v4629_v13, %v4625_v20  ;;  %v22529_v20 = vld [vmem:[%s29213_s5 + $0x8] sm:$0xff]  }
 0x532   : > { %v4007_v60 = vpop.f32.mrb[26].mxu1 }
 0x533   : > { %v4614_v1 = vpack.c.bf16 %v4007_v60, %v4004_v41  ;;  %v4009_v62 = vpop.f32.mrb[27].mxu1 }
 0x534   : > { %v22516_v62 = vld [vmem:[%s29209_s1 + $0x46c] ss:$16 sps:$4 sm:$0xff]  }
 0x535   : > { %v4632_v33 = vshll.u32 %v4614_v1, 16  ;;  %4219 = vmatmul.mubr.bf16.gmra.mrb[132].mxu1 %v22510_v50  ;;  %v4636_v50 = vshrl.u32 %v4614_v1, 16  ;;  %v22519_v1 = vld [vmem:[%s29209_s1 + $0x48c] ss:$16 sps:$4 sm:$0xff]  }
 0x536   : > { %19059 = vmatprep.mubr.msk.bf16.mxu1 %vm2997_vm0, %v22512_v3 }
 0x537   : > { %v4634_v25 = vrot.slane %v4632_v33, 1 }
 0x538   : > { %v4012_v46 = vpop.f32.mrb[28].mxu1 }
 0x539   : > { %v4014_v38 = vpop.f32.mrb[29].mxu1  ;;  %v4635_v23 = vsel %vm4623_vm1, %v4630_v15, %v4634_v25  ;;  %v22518_v15 = vld [vmem:[%s29209_s1 + $0x468] ss:$16 sps:$4 sm:$0xff]  }
 0x53a   : > { %v4015_v37 = vpop.f32.mrb[30].mxu1  ;;  %21159 = vmatprep.mubr.msk.bf16.mxu0 %vm4682_vm2, %v4635_v23  ;;  %v4638_v38 = vor.u32 %v4636_v50, %v4634_v25 }
 0x53b   : > { %v4615_v29 = vpack.c.bf16 %v4015_v37, %v4012_v46  ;;  %v4017_v41 = vpop.f32.mrb[31].mxu1  ;;  %v25081_v37 = vld [vmem:[%s29213_s5 + $0x20] sm:$0xff]  }
 0x53d   : > { %v4640_v60 = vshll.u32 %v4615_v29, 16  ;;  %4227 = vmatmul.mubr.bf16.gmra.mrb[136].mxu1 %v22514_v6 }
 0x53e   : > { %19060 = vmatprep.mubr.msk.bf16.mxu1 %vm2997_vm0, %v22516_v62  ;;  %v4644_v62 = vshrl.u32 %v4615_v29, 16  ;;  %v22524_v29 = vld [vmem:[%s29209_s1 + $0x4ac] ss:$16 sps:$4 sm:$0xff]  }
 0x53f   : > { %v4642_v3 = vrot.slane %v4640_v60, 1 }
 0x540   : > { %v4020_v13 = vpop.f32.mrb[32].mxu1 }
 0x541   : > { %v4022_v33 = vpop.f32.mrb[33].mxu1  ;;  %v4643_v23 = vsel %vm4623_vm1, %v4638_v38, %v4642_v3  ;;  %v4646_v50 = vor.u32 %v4644_v62, %v4642_v3 }
 0x542   : > { %v4023_v46 = vpop.f32.mrb[34].mxu1  ;;  %21160 = vmatmul.mubr.msk.bf16.vlgmr.msra.gmra.mrb[100].mxu0 %vm4682_vm2, %v4643_v23  ;;  %v22521_v33 = vld [vmem:[%s29209_s1 + $0x488] ss:$16 sps:$4 sm:$0xff]  }
 0x543   : > { %v4616_v6 = vpack.c.bf16 %v4023_v46, %v4020_v13  ;;  %v4025_v25 = vpop.f32.mrb[35].mxu1  ;;  %21172 = vmatpush3.bf16.msra.mxu0 %v24937_v19 }
 0x544   : > { %21173 = vmatprep.subr.bf16.mxu0 %v22529_v20 }
 0x545   : > { %v4648_v41 = vshll.u32 %v4616_v6, 16  ;;  %4235 = vmatmul.mubr.bf16.gmra.mrb[140].mxu1 %v22518_v15 }
 0x546   : > { %19061 = vmatprep.mubr.msk.bf16.mxu1 %vm2997_vm0, %v22519_v1 }
 0x547   : > { %v4650_v60 = vrot.slane %v4648_v41, 1  ;;  %21174 = vmatpush3.bf16.msra.mxu0 %v22529_v20  ;;  %v4652_v20 = vshrl.u32 %v4616_v6, 16  ;;  %v22528_v6 = vld [vmem:[%s29209_s1 + $0x4cc] ss:$16 sps:$4 sm:$0xff]  }
 0x548   : > { %v4028_v38 = vpop.f32.mrb[36].mxu1  ;;  %21187 = vmatprep.subr.bf16.mxu0 %v25081_v37 }
 0x549   : > { %v4030_v13 = vpop.f32.mrb[37].mxu1  ;;  %v4651_v19 = vsel %vm4623_vm1, %v4646_v50, %v4650_v60  ;;  %v4654_v1 = vor.u32 %v4652_v20, %v4650_v60 }
 0x54a   : > { %v4031_v23 = vpop.f32.mrb[38].mxu1  ;;  %21163 = vmatprep.mubr.msk.bf16.mxu0 %vm4682_vm2, %v4651_v19  ;;  %v22522_v19 = vld [vmem:[%s29209_s1 + $0x4a8] ss:$16 sps:$4 sm:$0xff]  }
 0x54b   : > { %v4617_v3 = vpack.c.bf16 %v4031_v23, %v4028_v38  ;;  %v4033_v15 = vpop.f32.mrb[39].mxu1 }
 0x54d   : > { %v4656_v46 = vshll.u32 %v4617_v3, 16  ;;  %4243 = vmatmul.mubr.bf16.gmra.mrb[144].mxu1 %v22521_v33  ;;  %v4660_v38 = vshrl.u32 %v4617_v3, 16 }
 0x54e   : > { %19062 = vmatprep.mubr.msk.bf16.mxu1 %vm2997_vm0, %v22524_v29 }
 0x54f   : > { %v4658_v25 = vrot.slane %v4656_v46, 1 }
 0x550   : > { %v4036_v62 = vpop.f32.mrb[40].mxu1 }
 0x551   : > { %v4618_v41 = vpack.c.bf16 %v4036_v62, %v4036_v62  ;;  %v4038_v50 = vpop.f32.mrb[41].mxu1  ;;  %v4659_v13 = vsel %vm4623_vm1, %v4654_v1, %v4658_v25  ;;  %v4662_v29 = vor.u32 %v4660_v38, %v4658_v25 }
 0x552   : > { %v4039_v52 = vpop.f32.mrb[42].mxu1  ;;  %21164 = vmatmul.mubr.msk.bf16.gmra.mrb[104].mxu0 %vm4682_vm2, %v4659_v13  ;;  %v22526_v13 = vld [vmem:[%s29209_s1 + $0x4c8] ss:$16 sps:$4 sm:$0xff]  }
 0x553   : > { %v4664_v33 = vshll.u32 %v4618_v41, 16  ;;  %v4891_v60 = vpack.c.bf16 %v4039_v52, %v4036_v62  ;;  %v4041_v23 = vpop.f32.mrb[43].mxu1  ;;  %v4668_v1 = vshrl.u32 %v4618_v41, 16  ;;  %v22532_v52 = vld [vmem:[%s29209_s1 + $0x4ec] ss:$16 sps:$4 sm:$0xff]  }
 0x554   : > { %v22540_v23 = vld [vmem:[%s29213_s5 + $0x28] sm:$0xff]  }
 0x555   : > { %4251 = vmatmul.mubr.bf16.gmra.mrb[0].mxu1 %v22522_v19  ;;  %v4666_v15 = vrot.slane %v4664_v33, 1  ;;  %v29226_v19 = vpack.c.bf16 %v24980_v47, %v24975_v43  ;;  %v4908_v41 = vrot.slane %v4891_v60, 1  ;;  %v22530_v43 = vld [vmem:[%s29209_s1 + $0x4e8] ss:$16 sps:$4 sm:$0xff]   ;;  %v29227_v60 = vpack.c.bf16 %v24993_v2, %v24988_v57  ;;  %v22550_v57 = vld [vmem:[%s29213_s5 + $0x30] sm:$0xff]  }
 0x556   : > { %19063 = vmatprep.mubr.msk.bf16.mxu1 %vm2997_vm0, %v22528_v6 }
 0x557   : > { %v4667_v20 = vsel %vm4623_vm1, %v4662_v29, %v4666_v15  ;;  %v22535_v15 = vld [vmem:[%s29209_s1 + $0x50c] ss:$16 sps:$4 sm:$0xff]  }
 0x558   : > { %v4044_v46 = vpop.f32.mrb[44].mxu1  ;;  %21167 = vmatprep.mubr.msk.bf16.mxu0 %vm4682_vm2, %v4667_v20 }
 0x559   : > { %v4046_v50 = vpop.f32.mrb[45].mxu1 }
 0x55a   : > { %v4047_v3 = vpop.f32.mrb[46].mxu1  ;;  %21168 = vmatmul.mubr.msk.bf16.gmra.mrb[108].mxu0 %vm4682_vm2, %v4668_v1  ;;  %v29228_v1 = vpack.c.bf16 %v25006_v16, %v25001_v12  ;;  %v22533_v12 = vld [vmem:[%s29209_s1 + $0x508] ss:$16 sps:$4 sm:$0xff]  }
 0x55b   : > { %v4892_v25 = vpack.c.bf16 %v4047_v3, %v4044_v46  ;;  %v4049_v62 = vpop.f32.mrb[47].mxu1  ;;  %21175 = vmatprep.mubr.msk.bf16.mxu0 %vm4682_vm2, %v29226_v19  ;;  %v29230_v19 = vpack.c.bf16 %v25032_v56, %v25027_v44  ;;  %v22543_v44 = vld [vmem:[%s29209_s1 + $0x54c] ss:$16 sps:$4 sm:$0xff]  }
 0x55d   : > { %v4909_v6 = vrot.slane %v4892_v25, 1  ;;  %4259 = vmatmul.mubr.bf16.gmra.mrb[4].mxu1 %v22526_v13 }
 0x55e   : > { %19064 = vmatprep.mubr.msk.bf16.mxu1 %vm2997_vm0, %v22532_v52  ;;  %v22539_v52 = vld [vmem:[%s29209_s1 + $0x52c] ss:$16 sps:$4 sm:$0xff]  }
 0x55f   : > { %v4910_v38 = vsel %vm4907_vm3, %v4908_v41, %v4909_v6 }
 0x560   : > { %v4052_v33 = vpop.f32.mrb[48].mxu1 }
 0x561   : > { %v4054_v29 = vpop.f32.mrb[49].mxu1 }
 0x562   : > { %v4055_v47 = vpop.f32.mrb[50].mxu1  ;;  %21176 = vmatmul.mubr.msk.bf16.vlgmr.msra.gmra.mrb[100].mxu0 %vm4682_vm2, %v29227_v60 }
 0x563   : > { %v4893_v20 = vpack.c.bf16 %v4055_v47, %v4052_v33  ;;  %v4057_v46 = vpop.f32.mrb[51].mxu1  ;;  %21179 = vmatprep.mubr.msk.bf16.mxu0 %vm4682_vm2, %v29228_v1  ;;  %21188 = vmatpush3.bf16.msra.mxu0 %v25081_v37  ;;  %v29229_v37 = vpack.c.bf16 %v25019_v35, %v25014_v28  ;;  %v4608_v28 = vpack.c.bf16 %v25040_v8, %v25040_v8  ;;  %v22541_v1 = vld [vmem:[%s29209_s1 + $0x548] ss:$16 sps:$4 sm:$0xff]  }
 0x564   : > { %21189 = vmatprep.subr.bf16.mxu0 %v22540_v23 }
 0x565   : > { %v4911_v2 = vrot.slane %v4893_v20, 1  ;;  %4267 = vmatmul.mubr.bf16.gmra.mrb[8].mxu1 %v22530_v43 }
 0x566   : > { %19065 = vmatprep.mubr.msk.bf16.mxu1 %vm2997_vm0, %v22535_v15  ;;  %v22551_v15 = vld [vmem:[%s29213_s5 + $0x38] sm:$0xff]  }
 0x567   : > { %21190 = vmatpush3.bf16.msra.mxu0 %v22540_v23  ;;  %v4912_v50 = vsel %vm4907_vm3, %v4909_v6, %v4911_v2  ;;  %v22537_v23 = vld [vmem:[%s29209_s1 + $0x528] ss:$16 sps:$4 sm:$0xff]  }
 0x568   : > { %v4060_v13 = vpop.f32.mrb[52].mxu1  ;;  %21203 = vmatprep.subr.bf16.mxu0 %v22550_v57 }
 0x569   : > { %v4062_v3 = vpop.f32.mrb[53].mxu1 }
 0x56a   : > { %v4063_v16 = vpop.f32.mrb[54].mxu1  ;;  %21180 = vmatmul.mubr.msk.bf16.gmra.mrb[104].mxu0 %vm4682_vm2, %v29229_v37 }
 0x56b   : > { %v4894_v25 = vpack.c.bf16 %v4063_v16, %v4060_v13  ;;  %v4065_v62 = vpop.f32.mrb[55].mxu1  ;;  %21183 = vmatprep.mubr.msk.bf16.mxu0 %vm4682_vm2, %v29230_v19  ;;  %v22564_v16 = vld [vmem:[%s29213_s5 + $0x40] sm:$0xff]  }
 0x56d   : > { %v4913_v41 = vrot.slane %v4894_v25, 1  ;;  %4275 = vmatmul.mubr.bf16.gmra.mrb[12].mxu1 %v22533_v12 }
 0x56e   : > { %19066 = vmatprep.mubr.msk.bf16.mxu1 %vm2997_vm0, %v22539_v52 }
 0x56f   : > { %v4914_v6 = vsel %vm4907_vm3, %v4911_v2, %v4913_v41 }
 0x570   : > { %v4068_v35 = vpop.f32.mrb[56].mxu1 }
 0x571   : > { %v4070_v33 = vpop.f32.mrb[57].mxu1 }
 0x572   : > { %v4071_v29 = vpop.f32.mrb[58].mxu1  ;;  %21184 = vmatmul.mubr.msk.bf16.gmra.mrb[112].mxu0 %vm4682_vm2, %v4608_v28 }
 0x573   : > { %v4895_v56 = vpack.c.bf16 %v4071_v29, %v4068_v35  ;;  %v4073_v43 = vpop.f32.mrb[59].mxu1  ;;  %21191 = vmatprep.mubr.msk.bf16.mxu0 %vm4682_vm2, %v4910_v38  ;;  %v22546_v38 = vld [vmem:[%s29209_s1 + $0x56c] ss:$16 sps:$4 sm:$0xff]  }
 0x575   : > { %v4915_v47 = vrot.slane %v4895_v56, 1  ;;  %4283 = vmatmul.mubr.bf16.gmra.mrb[16].mxu1 %v22537_v23 }
 0x576   : > { %19067 = vmatprep.mubr.msk.bf16.mxu1 %vm2997_vm0, %v22543_v44 }
 0x577   : > { %v4916_v8 = vsel %vm4907_vm3, %v4913_v41, %v4915_v47  ;;  %v22549_v41 = vld [vmem:[%s29209_s1 + $0x58c] ss:$16 sps:$4 sm:$0xff]  }
 0x578   : > { %v4076_v60 = vpop.f32.mrb[60].mxu1 }
 0x579   : > { %v4896_v20 = vpack.c.bf16 %v4076_v60, %v4076_v60  ;;  %v4078_v46 = vpop.f32.mrb[61].mxu1 }
 0x57a   : > { %v4079_v2 = vpop.f32.mrb[62].mxu1  ;;  %21192 = vmatmul.mubr.msk.bf16.vlgmr.msra.gmra.mrb[100].mxu0 %vm4682_vm2, %v4912_v50  ;;  %v22554_v46 = vld [vmem:[%s29209_s1 + $0x5ac] ss:$16 sps:$4 sm:$0xff]  }
 0x57b   : > { %v4917_v13 = vrot.slane %v4896_v20, 1  ;;  %v5040_v3 = vpack.c.bf16 %v4079_v2, %v4076_v60  ;;  %v4081_v12 = vpop.f32.mrb[63].mxu1  ;;  %21195 = vmatprep.mubr.msk.bf16.mxu0 %vm4682_vm2, %v4914_v6  ;;  %21204 = vmatpush3.bf16.msra.mxu0 %v22550_v57  ;;  %v22544_v57 = vld [vmem:[%s29209_s1 + $0x568] ss:$16 sps:$4 sm:$0xff]  }
 0x57c   : > { %21205 = vmatprep.subr.bf16.mxu0 %v22551_v15 }
 0x57d   : > { %4291 = vmatmul.mubr.bf16.gmra.mrb[20].mxu1 %v22541_v1  ;;  %v4918_v37 = vsel %vm4907_vm3, %v4915_v47, %v4917_v13  ;;  %v5052_v52 = vshrl.u32 %v5040_v3, 16  ;;  %v5055_v25 = vshll.u32 %v5040_v3, 16 }
 0x57e   : > { %19068 = vmatprep.mubr.msk.bf16.mxu1 %vm2997_vm0, %v22546_v38 }
 0x57f   : > { %21206 = vmatpush3.bf16.msra.mxu0 %v22551_v15  ;;  %v5054_v35 = vrot.slane %v5052_v52, 1  ;;  %v5057_v33 = vrot.slane %v5055_v25, 2 }
 0x580   : > { %v4084_v50 = vpop.f32.mrb[64].mxu1  ;;  %21219 = vmatprep.subr.bf16.mxu0 %v22564_v16 }
 0x581   : > { %v4086_v62 = vpop.f32.mrb[65].mxu1  ;;  %v5058_v60 = vor.u32 %v5057_v33, %v5054_v35 }
 0x582   : > { %v4087_v19 = vpop.f32.mrb[66].mxu1  ;;  %21196 = vmatmul.mubr.msk.bf16.gmra.mrb[104].mxu0 %vm4682_vm2, %v4916_v8  ;;  %v22547_v8 = vld [vmem:[%s29209_s1 + $0x588] ss:$16 sps:$4 sm:$0xff]  }
 0x583   : > { %v5041_v6 = vpack.c.bf16 %v4087_v19, %v4084_v50  ;;  %v4089_v28 = vpop.f32.mrb[67].mxu1  ;;  %21199 = vmatprep.mubr.msk.bf16.mxu0 %vm4682_vm2, %v4918_v37  ;;  %v22552_v62 = vld [vmem:[%s29209_s1 + $0x5a8] ss:$16 sps:$4 sm:$0xff]   ;;  %v22557_v19 = vld [vmem:[%s29209_s1 + $0x5cc] ss:$16 sps:$4 sm:$0xff]  }
 0x585   : > { %v5060_v23 = vshrl.u32 %v5041_v6, 16  ;;  %v5063_v29 = vshll.u32 %v5041_v6, 16  ;;  %4299 = vmatmul.mubr.bf16.gmra.mrb[24].mxu1 %v22544_v57 }
 0x586   : > { %19069 = vmatprep.mubr.msk.bf16.mxu1 %vm2997_vm0, %v22549_v41  ;;  %v22568_v41 = vld [vmem:[%s29213_s5 + $0x48] sm:$0xff]  }
 0x587   : > { %v5062_v44 = vrot.slane %v5060_v23, 1  ;;  %v5065_v56 = vrot.slane %v5063_v29, 2  ;;  %v25219_v29 = vld [vmem:[%s29213_s5 + $0x50] sm:$0xff]  }
 0x588   : > { %v4092_v43 = vpop.f32.mrb[68].mxu1 }
 0x589   : > { %v4094_v47 = vpop.f32.mrb[69].mxu1  ;;  %v5066_v15 = vor.u32 %v5065_v56, %v5062_v44 }
 0x58a   : > { %v4095_v20 = vpop.f32.mrb[70].mxu1  ;;  %21200 = vmatmul.mubr.msk.bf16.gmra.mrb[116].mxu0 %vm4682_vm2, %v4917_v13 }
 0x58b   : > { %v5042_v1 = vpack.c.bf16 %v4095_v20, %v4092_v43  ;;  %v4097_v2 = vpop.f32.mrb[71].mxu1  ;;  %v5067_v38 = vsel %vm5050_vm4, %v5058_v60, %v5066_v15 }
 0x58c   : > { %21207 = vmatprep.mubr.msk.bf16.mxu0 %vm4682_vm2, %v5067_v38 }
 0x58d   : > { %v5069_v3 = vshrl.u32 %v5042_v1, 16  ;;  %v5072_v12 = vshll.u32 %v5042_v1, 16  ;;  %4307 = vmatmul.mubr.bf16.gmra.mrb[28].mxu1 %v22547_v8  ;;  %v22555_v8 = vld [vmem:[%s29209_s1 + $0x5c8] ss:$16 sps:$4 sm:$0xff]  }
 0x58e   : > { %19070 = vmatprep.mubr.msk.bf16.mxu1 %vm2997_vm0, %v22554_v46 }
 0x58f   : > { %v5071_v37 = vrot.slane %v5069_v3, 1  ;;  %v5074_v50 = vrot.slane %v5072_v12, 2 }
 0x590   : > { %v4100_v52 = vpop.f32.mrb[72].mxu1 }
 0x591   : > { %v5075_v25 = vor.u32 %v5074_v50, %v5071_v37  ;;  %v4102_v13 = vpop.f32.mrb[73].mxu1 }
 0x592   : > { %v4103_v57 = vpop.f32.mrb[74].mxu1  ;;  %v22558_v13 = vld [vmem:[%s29209_s1 + $0x5e8] ss:$16 sps:$4 sm:$0xff]  }
 0x593   : > { %v5043_v6 = vpack.c.bf16 %v4103_v57, %v4100_v52  ;;  %v4105_v28 = vpop.f32.mrb[75].mxu1  ;;  %v5076_v35 = vsel %vm5050_vm4, %v5066_v15, %v5075_v25 }
 0x594   : > { %21208 = vmatmul.mubr.msk.bf16.vlgmr.msra.gmra.mrb[100].mxu0 %vm4682_vm2, %v5076_v35 }
 0x595   : > { %v5078_v33 = vshrl.u32 %v5043_v6, 16  ;;  %v5081_v23 = vshll.u32 %v5043_v6, 16  ;;  %4315 = vmatmul.mubr.bf16.gmra.mrb[32].mxu1 %v22552_v62  ;;  %21220 = vmatpush3.bf16.msra.mxu0 %v22564_v16  ;;  %v22560_v16 = vld [vmem:[%s29209_s1 + $0x5ec] ss:$16 sps:$4 sm:$0xff]  }
 0x596   : > { %19071 = vmatprep.mubr.msk.bf16.mxu1 %vm2997_vm0, %v22557_v19  ;;  %21221 = vmatprep.subr.bf16.mxu0 %v22568_v41 }
 0x597   : > { %v5080_v44 = vrot.slane %v5078_v33, 1  ;;  %v5083_v56 = vrot.slane %v5081_v23, 2 }
 0x598   : > { %v4108_v43 = vpop.f32.mrb[76].mxu1 }
 0x599   : > { %v4110_v47 = vpop.f32.mrb[77].mxu1  ;;  %v5084_v60 = vor.u32 %v5083_v56, %v5080_v44  ;;  %21222 = vmatpush3.bf16.msra.mxu0 %v22568_v41 }
 0x59a   : > { %v4111_v15 = vpop.f32.mrb[78].mxu1  ;;  %21235 = vmatprep.subr.bf16.mxu0 %v25219_v29 }
 0x59b   : > { %v5044_v20 = vpack.c.bf16 %v4111_v15, %v4108_v43  ;;  %v4113_v46 = vpop.f32.mrb[79].mxu1  ;;  %v5085_v1 = vsel %vm5050_vm4, %v5075_v25, %v5084_v60  ;;  %v22563_v25 = vld [vmem:[%s29209_s1 + $0x60c] ss:$16 sps:$4 sm:$0xff]  }
 0x59c   : > { %21211 = vmatprep.mubr.msk.bf16.mxu0 %vm4682_vm2, %v5085_v1 }
 0x59d   : > { %v5087_v2 = vshrl.u32 %v5044_v20, 16  ;;  %v5090_v38 = vshll.u32 %v5044_v20, 16  ;;  %4323 = vmatmul.mubr.bf16.gmra.mrb[36].mxu1 %v22555_v8  ;;  %v22561_v8 = vld [vmem:[%s29209_s1 + $0x608] ss:$16 sps:$4 sm:$0xff]  }
 0x59e   : > { %19072 = vmatprep.mubr.msk.bf16.mxu1 %vm2997_vm0, %v22560_v16 }
 0x59f   : > { %v5089_v3 = vrot.slane %v5087_v2, 1  ;;  %v5092_v12 = vrot.slane %v5090_v38, 2 }
 0x5a0   : > { %v4116_v37 = vpop.f32.mrb[80].mxu1 }
 0x5a1   : > { %v5045_v50 = vpack.c.bf16 %v4116_v37, %v4116_v37  ;;  %v4118_v52 = vpop.f32.mrb[81].mxu1  ;;  %v5093_v62 = vor.u32 %v5092_v12, %v5089_v3  ;;  %v22565_v12 = vld [vmem:[%s29209_s1 + $0x628] ss:$16 sps:$4 sm:$0xff]  }
 0x5a2   : > { %v4119_v57 = vpop.f32.mrb[82].mxu1 }
 0x5a3   : > { %v5096_v19 = vshrl.u32 %v5045_v50, 16  ;;  %v5099_v41 = vshll.u32 %v5045_v50, 16  ;;  %v5225_v6 = vpack.c.bf16 %v4119_v57, %v4116_v37  ;;  %v4121_v28 = vpop.f32.mrb[83].mxu1  ;;  %v5094_v35 = vsel %vm5050_vm4, %v5084_v60, %v5093_v62  ;;  %v22567_v60 = vld [vmem:[%s29209_s1 + $0x62c] ss:$16 sps:$4 sm:$0xff]  }
 0x5a4   : > { %21212 = vmatmul.mubr.msk.bf16.gmra.mrb[104].mxu0 %vm4682_vm2, %v5094_v35  ;;  %v22571_v50 = vld [vmem:[%s29209_s1 + $0x64c] ss:$16 sps:$4 sm:$0xff]  }
 0x5a5   : > { %v5098_v33 = vrot.slane %v5096_v19, 1  ;;  %v5101_v23 = vrot.slane %v5099_v41, 2  ;;  %4331 = vmatmul.mubr.bf16.gmra.mrb[40].mxu1 %v22558_v13  ;;  %v5242_v46 = vrot.slane %v5225_v6, 2  ;;  %v22585_v57 = vld [vmem:[%s29213_s5 + $0x58] sm:$0xff]  }
 0x5a6   : > { %19073 = vmatprep.mubr.msk.bf16.mxu1 %vm2997_vm0, %v22563_v25  ;;  %v22569_v6 = vld [vmem:[%s29209_s1 + $0x648] ss:$16 sps:$4 sm:$0xff]   ;;  %v22574_v35 = vld [vmem:[%s29209_s1 + $0x66c] ss:$16 sps:$4 sm:$0xff]  }
 0x5a7   : > { %v5102_v44 = vor.u32 %v5101_v23, %v5098_v33 }
 0x5a8   : > { %v4124_v56 = vpop.f32.mrb[84].mxu1 }
 0x5a9   : > { %v4126_v43 = vpop.f32.mrb[85].mxu1  ;;  %v5103_v47 = vsel %vm5050_vm4, %v5093_v62, %v5102_v44 }
 0x5aa   : > { %v4127_v15 = vpop.f32.mrb[86].mxu1  ;;  %21215 = vmatprep.mubr.msk.bf16.mxu0 %vm4682_vm2, %v5103_v47 }
 0x5ab   : > { %v5226_v16 = vpack.c.bf16 %v4127_v15, %v4124_v56  ;;  %v4129_v20 = vpop.f32.mrb[87].mxu1 }
 0x5ac   : > { %21216 = vmatmul.mubr.msk.bf16.gmra.mrb[120].mxu0 %vm4682_vm2, %v5098_v33  ;;  %v25274_v33 = vld [vmem:[%s29213_s5 + $0x60] sm:$0xff]  }
 0x5ad   : > { %v5243_v1 = vrot.slane %v5226_v16, 2  ;;  %4339 = vmatmul.mubr.bf16.gmra.mrb[44].mxu1 %v22561_v8  ;;  %v22572_v8 = vld [vmem:[%s29209_s1 + $0x668] ss:$16 sps:$4 sm:$0xff]  }
 0x5ae   : > { %19074 = vmatprep.mubr.msk.bf16.mxu1 %vm2997_vm0, %v22567_v60  ;;  %v22577_v60 = vld [vmem:[%s29209_s1 + $0x68c] ss:$16 sps:$4 sm:$0xff]  }
 0x5af   : > { %v5244_v2 = vsel %vm5241_vm5, %v5242_v46, %v5243_v1 }
 0x5b0   : > { %v4132_v38 = vpop.f32.mrb[88].mxu1  ;;  %21223 = vmatprep.mubr.msk.bf16.mxu0 %vm4682_vm2, %v5244_v2 }
 0x5b1   : > { %v4134_v3 = vpop.f32.mrb[89].mxu1 }
 0x5b2   : > { %v4135_v37 = vpop.f32.mrb[90].mxu1 }
 0x5b3   : > { %v5227_v52 = vpack.c.bf16 %v4135_v37, %v4132_v38  ;;  %v4137_v13 = vpop.f32.mrb[91].mxu1 }
 0x5b5   : > { %v5245_v62 = vrot.slane %v5227_v52, 2  ;;  %4347 = vmatmul.mubr.bf16.gmra.mrb[48].mxu1 %v22565_v12  ;;  %v22575_v12 = vld [vmem:[%s29209_s1 + $0x688] ss:$16 sps:$4 sm:$0xff]  }
 0x5b6   : > { %19075 = vmatprep.mubr.msk.bf16.mxu1 %vm2997_vm0, %v22571_v50  ;;  %v22580_v50 = vld [vmem:[%s29209_s1 + $0x6ac] ss:$16 sps:$4 sm:$0xff]  }
 0x5b7   : > { %v5246_v25 = vsel %vm5241_vm5, %v5243_v1, %v5245_v62 }
 0x5b8   : > { %v4140_v19 = vpop.f32.mrb[92].mxu1  ;;  %21224 = vmatmul.mubr.msk.bf16.vlgmr.msra.gmra.mrb[100].mxu0 %vm4682_vm2, %v5246_v25 }
 0x5b9   : > { %v4142_v41 = vpop.f32.mrb[93].mxu1  ;;  %21236 = vmatpush3.bf16.msra.mxu0 %v25219_v29 }
 0x5ba   : > { %v4143_v28 = vpop.f32.mrb[94].mxu1  ;;  %21237 = vmatprep.subr.bf16.mxu0 %v22585_v57 }
 0x5bb   : > { %v5228_v23 = vpack.c.bf16 %v4143_v28, %v4140_v19  ;;  %v4145_v44 = vpop.f32.mrb[95].mxu1  ;;  %v22578_v28 = vld [vmem:[%s29209_s1 + $0x6a8] ss:$16 sps:$4 sm:$0xff]  }
 0x5bd   : > { %v5247_v56 = vrot.slane %v5228_v23, 2  ;;  %4355 = vmatmul.mubr.bf16.gmra.mrb[52].mxu1 %v22569_v6  ;;  %21238 = vmatpush3.bf16.msra.mxu0 %v22585_v57  ;;  %v22581_v23 = vld [vmem:[%s29209_s1 + $0x6cc] ss:$16 sps:$4 sm:$0xff]  }
 0x5be   : > { %19076 = vmatprep.mubr.msk.bf16.mxu1 %vm2997_vm0, %v22574_v35  ;;  %21251 = vmatprep.subr.bf16.mxu0 %v25274_v33 }
 0x5bf   : > { %v5248_v29 = vsel %vm5241_vm5, %v5245_v62, %v5247_v56 }
 0x5c0   : > { %v4148_v43 = vpop.f32.mrb[96].mxu1  ;;  %21227 = vmatprep.mubr.msk.bf16.mxu0 %vm4682_vm2, %v5248_v29 }
 0x5c1   : > { %v4150_v47 = vpop.f32.mrb[97].mxu1 }
 0x5c2   : > { %v4151_v15 = vpop.f32.mrb[98].mxu1 }
 0x5c3   : > { %v5229_v16 = vpack.c.bf16 %v4151_v15, %v4148_v43  ;;  %v4153_v20 = vpop.f32.mrb[99].mxu1 }
 0x5c5   : > { %v5249_v46 = vrot.slane %v5229_v16, 2  ;;  %4363 = vmatmul.mubr.bf16.gmra.mrb[56].mxu1 %v22572_v8 }
 0x5c6   : > { %19077 = vmatprep.mubr.msk.bf16.mxu1 %vm2997_vm0, %v22577_v60 }
 0x5c7   : > { %v5250_v1 = vsel %vm5241_vm5, %v5247_v56, %v5249_v46 }
 0x5c8   : > { %v4156_v2 = vpop.f32.mrb[100].mxu1  ;;  %21228 = vmatmul.mubr.msk.bf16.gmra.mrb[104].mxu0 %vm4682_vm2, %v5250_v1 }
 0x5c9   : > { %v5230_v38 = vpack.c.bf16 %v4156_v2, %v4156_v2  ;;  %v4158_v3 = vpop.f32.mrb[101].mxu1 }
 0x5ca   : > { %v4159_v37 = vpop.f32.mrb[102].mxu1  ;;  %v22586_v3 = vld [vmem:[%s29209_s1 + $0x6ec] ss:$16 sps:$4 sm:$0xff]  }
 0x5cb   : > { %v5251_v52 = vrot.slane %v5230_v38, 2  ;;  %v5374_v13 = vpack.c.bf16 %v4159_v37, %v4156_v2  ;;  %v4161_v62 = vpop.f32.mrb[103].mxu1  ;;  %v22584_v2 = vld [vmem:[%s29209_s1 + $0x6c8] ss:$16 sps:$4 sm:$0xff]  }
 0x5cd   : > { %4371 = vmatmul.mubr.bf16.gmra.mrb[60].mxu1 %v22575_v12  ;;  %v5252_v57 = vsel %vm5241_vm5, %v5249_v46, %v5251_v52  ;;  %v5386_v19 = vshrl.u32 %v5374_v13, 16  ;;  %v5389_v41 = vshll.u32 %v5374_v13, 16 }
 0x5ce   : > { %21231 = vmatprep.mubr.msk.bf16.mxu0 %vm4682_vm2, %v5252_v57  ;;  %19078 = vmatprep.mubr.msk.bf16.mxu1 %vm2997_vm0, %v22580_v50 }
 0x5cf   : > { %v5388_v29 = vrot.slane %v5386_v19, 2  ;;  %v5391_v43 = vrot.slane %v5389_v41, 3 }
 0x5d0   : > { %v4164_v25 = vpop.f32.mrb[104].mxu1  ;;  %21232 = vmatmul.mubr.msk.bf16.gmra.mrb[124].mxu0 %vm4682_vm2, %v5251_v52 }
 0x5d1   : > { %v4166_v6 = vpop.f32.mrb[105].mxu1  ;;  %v5392_v46 = vor.u32 %v5391_v43, %v5388_v29 }
 0x5d2   : > { %v4167_v35 = vpop.f32.mrb[106].mxu1  ;;  %v22588_v6 = vld [vmem:[%s29209_s1 + $0x6e8] ss:$16 sps:$4 sm:$0xff]  }
 0x5d3   : > { %v5375_v44 = vpack.c.bf16 %v4167_v35, %v4164_v25  ;;  %v4169_v56 = vpop.f32.mrb[107].mxu1  ;;  %v22589_v35 = vld [vmem:[%s29209_s1 + $0x70c] ss:$16 sps:$4 sm:$0xff]  }
 0x5d5   : > { %v5394_v47 = vshrl.u32 %v5375_v44, 16  ;;  %v5397_v8 = vshll.u32 %v5375_v44, 16  ;;  %4379 = vmatmul.mubr.bf16.gmra.mrb[64].mxu1 %v22578_v28 }
 0x5d6   : > { %19079 = vmatprep.mubr.msk.bf16.mxu1 %vm2997_vm0, %v22581_v23  ;;  %v22601_v23 = vld [vmem:[%s29213_s5 + $0x68] sm:$0xff]  }
 0x5d7   : > { %v5396_v15 = vrot.slane %v5394_v47, 2  ;;  %v5399_v60 = vrot.slane %v5397_v8, 3  ;;  %v25331_v8 = vld [vmem:[%s29213_s5 + $0x70] sm:$0xff]  }
 0x5d8   : > { %v4172_v16 = vpop.f32.mrb[108].mxu1 }
 0x5d9   : > { %v4174_v20 = vpop.f32.mrb[109].mxu1  ;;  %v5400_v1 = vor.u32 %v5399_v60, %v5396_v15 }
 0x5da   : > { %v4175_v38 = vpop.f32.mrb[110].mxu1 }
 0x5db   : > { %v5376_v12 = vpack.c.bf16 %v4175_v38, %v4172_v16  ;;  %v4177_v37 = vpop.f32.mrb[111].mxu1  ;;  %v5401_v50 = vsel %vm5384_vm6, %v5392_v46, %v5400_v1 }
 0x5dc   : > { %21239 = vmatprep.mubr.msk.bf16.mxu0 %vm4682_vm2, %v5401_v50 }
 0x5dd   : > { %v5403_v52 = vshrl.u32 %v5376_v12, 16  ;;  %v5406_v13 = vshll.u32 %v5376_v12, 16  ;;  %4387 = vmatmul.mubr.bf16.gmra.mrb[216].mxu1 %v22584_v2 }
 0x5de   : > { %19080 = vmatprep.mubr.msk.bf16.mxu1 %vm2997_vm0, %v22586_v3 }
 0x5df   : > { %v5405_v62 = vrot.slane %v5403_v52, 2  ;;  %v5408_v57 = vrot.slane %v5406_v13, 3 }
 0x5e0   : > { %v4180_v25 = vpop.f32.mrb[112].mxu1 }
 0x5e1   : > { %v5409_v19 = vor.u32 %v5408_v57, %v5405_v62  ;;  %v4182_v41 = vpop.f32.mrb[113].mxu1 }
 0x5e2   : > { %v4183_v28 = vpop.f32.mrb[114].mxu1 }
 0x5e3   : > { %v5377_v44 = vpack.c.bf16 %v4183_v28, %v4180_v25  ;;  %v4185_v56 = vpop.f32.mrb[115].mxu1  ;;  %v5410_v29 = vsel %vm5384_vm6, %v5400_v1, %v5409_v19  ;;  %v22591_v1 = vld [vmem:[%s29209_s1 + $0x708] ss:$16 sps:$4 sm:$0xff]  }
 0x5e4   : > { %21240 = vmatmul.mubr.msk.bf16.vlgmr.msra.gmra.mrb[100].mxu0 %vm4682_vm2, %v5410_v29 }
 0x5e5   : > { %v5412_v43 = vshrl.u32 %v5377_v44, 16  ;;  %v5415_v47 = vshll.u32 %v5377_v44, 16  ;;  %4395 = vmatmul.mubr.bf16.gmra.mrb[220].mxu1 %v22588_v6  ;;  %21252 = vmatpush3.bf16.msra.mxu0 %v25274_v33  ;;  %v22592_v33 = vld [vmem:[%s29209_s1 + $0x72c] ss:$16 sps:$4 sm:$0xff]   ;;  %v22594_v6 = vld [vmem:[%s29209_s1 + $0x728] ss:$16 sps:$4 sm:$0xff]  }
 0x5e6   : > { %19081 = vmatprep.mubr.msk.bf16.mxu1 %vm2997_vm0, %v22589_v35  ;;  %21253 = vmatprep.subr.bf16.mxu0 %v22601_v23 }
 0x5e7   : > { %v5414_v15 = vrot.slane %v5412_v43, 2  ;;  %v5417_v60 = vrot.slane %v5415_v47, 3 }
 0x5e8   : > { %v4188_v16 = vpop.f32.mrb[116].mxu1 }
 0x5e9   : > { %v4190_v20 = vpop.f32.mrb[117].mxu1  ;;  %v5418_v46 = vor.u32 %v5417_v60, %v5414_v15  ;;  %21254 = vmatpush3.bf16.msra.mxu0 %v22601_v23 }
 0x5ea   : > { %v4191_v2 = vpop.f32.mrb[118].mxu1  ;;  %21267 = vmatprep.subr.bf16.mxu0 %v25331_v8 }
 0x5eb   : > { %v5378_v38 = vpack.c.bf16 %v4191_v2, %v4188_v16  ;;  %v4193_v3 = vpop.f32.mrb[119].mxu1  ;;  %v5419_v12 = vsel %vm5384_vm6, %v5409_v19, %v5418_v46  ;;  %v22595_v19 = vld [vmem:[%s29209_s1 + $0x74c] ss:$16 sps:$4 sm:$0xff]  }
 0x5ec   : > { %21243 = vmatprep.mubr.msk.bf16.mxu0 %vm4682_vm2, %v5419_v12 }
 0x5ed   : > { %v5421_v37 = vshrl.u32 %v5378_v38, 16  ;;  %v5424_v50 = vshll.u32 %v5378_v38, 16  ;;  %4403 = vmatmul.mubr.bf16.gmra.mrb[224].mxu1 %v22591_v1  ;;  %v22597_v1 = vld [vmem:[%s29209_s1 + $0x748] ss:$16 sps:$4 sm:$0xff]  }
 0x5ee   : > { %19082 = vmatprep.mubr.msk.bf16.mxu1 %vm2997_vm0, %v22592_v33 }
 0x5ef   : > { %v5423_v52 = vrot.slane %v5421_v37, 2  ;;  %v5426_v13 = vrot.slane %v5424_v50, 3 }
 0x5f0   : > { %v4196_v62 = vpop.f32.mrb[120].mxu1 }
 0x5f1   : > { %v5379_v57 = vpack.c.bf16 %v4196_v62, %v4196_v62  ;;  %v4198_v25 = vpop.f32.mrb[121].mxu1  ;;  %v5427_v41 = vor.u32 %v5426_v13, %v5423_v52  ;;  %v22602_v13 = vld [vmem:[%s29209_s1 + $0x768] ss:$16 sps:$4 sm:$0xff]  }
 0x5f2   : > { %v4199_v28 = vpop.f32.mrb[122].mxu1 }
 0x5f3   : > { %v5430_v35 = vshrl.u32 %v5379_v57, 16  ;;  %v5433_v23 = vshll.u32 %v5379_v57, 16  ;;  %v5559_v44 = vpack.c.bf16 %v4199_v28, %v4196_v62  ;;  %v4201_v56 = vpop.f32.mrb[123].mxu1  ;;  %v5428_v29 = vsel %vm5384_vm6, %v5418_v46, %v5427_v41  ;;  %v22599_v46 = vld [vmem:[%s29209_s1 + $0x76c] ss:$16 sps:$4 sm:$0xff]  }
 0x5f4   : > { %21244 = vmatmul.mubr.msk.bf16.gmra.mrb[104].mxu0 %vm4682_vm2, %v5428_v29  ;;  %v22603_v57 = vld [vmem:[%s29209_s1 + $0x78c] ss:$16 sps:$4 sm:$0xff]  }
 0x5f5   : > { %v5432_v43 = vrot.slane %v5430_v35, 2  ;;  %v5435_v47 = vrot.slane %v5433_v23, 3  ;;  %4411 = vmatmul.mubr.bf16.gmra.mrb[228].mxu1 %v22594_v6  ;;  %v5576_v3 = vrot.slane %v5559_v44, 3  ;;  %v22619_v28 = vld [vmem:[%s29213_s5 + $0x78] sm:$0xff]  }
 0x5f6   : > { %19083 = vmatprep.mubr.msk.bf16.mxu1 %vm2997_vm0, %v22595_v19  ;;  %v22605_v44 = vld [vmem:[%s29209_s1 + $0x788] ss:$16 sps:$4 sm:$0xff]   ;;  %v22606_v29 = vld [vmem:[%s29209_s1 + $0x7ac] ss:$16 sps:$4 sm:$0xff]  }
 0x5f7   : > { %v5436_v15 = vor.u32 %v5435_v47, %v5432_v43 }
 0x5f8   : > { %v4204_v60 = vpop.f32.mrb[124].mxu1 }
 0x5f9   : > { %v4206_v16 = vpop.f32.mrb[125].mxu1  ;;  %v5437_v20 = vsel %vm5384_vm6, %v5427_v41, %v5436_v15 }
 0x5fa   : > { %v4207_v2 = vpop.f32.mrb[126].mxu1  ;;  %21247 = vmatprep.mubr.msk.bf16.mxu0 %vm4682_vm2, %v5437_v20 }
 0x5fb   : > { %v5560_v33 = vpack.c.bf16 %v4207_v2, %v4204_v60  ;;  %v4209_v38 = vpop.f32.mrb[127].mxu1 }
 0x5fc   : > { %21248 = vmatmul.mubr.msk.bf16.gmra.mrb[128].mxu0 %vm4682_vm2, %v5432_v43  ;;  %v25386_v43 = vld [vmem:[%s29213_s5 + $0x80] sm:$0xff]  }
 0x5fd   : > { %v5577_v12 = vrot.slane %v5560_v33, 3  ;;  %4419 = vmatmul.mubr.bf16.gmra.mrb[232].mxu1 %v22597_v1  ;;  %v22608_v1 = vld [vmem:[%s29209_s1 + $0x7a8] ss:$16 sps:$4 sm:$0xff]  }
 0x5fe   : > { %19084 = vmatprep.mubr.msk.bf16.mxu1 %vm2997_vm0, %v22599_v46  ;;  %v22609_v46 = vld [vmem:[%s29209_s1 + $0x7cc] ss:$16 sps:$4 sm:$0xff]  }
 0x5ff   : > { %v5578_v37 = vsel %vm5575_vm7, %v5576_v3, %v5577_v12 }
 0x600   : > { %v4212_v50 = vpop.f32.mrb[128].mxu1  ;;  %21255 = vmatprep.mubr.msk.bf16.mxu0 %vm4682_vm2, %v5578_v37 }
 0x601   : > { %v4214_v52 = vpop.f32.mrb[129].mxu1 }
 0x602   : > { %v4215_v62 = vpop.f32.mrb[130].mxu1 }
 0x603   : > { %v5561_v25 = vpack.c.bf16 %v4215_v62, %v4212_v50  ;;  %v4217_v41 = vpop.f32.mrb[131].mxu1 }
 0x605   : > { %v5579_v6 = vrot.slane %v5561_v25, 3  ;;  %4427 = vmatmul.mubr.bf16.gmra.mrb[236].mxu1 %v22602_v13  ;;  %v22611_v13 = vld [vmem:[%s29209_s1 + $0x7c8] ss:$16 sps:$4 sm:$0xff]  }
 0x606   : > { %19085 = vmatprep.mubr.msk.bf16.mxu1 %vm2997_vm0, %v22603_v57  ;;  %v22612_v57 = vld [vmem:[%s29209_s1 + $0x7ec] ss:$16 sps:$4 sm:$0xff]  }
 0x607   : > { %v5580_v19 = vsel %vm5575_vm7, %v5577_v12, %v5579_v6 }
 0x608   : > { %v4220_v35 = vpop.f32.mrb[132].mxu1  ;;  %21256 = vmatmul.mubr.msk.bf16.vlgmr.msra.gmra.mrb[100].mxu0 %vm4682_vm2, %v5580_v19 }
 0x609   : > { %v4222_v23 = vpop.f32.mrb[133].mxu1  ;;  %21268 = vmatpush3.bf16.msra.mxu0 %v25331_v8 }
 0x60a   : > { %v4223_v56 = vpop.f32.mrb[134].mxu1  ;;  %21269 = vmatprep.subr.bf16.mxu0 %v22619_v28 }
 0x60b   : > { %v5562_v47 = vpack.c.bf16 %v4223_v56, %v4220_v35  ;;  %v4225_v15 = vpop.f32.mrb[135].mxu1  ;;  %v22614_v56 = vld [vmem:[%s29209_s1 + $0x7e8] ss:$16 sps:$4 sm:$0xff]  }
 0x60d   : > { %v5581_v60 = vrot.slane %v5562_v47, 3  ;;  %4435 = vmatmul.mubr.bf16.gmra.mrb[240].mxu1 %v22605_v44  ;;  %21270 = vmatpush3.bf16.msra.mxu0 %v22619_v28  ;;  %v22617_v47 = vld [vmem:[%s29209_s1 + $0x80c] ss:$16 sps:$4 sm:$0xff]  }
 0x60e   : > { %19086 = vmatprep.mubr.msk.bf16.mxu1 %vm2997_vm0, %v22606_v29  ;;  %21283 = vmatprep.subr.bf16.mxu0 %v25386_v43 }
 0x60f   : > { %v5582_v8 = vsel %vm5575_vm7, %v5579_v6, %v5581_v60 }
 0x610   : > { %v4228_v16 = vpop.f32.mrb[136].mxu1  ;;  %21259 = vmatprep.mubr.msk.bf16.mxu0 %vm4682_vm2, %v5582_v8 }
 0x611   : > { %v4230_v20 = vpop.f32.mrb[137].mxu1 }
 0x612   : > { %v4231_v2 = vpop.f32.mrb[138].mxu1 }
 0x613   : > { %v5563_v33 = vpack.c.bf16 %v4231_v2, %v4228_v16  ;;  %v4233_v38 = vpop.f32.mrb[139].mxu1 }
 0x615   : > { %v5583_v3 = vrot.slane %v5563_v33, 3  ;;  %4443 = vmatmul.mubr.bf16.gmra.mrb[244].mxu1 %v22608_v1 }
 0x616   : > { %19087 = vmatprep.mubr.msk.bf16.mxu1 %vm2997_vm0, %v22609_v46 }
 0x617   : > { %v5584_v12 = vsel %vm5575_vm7, %v5581_v60, %v5583_v3 }
 0x618   : > { %v4236_v37 = vpop.f32.mrb[140].mxu1  ;;  %21260 = vmatmul.mubr.msk.bf16.gmra.mrb[104].mxu0 %vm4682_vm2, %v5584_v12  ;;  %v22615_v12 = vld [vmem:[%s29209_s1 + $0x808] ss:$16 sps:$4 sm:$0xff]  }
 0x619   : > { %v5564_v50 = vpack.c.bf16 %v4236_v37, %v4236_v37  ;;  %v4238_v52 = vpop.f32.mrb[141].mxu1 }
 0x61a   : > { %v4239_v62 = vpop.f32.mrb[142].mxu1 }
 0x61b   : > { %v5585_v25 = vrot.slane %v5564_v50, 3  ;;  %v5708_v41 = vpack.c.bf16 %v4239_v62, %v4236_v37  ;;  %v4241_v6 = vpop.f32.mrb[143].mxu1 }
 0x61d   : > { %4451 = vmatmul.mubr.bf16.gmra.mrb[248].mxu1 %v22611_v13  ;;  %v5586_v28 = vsel %vm5575_vm7, %v5583_v3, %v5585_v25  ;;  %v5720_v35 = vshrl.u32 %v5708_v41, 16  ;;  %v5723_v23 = vshll.u32 %v5708_v41, 16  ;;  %v22622_v13 = vld [vmem:[%s29209_s1 + $0x82c] ss:$16 sps:$4 sm:$0xff]  }
 0x61e   : > { %21263 = vmatprep.mubr.msk.bf16.mxu0 %vm4682_vm2, %v5586_v28  ;;  %19088 = vmatprep.mubr.msk.bf16.mxu1 %vm2997_vm0, %v22612_v57 }
 0x61f   : > { %v5722_v8 = vrot.slane %v5720_v35, 3  ;;  %v5725_v16 = vrot.slane %v5723_v23, 4 }
 0x620   : > { %v4244_v19 = vpop.f32.mrb[144].mxu1  ;;  %21264 = vmatmul.mubr.msk.bf16.gmra.mrb[132].mxu0 %vm4682_vm2, %v5585_v25 }
 0x621   : > { %v4246_v44 = vpop.f32.mrb[145].mxu1  ;;  %v5726_v37 = vor.u32 %v5725_v16, %v5722_v8  ;;  %v22625_v8 = vld [vmem:[%s29209_s1 + $0x84c] ss:$16 sps:$4 sm:$0xff]  }
 0x622   : > { %v4247_v29 = vpop.f32.mrb[146].mxu1 }
 0x623   : > { %v5709_v15 = vpack.c.bf16 %v4247_v29, %v4244_v19  ;;  %v4249_v60 = vpop.f32.mrb[147].mxu1 }
 0x625   : > { %v5728_v20 = vshrl.u32 %v5709_v15, 16  ;;  %v5731_v1 = vshll.u32 %v5709_v15, 16  ;;  %4459 = vmatmul.mubr.bf16.gmra.mrb[252].mxu1 %v22614_v56  ;;  %v22620_v15 = vld [vmem:[%s29209_s1 + $0x828] ss:$16 sps:$4 sm:$0xff]  }
 0x626   : > { %19089 = vmatprep.mubr.msk.bf16.mxu1 %vm2997_vm0, %v22617_v47 }
 0x627   : > { %v5730_v2 = vrot.slane %v5728_v20, 3  ;;  %v5733_v46 = vrot.slane %v5731_v1, 4 }
 0x628   : > { %v4252_v33 = vpop.f32.mrb[0].mxu1 }
 0x629   : > { %v4253_v38 = vadd.f32 %v4252_v33, %v24603_v48  ;;  %v4254_v3 = vpop.f32.mrb[1].mxu1  ;;  %v5734_v50 = vor.u32 %v5733_v46, %v5730_v2  ;;  %v22633_v2 = vld [vmem:[%s29213_s5 + $0x88] sm:$0xff]  }
 0x62a   : > { %v4255_v52 = vpop.f32.mrb[2].mxu1 }
 0x62b   : > { %v4256_v62 = vadd.f32 %v4255_v52, %v24608_v51  ;;  %v4257_v57 = vpop.f32.mrb[3].mxu1  ;;  %v5735_v25 = vsel %vm5718_vm8, %v5726_v37, %v5734_v50 }
 0x62c   : > { %21271 = vmatprep.mubr.msk.bf16.mxu0 %vm4682_vm2, %v5735_v25 }
 0x62d   : > { %v5710_v48 = vpack.c.bf16 %v4256_v62, %v4253_v38  ;;  %4467 = vmatmul.mubr.bf16.gmra.mrb[148].mxu1 %v22615_v12  ;;  %v25428_v41 = vpop.f32.mrb[108].mxu0 }
 0x62e   : > { %v25430_v6 = vpop.f32.mrb[109].mxu0  ;;  %19090 = vmatprep.mubr.msk.bf16.mxu1 %vm2997_vm0, %v22622_v13  ;;  %v22623_v13 = vld [vmem:[%s29209_s1 + $0x848] ss:$16 sps:$4 sm:$0xff]  }
 0x62f   : > { %v5737_v28 = vshrl.u32 %v5710_v48, 16  ;;  %v5740_v19 = vshll.u32 %v5710_v48, 16  ;;  %v21170_v35 = vpop.f32.mrb[110].mxu0 }
 0x630   : > { %v4260_v23 = vpop.f32.mrb[4].mxu1  ;;  %v25433_v44 = vpop.f32.mrb[111].mxu0 }
 0x631   : > { %v5739_v51 = vrot.slane %v5737_v28, 3  ;;  %v5742_v56 = vrot.slane %v5740_v19, 4  ;;  %v4261_v29 = vadd.f32 %v4260_v23, %v24613_v54  ;;  %v4262_v47 = vpop.f32.mrb[5].mxu1 }
 0x632   : > { %v4263_v60 = vpop.f32.mrb[6].mxu1  ;;  %v22626_v47 = vld [vmem:[%s29209_s1 + $0x868] ss:$16 sps:$4 sm:$0xff]  }
 0x633   : > { %v5743_v16 = vor.u32 %v5742_v56, %v5739_v51  ;;  %v4264_v20 = vadd.f32 %v4263_v60, %v24618_v58  ;;  %v4265_v1 = vpop.f32.mrb[7].mxu1  ;;  %v25453_v58 = vld [vmem:[%s29213_s5 + $0x90] sm:$0xff]   ;;  %v22631_v60 = vld [vmem:[%s29209_s1 + $0x88c] ss:$16 sps:$4 sm:$0xff]  }
 0x635   : > { %v5711_v46 = vpack.c.bf16 %v4264_v20, %v4261_v29  ;;  %4475 = vmatmul.mubr.bf16.gmra.mrb[152].mxu1 %v22620_v15  ;;  %v5744_v54 = vsel %vm5718_vm8, %v5734_v50, %v5743_v16 }
 0x636   : > { %21272 = vmatmul.mubr.msk.bf16.vlgmr.msra.gmra.mrb[100].mxu0 %vm4682_vm2, %v5744_v54  ;;  %19091 = vmatprep.mubr.msk.bf16.mxu1 %vm2997_vm0, %v22625_v8 }
 0x637   : > { %v5746_v33 = vshrl.u32 %v5711_v46, 16  ;;  %v5749_v38 = vshll.u32 %v5711_v46, 16  ;;  %21284 = vmatpush3.bf16.msra.mxu0 %v25386_v43  ;;  %v22628_v43 = vld [vmem:[%s29209_s1 + $0x86c] ss:$16 sps:$4 sm:$0xff]  }
 0x638   : > { %v4268_v3 = vpop.f32.mrb[8].mxu1  ;;  %21285 = vmatprep.subr.bf16.mxu0 %v22633_v2 }
 0x639   : > { %v5748_v12 = vrot.slane %v5746_v33, 3  ;;  %v5751_v37 = vrot.slane %v5749_v38, 4  ;;  %v4269_v52 = vadd.f32 %v4268_v3, %v24623_v61  ;;  %v4270_v50 = vpop.f32.mrb[9].mxu1 }
 0x63a   : > { %v4271_v62 = vpop.f32.mrb[10].mxu1 }
 0x63b   : > { %v4272_v57 = vadd.f32 %v4271_v62, %v24628_v0  ;;  %v4273_v25 = vpop.f32.mrb[11].mxu1  ;;  %v5752_v48 = vor.u32 %v5751_v37, %v5748_v12  ;;  %21286 = vmatpush3.bf16.msra.mxu0 %v22633_v2 }
 0x63c   : > { %21299 = vmatprep.subr.bf16.mxu0 %v25453_v58 }
 0x63d   : > { %v5712_v28 = vpack.c.bf16 %v4272_v57, %v4269_v52  ;;  %4483 = vmatmul.mubr.bf16.gmra.mrb[156].mxu1 %v22623_v13  ;;  %v5753_v61 = vsel %vm5718_vm8, %v5743_v16, %v5752_v48 }
 0x63e   : > { %21275 = vmatprep.mubr.msk.bf16.mxu0 %vm4682_vm2, %v5753_v61  ;;  %19092 = vmatprep.mubr.msk.bf16.mxu1 %vm2997_vm0, %v22628_v43 }
 0x63f   : > { %v5755_v19 = vshrl.u32 %v5712_v28, 16  ;;  %v5758_v35 = vshll.u32 %v5712_v28, 16 }
 0x640   : > { %v4276_v23 = vpop.f32.mrb[12].mxu1 }
 0x641   : > { %v5757_v51 = vrot.slane %v5755_v19, 3  ;;  %v5760_v56 = vrot.slane %v5758_v35, 4  ;;  %v4277_v0 = vadd.f32 %v4276_v23, %v24633_v4  ;;  %v4278_v29 = vpop.f32.mrb[13].mxu1 }
 0x642   : > { %v4279_v15 = vpop.f32.mrb[14].mxu1 }
 0x643   : > { %v5713_v8 = vpack.c.bf16 %v4277_v0, %v4277_v0  ;;  %v4280_v16 = vadd.f32 %v4279_v15, %v24638_v7  ;;  %v4281_v20 = vpop.f32.mrb[15].mxu1  ;;  %v5761_v1 = vor.u32 %v5760_v56, %v5757_v51  ;;  %v22639_v51 = vld [vmem:[%s29209_s1 + $0x8cc] ss:$16 sps:$4 sm:$0xff]   ;;  %v25511_v15 = vld [vmem:[%s29213_s5 + $0xa0] sm:$0xff]  }
 0x644   : > { %v22642_v20 = vld [vmem:[%s29209_s1 + $0x8ec] ss:$16 sps:$4 sm:$0xff]  }
 0x645   : > { %v5764_v2 = vshrl.u32 %v5713_v8, 16  ;;  %v5767_v46 = vshll.u32 %v5713_v8, 16  ;;  %4491 = vmatmul.mubr.bf16.gmra.mrb[160].mxu1 %v22626_v47  ;;  %v21185_v54 = vpop.f32.mrb[112].mxu0  ;;  %v5762_v4 = vsel %vm5718_vm8, %v5752_v48, %v5761_v1  ;;  %v22636_v48 = vld [vmem:[%s29209_s1 + $0x8ac] ss:$16 sps:$4 sm:$0xff]  }
 0x646   : > { %v4886_v33 = vadd.f32 %v21185_v54, %v25428_v41  ;;  %v4877_v38 = vpop.f32.mrb[113].mxu0  ;;  %21276 = vmatmul.mubr.msk.bf16.gmra.mrb[104].mxu0 %vm4682_vm2, %v5762_v4  ;;  %19093 = vmatprep.mubr.msk.bf16.mxu1 %vm2997_vm0, %v22631_v60  ;;  %v22629_v41 = vld [vmem:[%s29209_s1 + $0x888] ss:$16 sps:$4 sm:$0xff]  }
 0x647   : > { %v5766_v3 = vrot.slane %v5764_v2, 3  ;;  %v5769_v12 = vrot.slane %v5767_v46, 4  ;;  %v4878_v37 = vadd.f32 %v4877_v38, %v25430_v6  ;;  %v21186_v7 = vpop.f32.mrb[114].mxu0  ;;  %v22656_v47 = vld [vmem:[%s29213_s5 + $0x98] sm:$0xff]  }
 0x648   : > { %v4284_v52 = vpop.f32.mrb[16].mxu1  ;;  %v4880_v50 = vpop.f32.mrb[115].mxu0  ;;  %v22637_v8 = vld [vmem:[%s29209_s1 + $0x8c8] ss:$16 sps:$4 sm:$0xff]  }
 0x649   : > { %v4285_v13 = vadd.f32 %v4284_v52, %v24643_v11  ;;  %v4881_v62 = vadd.f32 %v4880_v50, %v25433_v44  ;;  %v4286_v43 = vpop.f32.mrb[17].mxu1  ;;  %v5770_v57 = vor.u32 %v5769_v12, %v5766_v3  ;;  %v22640_v50 = vld [vmem:[%s29209_s1 + $0x8e8] ss:$16 sps:$4 sm:$0xff]  }
 0x64a   : > { %v4287_v25 = vpop.f32.mrb[18].mxu1 }
 0x64b   : > { %v5893_v28 = vpack.c.bf16 %v4285_v13, %v4280_v16  ;;  %v4288_v6 = vadd.f32 %v4287_v25, %v24648_v14  ;;  %v4289_v61 = vpop.f32.mrb[19].mxu1  ;;  %v5771_v19 = vsel %vm5718_vm8, %v5761_v1, %v5770_v57  ;;  %v22634_v14 = vld [vmem:[%s29209_s1 + $0x8a8] ss:$16 sps:$4 sm:$0xff]  }
 0x64c   : > { %21279 = vmatprep.mubr.msk.bf16.mxu0 %vm4682_vm2, %v5771_v19  ;;  %v22643_v25 = vld [vmem:[%s29209_s1 + $0x908] ss:$16 sps:$4 sm:$0xff]  }
 0x64d   : > { %4499 = vmatmul.mubr.bf16.gmra.mrb[164].mxu1 %v22629_v41 }
 0x64e   : > { %21280 = vmatmul.mubr.msk.bf16.gmra.mrb[136].mxu0 %vm4682_vm2, %v5766_v3  ;;  %19094 = vmatprep.mubr.msk.bf16.mxu1 %vm2997_vm0, %v22636_v48 }
 0x64f   : > { %21287 = vmatprep.mubr.msk.bf16.mxu0 %vm4682_vm2, %v5893_v28  ;;  %v22648_v28 = vld [vmem:[%s29209_s1 + $0x92c] ss:$16 sps:$4 sm:$0xff]  }
 0x650   : > { %v4292_v11 = vpop.f32.mrb[20].mxu1 }
 0x651   : > { %v4293_v44 = vadd.f32 %v4292_v11, %v24653_v10  ;;  %v4294_v35 = vpop.f32.mrb[21].mxu1 }
 0x652   : > { %v4295_v23 = vpop.f32.mrb[22].mxu1  ;;  %v22646_v35 = vld [vmem:[%s29209_s1 + $0x928] ss:$16 sps:$4 sm:$0xff]  }
 0x653   : > { %v5894_v56 = vpack.c.bf16 %v4293_v44, %v4288_v6  ;;  %v4296_v0 = vadd.f32 %v4295_v23, %v24658_v18  ;;  %v4297_v29 = vpop.f32.mrb[23].mxu1 }
 0x655   : > { %4507 = vmatmul.mubr.bf16.gmra.mrb[168].mxu1 %v22634_v14 }
 0x656   : > { %21288 = vmatmul.mubr.msk.bf16.vlgmr.msra.gmra.mrb[100].mxu0 %vm4682_vm2, %v5894_v56  ;;  %19095 = vmatprep.mubr.msk.bf16.mxu1 %vm2997_vm0, %v22639_v51 }
 0x657   : > { %21300 = vmatpush3.bf16.msra.mxu0 %v25453_v58 }
 0x658   : > { %v4300_v10 = vpop.f32.mrb[24].mxu1  ;;  %21301 = vmatprep.subr.bf16.mxu0 %v22656_v47 }
 0x659   : > { %v4301_v18 = vadd.f32 %v4300_v10, %v24663_v21  ;;  %v4302_v60 = vpop.f32.mrb[25].mxu1  ;;  %v22649_v10 = vld [vmem:[%s29209_s1 + $0x948] ss:$16 sps:$4 sm:$0xff]  }
 0x65a   : > { %v4303_v16 = vpop.f32.mrb[26].mxu1  ;;  %v22655_v60 = vld [vmem:[%s29209_s1 + $0x96c] ss:$16 sps:$4 sm:$0xff]  }
 0x65b   : > { %v5895_v58 = vpack.c.bf16 %v4301_v18, %v4296_v0  ;;  %v4304_v1 = vadd.f32 %v4303_v16, %v24668_v24  ;;  %v4305_v2 = vpop.f32.mrb[27].mxu1  ;;  %21302 = vmatpush3.bf16.msra.mxu0 %v22656_v47 }
 0x65c   : > { %21315 = vmatprep.subr.bf16.mxu0 %v25511_v15 }
 0x65d   : > { %4515 = vmatmul.mubr.bf16.gmra.mrb[172].mxu1 %v22637_v8  ;;  %v21201_v46 = vpop.f32.mrb[116].mxu0  ;;  %21291 = vmatprep.mubr.msk.bf16.mxu0 %vm4682_vm2, %v5895_v58 }
 0x65e   : > { %v5039_v21 = vadd.f32 %v21201_v46, %v4886_v33  ;;  %v5015_v54 = vpop.f32.mrb[117].mxu0  ;;  %19096 = vmatprep.mubr.msk.bf16.mxu1 %vm2997_vm0, %v22642_v20  ;;  %v22645_v33 = vld [vmem:[%s29209_s1 + $0x90c] ss:$16 sps:$4 sm:$0xff]  }
 0x65f   : > { %v25524_v4 = vadd.f32 %v5015_v54, %v4878_v37  ;;  %v21202_v38 = vpop.f32.mrb[118].mxu0 }
 0x660   : > { %v4308_v3 = vpop.f32.mrb[28].mxu1  ;;  %v5018_v12 = vpop.f32.mrb[119].mxu0 }
 0x661   : > { %v4309_v7 = vadd.f32 %v4308_v3, %v24673_v27  ;;  %v25527_v24 = vadd.f32 %v5018_v12, %v4881_v62  ;;  %v4310_v52 = vpop.f32.mrb[29].mxu1 }
 0x662   : > { %v4311_v13 = vpop.f32.mrb[30].mxu1 }
 0x663   : > { %v5896_v43 = vpack.c.bf16 %v4309_v7, %v4304_v1  ;;  %v4312_v37 = vadd.f32 %v4311_v13, %v24678_v30  ;;  %v4313_v41 = vpop.f32.mrb[31].mxu1  ;;  %v22653_v13 = vld [vmem:[%s29209_s1 + $0x968] ss:$16 sps:$4 sm:$0xff]  }
 0x665   : > { %4523 = vmatmul.mubr.bf16.gmra.mrb[176].mxu1 %v22640_v50  ;;  %21292 = vmatmul.mubr.msk.bf16.gmra.mrb[104].mxu0 %vm4682_vm2, %v5896_v43 }
 0x666   : > { %19097 = vmatprep.mubr.msk.bf16.mxu1 %vm2997_vm0, %v22645_v33 }
 0x668   : > { %v4316_v27 = vpop.f32.mrb[32].mxu1 }
 0x669   : > { %v4317_v62 = vadd.f32 %v4316_v27, %v24683_v34  ;;  %v4318_v57 = vpop.f32.mrb[33].mxu1 }
 0x66a   : > { %v4319_v48 = vpop.f32.mrb[34].mxu1 }
 0x66b   : > { %v5897_v30 = vpack.c.bf16 %v4317_v62, %v4312_v37  ;;  %v4320_v6 = vadd.f32 %v4319_v48, %v24688_v36  ;;  %v4321_v61 = vpop.f32.mrb[35].mxu1  ;;  %v22651_v36 = vld [vmem:[%s29209_s1 + $0x94c] ss:$16 sps:$4 sm:$0xff]  }
 0x66d   : > { %v5898_v19 = vpack.c.bf16 %v4320_v6, %v4320_v6  ;;  %4531 = vmatmul.mubr.bf16.gmra.mrb[180].mxu1 %v22643_v25  ;;  %21295 = vmatprep.mubr.msk.bf16.mxu0 %vm4682_vm2, %v5897_v30 }
 0x66e   : > { %19098 = vmatprep.mubr.msk.bf16.mxu1 %vm2997_vm0, %v22648_v28  ;;  %v22673_v28 = vld [vmem:[%s29213_s5 + $0xa8] sm:$0xff]  }
 0x66f   : > { %21296 = vmatmul.mubr.msk.bf16.gmra.mrb[140].mxu0 %vm4682_vm2, %v5898_v19  ;;  %v22662_v19 = vld [vmem:[%s29209_s1 + $0x9ac] ss:$16 sps:$4 sm:$0xff]  }
 0x670   : > { %v4324_v34 = vpop.f32.mrb[36].mxu1 }
 0x671   : > { %v4325_v11 = vadd.f32 %v4324_v34, %v24693_v39  ;;  %v4326_v44 = vpop.f32.mrb[37].mxu1 }
 0x672   : > { %v4327_v14 = vpop.f32.mrb[38].mxu1 }
 0x673   : > { %v6024_v23 = vpack.c.bf16 %v4325_v11, %v4320_v6  ;;  %v4328_v51 = vadd.f32 %v4327_v14, %v24698_v42  ;;  %v4329_v56 = vpop.f32.mrb[39].mxu1 }
 0x675   : > { %4539 = vmatmul.mubr.bf16.gmra.mrb[184].mxu1 %v22646_v35  ;;  %v6037_v0 = vshll.u32 %v6024_v23, 16  ;;  %v6035_v58 = vshrl.u32 %v6024_v23, 16 }
 0x676   : > { %19099 = vmatprep.mubr.msk.bf16.mxu1 %vm2997_vm0, %v22651_v36 }
 0x677   : > { %v6039_v8 = vrot.slane %v6037_v0, 1  ;;  %v22660_v0 = vld [vmem:[%s29209_s1 + $0x9a8] ss:$16 sps:$4 sm:$0xff]  }
 0x678   : > { %v4332_v29 = vpop.f32.mrb[40].mxu1 }
 0x679   : > { %v4333_v39 = vadd.f32 %v4332_v29, %v24703_v45  ;;  %v4334_v47 = vpop.f32.mrb[41].mxu1  ;;  %v6040_v2 = vor.u32 %v6039_v8, %v6035_v58 }
 0x67a   : > { %v4335_v18 = vpop.f32.mrb[42].mxu1 }
 0x67b   : > { %v6025_v42 = vpack.c.bf16 %v4333_v39, %v4328_v51  ;;  %v4336_v16 = vadd.f32 %v4335_v18, %v24708_v49  ;;  %v4337_v20 = vpop.f32.mrb[43].mxu1  ;;  %v22665_v39 = vld [vmem:[%s29209_s1 + $0x9cc] ss:$16 sps:$4 sm:$0xff]  }
 0x67d   : > { %v6042_v1 = vshll.u32 %v6025_v42, 16  ;;  %4547 = vmatmul.mubr.bf16.gmra.mrb[188].mxu1 %v22649_v10  ;;  %v6046_v27 = vshrl.u32 %v6025_v42, 16 }
 0x67e   : > { %19100 = vmatprep.mubr.msk.bf16.mxu1 %vm2997_vm0, %v22655_v60 }
 0x67f   : > { %v21217_v45 = vpop.f32.mrb[120].mxu0  ;;  %v6044_v46 = vrot.slane %v6042_v1, 1 }
 0x680   : > { %v25567_v54 = vadd.f32 %v21217_v45, %v5039_v21  ;;  %v4340_v38 = vpop.f32.mrb[44].mxu1  ;;  %v5200_v3 = vpop.f32.mrb[121].mxu0  ;;  %v22659_v21 = vld [vmem:[%s29209_s1 + $0x98c] ss:$16 sps:$4 sm:$0xff]  }
 0x681   : > { %v4341_v12 = vadd.f32 %v4340_v38, %v24713_v53  ;;  %v25571_v7 = vadd.f32 %v5200_v3, %v25524_v4  ;;  %v4342_v52 = vpop.f32.mrb[45].mxu1  ;;  %v21218_v49 = vpop.f32.mrb[122].mxu0  ;;  %v6045_v50 = vsel %vm4623_vm1, %v6040_v2, %v6044_v46  ;;  %v6048_v25 = vor.u32 %v6046_v27, %v6044_v46 }
 0x682   : > { %v4343_v33 = vpop.f32.mrb[46].mxu1  ;;  %v5203_v43 = vpop.f32.mrb[123].mxu0  ;;  %21303 = vmatprep.mubr.msk.bf16.mxu0 %vm4682_vm2, %v6045_v50  ;;  %v22668_v52 = vld [vmem:[%s29209_s1 + $0x9ec] ss:$16 sps:$4 sm:$0xff]  }
 0x683   : > { %v6026_v53 = vpack.c.bf16 %v4341_v12, %v4336_v16  ;;  %v4344_v4 = vadd.f32 %v4343_v33, %v24718_v59  ;;  %v25583_v37 = vadd.f32 %v5203_v43, %v25527_v24  ;;  %v4345_v41 = vpop.f32.mrb[47].mxu1  ;;  %v22657_v24 = vld [vmem:[%s29209_s1 + $0x988] ss:$16 sps:$4 sm:$0xff]  }
 0x685   : > { %v6050_v62 = vshll.u32 %v6026_v53, 16  ;;  %4555 = vmatmul.mubr.bf16.gmra.mrb[192].mxu1 %v22653_v13  ;;  %v6054_v35 = vshrl.u32 %v6026_v53, 16 }
 0x686   : > { %19101 = vmatprep.mubr.msk.bf16.mxu1 %vm2997_vm0, %v22659_v21 }
 0x687   : > { %v6052_v57 = vrot.slane %v6050_v62, 1 }
 0x688   : > { %v4348_v48 = vpop.f32.mrb[48].mxu1 }
 0x689   : > { %v4349_v30 = vadd.f32 %v4348_v48, %v24723_v63  ;;  %v4350_v6 = vpop.f32.mrb[49].mxu1  ;;  %v6053_v59 = vsel %vm4623_vm1, %v6048_v25, %v6052_v57  ;;  %v25603_v63 = vld [vmem:[%s29213_s5 + $0xb0] sm:$0xff]   ;;  %v6056_v36 = vor.u32 %v6054_v35, %v6052_v57 }
 0x68a   : > { %v4351_v61 = vpop.f32.mrb[50].mxu1  ;;  %21304 = vmatmul.mubr.msk.bf16.vlgmr.msra.gmra.mrb[100].mxu0 %vm4682_vm2, %v6053_v59 }
 0x68b   : > { %v6027_v34 = vpack.c.bf16 %v4349_v30, %v4344_v4  ;;  %v4352_v11 = vadd.f32 %v4351_v61, %v24728_v5  ;;  %v4353_v44 = vpop.f32.mrb[51].mxu1  ;;  %21316 = vmatpush3.bf16.msra.mxu0 %v25511_v15  ;;  %v22666_v4 = vld [vmem:[%s29209_s1 + $0x9e8] ss:$16 sps:$4 sm:$0xff]  }
 0x68c   : > { %21317 = vmatprep.subr.bf16.mxu0 %v22673_v28 }
 0x68d   : > { %v6058_v14 = vshll.u32 %v6027_v34, 16  ;;  %4563 = vmatmul.mubr.bf16.gmra.mrb[196].mxu1 %v22657_v24  ;;  %v6062_v60 = vshrl.u32 %v6027_v34, 16 }
 0x68e   : > { %19102 = vmatprep.mubr.msk.bf16.mxu1 %vm2997_vm0, %v22662_v19 }
 0x68f   : > { %v6060_v23 = vrot.slane %v6058_v14, 1  ;;  %21318 = vmatpush3.bf16.msra.mxu0 %v22673_v28 }
 0x690   : > { %v4356_v51 = vpop.f32.mrb[52].mxu1  ;;  %21331 = vmatprep.subr.bf16.mxu0 %v25603_v63 }
 0x691   : > { %v4357_v5 = vadd.f32 %v4356_v51, %v24733_v9  ;;  %v4358_v15 = vpop.f32.mrb[53].mxu1  ;;  %v6061_v56 = vsel %vm4623_vm1, %v6056_v36, %v6060_v23  ;;  %v6064_v20 = vor.u32 %v6062_v60, %v6060_v23  ;;  %v29231_v23 = vmov 0  }
 0x692   : > { %v4359_v29 = vpop.f32.mrb[54].mxu1  ;;  %21307 = vmatprep.mubr.msk.bf16.mxu0 %vm4682_vm2, %v6061_v56 }
 0x693   : > { %v6028_v47 = vpack.c.bf16 %v4357_v5, %v4352_v11  ;;  %v4360_v10 = vadd.f32 %v4359_v29, %v24738_v55  ;;  %v4361_v18 = vpop.f32.mrb[55].mxu1  ;;  %v22663_v55 = vld [vmem:[%s29209_s1 + $0x9c8] ss:$16 sps:$4 sm:$0xff]  }
 0x695   : > { %v6066_v9 = vshll.u32 %v6028_v47, 16  ;;  %v6029_v8 = vpack.c.bf16 %v4360_v10, %v4360_v10  ;;  %4571 = vmatmul.mubr.bf16.gmra.mrb[200].mxu1 %v22660_v0  ;;  %v6070_v42 = vshrl.u32 %v6028_v47, 16 }
 0x696   : > { %19103 = vmatprep.mubr.msk.bf16.mxu1 %vm2997_vm0, %v22665_v39 }
 0x697   : > { %v6074_v16 = vshll.u32 %v6029_v8, 16  ;;  %v6068_v58 = vrot.slane %v6066_v9, 1  ;;  %v6078_v43 = vshrl.u32 %v6029_v8, 16 }
 0x698   : > { %v4364_v1 = vpop.f32.mrb[56].mxu1 }
 0x699   : > { %v4365_v45 = vadd.f32 %v4364_v1, %v24743_v17  ;;  %v4366_v2 = vpop.f32.mrb[57].mxu1  ;;  %v6069_v46 = vsel %vm4623_vm1, %v6064_v20, %v6068_v58  ;;  %v6072_v38 = vor.u32 %v6070_v42, %v6068_v58  ;;  %v6076_v3 = vrot.slane %v6074_v16, 1 }
 0x69a   : > { %v4367_v12 = vpop.f32.mrb[58].mxu1  ;;  %21308 = vmatmul.mubr.msk.bf16.gmra.mrb[104].mxu0 %vm4682_vm2, %v6069_v46 }
 0x69b   : > { %v6201_v49 = vpack.c.bf16 %v4365_v45, %v4360_v10  ;;  %v4368_v50 = vadd.f32 %v4367_v12, %v24748_v22  ;;  %v4369_v17 = vpop.f32.mrb[59].mxu1  ;;  %v6077_v13 = vsel %vm4623_vm1, %v6072_v38, %v6076_v3  ;;  %v22672_v22 = vld [vmem:[%s29209_s1 + $0xa0c] ss:$16 sps:$4 sm:$0xff]  }
 0x69c   : > { %21311 = vmatprep.mubr.msk.bf16.mxu0 %vm4682_vm2, %v6077_v13 }
 0x69d   : > { %4579 = vmatmul.mubr.bf16.gmra.mrb[204].mxu1 %v22663_v55  ;;  %v6217_v28 = vrot.slane %v6201_v49, 1 }
 0x69e   : > { %19104 = vmatprep.mubr.msk.bf16.mxu1 %vm2997_vm0, %v22668_v52 }
 0x6a0   : > { %v4372_v33 = vpop.f32.mrb[60].mxu1 }
 0x6a1   : > { %v4373_v21 = vadd.f32 %v4372_v33, %v24753_v26  ;;  %v4374_v53 = vpop.f32.mrb[61].mxu1 }
 0x6a2   : > { %v4375_v41 = vpop.f32.mrb[62].mxu1  ;;  %21312 = vmatmul.mubr.msk.bf16.gmra.mrb[144].mxu0 %vm4682_vm2, %v6078_v43 }
 0x6a3   : > { %v6202_v27 = vpack.c.bf16 %v4373_v21, %v4368_v50  ;;  %v4376_v62 = vadd.f32 %v4375_v41, %v24758_v31  ;;  %v21233_v57 = vpop.f32.mrb[124].mxu0  ;;  %v4377_v25 = vpop.f32.mrb[63].mxu1 }
 0x6a4   : > { %v25641_v48 = vadd.f32 %v21233_v57, %v25567_v54  ;;  %v5349_v26 = vpop.f32.mrb[125].mxu0 }
 0x6a5   : > { %v6218_v30 = vrot.slane %v6202_v27, 1  ;;  %v25644_v6 = vadd.f32 %v5349_v26, %v25571_v7  ;;  %4587 = vmatmul.mubr.bf16.gmra.mrb[208].mxu1 %v22666_v4  ;;  %v21234_v59 = vpop.f32.mrb[126].mxu0  ;;  %v22670_v7 = vld [vmem:[%s29209_s1 + $0xa08] ss:$16 sps:$4 sm:$0xff]  }
 0x6a6   : > { %v5352_v24 = vpop.f32.mrb[127].mxu0  ;;  %19105 = vmatprep.mubr.msk.bf16.mxu1 %vm2997_vm0, %v22672_v22 }
 0x6a7   : > { %v25648_v61 = vadd.f32 %v5352_v24, %v25583_v37  ;;  %v6219_v31 = vsel %vm4907_vm3, %v6217_v28, %v6218_v30  ;;  %v22675_v37 = vld [vmem:[%s29213_s5 + $0xb8] sm:$0xff]  }
 0x6a8   : > { %v4380_v19 = vpop.f32.mrb[64].mxu1  ;;  %21319 = vmatprep.mubr.msk.bf16.mxu0 %vm4682_vm2, %v6219_v31 }
 0x6a9   : > { %v4381_v54 = vadd.f32 %v4380_v19, %v24763_v32  ;;  %v4382_v34 = vpop.f32.mrb[65].mxu1 }
 0x6aa   : > { %v4383_v11 = vpop.f32.mrb[66].mxu1 }
 0x6ab   : > { %v6203_v44 = vpack.c.bf16 %v4381_v54, %v4376_v62  ;;  %v4384_v35 = vadd.f32 %v4383_v11, %v24768_v40  ;;  %v4385_v14 = vpop.f32.mrb[67].mxu1  ;;  %v25667_v40 = vld [vmem:[%s29213_s5 + $0xc0] sm:$0xff]  }
 0x6ad   : > { %v6220_v36 = vrot.slane %v6203_v44, 1  ;;  %4595 = vmatmul.mubr.bf16.gmra.mrb[212].mxu1 %v22670_v7 }
 0x6ae   : > { %12484 = vmatprep.mubr.bf16.mxu1 %v29231_v23 }
 0x6af   : > { %v6221_v32 = vsel %vm4907_vm3, %v6218_v30, %v6220_v36 }
 0x6b0   : > { %v4388_v51 = vpop.f32.mrb[216].mxu1  ;;  %21320 = vmatmul.mubr.msk.bf16.vlgmr.msra.gmra.mrb[100].mxu0 %vm4682_vm2, %v6221_v32 }
 0x6b1   : > { %v6204_v5 = vpack.c.bf16 %v4388_v51, %v4384_v35  ;;  %v4390_v15 = vpop.f32.mrb[217].mxu1  ;;  %21332 = vmatpush3.bf16.msra.mxu0 %v25603_v63 }
 0x6b2   : > { %v4391_v56 = vpop.f32.mrb[218].mxu1  ;;  %21333 = vmatprep.subr.bf16.mxu0 %v22675_v37  ;;  %v22678_v15 = vld [vmem:[%s29213_s5 + $0xd0] sm:$0xff]  }
 0x6b3   : > { %v6222_v0 = vrot.slane %v6204_v5, 1  ;;  %v4393_v29 = vpop.f32.mrb[219].mxu1 }
 0x6b5   : > { %v6223_v39 = vsel %vm4907_vm3, %v6220_v36, %v6222_v0  ;;  %21334 = vmatpush3.bf16.msra.mxu0 %v22675_v37 }
 0x6b6   : > { %21323 = vmatprep.mubr.msk.bf16.mxu0 %vm4682_vm2, %v6223_v39  ;;  %21347 = vmatprep.subr.bf16.mxu0 %v25667_v40 }
 0x6b8   : > { %v4396_v47 = vpop.f32.mrb[220].mxu1 }
 0x6b9   : > { %v6205_v10 = vpack.c.bf16 %v4396_v47, %v4391_v56  ;;  %v4398_v18 = vpop.f32.mrb[221].mxu1 }
 0x6ba   : > { %v4399_v63 = vpop.f32.mrb[222].mxu1 }
 0x6bb   : > { %v6224_v60 = vrot.slane %v6205_v10, 1  ;;  %v6206_v9 = vpack.c.bf16 %v4399_v63, %v4399_v63  ;;  %v4401_v8 = vpop.f32.mrb[223].mxu1 }
 0x6bd   : > { %v6226_v42 = vrot.slane %v6206_v9, 1  ;;  %v6225_v16 = vsel %vm4907_vm3, %v6222_v0, %v6224_v60 }
 0x6be   : > { %21324 = vmatmul.mubr.msk.bf16.gmra.mrb[104].mxu0 %vm4682_vm2, %v6225_v16 }
 0x6bf   : > { %v6227_v20 = vsel %vm4907_vm3, %v6224_v60, %v6226_v42 }
 0x6c0   : > { %v4404_v58 = vpop.f32.mrb[224].mxu1  ;;  %21327 = vmatprep.mubr.msk.bf16.mxu0 %vm4682_vm2, %v6227_v20 }
 0x6c1   : > { %v6349_v1 = vpack.c.bf16 %v4404_v58, %v4399_v63  ;;  %v4406_v45 = vpop.f32.mrb[225].mxu1 }
 0x6c2   : > { %v4407_v2 = vpop.f32.mrb[226].mxu1 }
 0x6c3   : > { %v4409_v46 = vpop.f32.mrb[227].mxu1  ;;  %v6360_v55 = vshrl.u32 %v6349_v1, 16  ;;  %v6363_v38 = vshll.u32 %v6349_v1, 16 }
 0x6c5   : > { %v6362_v50 = vrot.slane %v6360_v55, 1  ;;  %v6365_v17 = vrot.slane %v6363_v38, 2 }
 0x6c6   : > { %21328 = vmatmul.mubr.msk.bf16.gmra.mrb[148].mxu0 %vm4682_vm2, %v6226_v42 }
 0x6c7   : > { %v6366_v4 = vor.u32 %v6365_v17, %v6362_v50 }
 0x6c8   : > { %v4412_v3 = vpop.f32.mrb[228].mxu1 }
 0x6c9   : > { %v6350_v12 = vpack.c.bf16 %v4412_v3, %v4407_v2  ;;  %v4414_v52 = vpop.f32.mrb[229].mxu1 }
 0x6ca   : > { %v4415_v49 = vpop.f32.mrb[230].mxu1 }
 0x6cb   : > { %v6368_v13 = vshrl.u32 %v6350_v12, 16  ;;  %v6371_v33 = vshll.u32 %v6350_v12, 16  ;;  %v4417_v43 = vpop.f32.mrb[231].mxu1 }
 0x6cd   : > { %v6370_v21 = vrot.slane %v6368_v13, 1  ;;  %v6373_v53 = vrot.slane %v6371_v33, 2 }
 0x6cf   : > { %v6374_v41 = vor.u32 %v6373_v53, %v6370_v21  ;;  %v21249_v22 = vpop.f32.mrb[128].mxu0 }
 0x6d0   : > { %v25678_v27 = vadd.f32 %v21249_v22, %v25641_v48  ;;  %v4420_v62 = vpop.f32.mrb[232].mxu1  ;;  %v5534_v57 = vpop.f32.mrb[129].mxu0 }
 0x6d1   : > { %v6351_v25 = vpack.c.bf16 %v4420_v62, %v4415_v49  ;;  %v25681_v26 = vadd.f32 %v5534_v57, %v25644_v6  ;;  %v4422_v28 = vpop.f32.mrb[233].mxu1  ;;  %v21250_v30 = vpop.f32.mrb[130].mxu0  ;;  %v6375_v59 = vsel %vm5050_vm4, %v6366_v4, %v6374_v41  ;;  %v22677_v6 = vld [vmem:[%s29213_s5 + $0xc8] sm:$0xff]  }
 0x6d2   : > { %v4423_v24 = vpop.f32.mrb[234].mxu1  ;;  %v5537_v31 = vpop.f32.mrb[131].mxu0  ;;  %21335 = vmatprep.mubr.msk.bf16.mxu0 %vm4682_vm2, %v6375_v59 }
 0x6d3   : > { %v6377_v19 = vshrl.u32 %v6351_v25, 16  ;;  %v6380_v54 = vshll.u32 %v6351_v25, 16  ;;  %v25686_v34 = vadd.f32 %v5537_v31, %v25648_v61  ;;  %v4425_v48 = vpop.f32.mrb[235].mxu1 }
 0x6d5   : > { %v6379_v7 = vrot.slane %v6377_v19, 1  ;;  %v6382_v11 = vrot.slane %v6380_v54, 2 }
 0x6d7   : > { %v6383_v44 = vor.u32 %v6382_v11, %v6379_v7 }
 0x6d8   : > { %v4428_v35 = vpop.f32.mrb[236].mxu1 }
 0x6d9   : > { %v6352_v14 = vpack.c.bf16 %v4428_v35, %v4423_v24  ;;  %v4430_v36 = vpop.f32.mrb[237].mxu1  ;;  %v6384_v37 = vsel %vm5050_vm4, %v6374_v41, %v6383_v44 }
 0x6da   : > { %v4431_v32 = vpop.f32.mrb[238].mxu1  ;;  %21336 = vmatmul.mubr.msk.bf16.vlgmr.msra.gmra.mrb[100].mxu0 %vm4682_vm2, %v6384_v37 }
 0x6db   : > { %v6386_v51 = vshrl.u32 %v6352_v14, 16  ;;  %v6389_v5 = vshll.u32 %v6352_v14, 16  ;;  %v4433_v61 = vpop.f32.mrb[239].mxu1  ;;  %21348 = vmatpush3.bf16.msra.mxu0 %v25667_v40 }
 0x6dc   : > { %21349 = vmatprep.subr.bf16.mxu0 %v22677_v6 }
 0x6dd   : > { %v6388_v56 = vrot.slane %v6386_v51, 1  ;;  %v6391_v0 = vrot.slane %v6389_v5, 2 }
 0x6df   : > { %v6392_v29 = vor.u32 %v6391_v0, %v6388_v56  ;;  %21350 = vmatpush3.bf16.msra.mxu0 %v22677_v6 }
 0x6e0   : > { %v4436_v39 = vpop.f32.mrb[240].mxu1  ;;  %21363 = vmatprep.subr.bf16.mxu0 %v22678_v15 }
 0x6e1   : > { %v6353_v47 = vpack.c.bf16 %v4436_v39, %v4431_v32  ;;  %v4438_v10 = vpop.f32.mrb[241].mxu1  ;;  %v6393_v18 = vsel %vm5050_vm4, %v6383_v44, %v6392_v29 }
 0x6e2   : > { %v4439_v63 = vpop.f32.mrb[242].mxu1  ;;  %21339 = vmatprep.mubr.msk.bf16.mxu0 %vm4682_vm2, %v6393_v18 }
 0x6e3   : > { %v6395_v60 = vshrl.u32 %v6353_v47, 16  ;;  %v6398_v40 = vshll.u32 %v6353_v47, 16  ;;  %v6354_v9 = vpack.c.bf16 %v4439_v63, %v4439_v63  ;;  %v4441_v8 = vpop.f32.mrb[243].mxu1 }
 0x6e5   : > { %v6397_v42 = vrot.slane %v6395_v60, 1  ;;  %v6400_v16 = vrot.slane %v6398_v40, 2  ;;  %v6404_v20 = vshrl.u32 %v6354_v9, 16  ;;  %v6407_v58 = vshll.u32 %v6354_v9, 16 }
 0x6e7   : > { %v6401_v1 = vor.u32 %v6400_v16, %v6397_v42  ;;  %v6406_v45 = vrot.slane %v6404_v20, 1  ;;  %v6409_v2 = vrot.slane %v6407_v58, 2 }
 0x6e8   : > { %v4444_v46 = vpop.f32.mrb[244].mxu1 }
 0x6e9   : > { %v6410_v55 = vor.u32 %v6409_v2, %v6406_v45  ;;  %v6533_v38 = vpack.c.bf16 %v4444_v46, %v4439_v63  ;;  %v4446_v3 = vpop.f32.mrb[245].mxu1  ;;  %v6402_v12 = vsel %vm5050_vm4, %v6392_v29, %v6401_v1 }
 0x6ea   : > { %v4447_v52 = vpop.f32.mrb[246].mxu1  ;;  %21340 = vmatmul.mubr.msk.bf16.gmra.mrb[104].mxu0 %vm4682_vm2, %v6402_v12 }
 0x6eb   : > { %v4449_v49 = vpop.f32.mrb[247].mxu1  ;;  %v6411_v50 = vsel %vm5050_vm4, %v6401_v1, %v6410_v55  ;;  %v6549_v21 = vrot.slane %v6533_v38, 2 }
 0x6ec   : > { %21343 = vmatprep.mubr.msk.bf16.mxu0 %vm4682_vm2, %v6411_v50 }
 0x6f0   : > { %v4452_v17 = vpop.f32.mrb[248].mxu1 }
 0x6f1   : > { %v6534_v13 = vpack.c.bf16 %v4452_v17, %v4447_v52  ;;  %v4454_v33 = vpop.f32.mrb[249].mxu1 }
 0x6f2   : > { %v4455_v43 = vpop.f32.mrb[250].mxu1  ;;  %21344 = vmatmul.mubr.msk.bf16.gmra.mrb[152].mxu0 %vm4682_vm2, %v6406_v45 }
 0x6f3   : > { %v6550_v53 = vrot.slane %v6534_v13, 2  ;;  %v4457_v4 = vpop.f32.mrb[251].mxu1  ;;  %v21265_v41 = vpop.f32.mrb[132].mxu0 }
 0x6f4   : > { %v25705_v22 = vadd.f32 %v21265_v41, %v25678_v27  ;;  %v5683_v62 = vpop.f32.mrb[133].mxu0 }
 0x6f5   : > { %v25708_v57 = vadd.f32 %v5683_v62, %v25681_v26  ;;  %v21266_v25 = vpop.f32.mrb[134].mxu0  ;;  %v6551_v28 = vsel %vm5241_vm5, %v6549_v21, %v6550_v53  ;;  %v22679_v26 = vld [vmem:[%s29213_s5 + $0xd8] sm:$0xff]  }
 0x6f6   : > { %v5686_v30 = vpop.f32.mrb[135].mxu0  ;;  %21351 = vmatprep.mubr.msk.bf16.mxu0 %vm4682_vm2, %v6551_v28 }
 0x6f7   : > { %v25713_v59 = vadd.f32 %v5686_v30, %v25686_v34  ;;  %v25723_v34 = vld [vmem:[%s29213_s5 + $0xe0] sm:$0xff]  }
 0x6f8   : > { %v4460_v24 = vpop.f32.mrb[252].mxu1 }
 0x6f9   : > { %v6535_v31 = vpack.c.bf16 %v4460_v24, %v4455_v43  ;;  %v4462_v19 = vpop.f32.mrb[253].mxu1 }
 0x6fa   : > { %v4463_v54 = vpop.f32.mrb[254].mxu1 }
 0x6fb   : > { %v6552_v48 = vrot.slane %v6535_v31, 2  ;;  %v4465_v27 = vpop.f32.mrb[255].mxu1 }
 0x6fd   : > { %v6553_v7 = vsel %vm5241_vm5, %v6550_v53, %v6552_v48 }
 0x6fe   : > { %21352 = vmatmul.mubr.msk.bf16.vlgmr.msra.gmra.mrb[100].mxu0 %vm4682_vm2, %v6553_v7 }
 0x6ff   : > { %21364 = vmatpush3.bf16.msra.mxu0 %v22678_v15 }
 0x700   : > { %v4468_v11 = vpop.f32.mrb[148].mxu1  ;;  %21365 = vmatprep.subr.bf16.mxu0 %v22679_v26 }
 0x701   : > { %v6536_v44 = vpack.c.bf16 %v4468_v11, %v4463_v54  ;;  %v4470_v35 = vpop.f32.mrb[149].mxu1 }
 0x702   : > { %v4471_v6 = vpop.f32.mrb[150].mxu1 }
 0x703   : > { %v6554_v14 = vrot.slane %v6536_v44, 2  ;;  %v4473_v36 = vpop.f32.mrb[151].mxu1  ;;  %21366 = vmatpush3.bf16.msra.mxu0 %v22679_v26 }
 0x704   : > { %21379 = vmatprep.subr.bf16.mxu0 %v25723_v34 }
 0x705   : > { %v6555_v37 = vsel %vm5241_vm5, %v6552_v48, %v6554_v14  ;;  %v22681_v48 = vld [vmem:[%s29213_s5 + $0xe8] sm:$0xff]  }
 0x706   : > { %21355 = vmatprep.mubr.msk.bf16.mxu0 %vm4682_vm2, %v6555_v37 }
 0x708   : > { %v4476_v32 = vpop.f32.mrb[152].mxu1 }
 0x709   : > { %v6537_v51 = vpack.c.bf16 %v4476_v32, %v4471_v6  ;;  %v4478_v5 = vpop.f32.mrb[153].mxu1 }
 0x70a   : > { %v4479_v61 = vpop.f32.mrb[154].mxu1 }
 0x70b   : > { %v6556_v15 = vrot.slane %v6537_v51, 2  ;;  %v6538_v56 = vpack.c.bf16 %v4479_v61, %v4479_v61  ;;  %v4481_v0 = vpop.f32.mrb[155].mxu1 }
 0x70d   : > { %v6558_v29 = vrot.slane %v6538_v56, 2  ;;  %v6557_v39 = vsel %vm5241_vm5, %v6554_v14, %v6556_v15 }
 0x70e   : > { %21356 = vmatmul.mubr.msk.bf16.gmra.mrb[104].mxu0 %vm4682_vm2, %v6557_v39 }
 0x70f   : > { %v6559_v47 = vsel %vm5241_vm5, %v6556_v15, %v6558_v29 }
 0x710   : > { %v4484_v10 = vpop.f32.mrb[156].mxu1  ;;  %21359 = vmatprep.mubr.msk.bf16.mxu0 %vm4682_vm2, %v6559_v47 }
 0x711   : > { %v6681_v18 = vpack.c.bf16 %v4484_v10, %v4479_v61  ;;  %v4486_v63 = vpop.f32.mrb[157].mxu1 }
 0x712   : > { %v4487_v60 = vpop.f32.mrb[158].mxu1 }
 0x713   : > { %v4489_v40 = vpop.f32.mrb[159].mxu1  ;;  %v6692_v9 = vshrl.u32 %v6681_v18, 16  ;;  %v6695_v8 = vshll.u32 %v6681_v18, 16 }
 0x715   : > { %v6694_v1 = vrot.slane %v6692_v9, 2  ;;  %v6697_v45 = vrot.slane %v6695_v8, 3 }
 0x716   : > { %21360 = vmatmul.mubr.msk.bf16.gmra.mrb[156].mxu0 %vm4682_vm2, %v6558_v29 }
 0x717   : > { %v6698_v12 = vor.u32 %v6697_v45, %v6694_v1 }
 0x718   : > { %v4492_v42 = vpop.f32.mrb[160].mxu1 }
 0x719   : > { %v6682_v16 = vpack.c.bf16 %v4492_v42, %v4487_v60  ;;  %v4494_v20 = vpop.f32.mrb[161].mxu1 }
 0x71a   : > { %v4495_v58 = vpop.f32.mrb[162].mxu1 }
 0x71b   : > { %v6700_v2 = vshrl.u32 %v6682_v16, 16  ;;  %v6703_v46 = vshll.u32 %v6682_v16, 16  ;;  %v4497_v55 = vpop.f32.mrb[163].mxu1 }
 0x71d   : > { %v6702_v38 = vrot.slane %v6700_v2, 2  ;;  %v6705_v3 = vrot.slane %v6703_v46, 3 }
 0x71f   : > { %v6706_v52 = vor.u32 %v6705_v3, %v6702_v38 }
 0x720   : > { %v4500_v49 = vpop.f32.mrb[164].mxu1 }
 0x721   : > { %v6683_v50 = vpack.c.bf16 %v4500_v49, %v4495_v58  ;;  %v4502_v17 = vpop.f32.mrb[165].mxu1  ;;  %v21281_v13 = vpop.f32.mrb[136].mxu0  ;;  %v6707_v33 = vsel %vm5384_vm6, %v6698_v12, %v6706_v52 }
 0x722   : > { %v25735_v43 = vadd.f32 %v21281_v13, %v25705_v22  ;;  %v4503_v21 = vpop.f32.mrb[166].mxu1  ;;  %v5868_v53 = vpop.f32.mrb[137].mxu0  ;;  %21367 = vmatprep.mubr.msk.bf16.mxu0 %vm4682_vm2, %v6707_v33 }
 0x723   : > { %v6709_v4 = vshrl.u32 %v6683_v50, 16  ;;  %v6712_v41 = vshll.u32 %v6683_v50, 16  ;;  %v25739_v62 = vadd.f32 %v5868_v53, %v25708_v57  ;;  %v4505_v25 = vpop.f32.mrb[167].mxu1  ;;  %v21282_v28 = vpop.f32.mrb[138].mxu0 }
 0x724   : > { %v5871_v30 = vpop.f32.mrb[139].mxu0 }
 0x725   : > { %v6711_v24 = vrot.slane %v6709_v4, 2  ;;  %v6714_v31 = vrot.slane %v6712_v41, 3  ;;  %v25742_v19 = vadd.f32 %v5871_v30, %v25713_v59  ;;  %v22682_v59 = vld [vmem:[%s29213_s5 + $0xf0] sm:$0xff]  }
 0x727   : > { %v6715_v54 = vor.u32 %v6714_v31, %v6711_v24 }
 0x728   : > { %v4508_v22 = vpop.f32.mrb[168].mxu1 }
 0x729   : > { %v6684_v27 = vpack.c.bf16 %v4508_v22, %v4503_v21  ;;  %v4510_v26 = vpop.f32.mrb[169].mxu1  ;;  %v6716_v7 = vsel %vm5384_vm6, %v6706_v52, %v6715_v54 }
 0x72a   : > { %v4511_v57 = vpop.f32.mrb[170].mxu1  ;;  %21368 = vmatmul.mubr.msk.bf16.vlgmr.msra.gmra.mrb[100].mxu0 %vm4682_vm2, %v6716_v7 }
 0x72b   : > { %v6718_v11 = vshrl.u32 %v6684_v27, 16  ;;  %v6721_v44 = vshll.u32 %v6684_v27, 16  ;;  %v4513_v35 = vpop.f32.mrb[171].mxu1  ;;  %21380 = vmatpush3.bf16.msra.mxu0 %v25723_v34 }
 0x72c   : > { %21381 = vmatprep.subr.bf16.mxu0 %v22681_v48 }
 0x72d   : > { %v6720_v6 = vrot.slane %v6718_v11, 2  ;;  %v6723_v14 = vrot.slane %v6721_v44, 3 }
 0x72f   : > { %v6724_v36 = vor.u32 %v6723_v14, %v6720_v6  ;;  %21382 = vmatpush3.bf16.msra.mxu0 %v22681_v48 }
 0x730   : > { %v4516_v37 = vpop.f32.mrb[172].mxu1  ;;  %21395 = vmatprep.subr.bf16.mxu0 %v22682_v59 }
 0x731   : > { %v6685_v32 = vpack.c.bf16 %v4516_v37, %v4511_v57  ;;  %v4518_v51 = vpop.f32.mrb[173].mxu1  ;;  %v6725_v5 = vsel %vm5384_vm6, %v6715_v54, %v6724_v36 }
 0x732   : > { %v4519_v61 = vpop.f32.mrb[174].mxu1  ;;  %21371 = vmatprep.mubr.msk.bf16.mxu0 %vm4682_vm2, %v6725_v5 }
 0x733   : > { %v6727_v15 = vshrl.u32 %v6685_v32, 16  ;;  %v6730_v34 = vshll.u32 %v6685_v32, 16  ;;  %v6686_v56 = vpack.c.bf16 %v4519_v61, %v4519_v61  ;;  %v4521_v0 = vpop.f32.mrb[175].mxu1 }
 0x735   : > { %v6729_v29 = vrot.slane %v6727_v15, 2  ;;  %v6732_v39 = vrot.slane %v6730_v34, 3  ;;  %v6736_v47 = vshrl.u32 %v6686_v56, 16  ;;  %v6739_v10 = vshll.u32 %v6686_v56, 16 }
 0x737   : > { %v6733_v18 = vor.u32 %v6732_v39, %v6729_v29  ;;  %v6738_v63 = vrot.slane %v6736_v47, 2  ;;  %v6741_v60 = vrot.slane %v6739_v10, 3 }
 0x738   : > { %v4524_v40 = vpop.f32.mrb[176].mxu1 }
 0x739   : > { %v6742_v9 = vor.u32 %v6741_v60, %v6738_v63  ;;  %v6865_v8 = vpack.c.bf16 %v4524_v40, %v4519_v61  ;;  %v4526_v42 = vpop.f32.mrb[177].mxu1  ;;  %v6734_v16 = vsel %vm5384_vm6, %v6724_v36, %v6733_v18 }
 0x73a   : > { %v4527_v20 = vpop.f32.mrb[178].mxu1  ;;  %21372 = vmatmul.mubr.msk.bf16.gmra.mrb[104].mxu0 %vm4682_vm2, %v6734_v16 }
 0x73b   : > { %v4529_v58 = vpop.f32.mrb[179].mxu1  ;;  %v6743_v1 = vsel %vm5384_vm6, %v6733_v18, %v6742_v9  ;;  %v6881_v3 = vrot.slane %v6865_v8, 3 }
 0x73c   : > { %21375 = vmatprep.mubr.msk.bf16.mxu0 %vm4682_vm2, %v6743_v1 }
 0x740   : > { %v4532_v45 = vpop.f32.mrb[180].mxu1 }
 0x741   : > { %v6866_v2 = vpack.c.bf16 %v4532_v45, %v4527_v20  ;;  %v4534_v46 = vpop.f32.mrb[181].mxu1 }
 0x742   : > { %v4535_v55 = vpop.f32.mrb[182].mxu1  ;;  %v21297_v38 = vpop.f32.mrb[140].mxu0  ;;  %21376 = vmatmul.mubr.msk.bf16.gmra.mrb[160].mxu0 %vm4682_vm2, %v6738_v63 }
 0x743   : > { %v6882_v12 = vrot.slane %v6866_v2, 3  ;;  %v25761_v52 = vadd.f32 %v21297_v38, %v25735_v43  ;;  %v4537_v49 = vpop.f32.mrb[183].mxu1  ;;  %v5999_v50 = vpop.f32.mrb[141].mxu0 }
 0x744   : > { %v25764_v17 = vadd.f32 %v5999_v50, %v25739_v62  ;;  %v21298_v13 = vpop.f32.mrb[142].mxu0  ;;  %v22683_v62 = vld [vmem:[%s29213_s5 + $0xf8] sm:$0xff]  }
 0x745   : > { %v6002_v33 = vpop.f32.mrb[143].mxu0  ;;  %v6883_v21 = vsel %vm5575_vm7, %v6881_v3, %v6882_v12 }
 0x746   : > { %v25768_v53 = vadd.f32 %v6002_v33, %v25742_v19  ;;  %21383 = vmatprep.mubr.msk.bf16.mxu0 %vm4682_vm2, %v6883_v21 }
 0x748   : > { %v4540_v4 = vpop.f32.mrb[184].mxu1 }
 0x749   : > { %v6867_v41 = vpack.c.bf16 %v4540_v4, %v4535_v55  ;;  %v4542_v25 = vpop.f32.mrb[185].mxu1 }
 0x74a   : > { %v4543_v28 = vpop.f32.mrb[186].mxu1 }
 0x74b   : > { %v6884_v43 = vrot.slane %v6867_v41, 3  ;;  %v4545_v30 = vpop.f32.mrb[187].mxu1 }
 0x74d   : > { %v6885_v24 = vsel %vm5575_vm7, %v6882_v12, %v6884_v43 }
 0x74e   : > { %21384 = vmatmul.mubr.msk.bf16.vlgmr.msra.gmra.mrb[100].mxu0 %vm4682_vm2, %v6885_v24 }
 0x74f   : > { %21396 = vmatpush3.bf16.msra.mxu0 %v22682_v59 }
 0x750   : > { %v4548_v31 = vpop.f32.mrb[188].mxu1  ;;  %21397 = vmatprep.subr.bf16.mxu0 %v22683_v62 }
 0x751   : > { %v6868_v19 = vpack.c.bf16 %v4548_v31, %v4543_v28  ;;  %v4550_v54 = vpop.f32.mrb[189].mxu1 }
 0x752   : > { %v4551_v22 = vpop.f32.mrb[190].mxu1 }
 0x753   : > { %v6886_v48 = vrot.slane %v6868_v19, 3  ;;  %v4553_v27 = vpop.f32.mrb[191].mxu1  ;;  %21398 = vmatpush3.bf16.msra.mxu0 %v22683_v62 }
 0x755   : > { %v6887_v26 = vsel %vm5575_vm7, %v6884_v43, %v6886_v48 }
 0x756   : > { %21387 = vmatprep.mubr.msk.bf16.mxu0 %vm4682_vm2, %v6887_v26 }
 0x758   : > { %v4556_v7 = vpop.f32.mrb[192].mxu1 }
 0x759   : > { %v6869_v57 = vpack.c.bf16 %v4556_v7, %v4551_v22  ;;  %v4558_v11 = vpop.f32.mrb[193].mxu1 }
 0x75a   : > { %v4559_v44 = vpop.f32.mrb[194].mxu1 }
 0x75b   : > { %v6888_v35 = vrot.slane %v6869_v57, 3  ;;  %v6870_v6 = vpack.c.bf16 %v4559_v44, %v4559_v44  ;;  %v4561_v14 = vpop.f32.mrb[195].mxu1 }
 0x75d   : > { %v6890_v59 = vrot.slane %v6870_v6, 3  ;;  %v6889_v36 = vsel %vm5575_vm7, %v6886_v48, %v6888_v35 }
 0x75e   : > { %21388 = vmatmul.mubr.msk.bf16.gmra.mrb[104].mxu0 %vm4682_vm2, %v6889_v36 }
 0x75f   : > { %v6891_v37 = vsel %vm5575_vm7, %v6888_v35, %v6890_v59 }
 0x760   : > { %v4564_v32 = vpop.f32.mrb[196].mxu1  ;;  %21391 = vmatprep.mubr.msk.bf16.mxu0 %vm4682_vm2, %v6891_v37 }
 0x761   : > { %v7013_v51 = vpack.c.bf16 %v4564_v32, %v4559_v44  ;;  %v4566_v5 = vpop.f32.mrb[197].mxu1 }
 0x762   : > { %v4567_v61 = vpop.f32.mrb[198].mxu1 }
 0x763   : > { %v4569_v15 = vpop.f32.mrb[199].mxu1  ;;  %v7024_v34 = vshrl.u32 %v7013_v51, 16  ;;  %v7027_v56 = vshll.u32 %v7013_v51, 16 }
 0x765   : > { %v7026_v10 = vrot.slane %v7024_v34, 3  ;;  %v7029_v18 = vrot.slane %v7027_v56, 4 }
 0x766   : > { %21392 = vmatmul.mubr.msk.bf16.gmra.mrb[164].mxu0 %vm4682_vm2, %v6890_v59 }
 0x767   : > { %v7030_v42 = vor.u32 %v7029_v18, %v7026_v10 }
 0x768   : > { %v4572_v0 = vpop.f32.mrb[200].mxu1 }
 0x769   : > { %v7014_v29 = vpack.c.bf16 %v4572_v0, %v4567_v61  ;;  %v4574_v39 = vpop.f32.mrb[201].mxu1 }
 0x76a   : > { %v4575_v47 = vpop.f32.mrb[202].mxu1 }
 0x76b   : > { %v7032_v63 = vshrl.u32 %v7014_v29, 16  ;;  %v7035_v60 = vshll.u32 %v7014_v29, 16  ;;  %v4577_v40 = vpop.f32.mrb[203].mxu1 }
 0x76d   : > { %v7034_v9 = vrot.slane %v7032_v63, 3  ;;  %v7037_v8 = vrot.slane %v7035_v60, 4 }
 0x76f   : > { %v7038_v16 = vor.u32 %v7037_v8, %v7034_v9 }
 0x770   : > { %v4580_v20 = vpop.f32.mrb[204].mxu1 }
 0x771   : > { %v7015_v58 = vpack.c.bf16 %v4580_v20, %v4575_v47  ;;  %v4582_v1 = vpop.f32.mrb[205].mxu1  ;;  %v7039_v45 = vsel %vm5718_vm8, %v7030_v42, %v7038_v16 }
 0x772   : > { %v4583_v2 = vpop.f32.mrb[206].mxu1  ;;  %21399 = vmatprep.mubr.msk.bf16.mxu0 %vm4682_vm2, %v7039_v45 }
 0x773   : > { %v7041_v46 = vshrl.u32 %v7015_v58, 16  ;;  %v7044_v55 = vshll.u32 %v7015_v58, 16  ;;  %v4585_v38 = vpop.f32.mrb[207].mxu1 }
 0x775   : > { %v7043_v3 = vrot.slane %v7041_v46, 3  ;;  %v7046_v12 = vrot.slane %v7044_v55, 4  ;;  %v21313_v49 = vpop.f32.mrb[144].mxu0  ;;  %v22684_v55 = vld [vmem:[%s29210_s2] sm:$0xff]  }
 0x776   : > { %v6200_v50 = vadd.f32 %v21313_v49, %v25761_v52  ;;  %v6176_v13 = vpop.f32.mrb[145].mxu0 }
 0x777   : > { %v7047_v33 = vor.u32 %v7046_v12, %v7043_v3  ;;  %v6198_v21 = vadd.f32 %v6176_v13, %v25764_v17  ;;  %v21314_v4 = vpop.f32.mrb[146].mxu0 }
 0x778   : > { %v4588_v41 = vpop.f32.mrb[208].mxu1  ;;  %v6179_v25 = vpop.f32.mrb[147].mxu0 }
 0x779   : > { %v7016_v28 = vpack.c.bf16 %v4588_v41, %v4583_v2  ;;  %v6199_v43 = vadd.f32 %v6179_v25, %v25768_v53  ;;  %v4590_v30 = vpop.f32.mrb[209].mxu1  ;;  %v7048_v62 = vsel %vm5718_vm8, %v7038_v16, %v7047_v33 }
 0x77a   : > { %v4591_v24 = vpop.f32.mrb[210].mxu1  ;;  %21400 = vmatmul.mubr.msk.bf16.vlgmr.msra.gmra.mrb[100].mxu0 %vm4682_vm2, %v7048_v62  ;;  %v19234_v62 = vld [vmem:[%s29214_s6] ss:$0 sm:$0xff] }
 0x77b   : > { %v7050_v31 = vshrl.u32 %v7016_v28, 16  ;;  %v7053_v19 = vshll.u32 %v7016_v28, 16  ;;  %v4593_v54 = vpop.f32.mrb[211].mxu1 }
 0x77d   : > { %v7052_v52 = vrot.slane %v7050_v31, 3  ;;  %v7055_v22 = vrot.slane %v7053_v19, 4 }
 0x77f   : > { %v7056_v48 = vor.u32 %v7055_v22, %v7052_v52 }
 0x780   : > { %v4596_v27 = vpop.f32.mrb[212].mxu1 }
 0x781   : > { %v7017_v17 = vpack.c.bf16 %v4596_v27, %v4591_v24  ;;  %v4598_v26 = vpop.f32.mrb[213].mxu1  ;;  %v7057_v7 = vsel %vm5718_vm8, %v7047_v33, %v7056_v48 }
 0x782   : > { %v4599_v57 = vpop.f32.mrb[214].mxu1  ;;  %21403 = vmatprep.mubr.msk.bf16.mxu0 %vm4682_vm2, %v7057_v7 }
 0x783   : > { %v7059_v53 = vshrl.u32 %v7017_v17, 16  ;;  %v7062_v11 = vshll.u32 %v7017_v17, 16  ;;  %v7018_v44 = vpack.c.bf16 %v4599_v57, %v4599_v57  ;;  %v4601_v35 = vpop.f32.mrb[215].mxu1 }
 0x785   : > { %v7061_v6 = vrot.slane %v7059_v53, 3  ;;  %v7064_v14 = vrot.slane %v7062_v11, 4  ;;  %v7068_v59 = vshrl.u32 %v7018_v44, 16  ;;  %v7071_v36 = vshll.u32 %v7018_v44, 16 }
 0x787   : > { %v7065_v37 = vor.u32 %v7064_v14, %v7061_v6  ;;  %v7070_v32 = vrot.slane %v7068_v59, 3  ;;  %v7073_v51 = vrot.slane %v7071_v36, 4 }
 0x789   : > { %v7074_v5 = vor.u32 %v7073_v51, %v7070_v32  ;;  %v7066_v61 = vsel %vm5718_vm8, %v7056_v48, %v7065_v37 }
 0x78a   : > { %21404 = vmatmul.mubr.msk.bf16.gmra.mrb[104].mxu0 %vm4682_vm2, %v7066_v61 }
 0x78b   : > { %v7075_v15 = vsel %vm5718_vm8, %v7065_v37, %v7074_v5 }
 0x78c   : > { %21407 = vmatprep.mubr.msk.bf16.mxu0 %vm4682_vm2, %v7075_v15 }
 0x792   : > { %21408 = vmatmul.mubr.msk.bf16.gmra.mrb[168].mxu0 %vm4682_vm2, %v7070_v32 }
 0x793   : > { %21423 = vmatprep.mubr.msk.bf16.mxu0 %vm7428_vm9, %v22684_v55  ;;  %v22686_v55 = vld [vmem:[%s29210_s2 + $0x10] sm:$0xff]  }
 0x799   : > { %v21329_v34 = vpop.f32.mrb[148].mxu0 }
 0x79a   : > { %v6348_v56 = vadd.f32 %v21329_v34, %v6200_v50  ;;  %v6324_v0 = vpop.f32.mrb[149].mxu0 }
 0x79b   : > { %v6346_v29 = vadd.f32 %v6324_v0, %v6198_v21  ;;  %v21330_v39 = vpop.f32.mrb[150].mxu0 }
 0x79c   : > { %v6327_v47 = vpop.f32.mrb[151].mxu0 }
 0x79d   : > { %v6347_v10 = vadd.f32 %v6327_v47, %v6199_v43 }
 0x7c5   : > { %v21345_v18 = vpop.f32.mrb[152].mxu0 }
 0x7c6   : > { %v6532_v63 = vadd.f32 %v21345_v18, %v6348_v56  ;;  %v6508_v60 = vpop.f32.mrb[153].mxu0 }
 0x7c7   : > { %v6530_v40 = vadd.f32 %v6508_v60, %v6346_v29  ;;  %v21346_v9 = vpop.f32.mrb[154].mxu0 }
 0x7c8   : > { %v6511_v8 = vpop.f32.mrb[155].mxu0 }
 0x7c9   : > { %v6531_v42 = vadd.f32 %v6511_v8, %v6347_v10 }
 0x7e9   : > { %v21361_v16 = vpop.f32.mrb[156].mxu0 }
 0x7ea   : > { %v6680_v20 = vadd.f32 %v21361_v16, %v6532_v63  ;;  %v6656_v58 = vpop.f32.mrb[157].mxu0 }
 0x7eb   : > { %v6678_v1 = vadd.f32 %v6656_v58, %v6530_v40  ;;  %v21362_v45 = vpop.f32.mrb[158].mxu0  ;;  %v7515_v58 = vsel %vm7513_vm10, 65535, %v29231_v23 }
 0x7ec   : > { %v6659_v2 = vpop.f32.mrb[159].mxu0 }
 0x7ed   : > { %v6679_v46 = vadd.f32 %v6659_v2, %v6531_v42  ;;  %v22710_v2 = vld [vmem:[%s29215_s7 + $0x20] sm:$0xff]  }
 0x815   : > { %v21377_v38 = vpop.f32.mrb[160].mxu0 }
 0x816   : > { %v6864_v3 = vadd.f32 %v21377_v38, %v6680_v20  ;;  %v6840_v12 = vpop.f32.mrb[161].mxu0  ;;  %v22713_v38 = vld [vmem:[%s29215_s7 + $0x28] sm:$0xff]  }
 0x817   : > { %v6862_v49 = vadd.f32 %v6840_v12, %v6678_v1  ;;  %v21378_v50 = vpop.f32.mrb[162].mxu0  ;;  %v22687_v12 = vld [vmem:[%s29210_s2 + $0x18] sm:$0xff]  }
 0x818   : > { %v6843_v13 = vpop.f32.mrb[163].mxu0  ;;  %v22689_v50 = vld [vmem:[%s29210_s2 + $0x28] sm:$0xff]  }
 0x819   : > { %v6863_v33 = vadd.f32 %v6843_v13, %v6679_v46  ;;  %v22685_v46 = vld [vmem:[%s29210_s2 + $0x8] sm:$0xff]   ;;  %v22690_v13 = vld [vmem:[%s29210_s2 + $0x30] sm:$0xff]  }
 0x839   : > { %v21393_v21 = vpop.f32.mrb[164].mxu0 }
 0x83a   : > { %v7012_v4 = vadd.f32 %v21393_v21, %v6864_v3  ;;  %v6988_v41 = vpop.f32.mrb[165].mxu0  ;;  %v22714_v3 = vld [vmem:[%s29215_s7 + $0x30] sm:$0xff]   ;;  %v22692_v21 = vld [vmem:[%s29210_s2 + $0x40] sm:$0xff]  }
 0x83b   : > { %v7010_v25 = vadd.f32 %v6988_v41, %v6862_v49  ;;  %v21394_v28 = vpop.f32.mrb[166].mxu0  ;;  %v22688_v49 = vld [vmem:[%s29210_s2 + $0x20] sm:$0xff]   ;;  %v22694_v41 = vld [vmem:[%s29210_s2 + $0x50] sm:$0xff]  }
 0x83c   : > { %v6991_v43 = vpop.f32.mrb[167].mxu0  ;;  %v22696_v28 = vld [vmem:[%s29210_s2 + $0x60] sm:$0xff]  }
 0x83d   : > { %v7011_v30 = vadd.f32 %v6991_v43, %v6863_v33  ;;  %v22691_v33 = vld [vmem:[%s29210_s2 + $0x38] sm:$0xff]   ;;  %v22697_v43 = vld [vmem:[%s29210_s2 + $0x68] sm:$0xff]  }
 0x84d   : > { %v21401_v24 = vpop.f32.mrb[100].mxu0 }
 0x84e   : > { %v7206_v31 = vadd.f32 %v21401_v24, %v19234_v62  ;;  %v7140_v19 = vpop.f32.mrb[101].mxu0  ;;  %v22700_v24 = vld [vmem:[%s29210_s2 + $0x80] sm:$0xff]  }
 0x84f   : > { %v7204_v54 = vadd.f32 %v19234_v62, %v7140_v19  ;;  %v21402_v52 = vpop.f32.mrb[102].mxu0  ;;  %v22702_v19 = vld [vmem:[%s29210_s2 + $0x90] sm:$0xff]  }
 0x850   : > { %v7207_v22 = vadd.f32 %v21402_v52, %v19234_v62  ;;  %v7143_v48 = vpop.f32.mrb[103].mxu0  ;;  %v7217_v17 = vmax.f32 %v7206_v31, 0.0  ;;  %v22701_v31 = vld [vmem:[%s29210_s2 + $0x88] sm:$0xff]   ;;  %v22704_v52 = vld [vmem:[%s29210_s2 + $0xa0] sm:$0xff]  }
 0x851   : > { %v7205_v27 = vadd.f32 %v19234_v62, %v7143_v48  ;;  %v7215_v7 = vmax.f32 %v7204_v54, 0.0  ;;  %v22703_v54 = vld [vmem:[%s29210_s2 + $0x98] sm:$0xff]   ;;  %v22706_v48 = vld [vmem:[%s29210_s2 + $0xb0] sm:$0xff]  }
 0x852   : > { %v7218_v26 = vmax.f32 %v7207_v22, 0.0  ;;  %v22705_v22 = vld [vmem:[%s29210_s2 + $0xa8] sm:$0xff]  }
 0x853   : > { %v7216_v57 = vmax.f32 %v7205_v27, 0.0  ;;  %v22707_v27 = vld [vmem:[%s29210_s2 + $0xb8] sm:$0xff]  }
 0x854   : > { %v7283_v53 = vpack.c.bf16 %v7218_v26, %v7217_v17  ;;  %v22708_v17 = vld [vmem:[%s29210_s2 + $0xc0] sm:$0xff]   ;;  %v22715_v26 = vld [vmem:[%s29215_s7 + $0x38] sm:$0xff]  }
 0x855   : > { %v7282_v11 = vpack.c.bf16 %v7216_v57, %v7215_v7  ;;  %v22709_v7 = vld [vmem:[%s29210_s2 + $0xc8] sm:$0xff]   ;;  %v22711_v57 = vld [vmem:[%s29210_s2 + $0xd0] sm:$0xff]  }
 0x857   : > { %21411 = vmatprep.subr.bf16.mxu0 %v7282_v11 }
 0x858   : > { %21412 = vmatpush3.bf16.msra.mxu0 %v7282_v11  ;;  %v22716_v11 = vld [vmem:[%s29215_s7] sm:$0xff]  }
 0x859   : > { %21413 = vmatprep.subr.bf16.mxu0 %v7283_v53 }
 0x85c   : > { %21414 = vmatpush3.bf16.msra.mxu0 %v7283_v53  ;;  %v22712_v53 = vld [vmem:[%s29210_s2 + $0xd8] sm:$0x1f]  }
 0x85d   : > { %v21405_v44 = vpop.f32.mrb[104].mxu0 }
 0x85e   : > { %v7210_v35 = vadd.f32 %v21405_v44, %v19234_v62  ;;  %v7156_v6 = vpop.f32.mrb[105].mxu0 }
 0x85f   : > { %v7208_v14 = vadd.f32 %v19234_v62, %v7156_v6  ;;  %v21406_v59 = vpop.f32.mrb[106].mxu0 }
 0x860   : > { %v7211_v36 = vadd.f32 %v21406_v59, %v19234_v62  ;;  %v7159_v37 = vpop.f32.mrb[107].mxu0  ;;  %v7221_v51 = vmax.f32 %v7210_v35, 0.0 }
 0x861   : > { %v7209_v32 = vadd.f32 %v19234_v62, %v7159_v37  ;;  %v7219_v61 = vmax.f32 %v7208_v14, 0.0 }
 0x862   : > { %v7222_v5 = vmax.f32 %v7211_v36, 0.0 }
 0x863   : > { %v7220_v15 = vmax.f32 %v7209_v32, 0.0 }
 0x864   : > { %v7285_v34 = vpack.c.bf16 %v7222_v5, %v7221_v51 }
 0x865   : > { %v21409_v56 = vpop.f32.mrb[168].mxu0  ;;  %v7284_v0 = vpack.c.bf16 %v7220_v15, %v7219_v61 }
 0x866   : > { %v7196_v29 = vadd.f32 %v21409_v56, %v7012_v4  ;;  %v7172_v39 = vpop.f32.mrb[169].mxu0  ;;  %v22693_v4 = vld [vmem:[%s29210_s2 + $0x48] sm:$0xff]  }
 0x867   : > { %v7194_v47 = vadd.f32 %v7172_v39, %v7010_v25  ;;  %v21410_v10 = vpop.f32.mrb[170].mxu0  ;;  %21415 = vmatprep.subr.bf16.mxu0 %v7284_v0  ;;  %v22695_v25 = vld [vmem:[%s29210_s2 + $0x58] sm:$0xff]  }
 0x868   : > { %v7214_v18 = vadd.f32 %v19234_v62, %v7196_v29  ;;  %v7175_v63 = vpop.f32.mrb[171].mxu0  ;;  %21416 = vmatpush3.bf16.msra.mxu0 %v7284_v0 }
 0x869   : > { %v7212_v60 = vadd.f32 %v19234_v62, %v7194_v47  ;;  %v7195_v40 = vadd.f32 %v7175_v63, %v7011_v30  ;;  %21417 = vmatprep.subr.bf16.mxu0 %v7285_v34  ;;  %v22698_v30 = vld [vmem:[%s29210_s2 + $0x70] sm:$0xff]  }
 0x86a   : > { %v7225_v9 = vmax.f32 %v7214_v18, 0.0 }
 0x86b   : > { %v7213_v8 = vadd.f32 %v19234_v62, %v7195_v40  ;;  %v7223_v42 = vmax.f32 %v7212_v60, 0.0  ;;  %v22699_v62 = vld [vmem:[%s29210_s2 + $0x78] sm:$0xff]  }
 0x86c   : > { %21418 = vmatpush3.bf16.msra.mxu0 %v7285_v34  ;;  %v7287_v20 = vpack.c.bf16 %v7225_v9, %v7225_v9 }
 0x86d   : > { %v7224_v16 = vmax.f32 %v7213_v8, 0.0 }
 0x86e   : > { %v7517_v45 = vand.u32 %v7515_v58, %v7287_v20 }
 0x86f   : > { %v7286_v1 = vpack.c.bf16 %v7224_v16, %v7223_v42 }
 0x871   : > { %21419 = vmatprep.subr.bf16.mxu0 %v7286_v1 }
 0x872   : > { %21420 = vmatpush3.bf16.msra.mxu0 %v7286_v1 }
 0x873   : > { %21421 = vmatprep.subr.bf16.mxu0 %v7517_v45 }
 0x876   : > { %21422 = vmatpush3.bf16.msra.mxu0 %v7517_v45 }
 0x877   : > { %21479 = vmatprep.subr.bf16.mxu0 %v22710_v2 }
 0x879   : > { %21424 = vmatmul.mubr.msk.bf16.vlgmr.msra.gmra.mrb[172].mxu0 %vm7428_vm9, %v22685_v46 }
 0x87a   : > { %21427 = vmatprep.mubr.msk.bf16.mxu0 %vm7428_vm9, %v22686_v55  ;;  %21480 = vmatpush3.bf16.msra.mxu0 %v22710_v2 }
 0x87b   : > { %21481 = vmatprep.subr.bf16.mxu0 %v22713_v38 }
 0x87e   : > { %21482 = vmatpush3.bf16.msra.mxu0 %v22713_v38 }
 0x87f   : > { %21483 = vmatprep.subr.bf16.mxu0 %v22714_v3 }
 0x881   : > { %21428 = vmatmul.mubr.msk.bf16.gmra.mrb[176].mxu0 %vm7428_vm9, %v22687_v12 }
 0x882   : > { %21431 = vmatprep.mubr.msk.bf16.mxu0 %vm7428_vm9, %v22688_v49  ;;  %21484 = vmatpush3.bf16.msra.mxu0 %v22714_v3  ;;  %v22717_v3 = vld [vmem:[%s29215_s7 + $0x8] sm:$0xff]  }
 0x883   : > { %21485 = vmatprep.subr.bf16.mxu0 %v22715_v26 }
 0x886   : > { %21486 = vmatpush3.bf16.msra.mxu0 %v22715_v26  ;;  %v22750_v26 = vld [vmem:[%s29217_s9 + $0x70c] ss:$112 sps:$4 sm:$0xff]  }
 0x887   : > { %21495 = vmatprep.subr.bf16.mxu0 %v22716_v11  ;;  %12452 = vmatprep.subr.bf16.mxu1 %v22750_v26 }
 0x889   : > { %21432 = vmatmul.mubr.msk.bf16.gmra.mrb[180].mxu0 %vm7428_vm9, %v22689_v50 }
 0x88a   : > { %21435 = vmatprep.mubr.msk.bf16.mxu0 %vm7428_vm9, %v22690_v13 }
 0x891   : > { %21436 = vmatmul.mubr.msk.bf16.gmra.mrb[184].mxu0 %vm7428_vm9, %v22691_v33 }
 0x892   : > { %21439 = vmatprep.mubr.msk.bf16.mxu0 %vm7428_vm9, %v22692_v21 }
 0x899   : > { %21440 = vmatmul.mubr.msk.bf16.gmra.mrb[188].mxu0 %vm7428_vm9, %v22693_v4 }
 0x89a   : > { %21443 = vmatprep.mubr.msk.bf16.mxu0 %vm7428_vm9, %v22694_v41 }
 0x8a1   : > { %21444 = vmatmul.mubr.msk.bf16.gmra.mrb[192].mxu0 %vm7428_vm9, %v22695_v25  ;;  %v22718_v25 = vld [vmem:[%s29215_s7 + $0x10] sm:$0xff]  }
 0x8a2   : > { %21447 = vmatprep.mubr.msk.bf16.mxu0 %vm7428_vm9, %v22696_v28 }
 0x8a9   : > { %21448 = vmatmul.mubr.msk.bf16.gmra.mrb[196].mxu0 %vm7428_vm9, %v22697_v43 }
 0x8aa   : > { %21451 = vmatprep.mubr.msk.bf16.mxu0 %vm7428_vm9, %v22698_v30 }
 0x8b1   : > { %21452 = vmatmul.mubr.msk.bf16.gmra.mrb[200].mxu0 %vm7428_vm9, %v22699_v62 }
 0x8b2   : > { %21455 = vmatprep.mubr.msk.bf16.mxu0 %vm7428_vm9, %v22700_v24 }
 0x8b9   : > { %21456 = vmatmul.mubr.msk.bf16.gmra.mrb[204].mxu0 %vm7428_vm9, %v22701_v31 }
 0x8ba   : > { %21459 = vmatprep.mubr.msk.bf16.mxu0 %vm7428_vm9, %v22702_v19 }
 0x8c1   : > { %21460 = vmatmul.mubr.msk.bf16.gmra.mrb[208].mxu0 %vm7428_vm9, %v22703_v54 }
 0x8c2   : > { %21463 = vmatprep.mubr.msk.bf16.mxu0 %vm7428_vm9, %v22704_v52 }
 0x8c9   : > { %21464 = vmatmul.mubr.msk.bf16.gmra.mrb[212].mxu0 %vm7428_vm9, %v22705_v22  ;;  %v22719_v22 = vld [vmem:[%s29215_s7 + $0x18] sm:$0xff]  }
 0x8ca   : > { %21467 = vmatprep.mubr.msk.bf16.mxu0 %vm7428_vm9, %v22706_v48 }
 0x8d1   : > { %21468 = vmatmul.mubr.msk.bf16.gmra.mrb[216].mxu0 %vm7428_vm9, %v22707_v27 }
 0x8d2   : > { %21471 = vmatprep.mubr.msk.bf16.mxu0 %vm7428_vm9, %v22708_v17  ;;  %v22748_v17 = vld [vmem:[%s29217_s9 + $0x708] ss:$112 sps:$4 sm:$0xff]  }
 0x8d3   : > { %12453 = vmatpush1.bf16.msra.mxu1 %v22748_v17 }
 0x8d9   : > { %21472 = vmatmul.mubr.msk.bf16.gmra.mrb[220].mxu0 %vm7428_vm9, %v22709_v7 }
 0x8da   : > { %21475 = vmatprep.mubr.msk.bf16.mxu0 %vm7428_vm9, %v22711_v57  ;;  %v22720_v57 = vld [vmem:[%s29215_s7 + $0x40] sm:$0xff]  }
 0x8e1   : > { %21476 = vmatmul.mubr.msk.bf16.gmra.mrb[224].mxu0 %vm7428_vm9, %v22712_v53 }
 0x94c   : > { %v25928_v44 = vpop.f32.mrb[172].mxu0 }
 0x94d   : > { %v25930_v35 = vpop.f32.mrb[173].mxu0 }
 0x94e   : > { %v25932_v6 = vpop.f32.mrb[174].mxu0 }
 0x94f   : > { %v7777_v14 = vpack.c.bf16 %v25932_v6, %v25928_v44  ;;  %v25936_v59 = vpop.f32.mrb[175].mxu0 }
 0x950   : > { %v7776_v36 = vpack.c.bf16 %v25936_v59, %v25930_v35 }
 0x954   : > { %v25940_v37 = vpop.f32.mrb[176].mxu0 }
 0x955   : > { %v25942_v32 = vpop.f32.mrb[177].mxu0 }
 0x956   : > { %v21430_v51 = vpop.f32.mrb[178].mxu0 }
 0x957   : > { %v7788_v5 = vpack.c.bf16 %v21430_v51, %v25940_v37  ;;  %v25945_v61 = vpop.f32.mrb[179].mxu0 }
 0x958   : > { %v7778_v15 = vpack.c.bf16 %v25945_v61, %v25942_v32 }
 0x959   : > { %v7803_v34 = vshll.u32 %v7788_v5, 16  ;;  %v7801_v63 = vshrl.u32 %v7788_v5, 16 }
 0x95b   : > { %v7805_v10 = vrot.slane %v7803_v34, 1 }
 0x95c   : > { %v21433_v56 = vpop.f32.mrb[180].mxu0 }
 0x95d   : > { %v7585_v0 = vpop.f32.mrb[181].mxu0  ;;  %v7806_v9 = vor.u32 %v7805_v10, %v7801_v63 }
 0x95e   : > { %v21434_v29 = vpop.f32.mrb[182].mxu0 }
 0x95f   : > { %v7790_v39 = vpack.c.bf16 %v21434_v29, %v21433_v56  ;;  %v7588_v47 = vpop.f32.mrb[183].mxu0 }
 0x960   : > { %v7789_v18 = vpack.c.bf16 %v7588_v47, %v7585_v0 }
 0x961   : > { %v7816_v60 = vshll.u32 %v7790_v39, 16  ;;  %v7820_v12 = vshrl.u32 %v7790_v39, 16 }
 0x962   : > { %v7808_v40 = vshll.u32 %v7789_v18, 16  ;;  %v7812_v42 = vshrl.u32 %v7789_v18, 16 }
 0x963   : > { %v7818_v58 = vrot.slane %v7816_v60, 1 }
 0x964   : > { %v7810_v8 = vrot.slane %v7808_v40, 1  ;;  %v21437_v16 = vpop.f32.mrb[184].mxu0  ;;  %v22722_v40 = vld [vmem:[%s29215_s7 + $0x50] sm:$0xff]  }
 0x965   : > { %v7601_v20 = vpop.f32.mrb[185].mxu0  ;;  %v7822_v21 = vor.u32 %v7820_v12, %v7818_v58 }
 0x966   : > { %v7814_v1 = vor.u32 %v7812_v42, %v7810_v8  ;;  %v7791_v45 = vpack.c.bf16 %v7601_v20, %v7601_v20  ;;  %v7811_v2 = vsel %vm4623_vm1, %v7806_v9, %v7810_v8  ;;  %v21438_v46 = vpop.f32.mrb[186].mxu0 }
 0x967   : > { %21487 = vmatprep.mubr.msk.bf16.mxu0 %vm7854_vm11, %v7811_v2  ;;  %v8032_v55 = vpack.c.bf16 %v21438_v46, %v21437_v16  ;;  %v7604_v38 = vpop.f32.mrb[187].mxu0 }
 0x968   : > { %v7824_v49 = vshll.u32 %v7791_v45, 16  ;;  %v7819_v50 = vsel %vm4623_vm1, %v7814_v1, %v7818_v58  ;;  %v8031_v13 = vpack.c.bf16 %v7604_v38, %v7601_v20  ;;  %v7828_v52 = vshrl.u32 %v7791_v45, 16  ;;  %v22723_v1 = vld [vmem:[%s29215_s7 + $0x58] sm:$0xff]  }
 0x969   : > { %21488 = vmatmul.mubr.msk.bf16.vlgmr.msra.gmra.mrb[228].mxu0 %vm7854_vm11, %v7819_v50  ;;  %v8048_v33 = vrot.slane %v8032_v55, 1  ;;  %v7779_v58 = vpack.c.bf16 %v25940_v37, %v25940_v37 }
 0x96a   : > { %21496 = vmatpush3.bf16.msra.mxu0 %v22716_v11  ;;  %v8047_v4 = vrot.slane %v8031_v13, 1  ;;  %v7826_v41 = vrot.slane %v7824_v49, 1 }
 0x96b   : > { %21497 = vmatprep.subr.bf16.mxu0 %v22717_v3 }
 0x96c   : > { %v21441_v28 = vpop.f32.mrb[188].mxu0  ;;  %v7827_v43 = vsel %vm4623_vm1, %v7822_v21, %v7826_v41  ;;  %v25961_v30 = vsel %vm4907_vm3, %v8047_v4, %v8048_v33 }
 0x96d   : > { %v8034_v62 = vpack.c.bf16 %v21441_v28, %v21441_v28  ;;  %v7617_v24 = vpop.f32.mrb[189].mxu0  ;;  %21491 = vmatprep.mubr.msk.bf16.mxu0 %vm7854_vm11, %v7827_v43 }
 0x96e   : > { %v21442_v31 = vpop.f32.mrb[190].mxu0  ;;  %21498 = vmatpush3.bf16.msra.mxu0 %v22717_v3 }
 0x96f   : > { %v8161_v19 = vpack.c.bf16 %v21442_v31, %v21441_v28  ;;  %v7620_v54 = vpop.f32.mrb[191].mxu0  ;;  %21499 = vmatprep.subr.bf16.mxu0 %v22718_v25  ;;  %v25967_v48 = vrot.slane %v8034_v62, 1  ;;  %v22725_v62 = vld [vmem:[%s29215_s7 + $0x68] sm:$0xff]  }
 0x970   : > { %v8033_v27 = vpack.c.bf16 %v7620_v54, %v7617_v24 }
 0x971   : > { %21492 = vmatmul.mubr.msk.bf16.gmra.mrb[232].mxu0 %vm7854_vm11, %v7828_v52  ;;  %v8174_v53 = vshrl.u32 %v8161_v19, 16  ;;  %v8177_v11 = vshll.u32 %v8161_v19, 16 }
 0x972   : > { %v8050_v7 = vrot.slane %v8033_v27, 1  ;;  %21500 = vmatpush3.bf16.msra.mxu0 %v22718_v25  ;;  %21503 = vmatprep.mubr.msk.bf16.mxu0 %vm7854_vm11, %v7776_v36  ;;  %v22721_v36 = vld [vmem:[%s29215_s7 + $0x48] sm:$0xff]  }
 0x973   : > { %21501 = vmatprep.subr.bf16.mxu0 %v22719_v22  ;;  %v8176_v29 = vrot.slane %v8174_v53, 1  ;;  %v8179_v39 = vrot.slane %v8177_v11, 2 }
 0x974   : > { %v21445_v51 = vpop.f32.mrb[192].mxu0  ;;  %v25984_v5 = vsel %vm4907_vm3, %v8048_v33, %v8050_v7  ;;  %v25988_v34 = vsel %vm4907_vm3, %v8050_v7, %v25967_v48  ;;  %v22724_v33 = vld [vmem:[%s29215_s7 + $0x60] sm:$0xff]  }
 0x975   : > { %v7633_v35 = vpop.f32.mrb[193].mxu0  ;;  %v8180_v42 = vor.u32 %v8179_v39, %v8176_v29 }
 0x976   : > { %21502 = vmatpush3.bf16.msra.mxu0 %v22719_v22  ;;  %v21446_v59 = vpop.f32.mrb[194].mxu0  ;;  %v22726_v22 = vld [vmem:[%s29215_s7 + $0x70] sm:$0xff]  }
 0x977   : > { %21511 = vmatprep.subr.bf16.mxu0 %v22720_v57  ;;  %v8163_v56 = vpack.c.bf16 %v21446_v59, %v21445_v51  ;;  %v7636_v0 = vpop.f32.mrb[195].mxu0  ;;  %v22727_v51 = vld [vmem:[%s29215_s7 + $0x78] sm:$0xff]  }
 0x978   : > { %v8162_v47 = vpack.c.bf16 %v7636_v0, %v7633_v35 }
 0x979   : > { %21504 = vmatmul.mubr.msk.bf16.vlgmr.msra.gmra.mrb[228].mxu0 %vm7854_vm11, %v7777_v14  ;;  %v8191_v10 = vshrl.u32 %v8163_v56, 16  ;;  %v8194_v18 = vshll.u32 %v8163_v56, 16 }
 0x97a   : > { %21507 = vmatprep.mubr.msk.bf16.mxu0 %vm7854_vm11, %v7778_v15  ;;  %21512 = vmatpush3.bf16.msra.mxu0 %v22720_v57  ;;  %v8182_v63 = vshrl.u32 %v8162_v47, 16  ;;  %v8185_v60 = vshll.u32 %v8162_v47, 16  ;;  %v22728_v47 = vld [vmem:[%s29215_s7 + $0x80] sm:$0xff]  }
 0x97b   : > { %21513 = vmatprep.subr.bf16.mxu0 %v22721_v36  ;;  %v8193_v9 = vrot.slane %v8191_v10, 1  ;;  %v8196_v8 = vrot.slane %v8194_v18, 2 }
 0x97c   : > { %v8184_v44 = vrot.slane %v8182_v63, 1  ;;  %v8187_v6 = vrot.slane %v8185_v60, 2  ;;  %v21449_v14 = vpop.f32.mrb[196].mxu0 }
 0x97d   : > { %v8197_v16 = vor.u32 %v8196_v8, %v8193_v9  ;;  %v7649_v20 = vpop.f32.mrb[197].mxu0 }
 0x97e   : > { %21514 = vmatpush3.bf16.msra.mxu0 %v22721_v36  ;;  %v8164_v32 = vpack.c.bf16 %v7649_v20, %v7649_v20  ;;  %v8188_v61 = vor.u32 %v8187_v6, %v8184_v44  ;;  %v21450_v15 = vpop.f32.mrb[198].mxu0 }
 0x97f   : > { %21515 = vmatprep.subr.bf16.mxu0 %v22722_v40  ;;  %v8316_v45 = vpack.c.bf16 %v21450_v15, %v21449_v14  ;;  %v7652_v2 = vpop.f32.mrb[199].mxu0 }
 0x980   : > { %v8200_v46 = vshrl.u32 %v8164_v32, 16  ;;  %v8203_v55 = vshll.u32 %v8164_v32, 16  ;;  %v8189_v38 = vsel %vm5050_vm4, %v8180_v42, %v8188_v61  ;;  %v8315_v3 = vpack.c.bf16 %v7652_v2, %v7649_v20  ;;  %v22729_v42 = vld [vmem:[%s29215_s7 + $0x88] sm:$0xff]  }
 0x981   : > { %21508 = vmatmul.mubr.msk.bf16.gmra.mrb[236].mxu0 %vm7854_vm11, %v7779_v58  ;;  %v8332_v12 = vrot.slane %v8316_v45, 2  ;;  %v26012_v49 = vsel %vm5050_vm4, %v8188_v61, %v8197_v16 }
 0x982   : > { %21516 = vmatpush3.bf16.msra.mxu0 %v22722_v40  ;;  %21519 = vmatprep.mubr.msk.bf16.mxu0 %vm7854_vm11, %v25961_v30  ;;  %v26016_v37 = vrot.slane %v8200_v46, 1  ;;  %v8205_v50 = vrot.slane %v8203_v55, 2  ;;  %v8331_v13 = vrot.slane %v8315_v3, 2 }
 0x983   : > { %21517 = vmatprep.subr.bf16.mxu0 %v22723_v1 }
 0x984   : > { %v21453_v21 = vpop.f32.mrb[200].mxu0  ;;  %v8206_v4 = vor.u32 %v8205_v50, %v26016_v37  ;;  %v26023_v41 = vsel %vm5241_vm5, %v8331_v13, %v8332_v12 }
 0x985   : > { %v8318_v25 = vpack.c.bf16 %v21453_v21, %v21453_v21  ;;  %v7665_v28 = vpop.f32.mrb[201].mxu0 }
 0x986   : > { %21518 = vmatpush3.bf16.msra.mxu0 %v22723_v1  ;;  %v21454_v43 = vpop.f32.mrb[202].mxu0  ;;  %v8207_v30 = vsel %vm5050_vm4, %v8197_v16, %v8206_v4  ;;  %v22731_v4 = vld [vmem:[%s29215_s7 + $0x98] sm:$0xff]  }
 0x987   : > { %21527 = vmatprep.subr.bf16.mxu0 %v22724_v33  ;;  %v8445_v24 = vpack.c.bf16 %v21454_v43, %v21453_v21  ;;  %v7668_v31 = vpop.f32.mrb[203].mxu0  ;;  %v26029_v19 = vrot.slane %v8318_v25, 2 }
 0x988   : > { %v8317_v54 = vpack.c.bf16 %v7668_v31, %v7665_v28 }
 0x989   : > { %21520 = vmatmul.mubr.msk.bf16.vlgmr.msra.gmra.mrb[228].mxu0 %vm7854_vm11, %v25984_v5  ;;  %v8458_v27 = vshrl.u32 %v8445_v24, 16  ;;  %v8461_v17 = vshll.u32 %v8445_v24, 16  ;;  %v22732_v24 = vld [vmem:[%s29215_s7 + $0xa0] sm:$0xff]  }
 0x98a   : > { %21528 = vmatpush3.bf16.msra.mxu0 %v22724_v33  ;;  %21523 = vmatprep.mubr.msk.bf16.mxu0 %vm7854_vm11, %v25988_v34  ;;  %v8334_v52 = vrot.slane %v8317_v54, 2 }
 0x98b   : > { %21529 = vmatprep.subr.bf16.mxu0 %v22725_v62  ;;  %v8460_v35 = vrot.slane %v8458_v27, 2  ;;  %v8463_v59 = vrot.slane %v8461_v17, 3 }
 0x98c   : > { %v21457_v26 = vpop.f32.mrb[204].mxu0  ;;  %v26039_v7 = vsel %vm5241_vm5, %v8332_v12, %v8334_v52  ;;  %v26043_v57 = vsel %vm5241_vm5, %v8334_v52, %v26029_v19 }
 0x98d   : > { %v7681_v53 = vpop.f32.mrb[205].mxu0  ;;  %v8464_v9 = vor.u32 %v8463_v59, %v8460_v35 }
 0x98e   : > { %21530 = vmatpush3.bf16.msra.mxu0 %v22725_v62  ;;  %v21458_v11 = vpop.f32.mrb[206].mxu0 }
 0x98f   : > { %21531 = vmatprep.subr.bf16.mxu0 %v22726_v22  ;;  %v8447_v5 = vpack.c.bf16 %v21458_v11, %v21457_v26  ;;  %v7684_v34 = vpop.f32.mrb[207].mxu0 }
 0x990   : > { %v8446_v36 = vpack.c.bf16 %v7684_v34, %v7681_v53 }
 0x991   : > { %21524 = vmatmul.mubr.msk.bf16.gmra.mrb[240].mxu0 %vm7854_vm11, %v25967_v48  ;;  %v8475_v56 = vshrl.u32 %v8447_v5, 16  ;;  %v8478_v0 = vshll.u32 %v8447_v5, 16 }
 0x992   : > { %21532 = vmatpush3.bf16.msra.mxu0 %v22726_v22  ;;  %21535 = vmatprep.mubr.msk.bf16.mxu0 %vm7854_vm11, %v8189_v38  ;;  %v8466_v29 = vshrl.u32 %v8446_v36, 16  ;;  %v8469_v39 = vshll.u32 %v8446_v36, 16  ;;  %v22730_v38 = vld [vmem:[%s29215_s7 + $0x90] sm:$0xff]  }
 0x993   : > { %21533 = vmatprep.subr.bf16.mxu0 %v22727_v51  ;;  %v8477_v10 = vrot.slane %v8475_v56, 2  ;;  %v8480_v18 = vrot.slane %v8478_v0, 3  ;;  %v22734_v56 = vld [vmem:[%s29215_s7 + $0xb0] sm:$0xff]  }
 0x994   : > { %v8468_v63 = vrot.slane %v8466_v29, 2  ;;  %v8471_v60 = vrot.slane %v8469_v39, 3  ;;  %v21461_v40 = vpop.f32.mrb[208].mxu0 }
 0x995   : > { %v8481_v8 = vor.u32 %v8480_v18, %v8477_v10  ;;  %v7697_v48 = vpop.f32.mrb[209].mxu0 }
 0x996   : > { %21534 = vmatpush3.bf16.msra.mxu0 %v22727_v51  ;;  %v8448_v44 = vpack.c.bf16 %v7697_v48, %v7697_v48  ;;  %v8472_v6 = vor.u32 %v8471_v60, %v8468_v63  ;;  %v21462_v14 = vpop.f32.mrb[210].mxu0 }
 0x997   : > { %21543 = vmatprep.subr.bf16.mxu0 %v22728_v47  ;;  %v8600_v16 = vpack.c.bf16 %v21462_v14, %v21461_v40  ;;  %v7700_v20 = vpop.f32.mrb[211].mxu0 }
 0x998   : > { %v8484_v32 = vshrl.u32 %v8448_v44, 16  ;;  %v8487_v61 = vshll.u32 %v8448_v44, 16  ;;  %v26058_v15 = vsel %vm5384_vm6, %v8464_v9, %v8472_v6  ;;  %v8599_v58 = vpack.c.bf16 %v7700_v20, %v7697_v48  ;;  %v22735_v9 = vld [vmem:[%s29215_s7 + $0xb8] sm:$0xff]  }
 0x999   : > { %21536 = vmatmul.mubr.msk.bf16.vlgmr.msra.gmra.mrb[228].mxu0 %vm7854_vm11, %v26012_v49  ;;  %v8616_v1 = vrot.slane %v8600_v16, 3  ;;  %v26063_v45 = vsel %vm5384_vm6, %v8472_v6, %v8481_v8 }
 0x99a   : > { %21539 = vmatprep.mubr.msk.bf16.mxu0 %vm7854_vm11, %v8207_v30  ;;  %21544 = vmatpush3.bf16.msra.mxu0 %v22728_v47  ;;  %v26066_v2 = vrot.slane %v8484_v32, 2  ;;  %v8489_v46 = vrot.slane %v8487_v61, 3  ;;  %v8615_v55 = vrot.slane %v8599_v58, 3  ;;  %v22736_v32 = vld [vmem:[%s29215_s7 + $0xc0] sm:$0xff]  }
 0x99b   : > { %21545 = vmatprep.subr.bf16.mxu0 %v22729_v42 }
 0x99c   : > { %v21465_v3 = vpop.f32.mrb[212].mxu0  ;;  %v8490_v12 = vor.u32 %v8489_v46, %v26066_v2  ;;  %v26073_v49 = vsel %vm5575_vm7, %v8615_v55, %v8616_v1 }
 0x99d   : > { %v8602_v50 = vpack.c.bf16 %v21465_v3, %v21465_v3  ;;  %v7713_v13 = vpop.f32.mrb[213].mxu0 }
 0x99e   : > { %21546 = vmatpush3.bf16.msra.mxu0 %v22729_v42  ;;  %v21466_v33 = vpop.f32.mrb[214].mxu0  ;;  %v26076_v21 = vsel %vm5384_vm6, %v8481_v8, %v8490_v12  ;;  %v22738_v12 = vld [vmem:[%s29215_s7 + $0xd0] sm:$0xff]  }
 0x99f   : > { %21547 = vmatprep.subr.bf16.mxu0 %v22730_v38  ;;  %v8729_v25 = vpack.c.bf16 %v21466_v33, %v21465_v3  ;;  %v7716_v28 = vpop.f32.mrb[215].mxu0  ;;  %v26081_v43 = vrot.slane %v8602_v50, 3  ;;  %v22739_v50 = vld [vmem:[%s29215_s7 + $0xd8] sm:$0xff]   ;;  %v22744_v33 = vld [vmem:[%s29215_s7 + $0x100] sm:$0xff]  }
 0x9a0   : > { %v8601_v30 = vpack.c.bf16 %v7716_v28, %v7713_v13  ;;  %v22741_v13 = vld [vmem:[%s29215_s7 + $0xe8] sm:$0xff]  }
 0x9a1   : > { %21540 = vmatmul.mubr.msk.bf16.gmra.mrb[244].mxu0 %vm7854_vm11, %v26016_v37  ;;  %v8742_v31 = vshrl.u32 %v8729_v25, 16  ;;  %v8745_v54 = vshll.u32 %v8729_v25, 16  ;;  %v22747_v25 = vld [vmem:[%s29215_s7 + $0x118] sm:$0xff]  }
 0x9a2   : > { %21548 = vmatpush3.bf16.msra.mxu0 %v22730_v38  ;;  %21551 = vmatprep.mubr.msk.bf16.mxu0 %vm7854_vm11, %v26023_v41  ;;  %v8618_v62 = vrot.slane %v8601_v30, 3  ;;  %v22733_v41 = vld [vmem:[%s29215_s7 + $0xa8] sm:$0xff]  }
 0x9a3   : > { %21549 = vmatprep.subr.bf16.mxu0 %v22731_v4  ;;  %v8744_v11 = vrot.slane %v8742_v31, 3  ;;  %v8747_v51 = vrot.slane %v8745_v54, 4  ;;  %v22753_v30 = vld [vmem:[%s29217_s9 + $0x7ec] ss:$112 sps:$4 sm:$0xff]   ;;  %v22759_v31 = vld [vmem:[%s29217_s9 + $0xe4] ss:$112 sps:$4 sm:$0xff]  }
 0x9a4   : > { %v21469_v52 = vpop.f32.mrb[216].mxu0  ;;  %v26091_v22 = vsel %vm5575_vm7, %v8616_v1, %v8618_v62  ;;  %v26095_v27 = vsel %vm5575_vm7, %v8618_v62, %v26081_v43  ;;  %12454 = vmatprep.subr.bf16.mxu1 %v22753_v30  ;;  %v22754_v62 = vld [vmem:[%s29217_s9] ss:$112 sps:$4 sm:$0xff]  }
 0x9a5   : > { %v7729_v37 = vpop.f32.mrb[217].mxu0  ;;  %v22757_v54 = vld [vmem:[%s29217_s9 + $0xe0] ss:$112 sps:$4 sm:$0xff]  }
 0x9a6   : > { %21550 = vmatpush3.bf16.msra.mxu0 %v22731_v4  ;;  %v21470_v17 = vpop.f32.mrb[218].mxu0  ;;  %v22746_v4 = vld [vmem:[%s29215_s7 + $0x110] sm:$0xff]  }
 0x9a7   : > { %21559 = vmatprep.subr.bf16.mxu0 %v22732_v24  ;;  %v8731_v26 = vpack.c.bf16 %v21470_v17, %v21469_v52  ;;  %v7732_v53 = vpop.f32.mrb[219].mxu0  ;;  %v22762_v52 = vld [vmem:[%s29217_s9 + $0x1c4] ss:$112 sps:$4 sm:$0xff]   ;;  %v22763_v17 = vld [vmem:[%s29217_s9 + $0x2a0] ss:$112 sps:$4 sm:$0xff]  }
 0x9a8   : > { %v8730_v5 = vpack.c.bf16 %v7732_v53, %v7729_v37  ;;  %v22768_v37 = vld [vmem:[%s29217_s9 + $0x8cc] ss:$112 sps:$4 sm:$0xff]  }
 0x9a9   : > { %21552 = vmatmul.mubr.msk.bf16.vlgmr.msra.gmra.mrb[228].mxu0 %vm7854_vm11, %v26039_v7  ;;  %v8759_v34 = vshrl.u32 %v8731_v26, 16  ;;  %v8762_v35 = vshll.u32 %v8731_v26, 16  ;;  %v8748_v7 = vor.u32 %v8747_v51, %v8744_v11  ;;  %v22771_v26 = vld [vmem:[%s29217_s9 + $0xc] ss:$112 sps:$4 sm:$0xff]   ;;  %v22772_v11 = vld [vmem:[%s29217_s9 + $0x9a8] ss:$112 sps:$4 sm:$0xff]  }
 0x9aa   : > { %21560 = vmatpush3.bf16.msra.mxu0 %v22732_v24  ;;  %21555 = vmatprep.mubr.msk.bf16.mxu0 %vm7854_vm11, %v26043_v57  ;;  %v8750_v59 = vshrl.u32 %v8730_v5, 16  ;;  %v8753_v36 = vshll.u32 %v8730_v5, 16  ;;  %v22756_v24 = vld [vmem:[%s29217_s9 + $0x4] ss:$112 sps:$4 sm:$0xff]   ;;  %v22774_v53 = vld [vmem:[%s29217_s9 + $0x9ac] ss:$112 sps:$4 sm:$0xff]  }
 0x9ab   : > { %21561 = vmatprep.subr.bf16.mxu0 %v22733_v41  ;;  %v8761_v0 = vrot.slane %v8759_v34, 3  ;;  %v8764_v29 = vrot.slane %v8762_v35, 4  ;;  %v22780_v35 = vld [vmem:[%s29217_s9 + $0x71c] ss:$112 sps:$4 sm:$0xff]  }
 0x9ac   : > { %v8752_v39 = vrot.slane %v8750_v59, 3  ;;  %v8755_v47 = vrot.slane %v8753_v36, 4  ;;  %v26107_v10 = vpop.f32.mrb[220].mxu0 }
 0x9ad   : > { %v8765_v18 = vor.u32 %v8764_v29, %v8761_v0  ;;  %v7745_v63 = vpop.f32.mrb[221].mxu0 }
 0x9ae   : > { %21562 = vmatpush3.bf16.msra.mxu0 %v22733_v41  ;;  %v8732_v60 = vpack.c.bf16 %v7745_v63, %v7745_v63  ;;  %v8756_v40 = vor.u32 %v8755_v47, %v8752_v39  ;;  %v26109_v57 = vpop.f32.mrb[222].mxu0  ;;  %v22766_v41 = vld [vmem:[%s29217_s9 + $0x8c8] ss:$112 sps:$4 sm:$0xff]  }
 0x9af   : > { %21563 = vmatprep.subr.bf16.mxu0 %v22734_v56  ;;  %v26114_v8 = vpop.f32.mrb[223].mxu0 }
 0x9b0   : > { %v8768_v48 = vshrl.u32 %v8732_v60, 16  ;;  %v8771_v44 = vshll.u32 %v8732_v60, 16  ;;  %v8757_v6 = vsel %vm5718_vm8, %v8748_v7, %v8756_v40  ;;  %v8883_v14 = vpack.c.bf16 %v26107_v10, %v26114_v8 }
 0x9b1   : > { %21556 = vmatmul.mubr.msk.bf16.gmra.mrb[248].mxu0 %vm7854_vm11, %v26029_v19  ;;  %v8766_v42 = vsel %vm5718_vm8, %v8756_v40, %v8765_v18 }
 0x9b2   : > { %21564 = vmatpush3.bf16.msra.mxu0 %v22734_v56  ;;  %21567 = vmatprep.mubr.msk.bf16.mxu0 %vm7854_vm11, %v26058_v15  ;;  %v8770_v16 = vrot.slane %v8768_v48, 3  ;;  %v8773_v20 = vrot.slane %v8771_v44, 4  ;;  %v22737_v15 = vld [vmem:[%s29215_s7 + $0xc8] sm:$0xff]  }
 0x9b3   : > { %21565 = vmatprep.subr.bf16.mxu0 %v22735_v9 }
 0x9b4   : > { %v21477_v61 = vpop.f32.mrb[224].mxu0  ;;  %v8774_v58 = vor.u32 %v8773_v20, %v8770_v16 }
 0x9b5   : > { %v7761_v1 = vpop.f32.mrb[225].mxu0 }
 0x9b6   : > { %21566 = vmatpush3.bf16.msra.mxu0 %v22735_v9  ;;  %v8884_v46 = vpack.c.bf16 %v7761_v1, %v26109_v57  ;;  %v8775_v19 = vsel %vm5718_vm8, %v8765_v18, %v8774_v58  ;;  %v21478_v55 = vpop.f32.mrb[226].mxu0 }
 0x9b7   : > { %21575 = vmatprep.subr.bf16.mxu0 %v22736_v32  ;;  %v7764_v38 = vpop.f32.mrb[227].mxu0  ;;  %v8886_v28 = vpack.c.bf16 %v21478_v55, %v21478_v55 }
 0x9b8   : > { %v8885_v3 = vpack.c.bf16 %v21477_v61, %v7764_v38 }
 0x9b9   : > { %21568 = vmatmul.mubr.msk.bf16.vlgmr.msra.gmra.mrb[228].mxu0 %vm7854_vm11, %v26063_v45  ;;  %v22740_v45 = vld [vmem:[%s29215_s7 + $0xe0] sm:$0xff]  }
 0x9ba   : > { %21571 = vmatprep.mubr.msk.bf16.mxu0 %vm7854_vm11, %v26076_v21  ;;  %21576 = vmatpush3.bf16.msra.mxu0 %v22736_v32  ;;  %v22745_v21 = vld [vmem:[%s29215_s7 + $0x108] sm:$0xff]  }
 0x9bb   : > { %21577 = vmatprep.subr.bf16.mxu0 %v22737_v15 }
 0x9be   : > { %21578 = vmatpush3.bf16.msra.mxu0 %v22737_v15 }
 0x9bf   : > { %21579 = vmatprep.subr.bf16.mxu0 %v22738_v12 }
 0x9c1   : > { %21572 = vmatmul.mubr.msk.bf16.gmra.mrb[252].mxu0 %vm7854_vm11, %v26066_v2  ;;  %v22742_v2 = vld [vmem:[%s29215_s7 + $0xf0] sm:$0xff]  }
 0x9c2   : > { %21580 = vmatpush3.bf16.msra.mxu0 %v22738_v12  ;;  %21583 = vmatprep.mubr.msk.bf16.mxu0 %vm7854_vm11, %v26073_v49  ;;  %v22743_v49 = vld [vmem:[%s29215_s7 + $0xf8] sm:$0xff]  }
 0x9c3   : > { %21581 = vmatprep.subr.bf16.mxu0 %v22739_v50 }
 0x9c6   : > { %21582 = vmatpush3.bf16.msra.mxu0 %v22739_v50 }
 0x9c7   : > { %21591 = vmatprep.subr.bf16.mxu0 %v22740_v45 }
 0x9c9   : > { %21584 = vmatmul.mubr.msk.bf16.vlgmr.msra.gmra.mrb[228].mxu0 %vm7854_vm11, %v26091_v22  ;;  %v22760_v22 = vld [vmem:[%s29217_s9 + $0x1c0] ss:$112 sps:$4 sm:$0xff]  }
 0x9ca   : > { %21592 = vmatpush3.bf16.msra.mxu0 %v22740_v45  ;;  %21587 = vmatprep.mubr.msk.bf16.mxu0 %vm7854_vm11, %v26095_v27  ;;  %v22765_v27 = vld [vmem:[%s29217_s9 + $0x2a4] ss:$112 sps:$4 sm:$0xff]  }
 0x9cb   : > { %21593 = vmatprep.subr.bf16.mxu0 %v22741_v13 }
 0x9ce   : > { %21594 = vmatpush3.bf16.msra.mxu0 %v22741_v13 }
 0x9cf   : > { %21595 = vmatprep.subr.bf16.mxu0 %v22742_v2 }
 0x9d1   : > { %21588 = vmatmul.mubr.msk.bf16.gmra.mrb[0].mxu0 %vm7854_vm11, %v26081_v43  ;;  %v22751_v43 = vld [vmem:[%s29217_s9 + $0x7e8] ss:$112 sps:$4 sm:$0xff]  }
 0x9d2   : > { %21596 = vmatpush3.bf16.msra.mxu0 %v22742_v2  ;;  %21599 = vmatprep.mubr.msk.bf16.mxu0 %vm7854_vm11, %v8757_v6 }
 0x9d3   : > { %21597 = vmatprep.subr.bf16.mxu0 %v22743_v49  ;;  %12455 = vmatpush1.bf16.msra.mxu1 %v22751_v43 }
 0x9d4   : > { %12456 = vmatprep.subr.bf16.mxu1 %v22768_v37 }
 0x9d6   : > { %21598 = vmatpush3.bf16.msra.mxu0 %v22743_v49 }
 0x9d7   : > { %21607 = vmatprep.subr.bf16.mxu0 %v22744_v33  ;;  %12457 = vmatpush1.bf16.msra.mxu1 %v22766_v41 }
 0x9d8   : > { %12458 = vmatprep.subr.bf16.mxu1 %v22774_v53 }
 0x9d9   : > { %21600 = vmatmul.mubr.msk.bf16.vlgmr.msra.gmra.mrb[228].mxu0 %vm7854_vm11, %v8766_v42 }
 0x9da   : > { %21603 = vmatprep.mubr.msk.bf16.mxu0 %vm7854_vm11, %v8775_v19  ;;  %21608 = vmatpush3.bf16.msra.mxu0 %v22744_v33 }
 0x9db   : > { %21609 = vmatprep.subr.bf16.mxu0 %v22745_v21  ;;  %12459 = vmatpush1.bf16.msra.mxu1 %v22772_v11 }
 0x9dc   : > { %12534 = vmatprep.subr.bf16.mxu1 %v22780_v35  ;;  %v22769_v35 = vld [vmem:[%s29217_s9 + $0x8] ss:$112 sps:$4 sm:$0xff]  }
 0x9de   : > { %21610 = vmatpush3.bf16.msra.mxu0 %v22745_v21 }
 0x9df   : > { %21611 = vmatprep.subr.bf16.mxu0 %v22746_v4 }
 0x9e1   : > { %21604 = vmatmul.mubr.msk.bf16.gmra.mrb[4].mxu0 %vm7854_vm11, %v8770_v16 }
 0x9e2   : > { %21612 = vmatpush3.bf16.msra.mxu0 %v22746_v4  ;;  %21615 = vmatprep.mubr.msk.bf16.mxu0 %vm7854_vm11, %v8883_v14 }
 0x9e3   : > { %21613 = vmatprep.subr.bf16.mxu0 %v22747_v25 }
 0x9e6   : > { %21614 = vmatpush3.bf16.msra.mxu0 %v22747_v25 }
 0x9e7   : > { %9699 = vmatprep.subr.bf16.mxu0 %v22756_v24 }
 0x9e9   : > { %21616 = vmatmul.mubr.msk.bf16.vlgmr.msra.gmra.mrb[228].mxu0 %vm7854_vm11, %v8884_v46 }
 0x9ea   : > { %21619 = vmatprep.mubr.msk.bf16.mxu0 %vm7854_vm11, %v8885_v3  ;;  %9700 = vmatpush1.bf16.msra.mxu0 %v22754_v62 }
 0x9eb   : > { %9701 = vmatprep.subr.bf16.mxu0 %v22759_v31 }
 0x9ee   : > { %9702 = vmatpush1.bf16.msra.mxu0 %v22757_v54 }
 0x9ef   : > { %9703 = vmatprep.subr.bf16.mxu0 %v22762_v52  ;;  %v19363_v52 = vld [vmem:[%s29216_s8] ss:$0 sm:$0xff] }
 0x9f1   : > { %21620 = vmatmul.mubr.msk.bf16.gmra.mrb[8].mxu0 %vm7854_vm11, %v8886_v28 }
 0x9f2   : > { %9731 = vmatprep.mubr.bf16.mxu0 %v29231_v23  ;;  %9704 = vmatpush1.bf16.msra.mxu0 %v22760_v22 }
 0x9f3   : > { %9705 = vmatprep.subr.bf16.mxu0 %v22765_v27 }
 0x9f6   : > { %9706 = vmatpush1.bf16.msra.mxu0 %v22763_v17 }
 0x9f7   : > { %9740 = vmatprep.subr.bf16.mxu0 %v22771_v26 }
 0xa44   : > { %v21493_v51 = vpop.f32.mrb[232].mxu0 }
 0xa45   : > { %v7917_v5 = vpop.f32.mrb[233].mxu0 }
 0xa46   : > { %v21494_v34 = vpop.f32.mrb[234].mxu0 }
 0xa47   : > { %v7920_v59 = vpop.f32.mrb[235].mxu0 }
 0xa54   : > { %v21509_v36 = vpop.f32.mrb[236].mxu0 }
 0xa55   : > { %v8026_v56 = vadd.f32 %v21509_v36, %v21493_v51  ;;  %v8017_v0 = vpop.f32.mrb[237].mxu0 }
 0xa56   : > { %v8018_v29 = vadd.f32 %v8017_v0, %v7917_v5  ;;  %v21510_v39 = vpop.f32.mrb[238].mxu0 }
 0xa57   : > { %v8020_v47 = vpop.f32.mrb[239].mxu0 }
 0xa58   : > { %v8021_v10 = vadd.f32 %v8020_v47, %v7920_v59 }
 0xa64   : > { %v21525_v7 = vpop.f32.mrb[240].mxu0 }
 0xa65   : > { %v8160_v18 = vadd.f32 %v21525_v7, %v8026_v56  ;;  %v8140_v63 = vpop.f32.mrb[241].mxu0  ;;  %v22777_v56 = vld [vmem:[%s29217_s9 + $0xec] ss:$112 sps:$4 sm:$0xff]  }
 0xa66   : > { %v8158_v60 = vadd.f32 %v8140_v63, %v8018_v29  ;;  %v21526_v40 = vpop.f32.mrb[242].mxu0  ;;  %v22778_v63 = vld [vmem:[%s29217_s9 + $0x718] ss:$112 sps:$4 sm:$0xff]  }
 0xa67   : > { %v8143_v57 = vpop.f32.mrb[243].mxu0 }
 0xa68   : > { %v8159_v9 = vadd.f32 %v8143_v57, %v8021_v10 }
 0xa74   : > { %v21541_v8 = vpop.f32.mrb[244].mxu0 }
 0xa75   : > { %v8314_v48 = vadd.f32 %v21541_v8, %v8160_v18  ;;  %v8294_v44 = vpop.f32.mrb[245].mxu0  ;;  %v22775_v18 = vld [vmem:[%s29217_s9 + $0xe8] ss:$112 sps:$4 sm:$0xff]   ;;  %v22786_v8 = vld [vmem:[%s29217_s9 + $0x7fc] ss:$112 sps:$4 sm:$0xff]  }
 0xa76   : > { %v8312_v6 = vadd.f32 %v8294_v44, %v8158_v60  ;;  %v21542_v14 = vpop.f32.mrb[246].mxu0 }
 0xa77   : > { %v8297_v42 = vpop.f32.mrb[247].mxu0 }
 0xa78   : > { %v8313_v16 = vadd.f32 %v8297_v42, %v8159_v9  ;;  %v22783_v9 = vld [vmem:[%s29217_s9 + $0x1cc] ss:$112 sps:$4 sm:$0xff]   ;;  %v22781_v42 = vld [vmem:[%s29217_s9 + $0x1c8] ss:$112 sps:$4 sm:$0xff]  }
 0xa84   : > { %v21557_v20 = vpop.f32.mrb[248].mxu0 }
 0xa85   : > { %v8444_v32 = vadd.f32 %v21557_v20, %v8314_v48  ;;  %v8424_v61 = vpop.f32.mrb[249].mxu0 }
 0xa86   : > { %v8442_v58 = vadd.f32 %v8424_v61, %v8312_v6  ;;  %v21558_v1 = vpop.f32.mrb[250].mxu0  ;;  %v22789_v61 = vld [vmem:[%s29217_s9 + $0x2ac] ss:$112 sps:$4 sm:$0xff]  }
 0xa87   : > { %v8427_v46 = vpop.f32.mrb[251].mxu0 }
 0xa88   : > { %v8443_v19 = vadd.f32 %v8427_v46, %v8313_v16  ;;  %v22784_v16 = vld [vmem:[%s29217_s9 + $0x7f8] ss:$112 sps:$4 sm:$0xff]  }
 0xa94   : > { %v21573_v55 = vpop.f32.mrb[252].mxu0 }
 0xa95   : > { %v8598_v15 = vadd.f32 %v21573_v55, %v8444_v32  ;;  %v8578_v38 = vpop.f32.mrb[253].mxu0  ;;  %v22787_v55 = vld [vmem:[%s29217_s9 + $0x2a8] ss:$112 sps:$4 sm:$0xff]  }
 0xa96   : > { %v8596_v3 = vadd.f32 %v8578_v38, %v8442_v58  ;;  %v21574_v12 = vpop.f32.mrb[254].mxu0  ;;  %v22792_v58 = vld [vmem:[%s29217_s9 + $0x8dc] ss:$112 sps:$4 sm:$0xff]  }
 0xa97   : > { %v8581_v50 = vpop.f32.mrb[255].mxu0  ;;  %v22795_v12 = vld [vmem:[%s29217_s9 + $0x14] ss:$112 sps:$4 sm:$0xff]  }
 0xa98   : > { %v8597_v45 = vadd.f32 %v8581_v50, %v8443_v19  ;;  %v22798_v50 = vld [vmem:[%s29217_s9 + $0x9bc] ss:$112 sps:$4 sm:$0xff]  }
 0xaa4   : > { %v21589_v13 = vpop.f32.mrb[0].mxu0 }
 0xaa5   : > { %v8728_v2 = vadd.f32 %v21589_v13, %v8598_v15  ;;  %v8708_v49 = vpop.f32.mrb[1].mxu0  ;;  %v22790_v15 = vld [vmem:[%s29217_s9 + $0x8d8] ss:$112 sps:$4 sm:$0xff]  }
 0xaa6   : > { %v8726_v33 = vadd.f32 %v8708_v49, %v8596_v3  ;;  %v21590_v21 = vpop.f32.mrb[2].mxu0  ;;  %v22796_v13 = vld [vmem:[%s29217_s9 + $0x9b8] ss:$112 sps:$4 sm:$0xff]   ;;  %v22804_v49 = vld [vmem:[%s29217_s9 + $0x72c] ss:$112 sps:$4 sm:$0xff]  }
 0xaa7   : > { %v8711_v4 = vpop.f32.mrb[3].mxu0  ;;  %v22802_v21 = vld [vmem:[%s29217_s9 + $0x728] ss:$112 sps:$4 sm:$0xff]  }
 0xaa8   : > { %v8727_v25 = vadd.f32 %v8711_v4, %v8597_v45  ;;  %v22793_v45 = vld [vmem:[%s29217_s9 + $0x10] ss:$112 sps:$4 sm:$0xff]   ;;  %v22807_v4 = vld [vmem:[%s29217_s9 + $0x1d4] ss:$112 sps:$4 sm:$0xff]  }
 0xab4   : > { %v21605_v28 = vpop.f32.mrb[4].mxu0 }
 0xab5   : > { %v8862_v43 = vpop.f32.mrb[5].mxu0  ;;  %v8882_v30 = vadd.f32 %v21605_v28, %v8728_v2  ;;  %v22801_v2 = vld [vmem:[%s29217_s9 + $0xf4] ss:$112 sps:$4 sm:$0xff]   ;;  %v22805_v28 = vld [vmem:[%s29217_s9 + $0x1d0] ss:$112 sps:$4 sm:$0xff]  }
 0xab6   : > { %v21606_v62 = vpop.f32.mrb[6].mxu0  ;;  %v8880_v24 = vadd.f32 %v8862_v43, %v8726_v33  ;;  %v22799_v33 = vld [vmem:[%s29217_s9 + $0xf0] ss:$112 sps:$4 sm:$0xff]   ;;  %v22808_v43 = vld [vmem:[%s29217_s9 + $0x808] ss:$112 sps:$4 sm:$0xff]  }
 0xab7   : > { %v8865_v31 = vpop.f32.mrb[7].mxu0  ;;  %v22816_v62 = vld [vmem:[%s29217_s9 + $0x8ec] ss:$112 sps:$4 sm:$0xff]  }
 0xab8   : > { %v8881_v54 = vadd.f32 %v8865_v31, %v8727_v25  ;;  %v22810_v25 = vld [vmem:[%s29217_s9 + $0x80c] ss:$112 sps:$4 sm:$0xff]   ;;  %v22814_v31 = vld [vmem:[%s29217_s9 + $0x8e8] ss:$112 sps:$4 sm:$0xff]  }
 0xabc   : > { %v21617_v22 = vpop.f32.mrb[228].mxu0 }
 0xabd   : > { %v9011_v27 = vadd.f32 %v21617_v22, %v19363_v52  ;;  %v8965_v37 = vpop.f32.mrb[229].mxu0  ;;  %v22817_v22 = vld [vmem:[%s29217_s9 + $0x18] ss:$112 sps:$4 sm:$0xff]  }
 0xabe   : > { %v9009_v17 = vadd.f32 %v19363_v52, %v8965_v37  ;;  %v21618_v41 = vpop.f32.mrb[230].mxu0  ;;  %v22825_v37 = vld [vmem:[%s29217_s9 + $0xfc] ss:$112 sps:$4 sm:$0xff]  }
 0xabf   : > { %v9012_v26 = vadd.f32 %v21618_v41, %v19363_v52  ;;  %v8968_v53 = vpop.f32.mrb[231].mxu0  ;;  %v9018_v5 = vmax.f32 %v9011_v27, 0.0  ;;  %v22820_v27 = vld [vmem:[%s29217_s9 + $0x9c8] ss:$112 sps:$4 sm:$0xff]  }
 0xac0   : > { %v9016_v11 = vmax.f32 %v9009_v17, 0.0  ;;  %v9010_v51 = vadd.f32 %v19363_v52, %v8968_v53  ;;  %v22828_v17 = vld [vmem:[%s29217_s9 + $0x73c] ss:$112 sps:$4 sm:$0xff]   ;;  %v22823_v41 = vld [vmem:[%s29217_s9 + $0xf8] ss:$112 sps:$4 sm:$0xff]  }
 0xac1   : > { %v9019_v34 = vmax.f32 %v9012_v26, 0.0  ;;  %v22826_v26 = vld [vmem:[%s29217_s9 + $0x738] ss:$112 sps:$4 sm:$0xff]   ;;  %v22831_v53 = vld [vmem:[%s29217_s9 + $0x1dc] ss:$112 sps:$4 sm:$0xff]  }
 0xac2   : > { %v26239_v59 = vpack.c.bf16 %v9016_v11, %v9016_v11  ;;  %v9017_v36 = vmax.f32 %v9010_v51, 0.0  ;;  %v22829_v51 = vld [vmem:[%s29217_s9 + $0x1d8] ss:$112 sps:$4 sm:$0xff]  }
 0xac3   : > { %v26244_v0 = vpack.c.bf16 %v9019_v34, %v9018_v5 }
 0xac4   : > { %v26246_v29 = vpack.c.bf16 %v9017_v36, %v9016_v11  ;;  %v11732_v39 = vpack.c.bf16 %v9018_v5, %v9017_v36  ;;  %v21621_v47 = vpop.f32.mrb[8].mxu0  ;;  %19476 = vmatmul.mubr.msk.bf16.vlgmr.msra.gmra.mrb[12].mxu0 %vm7854_vm11, %v26239_v59  ;;  %v22834_v11 = vld [vmem:[%s29217_s9 + $0x81c] ss:$112 sps:$4 sm:$0xff]   ;;  %v22832_v5 = vld [vmem:[%s29217_s9 + $0x818] ss:$112 sps:$4 sm:$0xff]  }
 0xac5   : > { %v9001_v10 = vadd.f32 %v21621_v47, %v8882_v30  ;;  %9741 = vmatpush1.bf16.msra.mxu0 %v22769_v35  ;;  %v8981_v7 = vpop.f32.mrb[9].mxu0  ;;  %9772 = vmatprep.mubr.bf16.mxu0 %v29231_v23  ;;  %v22813_v30 = vld [vmem:[%s29217_s9 + $0x2b4] ss:$112 sps:$4 sm:$0xff]   ;;  %v22840_v35 = vld [vmem:[%s29217_s9 + $0x8fc] ss:$112 sps:$4 sm:$0xff]  }
 0xac6   : > { %v26257_v60 = vrot.slane %v11732_v39, 3  ;;  %v8999_v40 = vadd.f32 %v8981_v7, %v8880_v24  ;;  %v21622_v57 = vpop.f32.mrb[10].mxu0  ;;  %9742 = vmatprep.subr.bf16.mxu0 %v22777_v56  ;;  %v22811_v24 = vld [vmem:[%s29217_s9 + $0x2b0] ss:$112 sps:$4 sm:$0xff]   ;;  %v22835_v36 = vld [vmem:[%s29217_s9 + $0x2b8] ss:$112 sps:$4 sm:$0xff]  }
 0xac7   : > { %v9015_v48 = vadd.f32 %v19363_v52, %v9001_v10  ;;  %v8984_v44 = vpop.f32.mrb[11].mxu0  ;;  %v22838_v56 = vld [vmem:[%s29217_s9 + $0x8f8] ss:$112 sps:$4 sm:$0xff]   ;;  %v22843_v39 = vld [vmem:[%s29217_s9 + $0x24] ss:$112 sps:$4 sm:$0xff]  }
 0xac8   : > { %v9013_v6 = vadd.f32 %v19363_v52, %v8999_v40  ;;  %v9000_v14 = vadd.f32 %v8984_v44, %v8881_v54  ;;  %19953 = vmatmul.mubr.msk.bf16.vlgmr.msra.gmra.mrb[68].mxu1 %vm7854_vm11, %v26257_v60  ;;  %v22819_v54 = vld [vmem:[%s29217_s9 + $0x1c] ss:$112 sps:$4 sm:$0xff]   ;;  %v22841_v10 = vld [vmem:[%s29217_s9 + $0x20] ss:$112 sps:$4 sm:$0xff]   ;;  %v22844_v7 = vld [vmem:[%s29217_s9 + $0x9d8] ss:$112 sps:$4 sm:$0xff]  }
 0xac9   : > { %9743 = vmatpush1.bf16.msra.mxu0 %v22775_v18  ;;  %12535 = vmatpush1.bf16.msra.mxu1 %v22778_v63  ;;  %v9022_v1 = vmax.f32 %v9015_v48, 0.0  ;;  %v22846_v47 = vld [vmem:[%s29217_s9 + $0x9dc] ss:$112 sps:$4 sm:$0xff]   ;;  %v22849_v18 = vld [vmem:[%s29217_s9 + $0x104] ss:$112 sps:$4 sm:$0xff]  }
 0xaca   : > { %v9020_v20 = vmax.f32 %v9013_v6, 0.0  ;;  %v9014_v32 = vadd.f32 %v19363_v52, %v9000_v14  ;;  %9744 = vmatprep.subr.bf16.mxu0 %v22783_v9  ;;  %12536 = vmatprep.subr.bf16.mxu1 %v22786_v8  ;;  %v22822_v52 = vld [vmem:[%s29217_s9 + $0x9cc] ss:$112 sps:$4 sm:$0xff]   ;;  %v22847_v40 = vld [vmem:[%s29217_s9 + $0x100] ss:$112 sps:$4 sm:$0xff]  }
 0xacb   : > { %12566 = vmatprep.mubr.bf16.mxu1 %v29231_v23  ;;  %v22852_v63 = vld [vmem:[%s29217_s9 + $0x74c] ss:$112 sps:$4 sm:$0xff]   ;;  %v22850_v57 = vld [vmem:[%s29217_s9 + $0x748] ss:$112 sps:$4 sm:$0xff]   ;;  %v22855_v9 = vld [vmem:[%s29217_s9 + $0x1e4] ss:$112 sps:$4 sm:$0xff]  }
 0xacc   : > { %v26280_v46 = vpack.c.bf16 %v9020_v20, %v9019_v34  ;;  %v9021_v19 = vmax.f32 %v9014_v32, 0.0  ;;  %v22837_v34 = vld [vmem:[%s29217_s9 + $0x2bc] ss:$112 sps:$4 sm:$0xff]   ;;  %v22853_v48 = vld [vmem:[%s29217_s9 + $0x1e0] ss:$112 sps:$4 sm:$0xff]  }
 0xacd   : > { %9745 = vmatpush1.bf16.msra.mxu0 %v22781_v42  ;;  %12537 = vmatpush1.bf16.msra.mxu1 %v22784_v16  ;;  %v22858_v8 = vld [vmem:[%s29217_s9 + $0x82c] ss:$112 sps:$4 sm:$0xff]   ;;  %v22856_v44 = vld [vmem:[%s29217_s9 + $0x828] ss:$112 sps:$4 sm:$0xff]   ;;  %v22861_v6 = vld [vmem:[%s29217_s9 + $0x2c4] ss:$112 sps:$4 sm:$0xff]  }
 0xace   : > { %v26288_v38 = vpack.c.bf16 %v9021_v19, %v9020_v20  ;;  %v26290_v3 = vpack.c.bf16 %v9022_v1, %v9021_v19  ;;  %9746 = vmatprep.subr.bf16.mxu0 %v22789_v61  ;;  %12538 = vmatprep.subr.bf16.mxu1 %v22792_v58  ;;  %v22864_v14 = vld [vmem:[%s29217_s9 + $0x90c] ss:$112 sps:$4 sm:$0xff]   ;;  %v22859_v42 = vld [vmem:[%s29217_s9 + $0x2c0] ss:$112 sps:$4 sm:$0xff]   ;;  %v22862_v16 = vld [vmem:[%s29217_s9 + $0x908] ss:$112 sps:$4 sm:$0xff]  }
 0xacf   : > { %v22867_v20 = vld [vmem:[%s29217_s9 + $0x2c] ss:$112 sps:$4 sm:$0xff]   ;;  %v22865_v61 = vld [vmem:[%s29217_s9 + $0x28] ss:$112 sps:$4 sm:$0xff]  }
 0xad0   : > { %v22870_v32 = vld [vmem:[%s29217_s9 + $0x9ec] ss:$112 sps:$4 sm:$0xff]   ;;  %v22868_v58 = vld [vmem:[%s29217_s9 + $0x9e8] ss:$112 sps:$4 sm:$0xff]  }
 0xad1   : > { %9747 = vmatpush1.bf16.msra.mxu0 %v22787_v55  ;;  %12539 = vmatpush1.bf16.msra.mxu1 %v22790_v15  ;;  %v22873_v1 = vld [vmem:[%s29217_s9 + $0x10c] ss:$112 sps:$4 sm:$0xff]   ;;  %v22871_v55 = vld [vmem:[%s29217_s9 + $0x108] ss:$112 sps:$4 sm:$0xff]  }
 0xad2   : > { %9781 = vmatprep.subr.bf16.mxu0 %v22795_v12  ;;  %12540 = vmatprep.subr.bf16.mxu1 %v22798_v50  ;;  %v22876_v19 = vld [vmem:[%s29217_s9 + $0x75c] ss:$112 sps:$4 sm:$0xff]   ;;  %v22874_v15 = vld [vmem:[%s29217_s9 + $0x758] ss:$112 sps:$4 sm:$0xff]  }
 0xad3   : > { %v22879_v12 = vld [vmem:[%s29217_s9 + $0x1ec] ss:$112 sps:$4 sm:$0xff]  }
 0xad4   : > { %19477 = vmatmul.mubr.msk.bf16.vlgmr.msra.gmra.mrb[16].mxu0 %vm7854_vm11, %v26239_v59  ;;  %v22882_v50 = vld [vmem:[%s29217_s9 + $0x83c] ss:$112 sps:$4 sm:$0xff]  }
 0xad5   : > { %9782 = vmatpush1.bf16.msra.mxu0 %v22793_v45  ;;  %12541 = vmatpush1.bf16.msra.mxu1 %v22796_v13  ;;  %v22877_v45 = vld [vmem:[%s29217_s9 + $0x1e8] ss:$112 sps:$4 sm:$0xff]  }
 0xad6   : > { %9783 = vmatprep.subr.bf16.mxu0 %v22801_v2  ;;  %12616 = vmatprep.subr.bf16.mxu1 %v22804_v49  ;;  %v22880_v13 = vld [vmem:[%s29217_s9 + $0x838] ss:$112 sps:$4 sm:$0xff]   ;;  %v22885_v2 = vld [vmem:[%s29217_s9 + $0x2cc] ss:$112 sps:$4 sm:$0xff]  }
 0xad7   : > { %9813 = vmatprep.mubr.bf16.mxu0 %v29231_v23  ;;  %v22888_v49 = vld [vmem:[%s29217_s9 + $0x91c] ss:$112 sps:$4 sm:$0xff]  }
 0xad8   : > { %19955 = vmatmul.mubr.msk.bf16.vlgmr.msra.gmra.mrb[72].mxu1 %vm7854_vm11, %v26257_v60 }
 0xad9   : > { %9784 = vmatpush1.bf16.msra.mxu0 %v22799_v33  ;;  %12617 = vmatpush1.bf16.msra.mxu1 %v22802_v21  ;;  %v22883_v33 = vld [vmem:[%s29217_s9 + $0x2c8] ss:$112 sps:$4 sm:$0xff]  }
 0xada   : > { %9785 = vmatprep.subr.bf16.mxu0 %v22807_v4  ;;  %12618 = vmatprep.subr.bf16.mxu1 %v22810_v25  ;;  %v22886_v21 = vld [vmem:[%s29217_s9 + $0x918] ss:$112 sps:$4 sm:$0xff]   ;;  %v22891_v4 = vld [vmem:[%s29217_s9 + $0x34] ss:$112 sps:$4 sm:$0xff]   ;;  %v22894_v25 = vld [vmem:[%s29217_s9 + $0x9fc] ss:$112 sps:$4 sm:$0xff]  }
 0xadb   : > { %12648 = vmatprep.mubr.bf16.mxu1 %v29231_v23 }
 0xadd   : > { %9786 = vmatpush1.bf16.msra.mxu0 %v22805_v28  ;;  %12619 = vmatpush1.bf16.msra.mxu1 %v22808_v43  ;;  %v22889_v28 = vld [vmem:[%s29217_s9 + $0x30] ss:$112 sps:$4 sm:$0xff]   ;;  %v22892_v43 = vld [vmem:[%s29217_s9 + $0x9f8] ss:$112 sps:$4 sm:$0xff]  }
 0xade   : > { %9787 = vmatprep.subr.bf16.mxu0 %v22813_v30  ;;  %12620 = vmatprep.subr.bf16.mxu1 %v22816_v62  ;;  %v22897_v30 = vld [vmem:[%s29217_s9 + $0x114] ss:$112 sps:$4 sm:$0xff]   ;;  %v22900_v62 = vld [vmem:[%s29217_s9 + $0x76c] ss:$112 sps:$4 sm:$0xff]  }
 0xae1   : > { %9788 = vmatpush1.bf16.msra.mxu0 %v22811_v24  ;;  %12621 = vmatpush1.bf16.msra.mxu1 %v22814_v31  ;;  %v22895_v24 = vld [vmem:[%s29217_s9 + $0x110] ss:$112 sps:$4 sm:$0xff]   ;;  %v22898_v31 = vld [vmem:[%s29217_s9 + $0x768] ss:$112 sps:$4 sm:$0xff]  }
 0xae2   : > { %9822 = vmatprep.subr.bf16.mxu0 %v22819_v54  ;;  %12622 = vmatprep.subr.bf16.mxu1 %v22822_v52  ;;  %v22903_v54 = vld [vmem:[%s29217_s9 + $0x1f4] ss:$112 sps:$4 sm:$0xff]   ;;  %v22906_v52 = vld [vmem:[%s29217_s9 + $0x84c] ss:$112 sps:$4 sm:$0xff]  }
 0xae4   : > { %19478 = vmatmul.mubr.msk.bf16.vlgmr.msra.gmra.mrb[20].mxu0 %vm7854_vm11, %v26239_v59 }
 0xae5   : > { %9823 = vmatpush1.bf16.msra.mxu0 %v22817_v22  ;;  %12623 = vmatpush1.bf16.msra.mxu1 %v22820_v27  ;;  %v22901_v22 = vld [vmem:[%s29217_s9 + $0x1f0] ss:$112 sps:$4 sm:$0xff]   ;;  %v22904_v27 = vld [vmem:[%s29217_s9 + $0x848] ss:$112 sps:$4 sm:$0xff]  }
 0xae6   : > { %9824 = vmatprep.subr.bf16.mxu0 %v22825_v37  ;;  %12698 = vmatprep.subr.bf16.mxu1 %v22828_v17  ;;  %v22909_v37 = vld [vmem:[%s29217_s9 + $0x2d4] ss:$112 sps:$4 sm:$0xff]   ;;  %v22912_v17 = vld [vmem:[%s29217_s9 + $0x92c] ss:$112 sps:$4 sm:$0xff]  }
 0xae7   : > { %9854 = vmatprep.mubr.bf16.mxu0 %v29231_v23 }
 0xae8   : > { %19957 = vmatmul.mubr.msk.bf16.vlgmr.msra.gmra.mrb[76].mxu1 %vm7854_vm11, %v26257_v60 }
 0xae9   : > { %9825 = vmatpush1.bf16.msra.mxu0 %v22823_v41  ;;  %12699 = vmatpush1.bf16.msra.mxu1 %v22826_v26  ;;  %v22907_v41 = vld [vmem:[%s29217_s9 + $0x2d0] ss:$112 sps:$4 sm:$0xff]   ;;  %v22910_v26 = vld [vmem:[%s29217_s9 + $0x928] ss:$112 sps:$4 sm:$0xff]  }
 0xaea   : > { %9826 = vmatprep.subr.bf16.mxu0 %v22831_v53  ;;  %12700 = vmatprep.subr.bf16.mxu1 %v22834_v11  ;;  %v22915_v53 = vld [vmem:[%s29217_s9 + $0x3c] ss:$112 sps:$4 sm:$0xff]  }
 0xaeb   : > { %12730 = vmatprep.mubr.bf16.mxu1 %v29231_v23  ;;  %v22918_v11 = vld [vmem:[%s29217_s9 + $0xa0c] ss:$112 sps:$4 sm:$0xff]  }
 0xaed   : > { %9827 = vmatpush1.bf16.msra.mxu0 %v22829_v51  ;;  %12701 = vmatpush1.bf16.msra.mxu1 %v22832_v5  ;;  %v22913_v51 = vld [vmem:[%s29217_s9 + $0x38] ss:$112 sps:$4 sm:$0xff]  }
 0xaee   : > { %9828 = vmatprep.subr.bf16.mxu0 %v22837_v34  ;;  %12702 = vmatprep.subr.bf16.mxu1 %v22840_v35  ;;  %v22916_v5 = vld [vmem:[%s29217_s9 + $0xa08] ss:$112 sps:$4 sm:$0xff]   ;;  %v22921_v34 = vld [vmem:[%s29217_s9 + $0x11c] ss:$112 sps:$4 sm:$0xff]  }
 0xaef   : > { %v22924_v35 = vld [vmem:[%s29217_s9 + $0xa8c] ss:$112 sps:$4 sm:$0xff]  }
 0xaf1   : > { %9829 = vmatpush1.bf16.msra.mxu0 %v22835_v36  ;;  %12703 = vmatpush1.bf16.msra.mxu1 %v22838_v56  ;;  %v22919_v36 = vld [vmem:[%s29217_s9 + $0x118] ss:$112 sps:$4 sm:$0xff]  }
 0xaf2   : > { %9863 = vmatprep.subr.bf16.mxu0 %v22843_v39  ;;  %12704 = vmatprep.subr.bf16.mxu1 %v22846_v47  ;;  %v22922_v56 = vld [vmem:[%s29217_s9 + $0xa88] ss:$112 sps:$4 sm:$0xff]   ;;  %v22927_v39 = vld [vmem:[%s29217_s9 + $0x1fc] ss:$112 sps:$4 sm:$0xff]  }
 0xaf3   : > { %v22930_v47 = vld [vmem:[%s29217_s9 + $0xb6c] ss:$112 sps:$4 sm:$0xff]  }
 0xaf4   : > { %19479 = vmatmul.mubr.msk.bf16.vlgmr.msra.gmra.mrb[24].mxu0 %vm7854_vm11, %v26239_v59 }
 0xaf5   : > { %9864 = vmatpush1.bf16.msra.mxu0 %v22841_v10  ;;  %12705 = vmatpush1.bf16.msra.mxu1 %v22844_v7  ;;  %v22925_v10 = vld [vmem:[%s29217_s9 + $0x1f8] ss:$112 sps:$4 sm:$0xff]  }
 0xaf6   : > { %9865 = vmatprep.subr.bf16.mxu0 %v22849_v18  ;;  %12780 = vmatprep.subr.bf16.mxu1 %v22852_v63  ;;  %v22928_v7 = vld [vmem:[%s29217_s9 + $0xb68] ss:$112 sps:$4 sm:$0xff]   ;;  %v22933_v18 = vld [vmem:[%s29217_s9 + $0x2dc] ss:$112 sps:$4 sm:$0xff]  }
 0xaf7   : > { %9895 = vmatprep.mubr.bf16.mxu0 %v29231_v23  ;;  %v22936_v63 = vld [vmem:[%s29217_s9 + $0xc4c] ss:$112 sps:$4 sm:$0xff]  }
 0xaf8   : > { %19959 = vmatmul.mubr.msk.bf16.vlgmr.msra.gmra.mrb[80].mxu1 %vm7854_vm11, %v26257_v60 }
 0xaf9   : > { %9866 = vmatpush1.bf16.msra.mxu0 %v22847_v40  ;;  %12781 = vmatpush1.bf16.msra.mxu1 %v22850_v57  ;;  %v22931_v40 = vld [vmem:[%s29217_s9 + $0x2d8] ss:$112 sps:$4 sm:$0xff]  }
 0xafa   : > { %9867 = vmatprep.subr.bf16.mxu0 %v22855_v9  ;;  %12782 = vmatprep.subr.bf16.mxu1 %v22858_v8  ;;  %v22934_v57 = vld [vmem:[%s29217_s9 + $0xc48] ss:$112 sps:$4 sm:$0xff]   ;;  %v13200_v9 = vshrl.u32 %v26244_v0, 16  ;;  %v13203_v8 = vshll.u32 %v26244_v0, 16 }
 0xafb   : > { %12812 = vmatprep.mubr.bf16.mxu1 %v29231_v23  ;;  %v22940_v0 = vld [vmem:[%s29217_s9 + $0xd28] ss:$112 sps:$4 sm:$0xff]  }
 0xafd   : > { %9868 = vmatpush1.bf16.msra.mxu0 %v22853_v48  ;;  %12783 = vmatpush1.bf16.msra.mxu1 %v22856_v44  ;;  %v22939_v48 = vld [vmem:[%s29217_s9 + $0x44] ss:$112 sps:$4 sm:$0xff]   ;;  %v22942_v44 = vld [vmem:[%s29217_s9 + $0xd2c] ss:$112 sps:$4 sm:$0xff]  }
 0xafe   : > { %9869 = vmatprep.subr.bf16.mxu0 %v22861_v6  ;;  %12784 = vmatprep.subr.bf16.mxu1 %v22864_v14  ;;  %v22937_v6 = vld [vmem:[%s29217_s9 + $0x40] ss:$112 sps:$4 sm:$0xff]   ;;  %v13202_v14 = vrot.slane %v13200_v9, 2  ;;  %v23017_v9 = vld [vmem:[%s29217_s9 + $0x13c] ss:$112 sps:$4 sm:$0xff]  }
 0xb01   : > { %9870 = vmatpush1.bf16.msra.mxu0 %v22859_v42  ;;  %12785 = vmatpush1.bf16.msra.mxu1 %v22862_v16  ;;  %v13205_v42 = vrot.slane %v13203_v8, 3  ;;  %v22945_v16 = vld [vmem:[%s29217_s9 + $0x124] ss:$112 sps:$4 sm:$0xff]   ;;  %v23020_v8 = vld [vmem:[%s29217_s9 + $0xacc] ss:$112 sps:$4 sm:$0xff]  }
 0xb02   : > { %9904 = vmatprep.subr.bf16.mxu0 %v22867_v20  ;;  %12786 = vmatprep.subr.bf16.mxu1 %v22870_v32  ;;  %v22948_v20 = vld [vmem:[%s29217_s9 + $0xa9c] ss:$112 sps:$4 sm:$0xff]   ;;  %v22943_v32 = vld [vmem:[%s29217_s9 + $0x120] ss:$112 sps:$4 sm:$0xff]  }
 0xb04   : > { %19480 = vmatmul.mubr.msk.bf16.vlgmr.msra.gmra.mrb[28].mxu0 %vm7854_vm11, %v26239_v59 }
 0xb05   : > { %9905 = vmatpush1.bf16.msra.mxu0 %v22865_v61  ;;  %12787 = vmatpush1.bf16.msra.mxu1 %v22868_v58  ;;  %v22946_v61 = vld [vmem:[%s29217_s9 + $0xa98] ss:$112 sps:$4 sm:$0xff]   ;;  %v26644_v58 = vor.u32 %v13205_v42, %v13202_v14 }
 0xb06   : > { %9906 = vmatprep.subr.bf16.mxu0 %v22873_v1  ;;  %12862 = vmatprep.subr.bf16.mxu1 %v22876_v19  ;;  %v22951_v1 = vld [vmem:[%s29217_s9 + $0x204] ss:$112 sps:$4 sm:$0xff]   ;;  %v22954_v19 = vld [vmem:[%s29217_s9 + $0xb7c] ss:$112 sps:$4 sm:$0xff]   ;;  %v23021_v14 = vld [vmem:[%s29217_s9 + $0x218] ss:$112 sps:$4 sm:$0xff]  }
 0xb07   : > { %9936 = vmatprep.mubr.bf16.mxu0 %v29231_v23  ;;  %v23024_v42 = vld [vmem:[%s29217_s9 + $0xba8] ss:$112 sps:$4 sm:$0xff]  }
 0xb08   : > { %19961 = vmatmul.mubr.msk.bf16.vlgmr.msra.gmra.mrb[84].mxu1 %vm7854_vm11, %v26257_v60 }
 0xb09   : > { %9907 = vmatpush1.bf16.msra.mxu0 %v22871_v55  ;;  %12863 = vmatpush1.bf16.msra.mxu1 %v22874_v15  ;;  %v22949_v55 = vld [vmem:[%s29217_s9 + $0x200] ss:$112 sps:$4 sm:$0xff]   ;;  %v22952_v15 = vld [vmem:[%s29217_s9 + $0xb78] ss:$112 sps:$4 sm:$0xff]  }
 0xb0a   : > { %9908 = vmatprep.subr.bf16.mxu0 %v22879_v12  ;;  %12864 = vmatprep.subr.bf16.mxu1 %v22882_v50  ;;  %v22957_v12 = vld [vmem:[%s29217_s9 + $0x2e4] ss:$112 sps:$4 sm:$0xff]   ;;  %v22960_v50 = vld [vmem:[%s29217_s9 + $0xc5c] ss:$112 sps:$4 sm:$0xff]  }
 0xb0b   : > { %12894 = vmatprep.mubr.bf16.mxu1 %v29231_v23 }
 0xb0d   : > { %9909 = vmatpush1.bf16.msra.mxu0 %v22877_v45  ;;  %12865 = vmatpush1.bf16.msra.mxu1 %v22880_v13  ;;  %v22955_v45 = vld [vmem:[%s29217_s9 + $0x2e0] ss:$112 sps:$4 sm:$0xff]   ;;  %v22958_v13 = vld [vmem:[%s29217_s9 + $0xc58] ss:$112 sps:$4 sm:$0xff]  }
 0xb0e   : > { %9910 = vmatprep.subr.bf16.mxu0 %v22885_v2  ;;  %12866 = vmatprep.subr.bf16.mxu1 %v22888_v49  ;;  %v22963_v2 = vld [vmem:[%s29217_s9 + $0x4c] ss:$112 sps:$4 sm:$0xff]  }
 0xb0f   : > { %v22966_v49 = vld [vmem:[%s29217_s9 + $0xd3c] ss:$112 sps:$4 sm:$0xff]  }
 0xb11   : > { %9911 = vmatpush1.bf16.msra.mxu0 %v22883_v33  ;;  %12867 = vmatpush1.bf16.msra.mxu1 %v22886_v21  ;;  %v22961_v33 = vld [vmem:[%s29217_s9 + $0x48] ss:$112 sps:$4 sm:$0xff]  }
 0xb12   : > { %9945 = vmatprep.subr.bf16.mxu0 %v22891_v4  ;;  %12868 = vmatprep.subr.bf16.mxu1 %v22894_v25  ;;  %v22964_v21 = vld [vmem:[%s29217_s9 + $0xd38] ss:$112 sps:$4 sm:$0xff]   ;;  %v22969_v4 = vld [vmem:[%s29217_s9 + $0x12c] ss:$112 sps:$4 sm:$0xff]  }
 0xb13   : > { %v22972_v25 = vld [vmem:[%s29217_s9 + $0xaac] ss:$112 sps:$4 sm:$0xff]  }
 0xb14   : > { %19481 = vmatmul.mubr.msk.bf16.vlgmr.msra.gmra.mrb[32].mxu0 %vm7854_vm11, %v26239_v59 }
 0xb15   : > { %9946 = vmatpush1.bf16.msra.mxu0 %v22889_v28  ;;  %12869 = vmatpush1.bf16.msra.mxu1 %v22892_v43  ;;  %v22967_v28 = vld [vmem:[%s29217_s9 + $0x128] ss:$112 sps:$4 sm:$0xff]  }
 0xb16   : > { %9947 = vmatprep.subr.bf16.mxu0 %v22897_v30  ;;  %12944 = vmatprep.subr.bf16.mxu1 %v22900_v62  ;;  %v22970_v43 = vld [vmem:[%s29217_s9 + $0xaa8] ss:$112 sps:$4 sm:$0xff]   ;;  %v22975_v30 = vld [vmem:[%s29217_s9 + $0x20c] ss:$112 sps:$4 sm:$0xff]  }
 0xb17   : > { %9977 = vmatprep.mubr.bf16.mxu0 %v29231_v23  ;;  %v22978_v62 = vld [vmem:[%s29217_s9 + $0xb8c] ss:$112 sps:$4 sm:$0xff]  }
 0xb18   : > { %19963 = vmatmul.mubr.msk.bf16.vlgmr.msra.gmra.mrb[88].mxu1 %vm7854_vm11, %v26257_v60 }
 0xb19   : > { %9948 = vmatpush1.bf16.msra.mxu0 %v22895_v24  ;;  %12945 = vmatpush1.bf16.msra.mxu1 %v22898_v31  ;;  %v22973_v24 = vld [vmem:[%s29217_s9 + $0x208] ss:$112 sps:$4 sm:$0xff]  }
 0xb1a   : > { %9949 = vmatprep.subr.bf16.mxu0 %v22903_v54  ;;  %12946 = vmatprep.subr.bf16.mxu1 %v22906_v52  ;;  %v22976_v31 = vld [vmem:[%s29217_s9 + $0xb88] ss:$112 sps:$4 sm:$0xff]   ;;  %v22981_v54 = vld [vmem:[%s29217_s9 + $0x2ec] ss:$112 sps:$4 sm:$0xff]  }
 0xb1b   : > { %12976 = vmatprep.mubr.bf16.mxu1 %v29231_v23  ;;  %v22984_v52 = vld [vmem:[%s29217_s9 + $0xc6c] ss:$112 sps:$4 sm:$0xff]  }
 0xb1d   : > { %9950 = vmatpush1.bf16.msra.mxu0 %v22901_v22  ;;  %12947 = vmatpush1.bf16.msra.mxu1 %v22904_v27  ;;  %v22979_v22 = vld [vmem:[%s29217_s9 + $0x2e8] ss:$112 sps:$4 sm:$0xff]  }
 0xb1e   : > { %9951 = vmatprep.subr.bf16.mxu0 %v22909_v37  ;;  %12948 = vmatprep.subr.bf16.mxu1 %v22912_v17  ;;  %v22982_v27 = vld [vmem:[%s29217_s9 + $0xc68] ss:$112 sps:$4 sm:$0xff]   ;;  %v22987_v37 = vld [vmem:[%s29217_s9 + $0x54] ss:$112 sps:$4 sm:$0xff]   ;;  %v22990_v17 = vld [vmem:[%s29217_s9 + $0xd4c] ss:$112 sps:$4 sm:$0xff]  }
 0xb21   : > { %9952 = vmatpush1.bf16.msra.mxu0 %v22907_v41  ;;  %12949 = vmatpush1.bf16.msra.mxu1 %v22910_v26  ;;  %v22985_v41 = vld [vmem:[%s29217_s9 + $0x50] ss:$112 sps:$4 sm:$0xff]   ;;  %v22988_v26 = vld [vmem:[%s29217_s9 + $0xd48] ss:$112 sps:$4 sm:$0xff]  }
 0xb22   : > { %9986 = vmatprep.subr.bf16.mxu0 %v22915_v53  ;;  %12950 = vmatprep.subr.bf16.mxu1 %v22918_v11  ;;  %v22993_v53 = vld [vmem:[%s29217_s9 + $0x134] ss:$112 sps:$4 sm:$0xff]   ;;  %v22996_v11 = vld [vmem:[%s29217_s9 + $0xabc] ss:$112 sps:$4 sm:$0xff]  }
 0xb24   : > { %19482 = vmatmul.mubr.msk.bf16.vlgmr.msra.gmra.mrb[36].mxu0 %vm7854_vm11, %v26239_v59 }
 0xb25   : > { %9987 = vmatpush1.bf16.msra.mxu0 %v22913_v51  ;;  %12951 = vmatpush1.bf16.msra.mxu1 %v22916_v5  ;;  %v22991_v51 = vld [vmem:[%s29217_s9 + $0x130] ss:$112 sps:$4 sm:$0xff]   ;;  %v22994_v5 = vld [vmem:[%s29217_s9 + $0xab8] ss:$112 sps:$4 sm:$0xff]  }
 0xb26   : > { %9988 = vmatprep.subr.bf16.mxu0 %v22921_v34  ;;  %13811 = vmatprep.subr.bf16.mxu1 %v22924_v35  ;;  %v22999_v34 = vld [vmem:[%s29217_s9 + $0x214] ss:$112 sps:$4 sm:$0xff]   ;;  %v23002_v35 = vld [vmem:[%s29217_s9 + $0xb9c] ss:$112 sps:$4 sm:$0xff]  }
 0xb27   : > { %10018 = vmatprep.mubr.bf16.mxu0 %v29231_v23 }
 0xb28   : > { %19965 = vmatmul.mubr.msk.bf16.vlgmr.msra.gmra.mrb[92].mxu1 %vm7854_vm11, %v26257_v60 }
 0xb29   : > { %9989 = vmatpush1.bf16.msra.mxu0 %v22919_v36  ;;  %13812 = vmatpush1.bf16.msra.mxu1 %v22922_v56  ;;  %v22997_v36 = vld [vmem:[%s29217_s9 + $0x210] ss:$112 sps:$4 sm:$0xff]   ;;  %v23000_v56 = vld [vmem:[%s29217_s9 + $0xb98] ss:$112 sps:$4 sm:$0xff]  }
 0xb2a   : > { %9990 = vmatprep.subr.bf16.mxu0 %v22927_v39  ;;  %13813 = vmatprep.subr.bf16.mxu1 %v22930_v47  ;;  %v23005_v39 = vld [vmem:[%s29217_s9 + $0x2f4] ss:$112 sps:$4 sm:$0xff]   ;;  %v23008_v47 = vld [vmem:[%s29217_s9 + $0xc7c] ss:$112 sps:$4 sm:$0xff]  }
 0xb2b   : > { %13843 = vmatprep.mubr.bf16.mxu1 %v29231_v23 }
 0xb2d   : > { %9991 = vmatpush1.bf16.msra.mxu0 %v22925_v10  ;;  %13814 = vmatpush1.bf16.msra.mxu1 %v22928_v7  ;;  %v23003_v10 = vld [vmem:[%s29217_s9 + $0x2f0] ss:$112 sps:$4 sm:$0xff]   ;;  %v23006_v7 = vld [vmem:[%s29217_s9 + $0xc78] ss:$112 sps:$4 sm:$0xff]  }
 0xb2e   : > { %9992 = vmatprep.subr.bf16.mxu0 %v22933_v18  ;;  %13815 = vmatprep.subr.bf16.mxu1 %v22936_v63  ;;  %v23011_v18 = vld [vmem:[%s29217_s9 + $0x5c] ss:$112 sps:$4 sm:$0xff]  }
 0xb2f   : > { %v23014_v63 = vld [vmem:[%s29217_s9 + $0xd5c] ss:$112 sps:$4 sm:$0xff]  }
 0xb31   : > { %9993 = vmatpush1.bf16.msra.mxu0 %v22931_v40  ;;  %13816 = vmatpush1.bf16.msra.mxu1 %v22934_v57  ;;  %v23009_v40 = vld [vmem:[%s29217_s9 + $0x58] ss:$112 sps:$4 sm:$0xff]  }
 0xb32   : > { %10027 = vmatprep.subr.bf16.mxu0 %v22939_v48  ;;  %13817 = vmatprep.subr.bf16.mxu1 %v22942_v44  ;;  %v23012_v57 = vld [vmem:[%s29217_s9 + $0xd58] ss:$112 sps:$4 sm:$0xff]  }
 0xb33   : > { %v23015_v48 = vld [vmem:[%s29217_s9 + $0x138] ss:$112 sps:$4 sm:$0xff]  }
 0xb34   : > { %19483 = vmatmul.mubr.msk.bf16.vlgmr.msra.gmra.mrb[40].mxu0 %vm7854_vm11, %v26239_v59  ;;  %v23018_v44 = vld [vmem:[%s29217_s9 + $0xac8] ss:$112 sps:$4 sm:$0xff]  }
 0xb35   : > { %10028 = vmatpush1.bf16.msra.mxu0 %v22937_v6  ;;  %13818 = vmatpush1.bf16.msra.mxu1 %v22940_v0  ;;  %v23023_v6 = vld [vmem:[%s29217_s9 + $0x21c] ss:$112 sps:$4 sm:$0xff]  }
 0xb36   : > { %10029 = vmatprep.subr.bf16.mxu0 %v22945_v16  ;;  %13893 = vmatprep.subr.bf16.mxu1 %v22948_v20  ;;  %v23026_v0 = vld [vmem:[%s29217_s9 + $0xbac] ss:$112 sps:$4 sm:$0xff]  }
 0xb37   : > { %10059 = vmatprep.mubr.bf16.mxu0 %v29231_v23  ;;  %v23029_v16 = vld [vmem:[%s29217_s9 + $0x2fc] ss:$112 sps:$4 sm:$0xff]  }
 0xb38   : > { %20191 = vmatmul.mubr.msk.bf16.vlgmr.msra.gmra.mrb[96].mxu1 %vm7854_vm11, %v26644_v58  ;;  %v23032_v20 = vld [vmem:[%s29217_s9 + $0xc8c] ss:$112 sps:$4 sm:$0xff]  }
 0xb39   : > { %10030 = vmatpush1.bf16.msra.mxu0 %v22943_v32  ;;  %13894 = vmatpush1.bf16.msra.mxu1 %v22946_v61  ;;  %v23027_v32 = vld [vmem:[%s29217_s9 + $0x2f8] ss:$112 sps:$4 sm:$0xff]  }
 0xb3a   : > { %10031 = vmatprep.subr.bf16.mxu0 %v22951_v1  ;;  %13895 = vmatprep.subr.bf16.mxu1 %v22954_v19  ;;  %v23030_v61 = vld [vmem:[%s29217_s9 + $0xc88] ss:$112 sps:$4 sm:$0xff]   ;;  %v23035_v1 = vld [vmem:[%s29217_s9 + $0x64] ss:$112 sps:$4 sm:$0xff]   ;;  %v23038_v19 = vld [vmem:[%s29217_s9 + $0xd6c] ss:$112 sps:$4 sm:$0xff]  }
 0xb3b   : > { %13925 = vmatprep.mubr.bf16.mxu1 %v29231_v23 }
 0xb3d   : > { %10032 = vmatpush1.bf16.msra.mxu0 %v22949_v55  ;;  %13896 = vmatpush1.bf16.msra.mxu1 %v22952_v15  ;;  %v23033_v55 = vld [vmem:[%s29217_s9 + $0x60] ss:$112 sps:$4 sm:$0xff]   ;;  %v23036_v15 = vld [vmem:[%s29217_s9 + $0xd68] ss:$112 sps:$4 sm:$0xff]  }
 0xb3e   : > { %10033 = vmatprep.subr.bf16.mxu0 %v22957_v12  ;;  %13897 = vmatprep.subr.bf16.mxu1 %v22960_v50  ;;  %v23041_v12 = vld [vmem:[%s29217_s9 + $0x144] ss:$112 sps:$4 sm:$0xff]   ;;  %v23044_v50 = vld [vmem:[%s29217_s9 + $0xadc] ss:$112 sps:$4 sm:$0xff]  }
 0xb41   : > { %10034 = vmatpush1.bf16.msra.mxu0 %v22955_v45  ;;  %13898 = vmatpush1.bf16.msra.mxu1 %v22958_v13  ;;  %v23039_v45 = vld [vmem:[%s29217_s9 + $0x140] ss:$112 sps:$4 sm:$0xff]   ;;  %v23042_v13 = vld [vmem:[%s29217_s9 + $0xad8] ss:$112 sps:$4 sm:$0xff]  }
 0xb42   : > { %10068 = vmatprep.subr.bf16.mxu0 %v22963_v2  ;;  %13899 = vmatprep.subr.bf16.mxu1 %v22966_v49  ;;  %v23047_v2 = vld [vmem:[%s29217_s9 + $0x224] ss:$112 sps:$4 sm:$0xff]   ;;  %v23050_v49 = vld [vmem:[%s29217_s9 + $0xbbc] ss:$112 sps:$4 sm:$0xff]  }
 0xb44   : > { %19484 = vmatmul.mubr.msk.bf16.vlgmr.msra.gmra.mrb[44].mxu0 %vm7854_vm11, %v26239_v59 }
 0xb45   : > { %10069 = vmatpush1.bf16.msra.mxu0 %v22961_v33  ;;  %13900 = vmatpush1.bf16.msra.mxu1 %v22964_v21  ;;  %v23045_v33 = vld [vmem:[%s29217_s9 + $0x220] ss:$112 sps:$4 sm:$0xff]   ;;  %v23048_v21 = vld [vmem:[%s29217_s9 + $0xbb8] ss:$112 sps:$4 sm:$0xff]  }
 0xb46   : > { %10070 = vmatprep.subr.bf16.mxu0 %v22969_v4  ;;  %13975 = vmatprep.subr.bf16.mxu1 %v22972_v25  ;;  %v23053_v4 = vld [vmem:[%s29217_s9 + $0x304] ss:$112 sps:$4 sm:$0xff]   ;;  %v23056_v25 = vld [vmem:[%s29217_s9 + $0xc9c] ss:$112 sps:$4 sm:$0xff]  }
 0xb47   : > { %10100 = vmatprep.mubr.bf16.mxu0 %v29231_v23 }
 0xb48   : > { %20193 = vmatmul.mubr.msk.bf16.vlgmr.msra.gmra.mrb[100].mxu1 %vm7854_vm11, %v26644_v58 }
 0xb49   : > { %10071 = vmatpush1.bf16.msra.mxu0 %v22967_v28  ;;  %13976 = vmatpush1.bf16.msra.mxu1 %v22970_v43  ;;  %v23051_v28 = vld [vmem:[%s29217_s9 + $0x300] ss:$112 sps:$4 sm:$0xff]   ;;  %v23054_v43 = vld [vmem:[%s29217_s9 + $0xc98] ss:$112 sps:$4 sm:$0xff]  }
 0xb4a   : > { %10072 = vmatprep.subr.bf16.mxu0 %v22975_v30  ;;  %13977 = vmatprep.subr.bf16.mxu1 %v22978_v62  ;;  %v23059_v30 = vld [vmem:[%s29217_s9 + $0x6c] ss:$112 sps:$4 sm:$0xff]  }
 0xb4b   : > { %14007 = vmatprep.mubr.bf16.mxu1 %v29231_v23  ;;  %v23062_v62 = vld [vmem:[%s29217_s9 + $0xd7c] ss:$112 sps:$4 sm:$0xff]  }
 0xb4d   : > { %10073 = vmatpush1.bf16.msra.mxu0 %v22973_v24  ;;  %13978 = vmatpush1.bf16.msra.mxu1 %v22976_v31  ;;  %v23057_v24 = vld [vmem:[%s29217_s9 + $0x68] ss:$112 sps:$4 sm:$0xff]  }
 0xb4e   : > { %10074 = vmatprep.subr.bf16.mxu0 %v22981_v54  ;;  %13979 = vmatprep.subr.bf16.mxu1 %v22984_v52  ;;  %v23060_v31 = vld [vmem:[%s29217_s9 + $0xd78] ss:$112 sps:$4 sm:$0xff]   ;;  %v23065_v54 = vld [vmem:[%s29217_s9 + $0x14c] ss:$112 sps:$4 sm:$0xff]  }
 0xb4f   : > { %v23068_v52 = vld [vmem:[%s29217_s9 + $0xaec] ss:$112 sps:$4 sm:$0xff]  }
 0xb51   : > { %10075 = vmatpush1.bf16.msra.mxu0 %v22979_v22  ;;  %13980 = vmatpush1.bf16.msra.mxu1 %v22982_v27  ;;  %v23063_v22 = vld [vmem:[%s29217_s9 + $0x148] ss:$112 sps:$4 sm:$0xff]  }
 0xb52   : > { %10109 = vmatprep.subr.bf16.mxu0 %v22987_v37  ;;  %13981 = vmatprep.subr.bf16.mxu1 %v22990_v17  ;;  %v23066_v27 = vld [vmem:[%s29217_s9 + $0xae8] ss:$112 sps:$4 sm:$0xff]   ;;  %v23071_v37 = vld [vmem:[%s29217_s9 + $0x22c] ss:$112 sps:$4 sm:$0xff]  }
 0xb53   : > { %v23074_v17 = vld [vmem:[%s29217_s9 + $0xbcc] ss:$112 sps:$4 sm:$0xff]  }
 0xb54   : > { %19485 = vmatmul.mubr.msk.bf16.vlgmr.msra.gmra.mrb[48].mxu0 %vm7854_vm11, %v26239_v59 }
 0xb55   : > { %10110 = vmatpush1.bf16.msra.mxu0 %v22985_v41  ;;  %13982 = vmatpush1.bf16.msra.mxu1 %v22988_v26  ;;  %v23069_v41 = vld [vmem:[%s29217_s9 + $0x228] ss:$112 sps:$4 sm:$0xff]  }
 0xb56   : > { %10111 = vmatprep.subr.bf16.mxu0 %v22993_v53  ;;  %14057 = vmatprep.subr.bf16.mxu1 %v22996_v11  ;;  %v23072_v26 = vld [vmem:[%s29217_s9 + $0xbc8] ss:$112 sps:$4 sm:$0xff]   ;;  %v23077_v53 = vld [vmem:[%s29217_s9 + $0x30c] ss:$112 sps:$4 sm:$0xff]  }
 0xb57   : > { %10141 = vmatprep.mubr.bf16.mxu0 %v29231_v23  ;;  %v23080_v11 = vld [vmem:[%s29217_s9 + $0xcac] ss:$112 sps:$4 sm:$0xff]  }
 0xb58   : > { %20195 = vmatmul.mubr.msk.bf16.vlgmr.msra.gmra.mrb[104].mxu1 %vm7854_vm11, %v26644_v58 }
 0xb59   : > { %10112 = vmatpush1.bf16.msra.mxu0 %v22991_v51  ;;  %14058 = vmatpush1.bf16.msra.mxu1 %v22994_v5  ;;  %v23075_v51 = vld [vmem:[%s29217_s9 + $0x308] ss:$112 sps:$4 sm:$0xff]  }
 0xb5a   : > { %10113 = vmatprep.subr.bf16.mxu0 %v22999_v34  ;;  %14059 = vmatprep.subr.bf16.mxu1 %v23002_v35  ;;  %v23078_v5 = vld [vmem:[%s29217_s9 + $0xca8] ss:$112 sps:$4 sm:$0xff]   ;;  %v23083_v34 = vld [vmem:[%s29217_s9 + $0x384] ss:$112 sps:$4 sm:$0xff]   ;;  %v23086_v35 = vld [vmem:[%s29217_s9 + $0xd8c] ss:$112 sps:$4 sm:$0xff]  }
 0xb5b   : > { %14089 = vmatprep.mubr.bf16.mxu1 %v29231_v23 }
 0xb5d   : > { %10114 = vmatpush1.bf16.msra.mxu0 %v22997_v36  ;;  %14060 = vmatpush1.bf16.msra.mxu1 %v23000_v56  ;;  %v23081_v36 = vld [vmem:[%s29217_s9 + $0x380] ss:$112 sps:$4 sm:$0xff]   ;;  %v23084_v56 = vld [vmem:[%s29217_s9 + $0xd88] ss:$112 sps:$4 sm:$0xff]  }
 0xb5e   : > { %10115 = vmatprep.subr.bf16.mxu0 %v23005_v39  ;;  %14061 = vmatprep.subr.bf16.mxu1 %v23008_v47  ;;  %v23089_v39 = vld [vmem:[%s29217_s9 + $0x464] ss:$112 sps:$4 sm:$0xff]   ;;  %v23092_v47 = vld [vmem:[%s29217_s9 + $0xe0c] ss:$112 sps:$4 sm:$0xff]  }
 0xb61   : > { %10116 = vmatpush1.bf16.msra.mxu0 %v23003_v10  ;;  %14062 = vmatpush1.bf16.msra.mxu1 %v23006_v7  ;;  %v23087_v10 = vld [vmem:[%s29217_s9 + $0x460] ss:$112 sps:$4 sm:$0xff]   ;;  %v23090_v7 = vld [vmem:[%s29217_s9 + $0xe08] ss:$112 sps:$4 sm:$0xff]  }
 0xb62   : > { %10150 = vmatprep.subr.bf16.mxu0 %v23011_v18  ;;  %14063 = vmatprep.subr.bf16.mxu1 %v23014_v63  ;;  %v23095_v18 = vld [vmem:[%s29217_s9 + $0x544] ss:$112 sps:$4 sm:$0xff]  }
 0xb64   : > { %19486 = vmatmul.mubr.msk.bf16.vlgmr.msra.gmra.mrb[52].mxu0 %vm7854_vm11, %v26239_v59 }
 0xb65   : > { %10151 = vmatpush1.bf16.msra.mxu0 %v23009_v40  ;;  %14064 = vmatpush1.bf16.msra.mxu1 %v23012_v57  ;;  %v10488_v57 = vshrl.u32 %v26246_v29, 16 }
 0xb66   : > { %10152 = vmatprep.subr.bf16.mxu0 %v23017_v9  ;;  %14139 = vmatprep.subr.bf16.mxu1 %v23020_v8  ;;  %v23093_v8 = vld [vmem:[%s29217_s9 + $0x540] ss:$112 sps:$4 sm:$0xff]  }
 0xb67   : > { %10182 = vmatprep.mubr.bf16.mxu0 %v29231_v23 }
 0xb68   : > { %20197 = vmatmul.mubr.msk.bf16.vlgmr.msra.gmra.mrb[108].mxu1 %vm7854_vm11, %v26644_v58 }
 0xb69   : > { %10153 = vmatpush1.bf16.msra.mxu0 %v23015_v48  ;;  %14140 = vmatpush1.bf16.msra.mxu1 %v23018_v44  ;;  %v23096_v48 = vld [vmem:[%s29217_s9 + $0xee8] ss:$112 sps:$4 sm:$0xff]   ;;  %v10491_v44 = vshll.u32 %v26246_v29, 16 }
 0xb6a   : > { %10154 = vmatprep.subr.bf16.mxu0 %v23023_v6  ;;  %14141 = vmatprep.subr.bf16.mxu1 %v23026_v0  ;;  %v23101_v0 = vld [vmem:[%s29217_s9 + $0x624] ss:$112 sps:$4 sm:$0xff]  }
 0xb6b   : > { %14171 = vmatprep.mubr.bf16.mxu1 %v29231_v23 }
 0xb6d   : > { %10155 = vmatpush1.bf16.msra.mxu0 %v23021_v14  ;;  %14142 = vmatpush1.bf16.msra.mxu1 %v23024_v42  ;;  %v23104_v14 = vld [vmem:[%s29217_s9 + $0xfcc] ss:$112 sps:$4 sm:$0xff]  }
 0xb6e   : > { %10156 = vmatprep.subr.bf16.mxu0 %v23029_v16  ;;  %14143 = vmatprep.subr.bf16.mxu1 %v23032_v20  ;;  %v10490_v20 = vrot.slane %v10488_v57, 3  ;;  %v23141_v57 = vld [vmem:[%s29217_s9 + $0x550] ss:$112 sps:$4 sm:$0xff]  }
 0xb71   : > { %10157 = vmatpush1.bf16.msra.mxu0 %v23027_v32  ;;  %14144 = vmatpush1.bf16.msra.mxu1 %v23030_v61  ;;  %v23099_v32 = vld [vmem:[%s29217_s9 + $0x620] ss:$112 sps:$4 sm:$0xff]   ;;  %v23102_v61 = vld [vmem:[%s29217_s9 + $0xfc8] ss:$112 sps:$4 sm:$0xff]  }
 0xb72   : > { %10191 = vmatprep.subr.bf16.mxu0 %v23035_v1  ;;  %14145 = vmatprep.subr.bf16.mxu1 %v23038_v19  ;;  %v10493_v1 = vrot.slane %v10491_v44, 4  ;;  %v23149_v44 = vld [vmem:[%s29217_s9 + $0x634] ss:$112 sps:$4 sm:$0xff]  }
 0xb74   : > { %19487 = vmatmul.mubr.msk.bf16.vlgmr.msra.gmra.mrb[56].mxu0 %vm7854_vm11, %v26239_v59 }
 0xb75   : > { %10192 = vmatpush1.bf16.msra.mxu0 %v23033_v55  ;;  %14146 = vmatpush1.bf16.msra.mxu1 %v23036_v15  ;;  %v23107_v55 = vld [vmem:[%s29217_s9 + $0x38c] ss:$112 sps:$4 sm:$0xff]  }
 0xb76   : > { %10193 = vmatprep.subr.bf16.mxu0 %v23041_v12  ;;  %14221 = vmatprep.subr.bf16.mxu1 %v23044_v50  ;;  %v23110_v15 = vld [vmem:[%s29217_s9 + $0x10ac] ss:$112 sps:$4 sm:$0xff]   ;;  %v23105_v12 = vld [vmem:[%s29217_s9 + $0x388] ss:$112 sps:$4 sm:$0xff]  }
 0xb77   : > { %10223 = vmatprep.mubr.bf16.mxu0 %v29231_v23  ;;  %v23108_v50 = vld [vmem:[%s29217_s9 + $0x10a8] ss:$112 sps:$4 sm:$0xff]  }
 0xb78   : > { %20199 = vmatmul.mubr.msk.bf16.vlgmr.msra.gmra.mrb[112].mxu1 %vm7854_vm11, %v26644_v58 }
 0xb79   : > { %10194 = vmatpush1.bf16.msra.mxu0 %v23039_v45  ;;  %14222 = vmatpush1.bf16.msra.mxu1 %v23042_v13  ;;  %v27020_v45 = vor.u32 %v10493_v1, %v10490_v20  ;;  %v23113_v13 = vld [vmem:[%s29217_s9 + $0x46c] ss:$112 sps:$4 sm:$0xff]  }
 0xb7a   : > { %10195 = vmatprep.subr.bf16.mxu0 %v23047_v2  ;;  %14223 = vmatprep.subr.bf16.mxu1 %v23050_v49  ;;  %v23116_v2 = vld [vmem:[%s29217_s9 + $0xe1c] ss:$112 sps:$4 sm:$0xff]   ;;  %v23111_v49 = vld [vmem:[%s29217_s9 + $0x468] ss:$112 sps:$4 sm:$0xff]  }
 0xb7b   : > { %14253 = vmatprep.mubr.bf16.mxu1 %v29231_v23  ;;  %v23158_v1 = vld [vmem:[%s29217_s9 + $0x10cc] ss:$112 sps:$4 sm:$0xff]  }
 0xb7d   : > { %10196 = vmatpush1.bf16.msra.mxu0 %v23045_v33  ;;  %14224 = vmatpush1.bf16.msra.mxu1 %v23048_v21  ;;  %v23114_v33 = vld [vmem:[%s29217_s9 + $0xe18] ss:$112 sps:$4 sm:$0xff]   ;;  %v27037_v21 = vrot.slane %v26280_v46, 2 }
 0xb7e   : > { %10197 = vmatprep.subr.bf16.mxu0 %v23053_v4  ;;  %14225 = vmatprep.subr.bf16.mxu1 %v23056_v25  ;;  %v23119_v4 = vld [vmem:[%s29217_s9 + $0x54c] ss:$112 sps:$4 sm:$0xff]  }
 0xb7f   : > { %v23122_v25 = vld [vmem:[%s29217_s9 + $0xefc] ss:$112 sps:$4 sm:$0xff]  }
 0xb81   : > { %10198 = vmatpush1.bf16.msra.mxu0 %v23051_v28  ;;  %14226 = vmatpush1.bf16.msra.mxu1 %v23054_v43 }
 0xb82   : > { %10232 = vmatprep.subr.bf16.mxu0 %v23059_v30  ;;  %14227 = vmatprep.subr.bf16.mxu1 %v23062_v62  ;;  %v23117_v30 = vld [vmem:[%s29217_s9 + $0x548] ss:$112 sps:$4 sm:$0xff]  }
 0xb83   : > { %v23120_v62 = vld [vmem:[%s29217_s9 + $0xef8] ss:$112 sps:$4 sm:$0xff]  }
 0xb84   : > { %19488 = vmatmul.mubr.msk.bf16.vlgmr.msra.gmra.mrb[60].mxu0 %vm7854_vm11, %v26239_v59 }
 0xb85   : > { %10233 = vmatpush1.bf16.msra.mxu0 %v23057_v24  ;;  %14228 = vmatpush1.bf16.msra.mxu1 %v23060_v31  ;;  %v23125_v31 = vld [vmem:[%s29217_s9 + $0x62c] ss:$112 sps:$4 sm:$0xff]  }
 0xb86   : > { %10234 = vmatprep.subr.bf16.mxu0 %v23065_v54  ;;  %14303 = vmatprep.subr.bf16.mxu1 %v23068_v52  ;;  %v23128_v54 = vld [vmem:[%s29217_s9 + $0xfdc] ss:$112 sps:$4 sm:$0xff]  }
 0xb87   : > { %10264 = vmatprep.mubr.bf16.mxu0 %v29231_v23 }
 0xb88   : > { %20201 = vmatmul.mubr.msk.bf16.vlgmr.msra.gmra.mrb[116].mxu1 %vm7854_vm11, %v26644_v58 }
 0xb89   : > { %10235 = vmatpush1.bf16.msra.mxu0 %v23063_v22  ;;  %14304 = vmatpush1.bf16.msra.mxu1 %v23066_v27 }
 0xb8a   : > { %10236 = vmatprep.subr.bf16.mxu0 %v23071_v37  ;;  %14305 = vmatprep.subr.bf16.mxu1 %v23074_v17  ;;  %v23123_v37 = vld [vmem:[%s29217_s9 + $0x628] ss:$112 sps:$4 sm:$0xff]  }
 0xb8b   : > { %14335 = vmatprep.mubr.bf16.mxu1 %v29231_v23  ;;  %v23126_v17 = vld [vmem:[%s29217_s9 + $0xfd8] ss:$112 sps:$4 sm:$0xff]  }
 0xb8d   : > { %10237 = vmatpush1.bf16.msra.mxu0 %v23069_v41  ;;  %14306 = vmatpush1.bf16.msra.mxu1 %v23072_v26  ;;  %v23131_v26 = vld [vmem:[%s29217_s9 + $0x394] ss:$112 sps:$4 sm:$0xff]  }
 0xb8e   : > { %10238 = vmatprep.subr.bf16.mxu0 %v23077_v53  ;;  %14307 = vmatprep.subr.bf16.mxu1 %v23080_v11  ;;  %v23134_v53 = vld [vmem:[%s29217_s9 + $0x10bc] ss:$112 sps:$4 sm:$0xff]   ;;  %v23129_v11 = vld [vmem:[%s29217_s9 + $0x390] ss:$112 sps:$4 sm:$0xff]  }
 0xb91   : > { %10239 = vmatpush1.bf16.msra.mxu0 %v23075_v51  ;;  %14308 = vmatpush1.bf16.msra.mxu1 %v23078_v5  ;;  %v23132_v51 = vld [vmem:[%s29217_s9 + $0x10b8] ss:$112 sps:$4 sm:$0xff]   ;;  %v23137_v5 = vld [vmem:[%s29217_s9 + $0x474] ss:$112 sps:$4 sm:$0xff]  }
 0xb92   : > { %11058 = vmatprep.subr.bf16.mxu0 %v23083_v34  ;;  %14309 = vmatprep.subr.bf16.mxu1 %v23086_v35  ;;  %v23140_v34 = vld [vmem:[%s29217_s9 + $0xe2c] ss:$112 sps:$4 sm:$0xff]   ;;  %v23135_v35 = vld [vmem:[%s29217_s9 + $0x470] ss:$112 sps:$4 sm:$0xff]  }
 0xb94   : > { %19489 = vmatmul.mubr.msk.bf16.vlgmr.msra.gmra.mrb[64].mxu0 %vm7854_vm11, %v26239_v59  ;;  %v23098_v59 = vld [vmem:[%s29217_s9 + $0xeec] ss:$112 sps:$4 sm:$0xff]  }
 0xb95   : > { %11059 = vmatpush1.bf16.msra.mxu0 %v23081_v36  ;;  %14310 = vmatpush1.bf16.msra.mxu1 %v23084_v56  ;;  %v23138_v36 = vld [vmem:[%s29217_s9 + $0xe28] ss:$112 sps:$4 sm:$0xff]   ;;  %v23143_v56 = vld [vmem:[%s29217_s9 + $0x554] ss:$112 sps:$4 sm:$0xff]  }
 0xb96   : > { %11060 = vmatprep.subr.bf16.mxu0 %v23089_v39  ;;  %15164 = vmatprep.subr.bf16.mxu1 %v23092_v47  ;;  %v23146_v39 = vld [vmem:[%s29217_s9 + $0xf0c] ss:$112 sps:$4 sm:$0xff]  }
 0xb97   : > { %v26976_v63 = vpop.f32.mrb[12].mxu0  ;;  %11090 = vmatprep.mubr.bf16.mxu0 %v29231_v23 }
 0xb98   : > { %20203 = vmatmul.mubr.msk.bf16.vlgmr.msra.gmra.mrb[120].mxu1 %vm7854_vm11, %v26644_v58  ;;  %v26981_v40 = vpop.f32.mrb[13].mxu0 }
 0xb99   : > { %11061 = vmatpush1.bf16.msra.mxu0 %v23087_v10  ;;  %15165 = vmatpush1.bf16.msra.mxu1 %v23090_v7  ;;  %v9737_v9 = vpop.f32.mrb[14].mxu0 }
 0xb9a   : > { %v9738_v6 = vpop.f32.mrb[15].mxu0  ;;  %11062 = vmatprep.subr.bf16.mxu0 %v23095_v18  ;;  %15166 = vmatprep.subr.bf16.mxu1 %v23098_v59  ;;  %v23144_v9 = vld [vmem:[%s29217_s9 + $0xf08] ss:$112 sps:$4 sm:$0xff]  }
 0xb9b   : > { %v26997_v42 = vpop.f32.mrb[68].mxu1  ;;  %15196 = vmatprep.mubr.bf16.mxu1 %v29231_v23  ;;  %v23152_v6 = vld [vmem:[%s29217_s9 + $0xfec] ss:$112 sps:$4 sm:$0xff]  }
 0xb9c   : > { %v27000_v16 = vpop.f32.mrb[69].mxu1 }
 0xb9d   : > { %11063 = vmatpush1.bf16.msra.mxu0 %v23093_v8  ;;  %15167 = vmatpush1.bf16.msra.mxu1 %v23096_v48  ;;  %v12490_v29 = vpop.f32.mrb[70].mxu1 }
 0xb9e   : > { %v12491_v19 = vpop.f32.mrb[71].mxu1  ;;  %11064 = vmatprep.subr.bf16.mxu0 %v23101_v0  ;;  %15168 = vmatprep.subr.bf16.mxu1 %v23104_v14  ;;  %v23147_v29 = vld [vmem:[%s29217_s9 + $0x630] ss:$112 sps:$4 sm:$0xff]  }
 0xb9f   : > { %v23153_v19 = vld [vmem:[%s29217_s9 + $0x398] ss:$112 sps:$4 sm:$0xff]  }
 0xba1   : > { %11065 = vmatpush1.bf16.msra.mxu0 %v23099_v32  ;;  %15169 = vmatpush1.bf16.msra.mxu1 %v23102_v61  ;;  %v23150_v32 = vld [vmem:[%s29217_s9 + $0xfe8] ss:$112 sps:$4 sm:$0xff]  }
 0xba2   : > { %11099 = vmatprep.subr.bf16.mxu0 %v23107_v55  ;;  %15170 = vmatprep.subr.bf16.mxu1 %v23110_v15  ;;  %v23156_v55 = vld [vmem:[%s29217_s9 + $0x10c8] ss:$112 sps:$4 sm:$0xff]   ;;  %v23161_v15 = vld [vmem:[%s29217_s9 + $0x47c] ss:$112 sps:$4 sm:$0xff]  }
 0xba4   : > { %19714 = vmatmul.mubr.msk.bf16.vlgmr.msra.gmra.mrb[68].mxu0 %vm7854_vm11, %v27020_v45 }
 0xba5   : > { %11100 = vmatpush1.bf16.msra.mxu0 %v23105_v12  ;;  %15171 = vmatpush1.bf16.msra.mxu1 %v23108_v50  ;;  %v23164_v12 = vld [vmem:[%s29217_s9 + $0xe3c] ss:$112 sps:$4 sm:$0xff]   ;;  %v23159_v50 = vld [vmem:[%s29217_s9 + $0x478] ss:$112 sps:$4 sm:$0xff]  }
 0xba6   : > { %11101 = vmatprep.subr.bf16.mxu0 %v23113_v13  ;;  %15246 = vmatprep.subr.bf16.mxu1 %v23116_v2  ;;  %v23162_v13 = vld [vmem:[%s29217_s9 + $0xe38] ss:$112 sps:$4 sm:$0xff]   ;;  %v23167_v2 = vld [vmem:[%s29217_s9 + $0x55c] ss:$112 sps:$4 sm:$0xff]  }
 0xba7   : > { %v27045_v28 = vpop.f32.mrb[16].mxu0  ;;  %11131 = vmatprep.mubr.bf16.mxu0 %v29231_v23 }
 0xba8   : > { %v27048_v43 = vpop.f32.mrb[17].mxu0  ;;  %20429 = vmatmul.mubr.msk.bf16.vlgmr.msra.gmra.mrb[124].mxu1 %vm7854_vm11, %v27037_v21 }
 0xba9   : > { %v9778_v46 = vpop.f32.mrb[18].mxu0  ;;  %11102 = vmatpush1.bf16.msra.mxu0 %v23111_v49  ;;  %15247 = vmatpush1.bf16.msra.mxu1 %v23114_v33  ;;  %v23170_v49 = vld [vmem:[%s29217_s9 + $0xf1c] ss:$112 sps:$4 sm:$0xff]  }
 0xbaa   : > { %v9779_v24 = vpop.f32.mrb[19].mxu0  ;;  %11103 = vmatprep.subr.bf16.mxu0 %v23119_v4  ;;  %15248 = vmatprep.subr.bf16.mxu1 %v23122_v25 }
 0xbab   : > { %v27064_v52 = vpop.f32.mrb[72].mxu1  ;;  %15278 = vmatprep.mubr.bf16.mxu1 %v29231_v23  ;;  %v23168_v24 = vld [vmem:[%s29217_s9 + $0xf18] ss:$112 sps:$4 sm:$0xff]  }
 0xbac   : > { %v27067_v22 = vpop.f32.mrb[73].mxu1 }
 0xbad   : > { %11104 = vmatpush1.bf16.msra.mxu0 %v23117_v30  ;;  %v12572_v27 = vpop.f32.mrb[74].mxu1  ;;  %15249 = vmatpush1.bf16.msra.mxu1 %v23120_v62  ;;  %v23165_v62 = vld [vmem:[%s29217_s9 + $0x558] ss:$112 sps:$4 sm:$0xff]  }
 0xbae   : > { %v12573_v41 = vpop.f32.mrb[75].mxu1  ;;  %11105 = vmatprep.subr.bf16.mxu0 %v23125_v31  ;;  %15250 = vmatprep.subr.bf16.mxu1 %v23128_v54  ;;  %v23173_v27 = vld [vmem:[%s29217_s9 + $0x63c] ss:$112 sps:$4 sm:$0xff]  }
 0xbb1   : > { %11106 = vmatpush1.bf16.msra.mxu0 %v23123_v37  ;;  %15251 = vmatpush1.bf16.msra.mxu1 %v23126_v17  ;;  %v23176_v37 = vld [vmem:[%s29217_s9 + $0xffc] ss:$112 sps:$4 sm:$0xff]  }
 0xbb2   : > { %11140 = vmatprep.subr.bf16.mxu0 %v23131_v26  ;;  %15252 = vmatprep.subr.bf16.mxu1 %v23134_v53  ;;  %v23171_v53 = vld [vmem:[%s29217_s9 + $0x638] ss:$112 sps:$4 sm:$0xff]  }
 0xbb4   : > { %19715 = vmatmul.mubr.msk.bf16.vlgmr.msra.gmra.mrb[72].mxu0 %vm7854_vm11, %v27020_v45 }
 0xbb5   : > { %11141 = vmatpush1.bf16.msra.mxu0 %v23129_v11  ;;  %15253 = vmatpush1.bf16.msra.mxu1 %v23132_v51  ;;  %v23174_v11 = vld [vmem:[%s29217_s9 + $0xff8] ss:$112 sps:$4 sm:$0xff]  }
 0xbb6   : > { %11142 = vmatprep.subr.bf16.mxu0 %v23137_v5  ;;  %15328 = vmatprep.subr.bf16.mxu1 %v23140_v34  ;;  %v23182_v5 = vld [vmem:[%s29217_s9 + $0x10dc] ss:$112 sps:$4 sm:$0xff]   ;;  %v23177_v34 = vld [vmem:[%s29217_s9 + $0x3a0] ss:$112 sps:$4 sm:$0xff]  }
 0xbb7   : > { %v9815_v47 = vpop.f32.mrb[20].mxu0  ;;  %11172 = vmatprep.mubr.bf16.mxu0 %v29231_v23 }
 0xbb8   : > { %v10281_v10 = vrot.slane %v9815_v47, 1  ;;  %v9817_v7 = vpop.f32.mrb[21].mxu0  ;;  %20431 = vmatmul.mubr.msk.bf16.vlgmr.msra.gmra.mrb[128].mxu1 %vm7854_vm11, %v27037_v21  ;;  %v23186_v47 = vld [vmem:[%s29217_s9 + $0xe48] ss:$112 sps:$4 sm:$0xff]  }
 0xbb9   : > { %v10282_v18 = vrot.slane %v9817_v7, 1  ;;  %v9819_v59 = vpop.f32.mrb[22].mxu0  ;;  %11143 = vmatpush1.bf16.msra.mxu0 %v23135_v35  ;;  %15329 = vmatpush1.bf16.msra.mxu1 %v23138_v36  ;;  %v23180_v35 = vld [vmem:[%s29217_s9 + $0x10d8] ss:$112 sps:$4 sm:$0xff]   ;;  %v23185_v36 = vld [vmem:[%s29217_s9 + $0x484] ss:$112 sps:$4 sm:$0xff]  }
 0xbba   : > { %v27117_v8 = vadd.f32 %v10281_v10, %v26976_v63  ;;  %v9820_v48 = vpop.f32.mrb[23].mxu0  ;;  %11144 = vmatprep.subr.bf16.mxu0 %v23143_v56  ;;  %15330 = vmatprep.subr.bf16.mxu1 %v23146_v39  ;;  %v23188_v56 = vld [vmem:[%s29217_s9 + $0xe4c] ss:$112 sps:$4 sm:$0xff]   ;;  %v23183_v39 = vld [vmem:[%s29217_s9 + $0x480] ss:$112 sps:$4 sm:$0xff]  }
 0xbbb   : > { %v27126_v0 = vadd.f32 %v10282_v18, %v26981_v40  ;;  %v27128_v14 = vpop.f32.mrb[76].mxu1  ;;  %15360 = vmatprep.mubr.bf16.mxu1 %v29231_v23  ;;  %v23155_v40 = vld [vmem:[%s29217_s9 + $0x39c] ss:$112 sps:$4 sm:$0xff]   ;;  %v23191_v10 = vld [vmem:[%s29217_s9 + $0x564] ss:$112 sps:$4 sm:$0xff]  }
 0xbbc   : > { %v27131_v63 = vpop.f32.mrb[77].mxu1  ;;  %v23194_v7 = vld [vmem:[%s29217_s9 + $0xf2c] ss:$112 sps:$4 sm:$0xff]  }
 0xbbd   : > { %11145 = vmatpush1.bf16.msra.mxu0 %v23141_v57  ;;  %v12654_v20 = vpop.f32.mrb[78].mxu1  ;;  %15331 = vmatpush1.bf16.msra.mxu1 %v23144_v9 }
 0xbbe   : > { %v12655_v61 = vpop.f32.mrb[79].mxu1  ;;  %11146 = vmatprep.subr.bf16.mxu0 %v23149_v44  ;;  %15332 = vmatprep.subr.bf16.mxu1 %v23152_v6  ;;  %v23189_v44 = vld [vmem:[%s29217_s9 + $0x560] ss:$112 sps:$4 sm:$0xff]   ;;  %v23192_v6 = vld [vmem:[%s29217_s9 + $0xf28] ss:$112 sps:$4 sm:$0xff]  }
 0xbbf   : > { %v23200_v61 = vld [vmem:[%s29217_s9 + $0x100c] ss:$112 sps:$4 sm:$0xff]  }
 0xbc1   : > { %11147 = vmatpush1.bf16.msra.mxu0 %v23147_v29  ;;  %15333 = vmatpush1.bf16.msra.mxu1 %v23150_v32  ;;  %v23197_v32 = vld [vmem:[%s29217_s9 + $0x644] ss:$112 sps:$4 sm:$0xff]  }
 0xbc2   : > { %11181 = vmatprep.subr.bf16.mxu0 %v23155_v40  ;;  %15334 = vmatprep.subr.bf16.mxu1 %v23158_v1 }
 0xbc4   : > { %19716 = vmatmul.mubr.msk.bf16.vlgmr.msra.gmra.mrb[76].mxu0 %vm7854_vm11, %v27020_v45 }
 0xbc5   : > { %11182 = vmatpush1.bf16.msra.mxu0 %v23153_v19  ;;  %15335 = vmatpush1.bf16.msra.mxu1 %v23156_v55  ;;  %v23195_v55 = vld [vmem:[%s29217_s9 + $0x640] ss:$112 sps:$4 sm:$0xff]  }
 0xbc6   : > { %11183 = vmatprep.subr.bf16.mxu0 %v23161_v15  ;;  %15410 = vmatprep.subr.bf16.mxu1 %v23164_v12  ;;  %v23198_v15 = vld [vmem:[%s29217_s9 + $0x1008] ss:$112 sps:$4 sm:$0xff]  }
 0xbc7   : > { %v9856_v33 = vpop.f32.mrb[24].mxu0  ;;  %11213 = vmatprep.mubr.bf16.mxu0 %v29231_v23 }
 0xbc8   : > { %v10283_v4 = vrot.slane %v9856_v33, 1  ;;  %v9858_v25 = vpop.f32.mrb[25].mxu0  ;;  %20433 = vmatmul.mubr.msk.bf16.vlgmr.msra.gmra.mrb[132].mxu1 %vm7854_vm11, %v27037_v21  ;;  %v23212_v33 = vld [vmem:[%s29217_s9 + $0xe5c] ss:$112 sps:$4 sm:$0xff]  }
 0xbc9   : > { %v10284_v46 = vrot.slane %v9858_v25, 1  ;;  %v9860_v30 = vpop.f32.mrb[26].mxu0  ;;  %11184 = vmatpush1.bf16.msra.mxu0 %v23159_v50  ;;  %15411 = vmatpush1.bf16.msra.mxu1 %v23162_v13  ;;  %v23206_v50 = vld [vmem:[%s29217_s9 + $0x10ec] ss:$112 sps:$4 sm:$0xff]   ;;  %v23201_v13 = vld [vmem:[%s29217_s9 + $0x3a8] ss:$112 sps:$4 sm:$0xff]  }
 0xbca   : > { %v27181_v31 = vadd.f32 %v10283_v4, %v27045_v28  ;;  %v9861_v54 = vpop.f32.mrb[27].mxu0  ;;  %11185 = vmatprep.subr.bf16.mxu0 %v23167_v2  ;;  %15412 = vmatprep.subr.bf16.mxu1 %v23170_v49  ;;  %v23204_v2 = vld [vmem:[%s29217_s9 + $0x10e8] ss:$112 sps:$4 sm:$0xff]   ;;  %v23209_v49 = vld [vmem:[%s29217_s9 + $0x48c] ss:$112 sps:$4 sm:$0xff]  }
 0xbcb   : > { %v27190_v17 = vadd.f32 %v10284_v46, %v27048_v43  ;;  %v27192_v41 = vpop.f32.mrb[80].mxu1  ;;  %15442 = vmatprep.mubr.bf16.mxu1 %v29231_v23  ;;  %v23179_v43 = vld [vmem:[%s29217_s9 + $0x3a4] ss:$112 sps:$4 sm:$0xff]   ;;  %v23207_v4 = vld [vmem:[%s29217_s9 + $0x488] ss:$112 sps:$4 sm:$0xff]  }
 0xbcc   : > { %v27195_v28 = vpop.f32.mrb[81].mxu1  ;;  %v23210_v25 = vld [vmem:[%s29217_s9 + $0xe58] ss:$112 sps:$4 sm:$0xff]   ;;  %v23215_v46 = vld [vmem:[%s29217_s9 + $0x56c] ss:$112 sps:$4 sm:$0xff]  }
 0xbcd   : > { %11186 = vmatpush1.bf16.msra.mxu0 %v23165_v62  ;;  %v12736_v26 = vpop.f32.mrb[82].mxu1  ;;  %15413 = vmatpush1.bf16.msra.mxu1 %v23168_v24  ;;  %v23218_v30 = vld [vmem:[%s29217_s9 + $0xf3c] ss:$112 sps:$4 sm:$0xff]  }
 0xbce   : > { %v12737_v51 = vpop.f32.mrb[83].mxu1  ;;  %11187 = vmatprep.subr.bf16.mxu0 %v23173_v27  ;;  %15414 = vmatprep.subr.bf16.mxu1 %v23176_v37  ;;  %v23213_v26 = vld [vmem:[%s29217_s9 + $0x568] ss:$112 sps:$4 sm:$0xff]  }
 0xbd1   : > { %11188 = vmatpush1.bf16.msra.mxu0 %v23171_v53  ;;  %15415 = vmatpush1.bf16.msra.mxu1 %v23174_v11  ;;  %v23216_v53 = vld [vmem:[%s29217_s9 + $0xf38] ss:$112 sps:$4 sm:$0xff]  }
 0xbd2   : > { %11222 = vmatprep.subr.bf16.mxu0 %v23179_v43  ;;  %15416 = vmatprep.subr.bf16.mxu1 %v23182_v5  ;;  %v23221_v43 = vld [vmem:[%s29217_s9 + $0x64c] ss:$112 sps:$4 sm:$0xff]  }
 0xbd3   : > { %v23224_v5 = vld [vmem:[%s29217_s9 + $0x101c] ss:$112 sps:$4 sm:$0xff]  }
 0xbd4   : > { %19717 = vmatmul.mubr.msk.bf16.vlgmr.msra.gmra.mrb[80].mxu0 %vm7854_vm11, %v27020_v45 }
 0xbd5   : > { %11223 = vmatpush1.bf16.msra.mxu0 %v23177_v34  ;;  %15417 = vmatpush1.bf16.msra.mxu1 %v23180_v35 }
 0xbd6   : > { %11224 = vmatprep.subr.bf16.mxu0 %v23185_v36  ;;  %15492 = vmatprep.subr.bf16.mxu1 %v23188_v56  ;;  %v23219_v56 = vld [vmem:[%s29217_s9 + $0x648] ss:$112 sps:$4 sm:$0xff]  }
 0xbd7   : > { %v9897_v18 = vpop.f32.mrb[28].mxu0  ;;  %11254 = vmatprep.mubr.bf16.mxu0 %v29231_v23 }
 0xbd8   : > { %v10297_v59 = vrot.slane %v9897_v18, 2  ;;  %v9899_v57 = vpop.f32.mrb[29].mxu0  ;;  %20435 = vmatmul.mubr.msk.bf16.vlgmr.msra.gmra.mrb[136].mxu1 %vm7854_vm11, %v27037_v21  ;;  %v23228_v18 = vld [vmem:[%s29217_s9 + $0x10f8] ss:$112 sps:$4 sm:$0xff]  }
 0xbd9   : > { %v10298_v9 = vrot.slane %v9899_v57, 2  ;;  %v9901_v48 = vpop.f32.mrb[30].mxu0  ;;  %11225 = vmatpush1.bf16.msra.mxu0 %v23183_v39  ;;  %15493 = vmatpush1.bf16.msra.mxu1 %v23186_v47  ;;  %v23222_v39 = vld [vmem:[%s29217_s9 + $0x1018] ss:$112 sps:$4 sm:$0xff]   ;;  %v23236_v57 = vld [vmem:[%s29217_s9 + $0xe6c] ss:$112 sps:$4 sm:$0xff]  }
 0xbda   : > { %v27245_v20 = vadd.f32 %v10297_v59, %v27117_v8  ;;  %v9902_v29 = vpop.f32.mrb[31].mxu0  ;;  %11226 = vmatprep.subr.bf16.mxu0 %v23191_v10  ;;  %15494 = vmatprep.subr.bf16.mxu1 %v23194_v7  ;;  %v23230_v10 = vld [vmem:[%s29217_s9 + $0x10fc] ss:$112 sps:$4 sm:$0xff]   ;;  %v23225_v7 = vld [vmem:[%s29217_s9 + $0x3b0] ss:$112 sps:$4 sm:$0xff]  }
 0xbdb   : > { %v27254_v40 = vadd.f32 %v10298_v9, %v27126_v0  ;;  %v27256_v1 = vpop.f32.mrb[84].mxu1  ;;  %15524 = vmatprep.mubr.bf16.mxu1 %v29231_v23  ;;  %v23203_v0 = vld [vmem:[%s29217_s9 + $0x3ac] ss:$112 sps:$4 sm:$0xff]   ;;  %v23233_v59 = vld [vmem:[%s29217_s9 + $0x494] ss:$112 sps:$4 sm:$0xff]  }
 0xbdc   : > { %v27259_v8 = vpop.f32.mrb[85].mxu1  ;;  %v23231_v9 = vld [vmem:[%s29217_s9 + $0x490] ss:$112 sps:$4 sm:$0xff]   ;;  %v23234_v48 = vld [vmem:[%s29217_s9 + $0xe68] ss:$112 sps:$4 sm:$0xff]  }
 0xbdd   : > { %11227 = vmatpush1.bf16.msra.mxu0 %v23189_v44  ;;  %v12818_v19 = vpop.f32.mrb[86].mxu1  ;;  %15495 = vmatpush1.bf16.msra.mxu1 %v23192_v6  ;;  %v23239_v44 = vld [vmem:[%s29217_s9 + $0x574] ss:$112 sps:$4 sm:$0xff]   ;;  %v23242_v6 = vld [vmem:[%s29217_s9 + $0xf4c] ss:$112 sps:$4 sm:$0xff]  }
 0xbde   : > { %v12819_v12 = vpop.f32.mrb[87].mxu1  ;;  %11228 = vmatprep.subr.bf16.mxu0 %v23197_v32  ;;  %15496 = vmatprep.subr.bf16.mxu1 %v23200_v61 }
 0xbdf   : > { %v23240_v12 = vld [vmem:[%s29217_s9 + $0xf48] ss:$112 sps:$4 sm:$0xff]  }
 0xbe1   : > { %11229 = vmatpush1.bf16.msra.mxu0 %v23195_v55  ;;  %15497 = vmatpush1.bf16.msra.mxu1 %v23198_v15  ;;  %v23237_v15 = vld [vmem:[%s29217_s9 + $0x570] ss:$112 sps:$4 sm:$0xff]  }
 0xbe2   : > { %11263 = vmatprep.subr.bf16.mxu0 %v23203_v0  ;;  %15498 = vmatprep.subr.bf16.mxu1 %v23206_v50 }
 0xbe4   : > { %19718 = vmatmul.mubr.msk.bf16.vlgmr.msra.gmra.mrb[84].mxu0 %vm7854_vm11, %v27020_v45 }
 0xbe5   : > { %11264 = vmatpush1.bf16.msra.mxu0 %v23201_v13  ;;  %15499 = vmatpush1.bf16.msra.mxu1 %v23204_v2  ;;  %v23245_v13 = vld [vmem:[%s29217_s9 + $0x654] ss:$112 sps:$4 sm:$0xff]   ;;  %v23248_v2 = vld [vmem:[%s29217_s9 + $0x102c] ss:$112 sps:$4 sm:$0xff]  }
 0xbe6   : > { %11265 = vmatprep.subr.bf16.mxu0 %v23209_v49  ;;  %15574 = vmatprep.subr.bf16.mxu1 %v23212_v33 }
 0xbe7   : > { %v9938_v62 = vpop.f32.mrb[32].mxu0  ;;  %11295 = vmatprep.mubr.bf16.mxu0 %v29231_v23 }
 0xbe8   : > { %v10299_v24 = vrot.slane %v9938_v62, 2  ;;  %v9940_v54 = vpop.f32.mrb[33].mxu0  ;;  %20437 = vmatmul.mubr.msk.bf16.vlgmr.msra.gmra.mrb[140].mxu1 %vm7854_vm11, %v27037_v21  ;;  %v23254_v62 = vld [vmem:[%s29217_s9 + $0x110c] ss:$112 sps:$4 sm:$0xff]  }
 0xbe9   : > { %v10300_v27 = vrot.slane %v9940_v54, 2  ;;  %v9942_v37 = vpop.f32.mrb[34].mxu0  ;;  %11266 = vmatpush1.bf16.msra.mxu0 %v23207_v4  ;;  %15575 = vmatpush1.bf16.msra.mxu1 %v23210_v25  ;;  %v23243_v25 = vld [vmem:[%s29217_s9 + $0x650] ss:$112 sps:$4 sm:$0xff]   ;;  %v23252_v54 = vld [vmem:[%s29217_s9 + $0x1108] ss:$112 sps:$4 sm:$0xff]  }
 0xbea   : > { %v27309_v11 = vadd.f32 %v10299_v24, %v27181_v31  ;;  %v9943_v51 = vpop.f32.mrb[35].mxu0  ;;  %11267 = vmatprep.subr.bf16.mxu0 %v23215_v46  ;;  %15576 = vmatprep.subr.bf16.mxu1 %v23218_v30  ;;  %v23246_v46 = vld [vmem:[%s29217_s9 + $0x1028] ss:$112 sps:$4 sm:$0xff]   ;;  %v23260_v37 = vld [vmem:[%s29217_s9 + $0x118c] ss:$112 sps:$4 sm:$0xff]  }
 0xbeb   : > { %v27318_v34 = vadd.f32 %v10300_v27, %v27190_v17  ;;  %v27320_v35 = vpop.f32.mrb[88].mxu1  ;;  %15606 = vmatprep.mubr.bf16.mxu1 %v29231_v23  ;;  %v23227_v17 = vld [vmem:[%s29217_s9 + $0x3b4] ss:$112 sps:$4 sm:$0xff]   ;;  %v23249_v24 = vld [vmem:[%s29217_s9 + $0x3b8] ss:$112 sps:$4 sm:$0xff]  }
 0xbec   : > { %v27323_v31 = vpop.f32.mrb[89].mxu1  ;;  %v23257_v27 = vld [vmem:[%s29217_s9 + $0x49c] ss:$112 sps:$4 sm:$0xff]  }
 0xbed   : > { %11268 = vmatpush1.bf16.msra.mxu0 %v23213_v26  ;;  %v12900_v36 = vpop.f32.mrb[90].mxu1  ;;  %15577 = vmatpush1.bf16.msra.mxu1 %v23216_v53  ;;  %v23255_v26 = vld [vmem:[%s29217_s9 + $0x498] ss:$112 sps:$4 sm:$0xff]   ;;  %v23263_v51 = vld [vmem:[%s29217_s9 + $0x57c] ss:$112 sps:$4 sm:$0xff]  }
 0xbee   : > { %v12901_v47 = vpop.f32.mrb[91].mxu1  ;;  %11269 = vmatprep.subr.bf16.mxu0 %v23221_v43  ;;  %15578 = vmatprep.subr.bf16.mxu1 %v23224_v5  ;;  %v23258_v53 = vld [vmem:[%s29217_s9 + $0x1188] ss:$112 sps:$4 sm:$0xff]   ;;  %v23266_v43 = vld [vmem:[%s29217_s9 + $0x126c] ss:$112 sps:$4 sm:$0xff]  }
 0xbf1   : > { %11270 = vmatpush1.bf16.msra.mxu0 %v23219_v56  ;;  %15579 = vmatpush1.bf16.msra.mxu1 %v23222_v39 }
 0xbf2   : > { %11304 = vmatprep.subr.bf16.mxu0 %v23227_v17  ;;  %15580 = vmatprep.subr.bf16.mxu1 %v23230_v10  ;;  %v23261_v17 = vld [vmem:[%s29217_s9 + $0x578] ss:$112 sps:$4 sm:$0xff]  }
 0xbf3   : > { %v23264_v10 = vld [vmem:[%s29217_s9 + $0x1268] ss:$112 sps:$4 sm:$0xff]  }
 0xbf4   : > { %19719 = vmatmul.mubr.msk.bf16.vlgmr.msra.gmra.mrb[88].mxu0 %vm7854_vm11, %v27020_v45 }
 0xbf5   : > { %11305 = vmatpush1.bf16.msra.mxu0 %v23225_v7  ;;  %15581 = vmatpush1.bf16.msra.mxu1 %v23228_v18 }
 0xbf6   : > { %11306 = vmatprep.subr.bf16.mxu0 %v23233_v59  ;;  %15656 = vmatprep.subr.bf16.mxu1 %v23236_v57  ;;  %v23269_v59 = vld [vmem:[%s29217_s9 + $0x65c] ss:$112 sps:$4 sm:$0xff]  }
 0xbf7   : > { %v9979_v29 = vpop.f32.mrb[36].mxu0  ;;  %11336 = vmatprep.mubr.bf16.mxu0 %v29231_v23  ;;  %v23272_v57 = vld [vmem:[%s29217_s9 + $0x134c] ss:$112 sps:$4 sm:$0xff]  }
 0xbf8   : > { %v10313_v32 = vrot.slane %v9979_v29, 3  ;;  %v9981_v61 = vpop.f32.mrb[37].mxu0  ;;  %20439 = vmatmul.mubr.msk.bf16.vlgmr.msra.gmra.mrb[144].mxu1 %vm7854_vm11, %v27037_v21  ;;  %v23267_v29 = vld [vmem:[%s29217_s9 + $0x658] ss:$112 sps:$4 sm:$0xff]  }
 0xbf9   : > { %v10314_v19 = vrot.slane %v9981_v61, 3  ;;  %v9983_v55 = vpop.f32.mrb[38].mxu0  ;;  %11307 = vmatpush1.bf16.msra.mxu0 %v23231_v9  ;;  %15657 = vmatpush1.bf16.msra.mxu1 %v23234_v48 }
 0xbfa   : > { %v27373_v0 = vadd.f32 %v10313_v32, %v27245_v20  ;;  %v9984_v50 = vpop.f32.mrb[39].mxu0  ;;  %11308 = vmatprep.subr.bf16.mxu0 %v23239_v44  ;;  %15658 = vmatprep.subr.bf16.mxu1 %v23242_v6  ;;  %v15912_v44 = vshrl.u32 %v26288_v38, 16  ;;  %v15915_v32 = vshll.u32 %v26288_v38, 16  ;;  %v23278_v55 = vld [vmem:[%s29217_s9 + $0x142c] ss:$112 sps:$4 sm:$0xff]  }
 0xbfb   : > { %v27382_v49 = vadd.f32 %v10314_v19, %v27254_v40  ;;  %v27384_v33 = vpop.f32.mrb[92].mxu1  ;;  %15688 = vmatprep.mubr.bf16.mxu1 %v29231_v23  ;;  %v23251_v40 = vld [vmem:[%s29217_s9 + $0x3bc] ss:$112 sps:$4 sm:$0xff]   ;;  %v23275_v19 = vld [vmem:[%s29217_s9 + $0x3c4] ss:$112 sps:$4 sm:$0xff]  }
 0xbfc   : > { %v27387_v20 = vpop.f32.mrb[93].mxu1  ;;  %v23276_v38 = vld [vmem:[%s29217_s9 + $0x1428] ss:$112 sps:$4 sm:$0xff]   ;;  %v15917_v50 = vrot.slane %v15915_v32, 2 }
 0xbfd   : > { %11309 = vmatpush1.bf16.msra.mxu0 %v23237_v15  ;;  %v12982_v4 = vpop.f32.mrb[94].mxu1  ;;  %15659 = vmatpush1.bf16.msra.mxu1 %v23240_v12  ;;  %v23273_v15 = vld [vmem:[%s29217_s9 + $0x3c0] ss:$112 sps:$4 sm:$0xff]   ;;  %v15914_v12 = vrot.slane %v15912_v44, 1  ;;  %v23300_v44 = vld [vmem:[%s29217_s9 + $0x1438] ss:$112 sps:$4 sm:$0xff]  }
 0xbfe   : > { %v12983_v30 = vpop.f32.mrb[95].mxu1  ;;  %11310 = vmatprep.subr.bf16.mxu0 %v23245_v13  ;;  %15660 = vmatprep.subr.bf16.mxu1 %v23248_v2  ;;  %v23281_v13 = vld [vmem:[%s29217_s9 + $0x4a4] ss:$112 sps:$4 sm:$0xff]   ;;  %v23284_v2 = vld [vmem:[%s29217_s9 + $0x119c] ss:$112 sps:$4 sm:$0xff]  }
 0xbff   : > { %v23279_v4 = vld [vmem:[%s29217_s9 + $0x4a0] ss:$112 sps:$4 sm:$0xff]   ;;  %v23287_v30 = vld [vmem:[%s29217_s9 + $0x584] ss:$112 sps:$4 sm:$0xff]   ;;  %v23306_v32 = vld [vmem:[%s29217_s9 + $0x11a8] ss:$112 sps:$4 sm:$0xff]  }
 0xc01   : > { %11311 = vmatpush1.bf16.msra.mxu0 %v23243_v25  ;;  %15661 = vmatpush1.bf16.msra.mxu1 %v23246_v46  ;;  %v23282_v25 = vld [vmem:[%s29217_s9 + $0x1198] ss:$112 sps:$4 sm:$0xff]   ;;  %v27487_v46 = vor.u32 %v15917_v50, %v15914_v12 }
 0xc02   : > { %11345 = vmatprep.subr.bf16.mxu0 %v23251_v40  ;;  %15662 = vmatprep.subr.bf16.mxu1 %v23254_v62  ;;  %v23290_v40 = vld [vmem:[%s29217_s9 + $0x127c] ss:$112 sps:$4 sm:$0xff]  }
 0xc03   : > { %29232 = vst [vmem:[#allocation2_spill] sm:$0xff] %v27487_v46 }
 0xc04   : > { %19720 = vmatmul.mubr.msk.bf16.vlgmr.msra.gmra.mrb[92].mxu0 %vm7854_vm11, %v27020_v45 }
 0xc05   : > { %11346 = vmatpush1.bf16.msra.mxu0 %v23249_v24  ;;  %15663 = vmatpush1.bf16.msra.mxu1 %v23252_v54 }
 0xc06   : > { %11347 = vmatprep.subr.bf16.mxu0 %v23257_v27  ;;  %16523 = vmatprep.subr.bf16.mxu1 %v23260_v37 }
 0xc07   : > { %v10020_v5 = vpop.f32.mrb[40].mxu0  ;;  %11377 = vmatprep.mubr.bf16.mxu0 %v29231_v23 }
 0xc08   : > { %v10315_v36 = vrot.slane %v10020_v5, 3  ;;  %v10022_v56 = vpop.f32.mrb[41].mxu0  ;;  %20441 = vmatmul.mubr.msk.bf16.vlgmr.msra.gmra.mrb[0].mxu1 %vm7854_vm11, %v27037_v21  ;;  %v23293_v5 = vld [vmem:[%s29217_s9 + $0x664] ss:$112 sps:$4 sm:$0xff]  }
 0xc09   : > { %v10316_v39 = vrot.slane %v10022_v56, 3  ;;  %v10024_v47 = vpop.f32.mrb[42].mxu0  ;;  %11348 = vmatpush1.bf16.msra.mxu0 %v23255_v26  ;;  %16524 = vmatpush1.bf16.msra.mxu1 %v23258_v53  ;;  %v23285_v26 = vld [vmem:[%s29217_s9 + $0x580] ss:$112 sps:$4 sm:$0xff]   ;;  %v23288_v53 = vld [vmem:[%s29217_s9 + $0x1278] ss:$112 sps:$4 sm:$0xff]  }
 0xc0a   : > { %v27437_v7 = vadd.f32 %v10315_v36, %v27309_v11  ;;  %v10025_v18 = vpop.f32.mrb[43].mxu0  ;;  %11349 = vmatprep.subr.bf16.mxu0 %v23263_v51  ;;  %16525 = vmatprep.subr.bf16.mxu1 %v23266_v43  ;;  %v23296_v36 = vld [vmem:[%s29217_s9 + $0x135c] ss:$112 sps:$4 sm:$0xff]  }
 0xc0b   : > { %v27446_v9 = vadd.f32 %v10316_v39, %v27318_v34  ;;  %v27448_v48 = vpop.f32.mrb[96].mxu1  ;;  %16555 = vmatprep.mubr.bf16.mxu1 %v29231_v23  ;;  %v23270_v34 = vld [vmem:[%s29217_s9 + $0x1348] ss:$112 sps:$4 sm:$0xff]  }
 0xc0c   : > { %v27451_v11 = vpop.f32.mrb[97].mxu1 }
 0xc0d   : > { %11350 = vmatpush1.bf16.msra.mxu0 %v23261_v17  ;;  %v13849_v6 = vpop.f32.mrb[98].mxu1  ;;  %16526 = vmatpush1.bf16.msra.mxu1 %v23264_v10  ;;  %v23291_v17 = vld [vmem:[%s29217_s9 + $0x660] ss:$112 sps:$4 sm:$0xff]   ;;  %v23294_v10 = vld [vmem:[%s29217_s9 + $0x1358] ss:$112 sps:$4 sm:$0xff]  }
 0xc0e   : > { %v13850_v61 = vpop.f32.mrb[99].mxu1  ;;  %11351 = vmatprep.subr.bf16.mxu0 %v23269_v59  ;;  %16527 = vmatprep.subr.bf16.mxu1 %v23272_v57  ;;  %v23302_v59 = vld [vmem:[%s29217_s9 + $0x143c] ss:$112 sps:$4 sm:$0xff]   ;;  %v23297_v57 = vld [vmem:[%s29217_s9 + $0x3c8] ss:$112 sps:$4 sm:$0xff]  }
 0xc0f   : > { %v23305_v6 = vld [vmem:[%s29217_s9 + $0x4ac] ss:$112 sps:$4 sm:$0xff]  }
 0xc10   : > { %v23311_v61 = vld [vmem:[%s29217_s9 + $0x58c] ss:$112 sps:$4 sm:$0xff]  }
 0xc11   : > { %11352 = vmatpush1.bf16.msra.mxu0 %v23267_v29  ;;  %16528 = vmatpush1.bf16.msra.mxu1 %v23270_v34  ;;  %v23308_v29 = vld [vmem:[%s29217_s9 + $0x11ac] ss:$112 sps:$4 sm:$0xff]   ;;  %v23303_v34 = vld [vmem:[%s29217_s9 + $0x4a8] ss:$112 sps:$4 sm:$0xff]  }
 0xc12   : > { %11386 = vmatprep.subr.bf16.mxu0 %v23275_v19  ;;  %16529 = vmatprep.subr.bf16.mxu1 %v23278_v55  ;;  %v23314_v19 = vld [vmem:[%s29217_s9 + $0x128c] ss:$112 sps:$4 sm:$0xff]  }
 0xc14   : > { %19721 = vmatmul.mubr.msk.bf16.vlgmr.msra.gmra.mrb[96].mxu0 %vm7854_vm11, %v27020_v45 }
 0xc15   : > { %11387 = vmatpush1.bf16.msra.mxu0 %v23273_v15  ;;  %16530 = vmatpush1.bf16.msra.mxu1 %v23276_v38 }
 0xc16   : > { %11388 = vmatprep.subr.bf16.mxu0 %v23281_v13  ;;  %16605 = vmatprep.subr.bf16.mxu1 %v23284_v2  ;;  %v23309_v13 = vld [vmem:[%s29217_s9 + $0x588] ss:$112 sps:$4 sm:$0xff]  }
 0xc17   : > { %v10061_v62 = vpop.f32.mrb[44].mxu0  ;;  %11418 = vmatprep.mubr.bf16.mxu0 %v29231_v23  ;;  %v23312_v2 = vld [vmem:[%s29217_s9 + $0x1288] ss:$112 sps:$4 sm:$0xff]  }
 0xc18   : > { %v10329_v24 = vrot.slane %v10061_v62, 4  ;;  %v10063_v54 = vpop.f32.mrb[45].mxu0  ;;  %20667 = vmatmul.mubr.msk.bf16.vlgmr.msra.gmra.mrb[4].mxu1 %vm7854_vm11, %v27487_v46 }
 0xc19   : > { %v10330_v27 = vrot.slane %v10063_v54, 4  ;;  %v10065_v37 = vpop.f32.mrb[46].mxu0  ;;  %11389 = vmatpush1.bf16.msra.mxu0 %v23279_v4  ;;  %16606 = vmatpush1.bf16.msra.mxu1 %v23282_v25 }
 0xc1a   : > { %v27505_v51 = vadd.f32 %v10329_v24, %v27373_v0  ;;  %v10066_v43 = vpop.f32.mrb[47].mxu0  ;;  %11390 = vmatprep.subr.bf16.mxu0 %v23287_v30  ;;  %16607 = vmatprep.subr.bf16.mxu1 %v23290_v40  ;;  %v23317_v30 = vld [vmem:[%s29217_s9 + $0x66c] ss:$112 sps:$4 sm:$0xff]   ;;  %v23318_v37 = vld [vmem:[%s29217_s9 + $0x1368] ss:$112 sps:$4 sm:$0xff]  }
 0xc1b   : > { %v27514_v56 = vadd.f32 %v10330_v27, %v27382_v49  ;;  %v27516_v39 = vpop.f32.mrb[100].mxu1  ;;  %16637 = vmatprep.mubr.bf16.mxu1 %v29231_v23  ;;  %v23299_v49 = vld [vmem:[%s29217_s9 + $0x3cc] ss:$112 sps:$4 sm:$0xff]   ;;  %v23315_v27 = vld [vmem:[%s29217_s9 + $0x668] ss:$112 sps:$4 sm:$0xff]  }
 0xc1c   : > { %v27519_v0 = vpop.f32.mrb[101].mxu1  ;;  %v23320_v40 = vld [vmem:[%s29217_s9 + $0x136c] ss:$112 sps:$4 sm:$0xff]   ;;  %v23321_v43 = vld [vmem:[%s29217_s9 + $0x3d0] ss:$112 sps:$4 sm:$0xff]  }
 0xc1d   : > { %11391 = vmatpush1.bf16.msra.mxu0 %v23285_v26  ;;  %v13931_v47 = vpop.f32.mrb[102].mxu1  ;;  %16608 = vmatpush1.bf16.msra.mxu1 %v23288_v53  ;;  %v23326_v53 = vld [vmem:[%s29217_s9 + $0x144c] ss:$112 sps:$4 sm:$0xff]  }
 0xc1e   : > { %v13932_v18 = vpop.f32.mrb[103].mxu1  ;;  %11392 = vmatprep.subr.bf16.mxu0 %v23293_v5  ;;  %16609 = vmatprep.subr.bf16.mxu1 %v23296_v36  ;;  %v23324_v5 = vld [vmem:[%s29217_s9 + $0x1448] ss:$112 sps:$4 sm:$0xff]   ;;  %v23329_v36 = vld [vmem:[%s29217_s9 + $0x4b4] ss:$112 sps:$4 sm:$0xff]  }
 0xc1f   : > { %v23332_v47 = vld [vmem:[%s29217_s9 + $0x11bc] ss:$112 sps:$4 sm:$0xff]   ;;  %v23335_v18 = vld [vmem:[%s29217_s9 + $0x594] ss:$112 sps:$4 sm:$0xff]  }
 0xc21   : > { %11393 = vmatpush1.bf16.msra.mxu0 %v23291_v17  ;;  %16610 = vmatpush1.bf16.msra.mxu1 %v23294_v10  ;;  %v23327_v17 = vld [vmem:[%s29217_s9 + $0x4b0] ss:$112 sps:$4 sm:$0xff]   ;;  %v23330_v10 = vld [vmem:[%s29217_s9 + $0x11b8] ss:$112 sps:$4 sm:$0xff]  }
 0xc22   : > { %11427 = vmatprep.subr.bf16.mxu0 %v23299_v49  ;;  %16611 = vmatprep.subr.bf16.mxu1 %v23302_v59  ;;  %v23338_v49 = vld [vmem:[%s29217_s9 + $0x129c] ss:$112 sps:$4 sm:$0xff]  }
 0xc24   : > { %19722 = vmatmul.mubr.msk.bf16.vlgmr.msra.gmra.mrb[108].mxu0 %vm7854_vm11, %v27020_v45 }
 0xc25   : > { %11428 = vmatpush1.bf16.msra.mxu0 %v23297_v57  ;;  %16612 = vmatpush1.bf16.msra.mxu1 %v23300_v44 }
 0xc26   : > { %11429 = vmatprep.subr.bf16.mxu0 %v23305_v6  ;;  %16687 = vmatprep.subr.bf16.mxu1 %v23308_v29 }
 0xc27   : > { %v10102_v55 = vpop.f32.mrb[48].mxu0  ;;  %11459 = vmatprep.mubr.bf16.mxu0 %v29231_v23 }
 0xc28   : > { %v10331_v15 = vrot.slane %v10102_v55, 4  ;;  %v10104_v38 = vpop.f32.mrb[49].mxu0  ;;  %20669 = vmatmul.mubr.msk.bf16.vlgmr.msra.gmra.mrb[8].mxu1 %vm7854_vm11, %v27487_v46  ;;  %v23341_v55 = vld [vmem:[%s29217_s9 + $0x674] ss:$112 sps:$4 sm:$0xff]  }
 0xc29   : > { %v10332_v12 = vrot.slane %v10104_v38, 4  ;;  %v10106_v50 = vpop.f32.mrb[50].mxu0  ;;  %11430 = vmatpush1.bf16.msra.mxu0 %v23303_v34  ;;  %16688 = vmatpush1.bf16.msra.mxu1 %v23306_v32  ;;  %v23333_v34 = vld [vmem:[%s29217_s9 + $0x590] ss:$112 sps:$4 sm:$0xff]   ;;  %v23336_v32 = vld [vmem:[%s29217_s9 + $0x1298] ss:$112 sps:$4 sm:$0xff]  }
 0xc2a   : > { %v27569_v4 = vadd.f32 %v10331_v15, %v27437_v7  ;;  %v10107_v25 = vpop.f32.mrb[51].mxu0  ;;  %11431 = vmatprep.subr.bf16.mxu0 %v23311_v61  ;;  %16689 = vmatprep.subr.bf16.mxu1 %v23314_v19  ;;  %v23344_v15 = vld [vmem:[%s29217_s9 + $0x137c] ss:$112 sps:$4 sm:$0xff]  }
 0xc2b   : > { %v27578_v62 = vadd.f32 %v10332_v12, %v27446_v9  ;;  %v27580_v24 = vpop.f32.mrb[104].mxu1  ;;  %16719 = vmatprep.mubr.bf16.mxu1 %v29231_v23  ;;  %v23323_v9 = vld [vmem:[%s29217_s9 + $0x3d4] ss:$112 sps:$4 sm:$0xff]  }
 0xc2c   : > { %v27583_v7 = vpop.f32.mrb[105].mxu1 }
 0xc2d   : > { %11432 = vmatpush1.bf16.msra.mxu0 %v23309_v13  ;;  %v14013_v54 = vpop.f32.mrb[106].mxu1  ;;  %16690 = vmatpush1.bf16.msra.mxu1 %v23312_v2  ;;  %v23339_v13 = vld [vmem:[%s29217_s9 + $0x670] ss:$112 sps:$4 sm:$0xff]   ;;  %v23342_v2 = vld [vmem:[%s29217_s9 + $0x1378] ss:$112 sps:$4 sm:$0xff]  }
 0xc2e   : > { %v14014_v26 = vpop.f32.mrb[107].mxu1  ;;  %11433 = vmatprep.subr.bf16.mxu0 %v23317_v30  ;;  %16691 = vmatprep.subr.bf16.mxu1 %v23320_v40  ;;  %v23350_v30 = vld [vmem:[%s29217_s9 + $0x145c] ss:$112 sps:$4 sm:$0xff]   ;;  %v23345_v40 = vld [vmem:[%s29217_s9 + $0x3d8] ss:$112 sps:$4 sm:$0xff]  }
 0xc2f   : > { %v23348_v54 = vld [vmem:[%s29217_s9 + $0x1458] ss:$112 sps:$4 sm:$0xff]  }
 0xc30   : > { %v23351_v26 = vld [vmem:[%s29217_s9 + $0x4b8] ss:$112 sps:$4 sm:$0xff]  }
 0xc31   : > { %11434 = vmatpush1.bf16.msra.mxu0 %v23315_v27  ;;  %16692 = vmatpush1.bf16.msra.mxu1 %v23318_v37  ;;  %v23353_v27 = vld [vmem:[%s29217_s9 + $0x4bc] ss:$112 sps:$4 sm:$0xff]  }
 0xc32   : > { %11468 = vmatprep.subr.bf16.mxu0 %v23323_v9  ;;  %16693 = vmatprep.subr.bf16.mxu1 %v23326_v53  ;;  %v23356_v37 = vld [vmem:[%s29217_s9 + $0x11cc] ss:$112 sps:$4 sm:$0xff]   ;;  %v23354_v9 = vld [vmem:[%s29217_s9 + $0x11c8] ss:$112 sps:$4 sm:$0xff]  }
 0xc33   : > { %v23359_v53 = vld [vmem:[%s29217_s9 + $0x59c] ss:$112 sps:$4 sm:$0xff]  }
 0xc34   : > { %19723 = vmatmul.mubr.msk.bf16.vlgmr.msra.gmra.mrb[112].mxu0 %vm7854_vm11, %v27020_v45 }
 0xc35   : > { %11469 = vmatpush1.bf16.msra.mxu0 %v23321_v43  ;;  %16694 = vmatpush1.bf16.msra.mxu1 %v23324_v5  ;;  %v23362_v43 = vld [vmem:[%s29217_s9 + $0x12ac] ss:$112 sps:$4 sm:$0xff]  }
 0xc36   : > { %11470 = vmatprep.subr.bf16.mxu0 %v23329_v36  ;;  %16769 = vmatprep.subr.bf16.mxu1 %v23332_v47 }
 0xc37   : > { %v10143_v59 = vpop.f32.mrb[52].mxu0  ;;  %11500 = vmatprep.mubr.bf16.mxu0 %v29231_v23 }
 0xc38   : > { %v10345_v57 = vrot.slane %v10143_v59, 5  ;;  %v10145_v44 = vpop.f32.mrb[53].mxu0  ;;  %20671 = vmatmul.mubr.msk.bf16.vlgmr.msra.gmra.mrb[12].mxu1 %vm7854_vm11, %v27487_v46 }
 0xc39   : > { %v10346_v6 = vrot.slane %v10145_v44, 5  ;;  %v10147_v29 = vpop.f32.mrb[54].mxu0  ;;  %11471 = vmatpush1.bf16.msra.mxu0 %v23327_v17  ;;  %16770 = vmatpush1.bf16.msra.mxu1 %v23330_v10  ;;  %v23365_v44 = vld [vmem:[%s29217_s9 + $0x67c] ss:$112 sps:$4 sm:$0xff]  }
 0xc3a   : > { %v27633_v61 = vadd.f32 %v10345_v57, %v27505_v51  ;;  %v10148_v19 = vpop.f32.mrb[55].mxu0  ;;  %11472 = vmatprep.subr.bf16.mxu0 %v23335_v18  ;;  %16771 = vmatprep.subr.bf16.mxu1 %v23338_v49  ;;  %v23357_v18 = vld [vmem:[%s29217_s9 + $0x598] ss:$112 sps:$4 sm:$0xff]  }
 0xc3b   : > { %v27642_v38 = vadd.f32 %v10346_v6, %v27514_v56  ;;  %v27644_v12 = vpop.f32.mrb[108].mxu1  ;;  %16801 = vmatprep.mubr.bf16.mxu1 %v29231_v23  ;;  %v23347_v56 = vld [vmem:[%s29217_s9 + $0x3dc] ss:$112 sps:$4 sm:$0xff]   ;;  %v23360_v49 = vld [vmem:[%s29217_s9 + $0x12a8] ss:$112 sps:$4 sm:$0xff]  }
 0xc3c   : > { %v27647_v51 = vpop.f32.mrb[109].mxu1  ;;  %v23368_v6 = vld [vmem:[%s29217_s9 + $0x138c] ss:$112 sps:$4 sm:$0xff]   ;;  %v23363_v19 = vld [vmem:[%s29217_s9 + $0x678] ss:$112 sps:$4 sm:$0xff]  }
 0xc3d   : > { %11473 = vmatpush1.bf16.msra.mxu0 %v23333_v34  ;;  %v14095_v50 = vpop.f32.mrb[110].mxu1  ;;  %16772 = vmatpush1.bf16.msra.mxu1 %v23336_v32 }
 0xc3e   : > { %v14096_v25 = vpop.f32.mrb[111].mxu1  ;;  %11474 = vmatprep.subr.bf16.mxu0 %v23341_v55  ;;  %16773 = vmatprep.subr.bf16.mxu1 %v23344_v15  ;;  %v23366_v55 = vld [vmem:[%s29217_s9 + $0x1388] ss:$112 sps:$4 sm:$0xff]   ;;  %v23374_v50 = vld [vmem:[%s29217_s9 + $0x146c] ss:$112 sps:$4 sm:$0xff]  }
 0xc3f   : > { %v23377_v25 = vld [vmem:[%s29217_s9 + $0x4c4] ss:$112 sps:$4 sm:$0xff]  }
 0xc41   : > { %11475 = vmatpush1.bf16.msra.mxu0 %v23339_v13  ;;  %16774 = vmatpush1.bf16.msra.mxu1 %v23342_v2  ;;  %v23369_v13 = vld [vmem:[%s29217_s9 + $0x3e0] ss:$112 sps:$4 sm:$0xff]   ;;  %v23372_v2 = vld [vmem:[%s29217_s9 + $0x1468] ss:$112 sps:$4 sm:$0xff]  }
 0xc42   : > { %11509 = vmatprep.subr.bf16.mxu0 %v23347_v56  ;;  %16775 = vmatprep.subr.bf16.mxu1 %v23350_v30  ;;  %v23380_v56 = vld [vmem:[%s29217_s9 + $0x11dc] ss:$112 sps:$4 sm:$0xff]   ;;  %v23375_v30 = vld [vmem:[%s29217_s9 + $0x4c0] ss:$112 sps:$4 sm:$0xff]  }
 0xc44   : > { %19724 = vmatmul.mubr.msk.bf16.vlgmr.msra.gmra.mrb[116].mxu0 %vm7854_vm11, %v27020_v45 }
 0xc45   : > { %11510 = vmatpush1.bf16.msra.mxu0 %v23345_v40  ;;  %16776 = vmatpush1.bf16.msra.mxu1 %v23348_v54  ;;  %v23378_v40 = vld [vmem:[%s29217_s9 + $0x11d8] ss:$112 sps:$4 sm:$0xff]   ;;  %v23383_v54 = vld [vmem:[%s29217_s9 + $0x5a4] ss:$112 sps:$4 sm:$0xff]  }
 0xc46   : > { %11511 = vmatprep.subr.bf16.mxu0 %v23353_v27  ;;  %16851 = vmatprep.subr.bf16.mxu1 %v23356_v37  ;;  %v23386_v27 = vld [vmem:[%s29217_s9 + $0x12bc] ss:$112 sps:$4 sm:$0xff]  }
 0xc47   : > { %v10184_v5 = vpop.f32.mrb[56].mxu0  ;;  %11541 = vmatprep.mubr.bf16.mxu0 %v29231_v23 }
 0xc48   : > { %v10347_v36 = vrot.slane %v10184_v5, 5  ;;  %v10186_v47 = vpop.f32.mrb[57].mxu0  ;;  %20673 = vmatmul.mubr.msk.bf16.vlgmr.msra.gmra.mrb[16].mxu1 %vm7854_vm11, %v27487_v46  ;;  %v23381_v5 = vld [vmem:[%s29217_s9 + $0x5a0] ss:$112 sps:$4 sm:$0xff]  }
 0xc49   : > { %v10348_v17 = vrot.slane %v10186_v47, 5  ;;  %v10188_v10 = vpop.f32.mrb[58].mxu0  ;;  %11512 = vmatpush1.bf16.msra.mxu0 %v23351_v26  ;;  %16852 = vmatpush1.bf16.msra.mxu1 %v23354_v9 }
 0xc4a   : > { %v27697_v59 = vadd.f32 %v10347_v36, %v27569_v4  ;;  %v10189_v57 = vpop.f32.mrb[59].mxu0  ;;  %11513 = vmatprep.subr.bf16.mxu0 %v23359_v53  ;;  %16853 = vmatprep.subr.bf16.mxu1 %v23362_v43  ;;  %v23384_v36 = vld [vmem:[%s29217_s9 + $0x12b8] ss:$112 sps:$4 sm:$0xff]   ;;  %v23392_v10 = vld [vmem:[%s29217_s9 + $0x139c] ss:$112 sps:$4 sm:$0xff]  }
 0xc4b   : > { %v27706_v29 = vadd.f32 %v10348_v17, %v27578_v62  ;;  %v27708_v34 = vpop.f32.mrb[112].mxu1  ;;  %16883 = vmatprep.mubr.bf16.mxu1 %v29231_v23  ;;  %v23371_v62 = vld [vmem:[%s29217_s9 + $0x3e4] ss:$112 sps:$4 sm:$0xff]  }
 0xc4c   : > { %v27711_v4 = vpop.f32.mrb[113].mxu1  ;;  %v23389_v17 = vld [vmem:[%s29217_s9 + $0x684] ss:$112 sps:$4 sm:$0xff]  }
 0xc4d   : > { %11514 = vmatpush1.bf16.msra.mxu0 %v23357_v18  ;;  %v14177_v32 = vpop.f32.mrb[114].mxu1  ;;  %16854 = vmatpush1.bf16.msra.mxu1 %v23360_v49 }
 0xc4e   : > { %v14178_v15 = vpop.f32.mrb[115].mxu1  ;;  %11515 = vmatprep.subr.bf16.mxu0 %v23365_v44  ;;  %16855 = vmatprep.subr.bf16.mxu1 %v23368_v6  ;;  %v23387_v32 = vld [vmem:[%s29217_s9 + $0x680] ss:$112 sps:$4 sm:$0xff]  }
 0xc4f   : > { %v23393_v15 = vld [vmem:[%s29217_s9 + $0x3e8] ss:$112 sps:$4 sm:$0xff]  }
 0xc51   : > { %11516 = vmatpush1.bf16.msra.mxu0 %v23363_v19  ;;  %16856 = vmatpush1.bf16.msra.mxu1 %v23366_v55  ;;  %v23398_v55 = vld [vmem:[%s29217_s9 + $0x147c] ss:$112 sps:$4 sm:$0xff]  }
 0xc52   : > { %11550 = vmatprep.subr.bf16.mxu0 %v23371_v62  ;;  %16857 = vmatprep.subr.bf16.mxu1 %v23374_v50  ;;  %v23396_v62 = vld [vmem:[%s29217_s9 + $0x1478] ss:$112 sps:$4 sm:$0xff]   ;;  %v23401_v50 = vld [vmem:[%s29217_s9 + $0x4cc] ss:$112 sps:$4 sm:$0xff]  }
 0xc54   : > { %19725 = vmatmul.mubr.msk.bf16.vlgmr.msra.gmra.mrb[120].mxu0 %vm7854_vm11, %v27020_v45 }
 0xc55   : > { %11551 = vmatpush1.bf16.msra.mxu0 %v23369_v13  ;;  %16858 = vmatpush1.bf16.msra.mxu1 %v23372_v2  ;;  %v23404_v13 = vld [vmem:[%s29217_s9 + $0x11ec] ss:$112 sps:$4 sm:$0xff]   ;;  %v23399_v2 = vld [vmem:[%s29217_s9 + $0x4c8] ss:$112 sps:$4 sm:$0xff]  }
 0xc56   : > { %11552 = vmatprep.subr.bf16.mxu0 %v23377_v25  ;;  %16933 = vmatprep.subr.bf16.mxu1 %v23380_v56  ;;  %v23402_v25 = vld [vmem:[%s29217_s9 + $0x11e8] ss:$112 sps:$4 sm:$0xff]   ;;  %v23407_v56 = vld [vmem:[%s29217_s9 + $0x5ac] ss:$112 sps:$4 sm:$0xff]  }
 0xc57   : > { %v10225_v37 = vpop.f32.mrb[60].mxu0  ;;  %11582 = vmatprep.mubr.bf16.mxu0 %v29231_v23 }
 0xc58   : > { %v10361_v26 = vrot.slane %v10225_v37, 6  ;;  %v10227_v9 = vpop.f32.mrb[61].mxu0  ;;  %20675 = vmatmul.mubr.msk.bf16.vlgmr.msra.gmra.mrb[20].mxu1 %vm7854_vm11, %v27487_v46 }
 0xc59   : > { %v10362_v53 = vrot.slane %v10227_v9, 6  ;;  %v10229_v43 = vpop.f32.mrb[62].mxu0  ;;  %11553 = vmatpush1.bf16.msra.mxu0 %v23375_v30  ;;  %16934 = vmatpush1.bf16.msra.mxu1 %v23378_v40  ;;  %v23410_v30 = vld [vmem:[%s29217_s9 + $0x12cc] ss:$112 sps:$4 sm:$0xff]   ;;  %v23405_v9 = vld [vmem:[%s29217_s9 + $0x5a8] ss:$112 sps:$4 sm:$0xff]  }
 0xc5a   : > { %v10230_v47 = vpop.f32.mrb[63].mxu0  ;;  %11554 = vmatprep.subr.bf16.mxu0 %v23383_v54  ;;  %16935 = vmatprep.subr.bf16.mxu1 %v23386_v27  ;;  %v27767_v18 = vadd.f32 %v10361_v26, %v27633_v61  ;;  %v23390_v61 = vld [vmem:[%s29217_s9 + $0x1398] ss:$112 sps:$4 sm:$0xff]  }
 0xc5b   : > { %v27769_v49 = vpop.f32.mrb[116].mxu1  ;;  %16965 = vmatprep.mubr.bf16.mxu1 %v29231_v23  ;;  %v27773_v57 = vadd.f32 %v10362_v53, %v27642_v38  ;;  %v23395_v38 = vld [vmem:[%s29217_s9 + $0x3ec] ss:$112 sps:$4 sm:$0xff]   ;;  %v23408_v53 = vld [vmem:[%s29217_s9 + $0x12c8] ss:$112 sps:$4 sm:$0xff]  }
 0xc5c   : > { %v27775_v44 = vpop.f32.mrb[117].mxu1 }
 0xc5d   : > { %11555 = vmatpush1.bf16.msra.mxu0 %v23381_v5  ;;  %v14259_v6 = vpop.f32.mrb[118].mxu1  ;;  %16936 = vmatpush1.bf16.msra.mxu1 %v23384_v36  ;;  %v23413_v5 = vld [vmem:[%s29217_s9 + $0x68c] ss:$112 sps:$4 sm:$0xff]  }
 0xc5e   : > { %v14260_v19 = vpop.f32.mrb[119].mxu1  ;;  %11556 = vmatprep.subr.bf16.mxu0 %v23389_v17  ;;  %16937 = vmatprep.subr.bf16.mxu1 %v23392_v10  ;;  %v23416_v36 = vld [vmem:[%s29217_s9 + $0x13ac] ss:$112 sps:$4 sm:$0xff]  }
 0xc61   : > { %11557 = vmatpush1.bf16.msra.mxu0 %v23387_v32  ;;  %16938 = vmatpush1.bf16.msra.mxu1 %v23390_v61  ;;  %v23411_v61 = vld [vmem:[%s29217_s9 + $0x688] ss:$112 sps:$4 sm:$0xff]  }
 0xc62   : > { %11591 = vmatprep.subr.bf16.mxu0 %v23395_v38  ;;  %16939 = vmatprep.subr.bf16.mxu1 %v23398_v55  ;;  %v23422_v38 = vld [vmem:[%s29217_s9 + $0x148c] ss:$112 sps:$4 sm:$0xff]   ;;  %v23417_v55 = vld [vmem:[%s29217_s9 + $0x700] ss:$112 sps:$4 sm:$0xff]  }
 0xc64   : > { %19726 = vmatmul.mubr.msk.bf16.vlgmr.msra.gmra.mrb[124].mxu0 %vm7854_vm11, %v27020_v45 }
 0xc65   : > { %11592 = vmatpush1.bf16.msra.mxu0 %v23393_v15  ;;  %16940 = vmatpush1.bf16.msra.mxu1 %v23396_v62  ;;  %v23420_v15 = vld [vmem:[%s29217_s9 + $0x1488] ss:$112 sps:$4 sm:$0xff]   ;;  %v23425_v62 = vld [vmem:[%s29217_s9 + $0x7e4] ss:$112 sps:$4 sm:$0xff]  }
 0xc66   : > { %11593 = vmatprep.subr.bf16.mxu0 %v23401_v50  ;;  %17015 = vmatprep.subr.bf16.mxu1 %v23404_v13  ;;  %v23428_v50 = vld [vmem:[%s29217_s9 + $0x150c] ss:$112 sps:$4 sm:$0xff]   ;;  %v23423_v13 = vld [vmem:[%s29217_s9 + $0x7e0] ss:$112 sps:$4 sm:$0xff]  }
 0xc67   : > { %v10266_v40 = vpop.f32.mrb[64].mxu0  ;;  %11623 = vmatprep.mubr.bf16.mxu0 %v29231_v23 }
 0xc68   : > { %v10363_v54 = vrot.slane %v10266_v40, 6  ;;  %v10268_v27 = vpop.f32.mrb[65].mxu0  ;;  %20677 = vmatmul.mubr.msk.bf16.vlgmr.msra.gmra.mrb[24].mxu1 %vm7854_vm11, %v27487_v46 }
 0xc69   : > { %v10364_v37 = vrot.slane %v10268_v27, 6  ;;  %v10270_v26 = vpop.f32.mrb[66].mxu0  ;;  %11594 = vmatpush1.bf16.msra.mxu0 %v23399_v2  ;;  %17016 = vmatpush1.bf16.msra.mxu1 %v23402_v25  ;;  %v23426_v2 = vld [vmem:[%s29217_s9 + $0x1508] ss:$112 sps:$4 sm:$0xff]   ;;  %v23431_v25 = vld [vmem:[%s29217_s9 + $0x8c4] ss:$112 sps:$4 sm:$0xff]  }
 0xc6a   : > { %v10271_v43 = vpop.f32.mrb[67].mxu0  ;;  %11595 = vmatprep.subr.bf16.mxu0 %v23407_v56  ;;  %17017 = vmatprep.subr.bf16.mxu1 %v23410_v30  ;;  %v27831_v47 = vadd.f32 %v10363_v54, %v27697_v59  ;;  %v23414_v59 = vld [vmem:[%s29217_s9 + $0x13a8] ss:$112 sps:$4 sm:$0xff]  }
 0xc6b   : > { %v27833_v17 = vpop.f32.mrb[120].mxu1  ;;  %17047 = vmatprep.mubr.bf16.mxu1 %v29231_v23  ;;  %v27837_v10 = vadd.f32 %v10364_v37, %v27706_v29  ;;  %v23419_v29 = vld [vmem:[%s29217_s9 + $0x704] ss:$112 sps:$4 sm:$0xff]   ;;  %v23429_v37 = vld [vmem:[%s29217_s9 + $0x8c0] ss:$112 sps:$4 sm:$0xff]  }
 0xc6c   : > { %v27839_v6 = vpop.f32.mrb[121].mxu1  ;;  %v23432_v26 = vld [vmem:[%s29217_s9 + $0x15e8] ss:$112 sps:$4 sm:$0xff]  }
 0xc6d   : > { %11596 = vmatpush1.bf16.msra.mxu0 %v23405_v9  ;;  %v14341_v32 = vpop.f32.mrb[122].mxu1  ;;  %17018 = vmatpush1.bf16.msra.mxu1 %v23408_v53  ;;  %v23437_v9 = vld [vmem:[%s29217_s9 + $0x9a4] ss:$112 sps:$4 sm:$0xff]  }
 0xc6e   : > { %v14342_v19 = vpop.f32.mrb[123].mxu1  ;;  %11597 = vmatprep.subr.bf16.mxu0 %v23413_v5  ;;  %17019 = vmatprep.subr.bf16.mxu1 %v23416_v36  ;;  %v23435_v36 = vld [vmem:[%s29217_s9 + $0x9a0] ss:$112 sps:$4 sm:$0xff]   ;;  %v23438_v32 = vld [vmem:[%s29217_s9 + $0x16c8] ss:$112 sps:$4 sm:$0xff]  }
 0xc6f   : > { %v23446_v19 = vld [vmem:[%s29217_s9 + $0x17ac] ss:$112 sps:$4 sm:$0xff]  }
 0xc71   : > { %11598 = vmatpush1.bf16.msra.mxu0 %v23411_v61  ;;  %17020 = vmatpush1.bf16.msra.mxu1 %v23414_v59  ;;  %v23443_v59 = vld [vmem:[%s29217_s9 + $0x714] ss:$112 sps:$4 sm:$0xff]  }
 0xc72   : > { %12411 = vmatprep.subr.bf16.mxu0 %v23419_v29  ;;  %17021 = vmatprep.subr.bf16.mxu1 %v23422_v38  ;;  %v23441_v29 = vld [vmem:[%s29217_s9 + $0x710] ss:$112 sps:$4 sm:$0xff]   ;;  %v23444_v38 = vld [vmem:[%s29217_s9 + $0x17a8] ss:$112 sps:$4 sm:$0xff]  }
 0xc74   : > { %19727 = vmatmul.mubr.msk.bf16.vlgmr.msra.gmra.mrb[128].mxu0 %vm7854_vm11, %v27020_v45  ;;  %v23434_v45 = vld [vmem:[%s29217_s9 + $0x15ec] ss:$112 sps:$4 sm:$0xff]  }
 0xc75   : > { %12412 = vmatpush1.bf16.msra.mxu0 %v23417_v55  ;;  %17022 = vmatpush1.bf16.msra.mxu1 %v23420_v15  ;;  %v23449_v55 = vld [vmem:[%s29217_s9 + $0x7f4] ss:$112 sps:$4 sm:$0xff]   ;;  %v23452_v15 = vld [vmem:[%s29217_s9 + $0x151c] ss:$112 sps:$4 sm:$0xff]  }
 0xc76   : > { %12413 = vmatprep.subr.bf16.mxu0 %v23425_v62  ;;  %17876 = vmatprep.subr.bf16.mxu1 %v23428_v50  ;;  %v23447_v62 = vld [vmem:[%s29217_s9 + $0x7f0] ss:$112 sps:$4 sm:$0xff]   ;;  %v23450_v50 = vld [vmem:[%s29217_s9 + $0x1518] ss:$112 sps:$4 sm:$0xff]  }
 0xc77   : > { %v11092_v56 = vpop.f32.mrb[68].mxu0  ;;  %12443 = vmatprep.mubr.bf16.mxu0 %v29231_v23 }
 0xc78   : > { %v27881_v30 = vadd.f32 %v11092_v56, %v27767_v18  ;;  %v11094_v40 = vpop.f32.mrb[69].mxu0  ;;  %20679 = vmatmul.mubr.msk.bf16.vlgmr.msra.gmra.mrb[28].mxu1 %vm7854_vm11, %v27487_v46 }
 0xc79   : > { %v27886_v54 = vadd.f32 %v11094_v40, %v27773_v57  ;;  %v11096_v27 = vpop.f32.mrb[70].mxu0  ;;  %12414 = vmatpush1.bf16.msra.mxu0 %v23423_v13  ;;  %17877 = vmatpush1.bf16.msra.mxu1 %v23426_v2  ;;  %v23440_v57 = vld [vmem:[%s29217_s9 + $0x16cc] ss:$112 sps:$4 sm:$0xff]   ;;  %v27938_v13 = vrot.slane %v26290_v3, 1  ;;  %v23455_v2 = vld [vmem:[%s29217_s9 + $0x8d4] ss:$112 sps:$4 sm:$0xff]  }
 0xc7a   : > { %v11097_v18 = vpop.f32.mrb[71].mxu0  ;;  %12415 = vmatprep.subr.bf16.mxu0 %v23431_v25  ;;  %17878 = vmatprep.subr.bf16.mxu1 %v23434_v45  ;;  %v23458_v25 = vld [vmem:[%s29217_s9 + $0x15fc] ss:$112 sps:$4 sm:$0xff]  }
 0xc7b   : > { %v27900_v53 = vpop.f32.mrb[124].mxu1  ;;  %17908 = vmatprep.mubr.bf16.mxu1 %v29231_v23  ;;  %29233 = vst [vmem:[#allocation3_spill] sm:$0xff] %v27938_v13  ;;  %v23461_v18 = vld [vmem:[%s29217_s9 + $0x9b4] ss:$112 sps:$4 sm:$0xff]  }
 0xc7c   : > { %v27903_v43 = vpop.f32.mrb[125].mxu1 }
 0xc7d   : > { %12416 = vmatpush1.bf16.msra.mxu0 %v23429_v37  ;;  %v15202_v5 = vpop.f32.mrb[126].mxu1  ;;  %17879 = vmatpush1.bf16.msra.mxu1 %v23432_v26  ;;  %v23453_v37 = vld [vmem:[%s29217_s9 + $0x8d0] ss:$112 sps:$4 sm:$0xff]   ;;  %v23456_v26 = vld [vmem:[%s29217_s9 + $0x15f8] ss:$112 sps:$4 sm:$0xff]  }
 0xc7e   : > { %v15203_v61 = vpop.f32.mrb[127].mxu1  ;;  %12417 = vmatprep.subr.bf16.mxu0 %v23437_v9  ;;  %17880 = vmatprep.subr.bf16.mxu1 %v23440_v57 }
 0xc81   : > { %12418 = vmatpush1.bf16.msra.mxu0 %v23435_v36  ;;  %17881 = vmatpush1.bf16.msra.mxu1 %v23438_v32  ;;  %v23459_v36 = vld [vmem:[%s29217_s9 + $0x9b0] ss:$112 sps:$4 sm:$0xff]   ;;  %v23462_v32 = vld [vmem:[%s29217_s9 + $0x16d8] ss:$112 sps:$4 sm:$0xff]  }
 0xc82   : > { %12493 = vmatprep.subr.bf16.mxu0 %v23443_v59  ;;  %17882 = vmatprep.subr.bf16.mxu1 %v23446_v19  ;;  %v23467_v59 = vld [vmem:[%s29217_s9 + $0x724] ss:$112 sps:$4 sm:$0xff]   ;;  %v23470_v19 = vld [vmem:[%s29217_s9 + $0x17bc] ss:$112 sps:$4 sm:$0xff]  }
 0xc84   : > { %19952 = vmatmul.mubr.msk.bf16.vlgmr.msra.gmra.mrb[132].mxu0 %vm7854_vm11, %v26257_v60 }
 0xc85   : > { %12494 = vmatpush1.bf16.msra.mxu0 %v23441_v29  ;;  %17883 = vmatpush1.bf16.msra.mxu1 %v23444_v38  ;;  %v23465_v29 = vld [vmem:[%s29217_s9 + $0x720] ss:$112 sps:$4 sm:$0xff]   ;;  %v23468_v38 = vld [vmem:[%s29217_s9 + $0x17b8] ss:$112 sps:$4 sm:$0xff]  }
 0xc86   : > { %12495 = vmatprep.subr.bf16.mxu0 %v23449_v55  ;;  %17958 = vmatprep.subr.bf16.mxu1 %v23452_v15  ;;  %v23473_v55 = vld [vmem:[%s29217_s9 + $0x804] ss:$112 sps:$4 sm:$0xff]   ;;  %v23476_v15 = vld [vmem:[%s29217_s9 + $0x152c] ss:$112 sps:$4 sm:$0xff]  }
 0xc87   : > { %v11133_v45 = vpop.f32.mrb[72].mxu0  ;;  %12525 = vmatprep.mubr.bf16.mxu0 %v29231_v23 }
 0xc88   : > { %v27948_v56 = vadd.f32 %v11133_v45, %v27831_v47  ;;  %v11135_v40 = vpop.f32.mrb[73].mxu0  ;;  %20905 = vmatmul.mubr.msk.bf16.vlgmr.msra.gmra.mrb[32].mxu1 %vm7854_vm11, %v27938_v13 }
 0xc89   : > { %v27953_v3 = vadd.f32 %v11135_v40, %v27837_v10  ;;  %v11137_v27 = vpop.f32.mrb[74].mxu0  ;;  %12496 = vmatpush1.bf16.msra.mxu0 %v23447_v62  ;;  %17959 = vmatpush1.bf16.msra.mxu1 %v23450_v50  ;;  %v23464_v10 = vld [vmem:[%s29217_s9 + $0x16dc] ss:$112 sps:$4 sm:$0xff]   ;;  %v23471_v62 = vld [vmem:[%s29217_s9 + $0x800] ss:$112 sps:$4 sm:$0xff]  }
 0xc8a   : > { %v11138_v47 = vpop.f32.mrb[75].mxu0  ;;  %12497 = vmatprep.subr.bf16.mxu0 %v23455_v2  ;;  %17960 = vmatprep.subr.bf16.mxu1 %v23458_v25  ;;  %v23474_v50 = vld [vmem:[%s29217_s9 + $0x1528] ss:$112 sps:$4 sm:$0xff]   ;;  %v23479_v2 = vld [vmem:[%s29217_s9 + $0x8e4] ss:$112 sps:$4 sm:$0xff]  }
 0xc8b   : > { %v27967_v9 = vpop.f32.mrb[128].mxu1  ;;  %17990 = vmatprep.mubr.bf16.mxu1 %v29231_v23  ;;  %v23482_v25 = vld [vmem:[%s29217_s9 + $0x160c] ss:$112 sps:$4 sm:$0xff]   ;;  %v23477_v47 = vld [vmem:[%s29217_s9 + $0x8e0] ss:$112 sps:$4 sm:$0xff]  }
 0xc8c   : > { %v27970_v57 = vpop.f32.mrb[129].mxu1 }
 0xc8d   : > { %12498 = vmatpush1.bf16.msra.mxu0 %v23453_v37  ;;  %v15284_v5 = vpop.f32.mrb[130].mxu1  ;;  %17961 = vmatpush1.bf16.msra.mxu1 %v23456_v26 }
 0xc8e   : > { %v15285_v61 = vpop.f32.mrb[131].mxu1  ;;  %12499 = vmatprep.subr.bf16.mxu0 %v23461_v18  ;;  %17962 = vmatprep.subr.bf16.mxu1 %v23464_v10  ;;  %v23480_v18 = vld [vmem:[%s29217_s9 + $0x1608] ss:$112 sps:$4 sm:$0xff]  }
 0xc91   : > { %12500 = vmatpush1.bf16.msra.mxu0 %v23459_v36  ;;  %17963 = vmatpush1.bf16.msra.mxu1 %v23462_v32  ;;  %v23485_v36 = vld [vmem:[%s29217_s9 + $0x9c4] ss:$112 sps:$4 sm:$0xff]   ;;  %v23488_v32 = vld [vmem:[%s29217_s9 + $0x16ec] ss:$112 sps:$4 sm:$0xff]  }
 0xc92   : > { %12575 = vmatprep.subr.bf16.mxu0 %v23467_v59  ;;  %17964 = vmatprep.subr.bf16.mxu1 %v23470_v19 }
 0xc94   : > { %19954 = vmatmul.mubr.msk.bf16.vlgmr.msra.gmra.mrb[136].mxu0 %vm7854_vm11, %v26257_v60 }
 0xc95   : > { %12576 = vmatpush1.bf16.msra.mxu0 %v23465_v29  ;;  %17965 = vmatpush1.bf16.msra.mxu1 %v23468_v38  ;;  %v23483_v29 = vld [vmem:[%s29217_s9 + $0x9c0] ss:$112 sps:$4 sm:$0xff]   ;;  %v23486_v38 = vld [vmem:[%s29217_s9 + $0x16e8] ss:$112 sps:$4 sm:$0xff]  }
 0xc96   : > { %12577 = vmatprep.subr.bf16.mxu0 %v23473_v55  ;;  %18040 = vmatprep.subr.bf16.mxu1 %v23476_v15  ;;  %v23494_v15 = vld [vmem:[%s29217_s9 + $0x17cc] ss:$112 sps:$4 sm:$0xff]  }
 0xc97   : > { %v11174_v45 = vpop.f32.mrb[76].mxu0  ;;  %12607 = vmatprep.mubr.bf16.mxu0 %v29231_v23 }
 0xc98   : > { %v11640_v40 = vrot.slane %v11174_v45, 1  ;;  %v11176_v27 = vpop.f32.mrb[77].mxu0  ;;  %20907 = vmatmul.mubr.msk.bf16.vlgmr.msra.gmra.mrb[36].mxu1 %vm7854_vm11, %v27938_v13  ;;  %v23495_v45 = vld [vmem:[%s29217_s9 + $0x810] ss:$112 sps:$4 sm:$0xff]  }
 0xc99   : > { %v11641_v37 = vrot.slane %v11176_v27, 1  ;;  %v11178_v26 = vpop.f32.mrb[78].mxu0  ;;  %12578 = vmatpush1.bf16.msra.mxu0 %v23471_v62  ;;  %18041 = vmatpush1.bf16.msra.mxu1 %v23474_v50  ;;  %v23489_v62 = vld [vmem:[%s29217_s9 + $0x730] ss:$112 sps:$4 sm:$0xff]   ;;  %v23492_v50 = vld [vmem:[%s29217_s9 + $0x17c8] ss:$112 sps:$4 sm:$0xff]  }
 0xc9a   : > { %v28020_v10 = vadd.f32 %v11640_v40, %v27881_v30  ;;  %v11179_v5 = vpop.f32.mrb[79].mxu0  ;;  %12579 = vmatprep.subr.bf16.mxu0 %v23479_v2  ;;  %18042 = vmatprep.subr.bf16.mxu1 %v23482_v25  ;;  %v23497_v2 = vld [vmem:[%s29217_s9 + $0x814] ss:$112 sps:$4 sm:$0xff]   ;;  %v23500_v25 = vld [vmem:[%s29217_s9 + $0x153c] ss:$112 sps:$4 sm:$0xff]  }
 0xc9b   : > { %v28029_v61 = vadd.f32 %v11641_v37, %v27886_v54  ;;  %v28031_v59 = vpop.f32.mrb[132].mxu1  ;;  %18072 = vmatprep.mubr.bf16.mxu1 %v29231_v23  ;;  %v23491_v54 = vld [vmem:[%s29217_s9 + $0x734] ss:$112 sps:$4 sm:$0xff]   ;;  %v23498_v40 = vld [vmem:[%s29217_s9 + $0x1538] ss:$112 sps:$4 sm:$0xff]  }
 0xc9c   : > { %v28034_v30 = vpop.f32.mrb[133].mxu1  ;;  %v23503_v27 = vld [vmem:[%s29217_s9 + $0x8f4] ss:$112 sps:$4 sm:$0xff]   ;;  %v23506_v37 = vld [vmem:[%s29217_s9 + $0x161c] ss:$112 sps:$4 sm:$0xff]  }
 0xc9d   : > { %12580 = vmatpush1.bf16.msra.mxu0 %v23477_v47  ;;  %v15366_v19 = vpop.f32.mrb[134].mxu1  ;;  %18043 = vmatpush1.bf16.msra.mxu1 %v23480_v18 }
 0xc9e   : > { %v15367_v55 = vpop.f32.mrb[135].mxu1  ;;  %12581 = vmatprep.subr.bf16.mxu0 %v23485_v36  ;;  %18044 = vmatprep.subr.bf16.mxu1 %v23488_v32  ;;  %v23501_v32 = vld [vmem:[%s29217_s9 + $0x8f0] ss:$112 sps:$4 sm:$0xff]   ;;  %v23504_v19 = vld [vmem:[%s29217_s9 + $0x1618] ss:$112 sps:$4 sm:$0xff]  }
 0xc9f   : > { %v23509_v55 = vld [vmem:[%s29217_s9 + $0x9d4] ss:$112 sps:$4 sm:$0xff]  }
 0xca1   : > { %12582 = vmatpush1.bf16.msra.mxu0 %v23483_v29  ;;  %18045 = vmatpush1.bf16.msra.mxu1 %v23486_v38 }
 0xca2   : > { %12657 = vmatprep.subr.bf16.mxu0 %v23491_v54  ;;  %18046 = vmatprep.subr.bf16.mxu1 %v23494_v15  ;;  %v23512_v54 = vld [vmem:[%s29217_s9 + $0x16fc] ss:$112 sps:$4 sm:$0xff]  }
 0xca4   : > { %19956 = vmatmul.mubr.msk.bf16.vlgmr.msra.gmra.mrb[140].mxu0 %vm7854_vm11, %v26257_v60 }
 0xca5   : > { %12658 = vmatpush1.bf16.msra.mxu0 %v23489_v62  ;;  %18047 = vmatpush1.bf16.msra.mxu1 %v23492_v50 }
 0xca6   : > { %12659 = vmatprep.subr.bf16.mxu0 %v23497_v2  ;;  %18122 = vmatprep.subr.bf16.mxu1 %v23500_v25  ;;  %v23507_v2 = vld [vmem:[%s29217_s9 + $0x9d0] ss:$112 sps:$4 sm:$0xff]   ;;  %v23510_v25 = vld [vmem:[%s29217_s9 + $0x16f8] ss:$112 sps:$4 sm:$0xff]  }
 0xca7   : > { %v11215_v26 = vpop.f32.mrb[80].mxu0  ;;  %12689 = vmatprep.mubr.bf16.mxu0 %v29231_v23 }
 0xca8   : > { %v11642_v47 = vrot.slane %v11215_v26, 1  ;;  %v11217_v18 = vpop.f32.mrb[81].mxu0  ;;  %20909 = vmatmul.mubr.msk.bf16.vlgmr.msra.gmra.mrb[40].mxu1 %vm7854_vm11, %v27938_v13  ;;  %v23521_v26 = vld [vmem:[%s29217_s9 + $0x824] ss:$112 sps:$4 sm:$0xff]  }
 0xca9   : > { %v11643_v5 = vrot.slane %v11217_v18, 1  ;;  %v11219_v36 = vpop.f32.mrb[82].mxu0  ;;  %12660 = vmatpush1.bf16.msra.mxu0 %v23495_v45  ;;  %18123 = vmatpush1.bf16.msra.mxu1 %v23498_v40  ;;  %v23518_v40 = vld [vmem:[%s29217_s9 + $0x17dc] ss:$112 sps:$4 sm:$0xff]   ;;  %v23519_v18 = vld [vmem:[%s29217_s9 + $0x820] ss:$112 sps:$4 sm:$0xff]  }
 0xcaa   : > { %v28084_v29 = vadd.f32 %v11642_v47, %v27948_v56  ;;  %v11220_v38 = vpop.f32.mrb[83].mxu0  ;;  %12661 = vmatprep.subr.bf16.mxu0 %v23503_v27  ;;  %18124 = vmatprep.subr.bf16.mxu1 %v23506_v37  ;;  %v23513_v27 = vld [vmem:[%s29217_s9 + $0x740] ss:$112 sps:$4 sm:$0xff]   ;;  %v23516_v37 = vld [vmem:[%s29217_s9 + $0x17d8] ss:$112 sps:$4 sm:$0xff]  }
 0xcab   : > { %v28093_v15 = vadd.f32 %v11643_v5, %v27953_v3  ;;  %v28095_v62 = vpop.f32.mrb[136].mxu1  ;;  %18154 = vmatprep.mubr.bf16.mxu1 %v29231_v23  ;;  %v23515_v3 = vld [vmem:[%s29217_s9 + $0x744] ss:$112 sps:$4 sm:$0xff]   ;;  %v23524_v47 = vld [vmem:[%s29217_s9 + $0x154c] ss:$112 sps:$4 sm:$0xff]  }
 0xcac   : > { %v28098_v56 = vpop.f32.mrb[137].mxu1  ;;  %v23522_v5 = vld [vmem:[%s29217_s9 + $0x1548] ss:$112 sps:$4 sm:$0xff]   ;;  %v23527_v36 = vld [vmem:[%s29217_s9 + $0x904] ss:$112 sps:$4 sm:$0xff]  }
 0xcad   : > { %12662 = vmatpush1.bf16.msra.mxu0 %v23501_v32  ;;  %v15448_v50 = vpop.f32.mrb[138].mxu1  ;;  %18125 = vmatpush1.bf16.msra.mxu1 %v23504_v19  ;;  %v23530_v32 = vld [vmem:[%s29217_s9 + $0x162c] ss:$112 sps:$4 sm:$0xff]  }
 0xcae   : > { %v15449_v45 = vpop.f32.mrb[139].mxu1  ;;  %12663 = vmatprep.subr.bf16.mxu0 %v23509_v55  ;;  %18126 = vmatprep.subr.bf16.mxu1 %v23512_v54 }
 0xcb1   : > { %12664 = vmatpush1.bf16.msra.mxu0 %v23507_v2  ;;  %18127 = vmatpush1.bf16.msra.mxu1 %v23510_v25  ;;  %v23525_v2 = vld [vmem:[%s29217_s9 + $0x900] ss:$112 sps:$4 sm:$0xff]   ;;  %v23528_v25 = vld [vmem:[%s29217_s9 + $0x1628] ss:$112 sps:$4 sm:$0xff]  }
 0xcb2   : > { %12739 = vmatprep.subr.bf16.mxu0 %v23515_v3  ;;  %18128 = vmatprep.subr.bf16.mxu1 %v23518_v40  ;;  %v23533_v40 = vld [vmem:[%s29217_s9 + $0x9e4] ss:$112 sps:$4 sm:$0xff]  }
 0xcb4   : > { %19958 = vmatmul.mubr.msk.bf16.vlgmr.msra.gmra.mrb[144].mxu0 %vm7854_vm11, %v26257_v60 }
 0xcb5   : > { %12740 = vmatpush1.bf16.msra.mxu0 %v23513_v27  ;;  %18129 = vmatpush1.bf16.msra.mxu1 %v23516_v37  ;;  %v23536_v27 = vld [vmem:[%s29217_s9 + $0x170c] ss:$112 sps:$4 sm:$0xff]  }
 0xcb6   : > { %12741 = vmatprep.subr.bf16.mxu0 %v23521_v26  ;;  %18204 = vmatprep.subr.bf16.mxu1 %v23524_v47 }
 0xcb7   : > { %v11256_v19 = vpop.f32.mrb[84].mxu0  ;;  %12771 = vmatprep.mubr.bf16.mxu0 %v29231_v23 }
 0xcb8   : > { %v11656_v38 = vrot.slane %v11256_v19, 2  ;;  %v11258_v55 = vpop.f32.mrb[85].mxu0  ;;  %20911 = vmatmul.mubr.msk.bf16.vlgmr.msra.gmra.mrb[44].mxu1 %vm7854_vm11, %v27938_v13  ;;  %v23537_v19 = vld [vmem:[%s29217_s9 + $0x750] ss:$112 sps:$4 sm:$0xff]  }
 0xcb9   : > { %v11657_v54 = vrot.slane %v11258_v55, 2  ;;  %v11260_v50 = vpop.f32.mrb[86].mxu0  ;;  %12742 = vmatpush1.bf16.msra.mxu0 %v23519_v18  ;;  %18205 = vmatpush1.bf16.msra.mxu1 %v23522_v5  ;;  %v23531_v18 = vld [vmem:[%s29217_s9 + $0x9e0] ss:$112 sps:$4 sm:$0xff]   ;;  %v23534_v5 = vld [vmem:[%s29217_s9 + $0x1708] ss:$112 sps:$4 sm:$0xff]  }
 0xcba   : > { %v28148_v45 = vadd.f32 %v11656_v38, %v28020_v10  ;;  %v11261_v3 = vpop.f32.mrb[87].mxu0  ;;  %12743 = vmatprep.subr.bf16.mxu0 %v23527_v36  ;;  %18206 = vmatprep.subr.bf16.mxu1 %v23530_v32  ;;  %v23542_v32 = vld [vmem:[%s29217_s9 + $0x17ec] ss:$112 sps:$4 sm:$0xff]   ;;  %v23540_v38 = vld [vmem:[%s29217_s9 + $0x17e8] ss:$112 sps:$4 sm:$0xff]  }
 0xcbb   : > { %v28157_v37 = vadd.f32 %v11657_v54, %v28029_v61  ;;  %v28159_v26 = vpop.f32.mrb[140].mxu1  ;;  %18236 = vmatprep.mubr.bf16.mxu1 %v29231_v23  ;;  %v23539_v61 = vld [vmem:[%s29217_s9 + $0x754] ss:$112 sps:$4 sm:$0xff]   ;;  %v23548_v54 = vld [vmem:[%s29217_s9 + $0x155c] ss:$112 sps:$4 sm:$0xff]  }
 0xcbc   : > { %v28162_v10 = vpop.f32.mrb[141].mxu1  ;;  %v23545_v55 = vld [vmem:[%s29217_s9 + $0x834] ss:$112 sps:$4 sm:$0xff]   ;;  %v23543_v50 = vld [vmem:[%s29217_s9 + $0x830] ss:$112 sps:$4 sm:$0xff]  }
 0xcbd   : > { %12744 = vmatpush1.bf16.msra.mxu0 %v23525_v2  ;;  %v15530_v47 = vpop.f32.mrb[142].mxu1  ;;  %18207 = vmatpush1.bf16.msra.mxu1 %v23528_v25  ;;  %v23546_v2 = vld [vmem:[%s29217_s9 + $0x1558] ss:$112 sps:$4 sm:$0xff]   ;;  %v23551_v25 = vld [vmem:[%s29217_s9 + $0x914] ss:$112 sps:$4 sm:$0xff]  }
 0xcbe   : > { %v15531_v36 = vpop.f32.mrb[143].mxu1  ;;  %12745 = vmatprep.subr.bf16.mxu0 %v23533_v40  ;;  %18208 = vmatprep.subr.bf16.mxu1 %v23536_v27  ;;  %v23554_v3 = vld [vmem:[%s29217_s9 + $0x163c] ss:$112 sps:$4 sm:$0xff]  }
 0xcbf   : > { %v23549_v36 = vld [vmem:[%s29217_s9 + $0x910] ss:$112 sps:$4 sm:$0xff]  }
 0xcc1   : > { %12746 = vmatpush1.bf16.msra.mxu0 %v23531_v18  ;;  %18209 = vmatpush1.bf16.msra.mxu1 %v23534_v5 }
 0xcc2   : > { %12821 = vmatprep.subr.bf16.mxu0 %v23539_v61  ;;  %18210 = vmatprep.subr.bf16.mxu1 %v23542_v32  ;;  %v23552_v61 = vld [vmem:[%s29217_s9 + $0x1638] ss:$112 sps:$4 sm:$0xff]  }
 0xcc4   : > { %19960 = vmatmul.mubr.msk.bf16.vlgmr.msra.gmra.mrb[148].mxu0 %vm7854_vm11, %v26257_v60 }
 0xcc5   : > { %12822 = vmatpush1.bf16.msra.mxu0 %v23537_v19  ;;  %18211 = vmatpush1.bf16.msra.mxu1 %v23540_v38  ;;  %v23557_v38 = vld [vmem:[%s29217_s9 + $0x9f4] ss:$112 sps:$4 sm:$0xff]  }
 0xcc6   : > { %12823 = vmatprep.subr.bf16.mxu0 %v23545_v55  ;;  %18286 = vmatprep.subr.bf16.mxu1 %v23548_v54  ;;  %v23560_v55 = vld [vmem:[%s29217_s9 + $0x171c] ss:$112 sps:$4 sm:$0xff]  }
 0xcc7   : > { %v11297_v40 = vpop.f32.mrb[88].mxu0  ;;  %12853 = vmatprep.mubr.bf16.mxu0 %v29231_v23 }
 0xcc8   : > { %v11658_v27 = vrot.slane %v11297_v40, 2  ;;  %v11299_v47 = vpop.f32.mrb[89].mxu0  ;;  %20913 = vmatmul.mubr.msk.bf16.vlgmr.msra.gmra.mrb[48].mxu1 %vm7854_vm11, %v27938_v13 }
 0xcc9   : > { %v11659_v18 = vrot.slane %v11299_v47, 2  ;;  %v11301_v5 = vpop.f32.mrb[90].mxu0  ;;  %12824 = vmatpush1.bf16.msra.mxu0 %v23543_v50  ;;  %18287 = vmatpush1.bf16.msra.mxu1 %v23546_v2  ;;  %v23561_v47 = vld [vmem:[%s29217_s9 + $0x760] ss:$112 sps:$4 sm:$0xff]  }
 0xcca   : > { %v28212_v32 = vadd.f32 %v11658_v27, %v28084_v29  ;;  %v11302_v19 = vpop.f32.mrb[91].mxu0  ;;  %12825 = vmatprep.subr.bf16.mxu0 %v23551_v25  ;;  %18288 = vmatprep.subr.bf16.mxu1 %v23554_v3  ;;  %v23555_v25 = vld [vmem:[%s29217_s9 + $0x9f0] ss:$112 sps:$4 sm:$0xff]   ;;  %v23558_v3 = vld [vmem:[%s29217_s9 + $0x1718] ss:$112 sps:$4 sm:$0xff]  }
 0xccb   : > { %v28221_v54 = vadd.f32 %v11659_v18, %v28093_v15  ;;  %v28223_v50 = vpop.f32.mrb[144].mxu1  ;;  %18318 = vmatprep.mubr.bf16.mxu1 %v29231_v23  ;;  %v23563_v15 = vld [vmem:[%s29217_s9 + $0x764] ss:$112 sps:$4 sm:$0xff]   ;;  %v23566_v27 = vld [vmem:[%s29217_s9 + $0x17fc] ss:$112 sps:$4 sm:$0xff]  }
 0xccc   : > { %v28226_v29 = vpop.f32.mrb[145].mxu1  ;;  %v23564_v18 = vld [vmem:[%s29217_s9 + $0x17f8] ss:$112 sps:$4 sm:$0xff]   ;;  %v23569_v5 = vld [vmem:[%s29217_s9 + $0x844] ss:$112 sps:$4 sm:$0xff]  }
 0xccd   : > { %12826 = vmatpush1.bf16.msra.mxu0 %v23549_v36  ;;  %v15612_v2 = vpop.f32.mrb[146].mxu1  ;;  %18289 = vmatpush1.bf16.msra.mxu1 %v23552_v61  ;;  %v23572_v36 = vld [vmem:[%s29217_s9 + $0x156c] ss:$112 sps:$4 sm:$0xff]   ;;  %v23567_v61 = vld [vmem:[%s29217_s9 + $0x840] ss:$112 sps:$4 sm:$0xff]  }
 0xcce   : > { %v15613_v40 = vpop.f32.mrb[147].mxu1  ;;  %12827 = vmatprep.subr.bf16.mxu0 %v23557_v38  ;;  %18290 = vmatprep.subr.bf16.mxu1 %v23560_v55  ;;  %v23570_v19 = vld [vmem:[%s29217_s9 + $0x1568] ss:$112 sps:$4 sm:$0xff]   ;;  %v23575_v38 = vld [vmem:[%s29217_s9 + $0x924] ss:$112 sps:$4 sm:$0xff]  }
 0xccf   : > { %v23578_v55 = vld [vmem:[%s29217_s9 + $0x164c] ss:$112 sps:$4 sm:$0xff]  }
 0xcd1   : > { %12828 = vmatpush1.bf16.msra.mxu0 %v23555_v25  ;;  %18291 = vmatpush1.bf16.msra.mxu1 %v23558_v3 }
 0xcd2   : > { %12903 = vmatprep.subr.bf16.mxu0 %v23563_v15  ;;  %18292 = vmatprep.subr.bf16.mxu1 %v23566_v27  ;;  %v23573_v27 = vld [vmem:[%s29217_s9 + $0x920] ss:$112 sps:$4 sm:$0xff]  }
 0xcd4   : > { %19962 = vmatmul.mubr.msk.bf16.vlgmr.msra.gmra.mrb[152].mxu0 %vm7854_vm11, %v26257_v60 }
 0xcd5   : > { %12904 = vmatpush1.bf16.msra.mxu0 %v23561_v47  ;;  %18293 = vmatpush1.bf16.msra.mxu1 %v23564_v18  ;;  %v23576_v47 = vld [vmem:[%s29217_s9 + $0x1648] ss:$112 sps:$4 sm:$0xff]  }
 0xcd6   : > { %12905 = vmatprep.subr.bf16.mxu0 %v23569_v5  ;;  %18368 = vmatprep.subr.bf16.mxu1 %v23572_v36  ;;  %v23581_v36 = vld [vmem:[%s29217_s9 + $0xa04] ss:$112 sps:$4 sm:$0xff]  }
 0xcd7   : > { %v11338_v2 = vpop.f32.mrb[92].mxu0  ;;  %12935 = vmatprep.mubr.bf16.mxu0 %v29231_v23 }
 0xcd8   : > { %v11672_v25 = vrot.slane %v11338_v2, 3  ;;  %v11340_v3 = vpop.f32.mrb[93].mxu0  ;;  %20915 = vmatmul.mubr.msk.bf16.vlgmr.msra.gmra.mrb[52].mxu1 %vm7854_vm11, %v27938_v13 }
 0xcd9   : > { %v11673_v40 = vrot.slane %v11340_v3, 3  ;;  %v11342_v15 = vpop.f32.mrb[94].mxu0  ;;  %12906 = vmatpush1.bf16.msra.mxu0 %v23567_v61  ;;  %18369 = vmatpush1.bf16.msra.mxu1 %v23570_v19  ;;  %v23584_v61 = vld [vmem:[%s29217_s9 + $0x172c] ss:$112 sps:$4 sm:$0xff]  }
 0xcda   : > { %v28276_v18 = vadd.f32 %v11672_v25, %v28148_v45  ;;  %v11343_v5 = vpop.f32.mrb[95].mxu0  ;;  %12907 = vmatprep.subr.bf16.mxu0 %v23575_v38  ;;  %18370 = vmatprep.subr.bf16.mxu1 %v23578_v55  ;;  %v23579_v55 = vld [vmem:[%s29217_s9 + $0xa00] ss:$112 sps:$4 sm:$0xff]   ;;  %v23582_v25 = vld [vmem:[%s29217_s9 + $0x1728] ss:$112 sps:$4 sm:$0xff]  }
 0xcdb   : > { %v28285_v19 = vadd.f32 %v11673_v40, %v28157_v37  ;;  %v28287_v2 = vpop.f32.mrb[0].mxu1  ;;  %18400 = vmatprep.mubr.bf16.mxu1 %v29231_v23  ;;  %v23587_v37 = vld [vmem:[%s29217_s9 + $0xa84] ss:$112 sps:$4 sm:$0xff]   ;;  %v23590_v40 = vld [vmem:[%s29217_s9 + $0x180c] ss:$112 sps:$4 sm:$0xff]  }
 0xcdc   : > { %v28290_v45 = vpop.f32.mrb[1].mxu1  ;;  %v23585_v15 = vld [vmem:[%s29217_s9 + $0xa80] ss:$112 sps:$4 sm:$0xff]  }
 0xcdd   : > { %12908 = vmatpush1.bf16.msra.mxu0 %v23573_v27  ;;  %v15694_v38 = vpop.f32.mrb[2].mxu1  ;;  %18371 = vmatpush1.bf16.msra.mxu1 %v23576_v47  ;;  %v23588_v27 = vld [vmem:[%s29217_s9 + $0x1808] ss:$112 sps:$4 sm:$0xff]   ;;  %v23593_v47 = vld [vmem:[%s29217_s9 + $0xb64] ss:$112 sps:$4 sm:$0xff]  }
 0xcde   : > { %v15695_v3 = vpop.f32.mrb[3].mxu1  ;;  %12909 = vmatprep.subr.bf16.mxu0 %v23581_v36  ;;  %18372 = vmatprep.subr.bf16.mxu1 %v23584_v61  ;;  %v23591_v5 = vld [vmem:[%s29217_s9 + $0xb60] ss:$112 sps:$4 sm:$0xff]   ;;  %v23596_v36 = vld [vmem:[%s29217_s9 + $0xc44] ss:$112 sps:$4 sm:$0xff]  }
 0xcdf   : > { %v23594_v3 = vld [vmem:[%s29217_s9 + $0xc40] ss:$112 sps:$4 sm:$0xff]  }
 0xce1   : > { %12910 = vmatpush1.bf16.msra.mxu0 %v23579_v55  ;;  %18373 = vmatpush1.bf16.msra.mxu1 %v23582_v25 }
 0xce2   : > { %13770 = vmatprep.subr.bf16.mxu0 %v23587_v37  ;;  %18374 = vmatprep.subr.bf16.mxu1 %v23590_v40 }
 0xce4   : > { %19964 = vmatmul.mubr.msk.bf16.vlgmr.msra.gmra.mrb[156].mxu0 %vm7854_vm11, %v26257_v60 }
 0xce5   : > { %13771 = vmatpush1.bf16.msra.mxu0 %v23585_v15  ;;  %18375 = vmatpush1.bf16.msra.mxu1 %v23588_v27  ;;  %v23599_v15 = vld [vmem:[%s29217_s9 + $0xd24] ss:$112 sps:$4 sm:$0xff]  }
 0xce6   : > { %13772 = vmatprep.subr.bf16.mxu0 %v23593_v47  ;;  %13802 = vmatprep.mubr.bf16.mxu0 %v29231_v23 }
 0xce7   : > { %v11379_v61 = vpop.f32.mrb[96].mxu0 }
 0xce8   : > { %v11674_v38 = vrot.slane %v11379_v61, 3  ;;  %v11381_v55 = vpop.f32.mrb[97].mxu0  ;;  %20917 = vmatmul.mubr.msk.bf16.vlgmr.msra.gmra.mrb[56].mxu1 %vm7854_vm11, %v27938_v13 }
 0xce9   : > { %v11675_v60 = vrot.slane %v11381_v55, 3  ;;  %v11383_v25 = vpop.f32.mrb[98].mxu0  ;;  %13773 = vmatpush1.bf16.msra.mxu0 %v23591_v5  ;;  %v23597_v55 = vld [vmem:[%s29217_s9 + $0xd20] ss:$112 sps:$4 sm:$0xff]  }
 0xcea   : > { %v11682_v37 = vadd.f32 %v11674_v38, %v28212_v32  ;;  %v11384_v40 = vpop.f32.mrb[99].mxu0  ;;  %13774 = vmatprep.subr.bf16.mxu0 %v23596_v36  ;;  %v23602_v32 = vld [vmem:[%s29217_s9 + $0xa94] ss:$112 sps:$4 sm:$0xff]   ;;  %v23603_v38 = vld [vmem:[%s29217_s9 + $0xb70] ss:$112 sps:$4 sm:$0xff]  }
 0xceb   : > { %v11683_v27 = vadd.f32 %v11675_v60, %v28221_v54  ;;  %v28332_v47 = vpop.f32.mrb[4].mxu1  ;;  %v23600_v54 = vld [vmem:[%s29217_s9 + $0xa90] ss:$112 sps:$4 sm:$0xff]   ;;  %v23605_v36 = vld [vmem:[%s29217_s9 + $0xb74] ss:$112 sps:$4 sm:$0xff]  }
 0xcec   : > { %29234 = vst [vmem:[#allocation4_spill] sm:$0xff] %v28332_v47  ;;  %v28334_v61 = vpop.f32.mrb[5].mxu1  ;;  %v23608_v60 = vld [vmem:[%s29217_s9 + $0xc54] ss:$112 sps:$4 sm:$0xff]  }
 0xced   : > { %29235 = vst [vmem:[#allocation5_spill] sm:$0xff] %v28334_v61  ;;  %13775 = vmatpush1.bf16.msra.mxu0 %v23594_v3  ;;  %v16561_v5 = vpop.f32.mrb[6].mxu1 }
 0xcee   : > { %v16562_v25 = vpop.f32.mrb[7].mxu1  ;;  %13776 = vmatprep.subr.bf16.mxu0 %v23599_v15 }
 0xcef   : > { %v23606_v25 = vld [vmem:[%s29217_s9 + $0xc50] ss:$112 sps:$4 sm:$0xff]  }
 0xcf1   : > { %13777 = vmatpush1.bf16.msra.mxu0 %v23597_v55 }
 0xcf2   : > { %13852 = vmatprep.subr.bf16.mxu0 %v23602_v32 }
 0xcf4   : > { %20190 = vmatmul.mubr.msk.bf16.vlgmr.msra.gmra.mrb[160].mxu0 %vm7854_vm11, %v26644_v58 }
 0xcf5   : > { %13853 = vmatpush1.bf16.msra.mxu0 %v23600_v54  ;;  %13884 = vmatprep.mubr.bf16.mxu0 %v29231_v23 }
 0xcf6   : > { %13854 = vmatprep.subr.bf16.mxu0 %v23605_v36  ;;  %v23611_v36 = vld [vmem:[%s29217_s9 + $0xd34] ss:$112 sps:$4 sm:$0xff]  }
 0xcf7   : > { %v11420_v3 = vpop.f32.mrb[108].mxu0 }
 0xcf8   : > { %v11688_v40 = vrot.slane %v11420_v3, 4  ;;  %v11422_v15 = vpop.f32.mrb[109].mxu0 }
 0xcf9   : > { %v11689_v5 = vrot.slane %v11422_v15, 4  ;;  %v11424_v55 = vpop.f32.mrb[110].mxu0  ;;  %13855 = vmatpush1.bf16.msra.mxu0 %v23603_v38  ;;  %v23609_v15 = vld [vmem:[%s29217_s9 + $0xd30] ss:$112 sps:$4 sm:$0xff]  }
 0xcfa   : > { %v11696_v32 = vadd.f32 %v11688_v40, %v28276_v18  ;;  %v11425_v54 = vpop.f32.mrb[111].mxu0  ;;  %13856 = vmatprep.subr.bf16.mxu0 %v23608_v60  ;;  %v23614_v18 = vld [vmem:[%s29217_s9 + $0xaa4] ss:$112 sps:$4 sm:$0xff]   ;;  %v23615_v40 = vld [vmem:[%s29217_s9 + $0xb80] ss:$112 sps:$4 sm:$0xff]  }
 0xcfb   : > { %v11697_v13 = vadd.f32 %v11689_v5, %v28285_v19  ;;  %v28365_v46 = vpop.f32.mrb[8].mxu1  ;;  %v23612_v19 = vld [vmem:[%s29217_s9 + $0xaa0] ss:$112 sps:$4 sm:$0xff]   ;;  %v23617_v60 = vld [vmem:[%s29217_s9 + $0xb84] ss:$112 sps:$4 sm:$0xff]  }
 0xcfc   : > { %v28367_v3 = vpop.f32.mrb[9].mxu1  ;;  %v23620_v5 = vld [vmem:[%s29217_s9 + $0xc64] ss:$112 sps:$4 sm:$0xff]  }
 0xcfd   : > { %29236 = vst [vmem:[#allocation6_spill] sm:$0xff] %v28367_v3  ;;  %13857 = vmatpush1.bf16.msra.mxu0 %v23606_v25  ;;  %v16643_v38 = vpop.f32.mrb[10].mxu1 }
 0xcfe   : > { %v16644_v55 = vpop.f32.mrb[11].mxu1  ;;  %13858 = vmatprep.subr.bf16.mxu0 %v23611_v36 }
 0xcff   : > { %v23618_v55 = vld [vmem:[%s29217_s9 + $0xc60] ss:$112 sps:$4 sm:$0xff]  }
 0xd01   : > { %13859 = vmatpush1.bf16.msra.mxu0 %v23609_v15 }
 0xd02   : > { %13934 = vmatprep.subr.bf16.mxu0 %v23614_v18 }
 0xd04   : > { %20192 = vmatmul.mubr.msk.bf16.vlgmr.msra.gmra.mrb[164].mxu0 %vm7854_vm11, %v26644_v58 }
 0xd05   : > { %13935 = vmatpush1.bf16.msra.mxu0 %v23612_v19  ;;  %13966 = vmatprep.mubr.bf16.mxu0 %v29231_v23 }
 0xd06   : > { %13936 = vmatprep.subr.bf16.mxu0 %v23617_v60  ;;  %v23623_v60 = vld [vmem:[%s29217_s9 + $0xd44] ss:$112 sps:$4 sm:$0xff]  }
 0xd07   : > { %v11461_v25 = vpop.f32.mrb[112].mxu0 }
 0xd08   : > { %v11690_v54 = vrot.slane %v11461_v25, 4  ;;  %v11463_v36 = vpop.f32.mrb[113].mxu0 }
 0xd09   : > { %v11691_v38 = vrot.slane %v11463_v36, 4  ;;  %v11465_v15 = vpop.f32.mrb[114].mxu0  ;;  %13937 = vmatpush1.bf16.msra.mxu0 %v23615_v40  ;;  %v23621_v40 = vld [vmem:[%s29217_s9 + $0xd40] ss:$112 sps:$4 sm:$0xff]  }
 0xd0a   : > { %v11698_v18 = vadd.f32 %v11690_v54, %v11682_v37  ;;  %v11466_v19 = vpop.f32.mrb[115].mxu0  ;;  %13938 = vmatprep.subr.bf16.mxu0 %v23620_v5  ;;  %v23626_v37 = vld [vmem:[%s29217_s9 + $0xab4] ss:$112 sps:$4 sm:$0xff]   ;;  %v23627_v54 = vld [vmem:[%s29217_s9 + $0xb90] ss:$112 sps:$4 sm:$0xff]  }
 0xd0b   : > { %v11699_v61 = vadd.f32 %v11691_v38, %v11683_v27  ;;  %v28396_v3 = vpop.f32.mrb[12].mxu1  ;;  %v23624_v27 = vld [vmem:[%s29217_s9 + $0xab0] ss:$112 sps:$4 sm:$0xff]   ;;  %v23629_v5 = vld [vmem:[%s29217_s9 + $0xb94] ss:$112 sps:$4 sm:$0xff]  }
 0xd0c   : > { %29237 = vst [vmem:[#allocation7_spill] sm:$0xff] %v28396_v3  ;;  %v28398_v47 = vpop.f32.mrb[13].mxu1  ;;  %v23632_v38 = vld [vmem:[%s29217_s9 + $0xc74] ss:$112 sps:$4 sm:$0xff]  }
 0xd0d   : > { %29238 = vst [vmem:[#allocation8_spill] sm:$0xff] %v28398_v47  ;;  %13939 = vmatpush1.bf16.msra.mxu0 %v23618_v55  ;;  %v16725_v25 = vpop.f32.mrb[14].mxu1 }
 0xd0e   : > { %v16726_v36 = vpop.f32.mrb[15].mxu1  ;;  %13940 = vmatprep.subr.bf16.mxu0 %v23623_v60 }
 0xd11   : > { %13941 = vmatpush1.bf16.msra.mxu0 %v23621_v40  ;;  %v23630_v40 = vld [vmem:[%s29217_s9 + $0xc70] ss:$112 sps:$4 sm:$0xff]  }
 0xd12   : > { %14016 = vmatprep.subr.bf16.mxu0 %v23626_v37 }
 0xd14   : > { %20194 = vmatmul.mubr.msk.bf16.vlgmr.msra.gmra.mrb[100].mxu0 %vm7854_vm11, %v26644_v58 }
 0xd15   : > { %14017 = vmatpush1.bf16.msra.mxu0 %v23624_v27  ;;  %14048 = vmatprep.mubr.bf16.mxu0 %v29231_v23  ;;  %v23635_v27 = vld [vmem:[%s29217_s9 + $0xd54] ss:$112 sps:$4 sm:$0xff]  }
 0xd16   : > { %14018 = vmatprep.subr.bf16.mxu0 %v23629_v5 }
 0xd17   : > { %v11502_v15 = vpop.f32.mrb[116].mxu0 }
 0xd18   : > { %v11704_v55 = vrot.slane %v11502_v15, 5  ;;  %v11504_v19 = vpop.f32.mrb[117].mxu0 }
 0xd19   : > { %v11705_v60 = vrot.slane %v11504_v19, 5  ;;  %v11506_v25 = vpop.f32.mrb[118].mxu0  ;;  %14019 = vmatpush1.bf16.msra.mxu0 %v23627_v54  ;;  %v23633_v54 = vld [vmem:[%s29217_s9 + $0xd50] ss:$112 sps:$4 sm:$0xff]  }
 0xd1a   : > { %v28424_v36 = vadd.f32 %v11704_v55, %v11696_v32  ;;  %v11507_v37 = vpop.f32.mrb[119].mxu0  ;;  %14020 = vmatprep.subr.bf16.mxu0 %v23632_v38  ;;  %v23638_v32 = vld [vmem:[%s29217_s9 + $0xac4] ss:$112 sps:$4 sm:$0xff]   ;;  %v23639_v55 = vld [vmem:[%s29217_s9 + $0xba0] ss:$112 sps:$4 sm:$0xff]  }
 0xd1b   : > { %v11713_v5 = vadd.f32 %v11705_v60, %v11697_v13  ;;  %v28429_v47 = vpop.f32.mrb[16].mxu1  ;;  %v23636_v13 = vld [vmem:[%s29217_s9 + $0xac0] ss:$112 sps:$4 sm:$0xff]   ;;  %v23641_v38 = vld [vmem:[%s29217_s9 + $0xba4] ss:$112 sps:$4 sm:$0xff]  }
 0xd1c   : > { %29239 = vst [vmem:[#allocation9_spill] sm:$0xff] %v28429_v47  ;;  %v28431_v15 = vpop.f32.mrb[17].mxu1  ;;  %v23644_v60 = vld [vmem:[%s29217_s9 + $0xc84] ss:$112 sps:$4 sm:$0xff]  }
 0xd1d   : > { %29240 = vst [vmem:[#allocation10_spill] sm:$0xff] %v28431_v15  ;;  %14021 = vmatpush1.bf16.msra.mxu0 %v23630_v40  ;;  %v16807_v19 = vpop.f32.mrb[18].mxu1 }
 0xd1e   : > { %v16808_v25 = vpop.f32.mrb[19].mxu1  ;;  %14022 = vmatprep.subr.bf16.mxu0 %v23635_v27 }
 0xd1f   : > { %v23642_v25 = vld [vmem:[%s29217_s9 + $0xc80] ss:$112 sps:$4 sm:$0xff]  }
 0xd21   : > { %14023 = vmatpush1.bf16.msra.mxu0 %v23633_v54 }
 0xd22   : > { %14098 = vmatprep.subr.bf16.mxu0 %v23638_v32 }
 0xd24   : > { %20196 = vmatmul.mubr.msk.bf16.vlgmr.msra.gmra.mrb[104].mxu0 %vm7854_vm11, %v26644_v58 }
 0xd25   : > { %14099 = vmatpush1.bf16.msra.mxu0 %v23636_v13  ;;  %14130 = vmatprep.mubr.bf16.mxu0 %v29231_v23 }
 0xd26   : > { %14100 = vmatprep.subr.bf16.mxu0 %v23641_v38  ;;  %v23647_v38 = vld [vmem:[%s29217_s9 + $0xd64] ss:$112 sps:$4 sm:$0xff]  }
 0xd27   : > { %v11543_v40 = vpop.f32.mrb[120].mxu0 }
 0xd28   : > { %v11706_v37 = vrot.slane %v11543_v40, 5  ;;  %v11545_v27 = vpop.f32.mrb[121].mxu0 }
 0xd29   : > { %v11707_v19 = vrot.slane %v11545_v27, 5  ;;  %v11547_v54 = vpop.f32.mrb[122].mxu0  ;;  %14101 = vmatpush1.bf16.msra.mxu0 %v23639_v55  ;;  %v23645_v55 = vld [vmem:[%s29217_s9 + $0xd60] ss:$112 sps:$4 sm:$0xff]  }
 0xd2a   : > { %v11714_v32 = vadd.f32 %v11706_v37, %v11698_v18  ;;  %v11548_v13 = vpop.f32.mrb[123].mxu0  ;;  %14102 = vmatprep.subr.bf16.mxu0 %v23644_v60  ;;  %v23650_v18 = vld [vmem:[%s29217_s9 + $0xad4] ss:$112 sps:$4 sm:$0xff]   ;;  %v23651_v37 = vld [vmem:[%s29217_s9 + $0xbb0] ss:$112 sps:$4 sm:$0xff]  }
 0xd2b   : > { %v11715_v15 = vadd.f32 %v11707_v19, %v11699_v61  ;;  %v28460_v47 = vpop.f32.mrb[20].mxu1  ;;  %v23648_v61 = vld [vmem:[%s29217_s9 + $0xad0] ss:$112 sps:$4 sm:$0xff]   ;;  %v23653_v60 = vld [vmem:[%s29217_s9 + $0xbb4] ss:$112 sps:$4 sm:$0xff]  }
 0xd2c   : > { %29241 = vst [vmem:[#allocation11_spill] sm:$0xff] %v28460_v47  ;;  %v28462_v3 = vpop.f32.mrb[21].mxu1  ;;  %v23656_v19 = vld [vmem:[%s29217_s9 + $0xc94] ss:$112 sps:$4 sm:$0xff]  }
 0xd2d   : > { %29242 = vst [vmem:[#allocation12_spill] sm:$0xff] %v28462_v3  ;;  %14103 = vmatpush1.bf16.msra.mxu0 %v23642_v25  ;;  %v16889_v40 = vpop.f32.mrb[22].mxu1 }
 0xd2e   : > { %v16890_v27 = vpop.f32.mrb[23].mxu1  ;;  %14104 = vmatprep.subr.bf16.mxu0 %v23647_v38 }
 0xd31   : > { %14105 = vmatpush1.bf16.msra.mxu0 %v23645_v55  ;;  %v23654_v55 = vld [vmem:[%s29217_s9 + $0xc90] ss:$112 sps:$4 sm:$0xff]  }
 0xd32   : > { %14180 = vmatprep.subr.bf16.mxu0 %v23650_v18  ;;  %v23659_v18 = vld [vmem:[%s29217_s9 + $0xd74] ss:$112 sps:$4 sm:$0xff]  }
 0xd34   : > { %20198 = vmatmul.mubr.msk.bf16.vlgmr.msra.gmra.mrb[168].mxu0 %vm7854_vm11, %v26644_v58 }
 0xd35   : > { %14181 = vmatpush1.bf16.msra.mxu0 %v23648_v61  ;;  %14212 = vmatprep.mubr.bf16.mxu0 %v29231_v23 }
 0xd36   : > { %14182 = vmatprep.subr.bf16.mxu0 %v23653_v60 }
 0xd37   : > { %v11584_v54 = vpop.f32.mrb[124].mxu0 }
 0xd38   : > { %v11720_v25 = vrot.slane %v11584_v54, 6  ;;  %v11586_v13 = vpop.f32.mrb[125].mxu0 }
 0xd39   : > { %v11721_v38 = vrot.slane %v11586_v13, 6  ;;  %v11588_v40 = vpop.f32.mrb[126].mxu0  ;;  %14183 = vmatpush1.bf16.msra.mxu0 %v23651_v37 }
 0xd3a   : > { %v11589_v27 = vpop.f32.mrb[127].mxu0  ;;  %14184 = vmatprep.subr.bf16.mxu0 %v23656_v19  ;;  %v28492_v61 = vadd.f32 %v11720_v25, %v28424_v36  ;;  %v23657_v40 = vld [vmem:[%s29217_s9 + $0xd70] ss:$112 sps:$4 sm:$0xff]  }
 0xd3b   : > { %v28494_v60 = vpop.f32.mrb[24].mxu1  ;;  %v28496_v54 = vadd.f32 %v11721_v38, %v11713_v5  ;;  %v23662_v27 = vld [vmem:[%s29217_s9 + $0xae4] ss:$112 sps:$4 sm:$0xff]   ;;  %v23660_v36 = vld [vmem:[%s29217_s9 + $0xae0] ss:$112 sps:$4 sm:$0xff]  }
 0xd3c   : > { %29243 = vst [vmem:[#allocation13_spill] sm:$0xff] %v28494_v60  ;;  %v28498_v13 = vpop.f32.mrb[25].mxu1  ;;  %v23665_v5 = vld [vmem:[%s29217_s9 + $0xbc4] ss:$112 sps:$4 sm:$0xff]   ;;  %v23663_v25 = vld [vmem:[%s29217_s9 + $0xbc0] ss:$112 sps:$4 sm:$0xff]  }
 0xd3d   : > { %29244 = vst [vmem:[#allocation14_spill] sm:$0xff] %v28498_v13  ;;  %14185 = vmatpush1.bf16.msra.mxu0 %v23654_v55  ;;  %v16971_v37 = vpop.f32.mrb[26].mxu1  ;;  %v23668_v38 = vld [vmem:[%s29217_s9 + $0xca4] ss:$112 sps:$4 sm:$0xff]  }
 0xd3e   : > { %v16972_v19 = vpop.f32.mrb[27].mxu1  ;;  %14186 = vmatprep.subr.bf16.mxu0 %v23659_v18 }
 0xd41   : > { %14187 = vmatpush1.bf16.msra.mxu0 %v23657_v40 }
 0xd42   : > { %14262 = vmatprep.subr.bf16.mxu0 %v23662_v27  ;;  %v23666_v27 = vld [vmem:[%s29217_s9 + $0xca0] ss:$112 sps:$4 sm:$0xff]  }
 0xd44   : > { %20200 = vmatmul.mubr.msk.bf16.vlgmr.msra.gmra.mrb[172].mxu0 %vm7854_vm11, %v26644_v58 }
 0xd45   : > { %14263 = vmatpush1.bf16.msra.mxu0 %v23660_v36  ;;  %14294 = vmatprep.mubr.bf16.mxu0 %v29231_v23 }
 0xd46   : > { %14264 = vmatprep.subr.bf16.mxu0 %v23665_v5  ;;  %v23671_v5 = vld [vmem:[%s29217_s9 + $0xd84] ss:$112 sps:$4 sm:$0xff]  }
 0xd47   : > { %v11625_v55 = vpop.f32.mrb[128].mxu0 }
 0xd48   : > { %v11722_v18 = vrot.slane %v11625_v55, 6  ;;  %v11627_v37 = vpop.f32.mrb[129].mxu0  ;;  %v12995_v55 = vrot.slane %v27064_v52, 1  ;;  %v13012_v52 = vrot.slane %v27131_v63, 2  ;;  %v23677_v63 = vld [vmem:[%s29217_s9 + $0xee4] ss:$112 sps:$4 sm:$0xff]  }
 0xd49   : > { %v11723_v40 = vrot.slane %v11627_v37, 6  ;;  %v11629_v19 = vpop.f32.mrb[130].mxu0  ;;  %14265 = vmatpush1.bf16.msra.mxu0 %v23663_v25  ;;  %v12996_v25 = vrot.slane %v27067_v22, 1 }
 0xd4a   : > { %v11730_v36 = vadd.f32 %v11722_v18, %v11714_v32  ;;  %v11630_v13 = vpop.f32.mrb[131].mxu0  ;;  %14266 = vmatprep.subr.bf16.mxu0 %v23668_v38 }
 0xd4b   : > { %v11731_v60 = vadd.f32 %v11723_v40, %v11715_v15  ;;  %v28527_v3 = vpop.f32.mrb[28].mxu1  ;;  %v23669_v13 = vld [vmem:[%s29217_s9 + $0xd80] ss:$112 sps:$4 sm:$0xff]   ;;  %v13011_v15 = vrot.slane %v27128_v14, 2  ;;  %v13028_v40 = vrot.slane %v27195_v28, 3 }
 0xd4c   : > { %v12987_v37 = vadd.f32 %v26997_v42, %v11730_v36  ;;  %v28531_v19 = vpop.f32.mrb[29].mxu1  ;;  %v23674_v42 = vld [vmem:[%s29217_s9 + $0xe04] ss:$112 sps:$4 sm:$0xff]   ;;  %v23672_v14 = vld [vmem:[%s29217_s9 + $0xe00] ss:$112 sps:$4 sm:$0xff]   ;;  %v13043_v36 = vrot.slane %v27256_v1, 4 }
 0xd4d   : > { %v12988_v47 = vadd.f32 %v27000_v16, %v11731_v60  ;;  %14267 = vmatpush1.bf16.msra.mxu0 %v23666_v27  ;;  %v17053_v32 = vpop.f32.mrb[30].mxu1  ;;  %v13027_v16 = vrot.slane %v27192_v41, 3  ;;  %v23675_v1 = vld [vmem:[%s29217_s9 + $0xee0] ss:$112 sps:$4 sm:$0xff]  }
 0xd4e   : > { %v13003_v38 = vadd.f32 %v12995_v55, %v12987_v37  ;;  %v17054_v18 = vpop.f32.mrb[31].mxu1  ;;  %14268 = vmatprep.subr.bf16.mxu0 %v23671_v5  ;;  %v13059_v55 = vrot.slane %v27320_v35, 5  ;;  %v13060_v37 = vrot.slane %v27323_v31, 5  ;;  %v13075_v32 = vrot.slane %v27384_v33, 6  ;;  %v23680_v35 = vld [vmem:[%s29217_s9 + $0xfc4] ss:$112 sps:$4 sm:$0xff]  }
 0xd4f   : > { %v13004_v22 = vadd.f32 %v12996_v25, %v12988_v47  ;;  %v13044_v47 = vrot.slane %v27259_v8, 4 }
 0xd50   : > { %v13019_v60 = vadd.f32 %v13011_v15, %v13003_v38 }
 0xd51   : > { %v13020_v27 = vadd.f32 %v13012_v52, %v13004_v22  ;;  %14269 = vmatpush1.bf16.msra.mxu0 %v23669_v13  ;;  %v23678_v22 = vld [vmem:[%s29217_s9 + $0xfc0] ss:$112 sps:$4 sm:$0xff]  }
 0xd52   : > { %v13035_v5 = vadd.f32 %v13027_v16, %v13019_v60  ;;  %15123 = vmatprep.subr.bf16.mxu0 %v23674_v42  ;;  %v14354_v16 = vrot.slane %v27516_v39, 1  ;;  %v14371_v39 = vrot.slane %v27583_v7, 2  ;;  %v14402_v7 = vrot.slane %v27708_v34, 4 }
 0xd53   : > { %v13036_v41 = vadd.f32 %v13028_v40, %v13020_v27  ;;  %v14355_v40 = vrot.slane %v27519_v0, 1  ;;  %v14386_v0 = vrot.slane %v27644_v12, 3  ;;  %v23684_v12 = vld [vmem:[%s29217_s9 + $0xe10] ss:$112 sps:$4 sm:$0xff]  }
 0xd54   : > { %v13051_v28 = vadd.f32 %v13043_v36, %v13035_v5  ;;  %20202 = vmatmul.mubr.msk.bf16.vlgmr.msra.gmra.mrb[176].mxu0 %vm7854_vm11, %v26644_v58  ;;  %v13076_v58 = vrot.slane %v27387_v20, 6 }
 0xd55   : > { %v13052_v25 = vadd.f32 %v13044_v47, %v13036_v41  ;;  %15124 = vmatpush1.bf16.msra.mxu0 %v23672_v14  ;;  %15155 = vmatprep.mubr.bf16.mxu0 %v29231_v23  ;;  %v14370_v14 = vrot.slane %v27580_v24, 2  ;;  %v23681_v47 = vld [vmem:[%s29217_s9 + $0x10a0] ss:$112 sps:$4 sm:$0xff]   ;;  %v23686_v24 = vld [vmem:[%s29217_s9 + $0xe14] ss:$112 sps:$4 sm:$0xff]  }
 0xd56   : > { %v13067_v8 = vadd.f32 %v13059_v55, %v13051_v28  ;;  %15125 = vmatprep.subr.bf16.mxu0 %v23677_v63  ;;  %v14387_v55 = vrot.slane %v27647_v51, 3  ;;  %v23689_v51 = vld [vmem:[%s29217_s9 + $0xef4] ss:$112 sps:$4 sm:$0xff]  }
 0xd57   : > { %v13068_v13 = vadd.f32 %v13060_v37, %v13052_v25  ;;  %v12445_v31 = vpop.f32.mrb[132].mxu0  ;;  %v14403_v25 = vrot.slane %v27711_v4, 4 }
 0xd58   : > { %v13083_v15 = vadd.f32 %v13075_v32, %v13067_v8  ;;  %v28567_v38 = vadd.f32 %v12445_v31, %v28492_v61  ;;  %v12447_v18 = vpop.f32.mrb[133].mxu0  ;;  %v23683_v61 = vld [vmem:[%s29217_s9 + $0x10a4] ss:$112 sps:$4 sm:$0xff]   ;;  %v14418_v32 = vrot.slane %v27769_v49, 5  ;;  %v23687_v49 = vld [vmem:[%s29217_s9 + $0xef0] ss:$112 sps:$4 sm:$0xff]  }
 0xd59   : > { %v13084_v42 = vadd.f32 %v13076_v58, %v13068_v13  ;;  %v28570_v52 = vadd.f32 %v12447_v18, %v28496_v54  ;;  %v12449_v33 = vpop.f32.mrb[134].mxu0  ;;  %15126 = vmatpush1.bf16.msra.mxu0 %v23675_v1  ;;  %v14434_v58 = vrot.slane %v27833_v17, 6  ;;  %v14435_v13 = vrot.slane %v27839_v6, 6 }
 0xd5a   : > { %v14346_v20 = vadd.f32 %v27448_v48, %v13083_v15  ;;  %v12450_v60 = vpop.f32.mrb[135].mxu0  ;;  %15127 = vmatprep.subr.bf16.mxu0 %v23680_v35  ;;  %v14419_v35 = vrot.slane %v27775_v44, 5  ;;  %v23692_v44 = vld [vmem:[%s29217_s9 + $0xfd4] ss:$112 sps:$4 sm:$0xff]  }
 0xd5b   : > { %v14347_v54 = vadd.f32 %v27451_v11, %v13084_v42  ;;  %v28582_v27 = vpop.f32.mrb[32].mxu1  ;;  %v15707_v42 = vrot.slane %v27967_v9, 1 }
 0xd5c   : > { %v14362_v36 = vadd.f32 %v14354_v16, %v14346_v20  ;;  %v28585_v5 = vpop.f32.mrb[33].mxu1  ;;  %v15708_v16 = vrot.slane %v27970_v57, 1 }
 0xd5d   : > { %v14363_v48 = vadd.f32 %v14355_v40, %v14347_v54  ;;  %15128 = vmatpush1.bf16.msra.mxu0 %v23678_v22  ;;  %v17914_v63 = vpop.f32.mrb[34].mxu1  ;;  %v23690_v40 = vld [vmem:[%s29217_s9 + $0xfd0] ss:$112 sps:$4 sm:$0xff]   ;;  %v15723_v54 = vrot.slane %v28031_v59, 2 }
 0xd5e   : > { %v14378_v41 = vadd.f32 %v14370_v14, %v14362_v36  ;;  %v17915_v11 = vpop.f32.mrb[35].mxu1  ;;  %15129 = vmatprep.subr.bf16.mxu0 %v23683_v61  ;;  %v15739_v63 = vrot.slane %v28095_v62, 3  ;;  %v23698_v62 = vld [vmem:[%s29217_s9 + $0xe24] ss:$112 sps:$4 sm:$0xff]  }
 0xd5f   : > { %v14379_v28 = vadd.f32 %v14371_v39, %v14363_v48  ;;  %v23693_v11 = vld [vmem:[%s29217_s9 + $0x10b0] ss:$112 sps:$4 sm:$0xff]  }
 0xd60   : > { %v14394_v37 = vadd.f32 %v14386_v0, %v14378_v41 }
 0xd61   : > { %v14395_v1 = vadd.f32 %v14387_v55, %v14379_v28  ;;  %15130 = vmatpush1.bf16.msra.mxu0 %v23681_v47  ;;  %v15756_v55 = vrot.slane %v28162_v10, 4  ;;  %v23701_v10 = vld [vmem:[%s29217_s9 + $0xf04] ss:$112 sps:$4 sm:$0xff]  }
 0xd62   : > { %v14410_v8 = vadd.f32 %v14402_v7, %v14394_v37  ;;  %15205 = vmatprep.subr.bf16.mxu0 %v23686_v24  ;;  %v15772_v37 = vrot.slane %v28226_v29, 5 }
 0xd63   : > { %v14411_v34 = vadd.f32 %v14403_v25, %v14395_v1  ;;  %v15787_v1 = vrot.slane %v28287_v2, 6  ;;  %v17066_v2 = vrot.slane %v28365_v46, 1 }
 0xd64   : > { %v14426_v4 = vadd.f32 %v14418_v32, %v14410_v8  ;;  %20428 = vmatmul.mubr.msk.bf16.vlgmr.msra.gmra.mrb[180].mxu0 %vm7854_vm11, %v27037_v21  ;;  %v15788_v32 = vrot.slane %v28290_v45, 6  ;;  %v23704_v45 = vld [vmem:[%s29217_s9 + $0xfe4] ss:$112 sps:$4 sm:$0xff]  }
 0xd65   : > { %v14427_v31 = vadd.f32 %v14419_v35, %v14411_v34  ;;  %15206 = vmatpush1.bf16.msra.mxu0 %v23684_v12  ;;  %15237 = vmatprep.mubr.bf16.mxu0 %v29231_v23  ;;  %v29245_v35 = vld [vmem:[#allocation4_spill] sm:$0xff] }
 0xd66   : > { %v14442_v15 = vadd.f32 %v14434_v58, %v14426_v4  ;;  %15207 = vmatprep.subr.bf16.mxu0 %v23689_v51  ;;  %v23699_v51 = vld [vmem:[%s29217_s9 + $0xf00] ss:$112 sps:$4 sm:$0xff]  }
 0xd67   : > { %v14443_v17 = vadd.f32 %v14435_v13, %v14427_v31  ;;  %v12527_v18 = vpop.f32.mrb[136].mxu0  ;;  %v29246_v58 = vld [vmem:[#allocation6_spill] sm:$0xff]  ;;  %v29247_v13 = vld [vmem:[#allocation5_spill] sm:$0xff] }
 0xd68   : > { %v15699_v6 = vadd.f32 %v27900_v53, %v14442_v15  ;;  %v12993_v33 = vrot.slane %v12527_v18, 1  ;;  %v12529_v22 = vpop.f32.mrb[137].mxu0  ;;  %v23695_v53 = vld [vmem:[%s29217_s9 + $0x10b4] ss:$112 sps:$4 sm:$0xff]   ;;  %v17067_v4 = vrot.slane %v29246_v58, 1  ;;  %v29248_v15 = vld [vmem:[#allocation7_spill] sm:$0xff] }
 0xd69   : > { %v15700_v20 = vadd.f32 %v27903_v43, %v14443_v17  ;;  %v12994_v60 = vrot.slane %v12529_v22, 1  ;;  %v12531_v61 = vpop.f32.mrb[138].mxu0  ;;  %15208 = vmatpush1.bf16.msra.mxu0 %v23687_v49  ;;  %v15724_v43 = vrot.slane %v28034_v30, 2  ;;  %v15755_v30 = vrot.slane %v28159_v26, 4  ;;  %v23696_v26 = vld [vmem:[%s29217_s9 + $0xe20] ss:$112 sps:$4 sm:$0xff]  }
 0xd6a   : > { %v15715_v14 = vadd.f32 %v15707_v42, %v15699_v6  ;;  %v13001_v9 = vadd.f32 %v12993_v33, %v28567_v38  ;;  %v12532_v36 = vpop.f32.mrb[139].mxu0  ;;  %15209 = vmatprep.subr.bf16.mxu0 %v23692_v44  ;;  %v15740_v38 = vrot.slane %v28098_v56, 3  ;;  %v15771_v56 = vrot.slane %v28223_v50, 5  ;;  %v29249_v6 = vld [vmem:[#allocation8_spill] sm:$0xff] }
 0xd6b   : > { %v15716_v57 = vadd.f32 %v15708_v16, %v15700_v20  ;;  %v13002_v39 = vadd.f32 %v12994_v60, %v28570_v52  ;;  %v28631_v48 = vpop.f32.mrb[36].mxu1  ;;  %v17082_v44 = vrot.slane %v29248_v15, 2  ;;  %v17083_v33 = vrot.slane %v29249_v6, 2  ;;  %v23702_v20 = vld [vmem:[%s29217_s9 + $0xfe0] ss:$112 sps:$4 sm:$0xff]   ;;  %v29250_v60 = vld [vmem:[#allocation9_spill] sm:$0xff] }
 0xd6c   : > { %v15731_v47 = vadd.f32 %v15723_v54, %v15715_v14  ;;  %v28634_v59 = vpop.f32.mrb[37].mxu1  ;;  %v17098_v61 = vrot.slane %v29250_v60, 3  ;;  %v23707_v36 = vld [vmem:[%s29217_s9 + $0x10c4] ss:$112 sps:$4 sm:$0xff]  }
 0xd6d   : > { %v15732_v0 = vadd.f32 %v15724_v43, %v15716_v57  ;;  %15210 = vmatpush1.bf16.msra.mxu0 %v23690_v40  ;;  %v17996_v41 = vpop.f32.mrb[38].mxu1  ;;  %v23719_v6 = vld [vmem:[%s29217_s9 + $0x10d4] ss:$112 sps:$4 sm:$0xff]  }
 0xd6e   : > { %v15747_v24 = vadd.f32 %v15739_v63, %v15731_v47  ;;  %v17997_v52 = vpop.f32.mrb[39].mxu1  ;;  %15211 = vmatprep.subr.bf16.mxu0 %v23695_v53  ;;  %v29251_v53 = vld [vmem:[#allocation10_spill] sm:$0xff] }
 0xd6f   : > { %v15748_v28 = vadd.f32 %v15740_v38, %v15732_v0  ;;  %v17099_v43 = vrot.slane %v29251_v53, 3  ;;  %v29252_v38 = vld [vmem:[#allocation11_spill] sm:$0xff]  ;;  %v23720_v53 = vld [vmem:[%s29217_s9 + $0xe40] ss:$112 sps:$4 sm:$0xff]  }
 0xd70   : > { %v15763_v7 = vadd.f32 %v15755_v30, %v15747_v24  ;;  %v17114_v0 = vrot.slane %v29252_v38, 4  ;;  %v29253_v30 = vld [vmem:[#allocation12_spill] sm:$0xff] }
 0xd71   : > { %v15764_v25 = vadd.f32 %v15756_v55, %v15748_v28  ;;  %15212 = vmatpush1.bf16.msra.mxu0 %v23693_v11  ;;  %v17115_v24 = vrot.slane %v29253_v30, 4  ;;  %v29254_v55 = vld [vmem:[#allocation13_spill] sm:$0xff]  ;;  %v23726_v30 = vld [vmem:[%s29217_s9 + $0x1000] ss:$112 sps:$4 sm:$0xff]  }
 0xd72   : > { %v15779_v12 = vadd.f32 %v15771_v56, %v15763_v7  ;;  %15287 = vmatprep.subr.bf16.mxu0 %v23698_v62  ;;  %v23705_v62 = vld [vmem:[%s29217_s9 + $0x10c0] ss:$112 sps:$4 sm:$0xff]   ;;  %v17130_v28 = vrot.slane %v29254_v55, 5 }
 0xd73   : > { %v15780_v50 = vadd.f32 %v15772_v37, %v15764_v25  ;;  %v29255_v37 = vld [vmem:[#allocation14_spill] sm:$0xff] }
 0xd74   : > { %v15795_v8 = vadd.f32 %v15787_v1, %v15779_v12  ;;  %20430 = vmatmul.mubr.msk.bf16.vlgmr.msra.gmra.mrb[184].mxu0 %vm7854_vm11, %v27037_v21  ;;  %v17131_v25 = vrot.slane %v29255_v37, 5  ;;  %v17146_v1 = vrot.slane %v28527_v3, 6  ;;  %v18419_v3 = vrot.slane %v28631_v48, 1  ;;  %v23729_v37 = vld [vmem:[%s29217_s9 + $0x10e0] ss:$112 sps:$4 sm:$0xff]  }
 0xd75   : > { %v15796_v29 = vadd.f32 %v15788_v32, %v15780_v50  ;;  %15288 = vmatpush1.bf16.msra.mxu0 %v23696_v26  ;;  %15319 = vmatprep.mubr.bf16.mxu0 %v29231_v23  ;;  %v23708_v50 = vld [vmem:[%s29217_s9 + $0xe30] ss:$112 sps:$4 sm:$0xff]  }
 0xd76   : > { %v17058_v34 = vadd.f32 %v29245_v35, %v15795_v8  ;;  %15289 = vmatprep.subr.bf16.mxu0 %v23701_v10  ;;  %v17147_v10 = vrot.slane %v28531_v19, 6  ;;  %v18420_v35 = vrot.slane %v28634_v59, 1 }
 0xd77   : > { %v17059_v31 = vadd.f32 %v29247_v13, %v15796_v29  ;;  %v12609_v49 = vpop.f32.mrb[140].mxu0  ;;  %v23713_v29 = vld [vmem:[%s29217_s9 + $0xf14] ss:$112 sps:$4 sm:$0xff]  }
 0xd78   : > { %v17074_v17 = vadd.f32 %v17066_v2, %v17058_v34  ;;  %v13009_v18 = vrot.slane %v12609_v49, 2  ;;  %v12611_v42 = vpop.f32.mrb[141].mxu0  ;;  %v23711_v34 = vld [vmem:[%s29217_s9 + $0xf10] ss:$112 sps:$4 sm:$0xff]  }
 0xd79   : > { %v17075_v46 = vadd.f32 %v17067_v4, %v17059_v31  ;;  %v13010_v22 = vrot.slane %v12611_v42, 2  ;;  %v12613_v16 = vpop.f32.mrb[142].mxu0  ;;  %15290 = vmatpush1.bf16.msra.mxu0 %v23699_v51 }
 0xd7a   : > { %v17090_v40 = vadd.f32 %v17082_v44, %v17074_v17  ;;  %v13017_v54 = vadd.f32 %v13009_v18, %v13001_v9  ;;  %v12614_v14 = vpop.f32.mrb[143].mxu0  ;;  %15291 = vmatprep.subr.bf16.mxu0 %v23704_v45  ;;  %v23714_v17 = vld [vmem:[%s29217_s9 + $0xff0] ss:$112 sps:$4 sm:$0xff]  }
 0xd7b   : > { %v17091_v57 = vadd.f32 %v17083_v33, %v17075_v46  ;;  %v13018_v63 = vadd.f32 %v13010_v22, %v13002_v39  ;;  %v18074_v47 = vpop.f32.mrb[40].mxu1  ;;  %v23710_v39 = vld [vmem:[%s29217_s9 + $0xe34] ss:$112 sps:$4 sm:$0xff]  }
 0xd7c   : > { %v17106_v41 = vadd.f32 %v17098_v61, %v17090_v40  ;;  %v18076_v11 = vpop.f32.mrb[41].mxu1  ;;  %v18435_v58 = vrot.slane %v18074_v47, 2  ;;  %v23717_v61 = vld [vmem:[%s29217_s9 + $0x10d0] ss:$112 sps:$4 sm:$0xff]  }
 0xd7d   : > { %v17107_v52 = vadd.f32 %v17099_v43, %v17091_v57  ;;  %15292 = vmatpush1.bf16.msra.mxu0 %v23702_v20  ;;  %v18078_v9 = vpop.f32.mrb[42].mxu1  ;;  %v18436_v4 = vrot.slane %v18076_v11, 2  ;;  %v23725_v43 = vld [vmem:[%s29217_s9 + $0xf24] ss:$112 sps:$4 sm:$0xff]   ;;  %v23723_v57 = vld [vmem:[%s29217_s9 + $0xf20] ss:$112 sps:$4 sm:$0xff]  }
 0xd7e   : > { %v17122_v56 = vadd.f32 %v17114_v0, %v17106_v41  ;;  %v18079_v7 = vpop.f32.mrb[43].mxu1  ;;  %15293 = vmatprep.subr.bf16.mxu0 %v23707_v36  ;;  %v23731_v9 = vld [vmem:[%s29217_s9 + $0x10e4] ss:$112 sps:$4 sm:$0xff]  }
 0xd7f   : > { %v17123_v26 = vadd.f32 %v17115_v24, %v17107_v52 }
 0xd80   : > { %v17138_v12 = vadd.f32 %v17130_v28, %v17122_v56 }
 0xd81   : > { %v17139_v32 = vadd.f32 %v17131_v25, %v17123_v26  ;;  %15294 = vmatpush1.bf16.msra.mxu0 %v23705_v62 }
 0xd82   : > { %v17154_v8 = vadd.f32 %v17146_v1, %v17138_v12  ;;  %15369 = vmatprep.subr.bf16.mxu0 %v23710_v39  ;;  %v23734_v1 = vld [vmem:[%s29217_s9 + $0xe54] ss:$112 sps:$4 sm:$0xff]  }
 0xd83   : > { %v17155_v51 = vadd.f32 %v17147_v10, %v17139_v32  ;;  %v23732_v10 = vld [vmem:[%s29217_s9 + $0xe50] ss:$112 sps:$4 sm:$0xff]   ;;  %v23737_v32 = vld [vmem:[%s29217_s9 + $0xf34] ss:$112 sps:$4 sm:$0xff]  }
 0xd84   : > { %v18411_v2 = vadd.f32 %v28582_v27, %v17154_v8  ;;  %20432 = vmatmul.mubr.msk.bf16.vlgmr.msra.gmra.mrb[188].mxu0 %vm7854_vm11, %v27037_v21  ;;  %v23716_v27 = vld [vmem:[%s29217_s9 + $0xff4] ss:$112 sps:$4 sm:$0xff]  }
 0xd85   : > { %v18412_v19 = vadd.f32 %v28585_v5, %v17155_v51  ;;  %15370 = vmatpush1.bf16.msra.mxu0 %v23708_v50  ;;  %15401 = vmatprep.mubr.bf16.mxu0 %v29231_v23  ;;  %v23735_v50 = vld [vmem:[%s29217_s9 + $0xf30] ss:$112 sps:$4 sm:$0xff]   ;;  %v23740_v8 = vld [vmem:[%s29217_s9 + $0x1014] ss:$112 sps:$4 sm:$0xff]  }
 0xd86   : > { %v18427_v45 = vadd.f32 %v18419_v3, %v18411_v2  ;;  %15371 = vmatprep.subr.bf16.mxu0 %v23713_v29 }
 0xd87   : > { %v18428_v48 = vadd.f32 %v18420_v35, %v18412_v19  ;;  %v12691_v13 = vpop.f32.mrb[144].mxu0  ;;  %v23738_v35 = vld [vmem:[%s29217_s9 + $0x1010] ss:$112 sps:$4 sm:$0xff]  }
 0xd88   : > { %v18443_v5 = vadd.f32 %v18435_v58, %v18427_v45  ;;  %v13025_v31 = vrot.slane %v12691_v13, 3  ;;  %v12693_v59 = vpop.f32.mrb[145].mxu0  ;;  %v23743_v58 = vld [vmem:[%s29217_s9 + $0x10f4] ss:$112 sps:$4 sm:$0xff]  }
 0xd89   : > { %v18444_v49 = vadd.f32 %v18436_v4, %v18428_v48  ;;  %v13026_v15 = vrot.slane %v12693_v59, 3  ;;  %v12695_v44 = vpop.f32.mrb[146].mxu0  ;;  %15372 = vmatpush1.bf16.msra.mxu0 %v23711_v34  ;;  %v23741_v59 = vld [vmem:[%s29217_s9 + $0x10f0] ss:$112 sps:$4 sm:$0xff]  }
 0xd8a   : > { %v13033_v18 = vadd.f32 %v13025_v31, %v13017_v54  ;;  %v12696_v42 = vpop.f32.mrb[147].mxu0  ;;  %15373 = vmatprep.subr.bf16.mxu0 %v23716_v27  ;;  %v23722_v54 = vld [vmem:[%s29217_s9 + $0xe44] ss:$112 sps:$4 sm:$0xff]  }
 0xd8b   : > { %v13034_v33 = vadd.f32 %v13026_v15, %v13018_v63  ;;  %v18156_v46 = vpop.f32.mrb[44].mxu1  ;;  %v23728_v63 = vld [vmem:[%s29217_s9 + $0x1004] ss:$112 sps:$4 sm:$0xff]   ;;  %v23744_v42 = vld [vmem:[%s29217_s9 + $0xe60] ss:$112 sps:$4 sm:$0xff]  }
 0xd8c   : > { %v18451_v22 = vrot.slane %v18156_v46, 3  ;;  %v18158_v16 = vpop.f32.mrb[45].mxu1  ;;  %v23746_v44 = vld [vmem:[%s29217_s9 + $0xe64] ss:$112 sps:$4 sm:$0xff]   ;;  %v23747_v46 = vld [vmem:[%s29217_s9 + $0xf40] ss:$112 sps:$4 sm:$0xff]  }
 0xd8d   : > { %v18452_v20 = vrot.slane %v18158_v16, 3  ;;  %15374 = vmatpush1.bf16.msra.mxu0 %v23714_v17  ;;  %v18160_v60 = vpop.f32.mrb[46].mxu1 }
 0xd8e   : > { %v18459_v40 = vadd.f32 %v18451_v22, %v18443_v5  ;;  %v18161_v14 = vpop.f32.mrb[47].mxu1  ;;  %15375 = vmatprep.subr.bf16.mxu0 %v23719_v6  ;;  %v23749_v6 = vld [vmem:[%s29217_s9 + $0xf44] ss:$112 sps:$4 sm:$0xff]  }
 0xd8f   : > { %v18460_v36 = vadd.f32 %v18452_v20, %v18444_v49  ;;  %v23752_v22 = vld [vmem:[%s29217_s9 + $0x1024] ss:$112 sps:$4 sm:$0xff]  }
 0xd91   : > { %15376 = vmatpush1.bf16.msra.mxu0 %v23717_v61 }
 0xd92   : > { %15451 = vmatprep.subr.bf16.mxu0 %v23722_v54 }
 0xd94   : > { %20434 = vmatmul.mubr.msk.bf16.vlgmr.msra.gmra.mrb[192].mxu0 %vm7854_vm11, %v27037_v21 }
 0xd95   : > { %15452 = vmatpush1.bf16.msra.mxu0 %v23720_v53  ;;  %15483 = vmatprep.mubr.bf16.mxu0 %v29231_v23 }
 0xd96   : > { %15453 = vmatprep.subr.bf16.mxu0 %v23725_v43 }
 0xd97   : > { %v12773_v47 = vpop.f32.mrb[148].mxu0 }
 0xd98   : > { %v13041_v38 = vrot.slane %v12773_v47, 4  ;;  %v12775_v0 = vpop.f32.mrb[149].mxu0 }
 0xd99   : > { %v13042_v41 = vrot.slane %v12775_v0, 4  ;;  %v12777_v11 = vpop.f32.mrb[150].mxu0  ;;  %15454 = vmatpush1.bf16.msra.mxu0 %v23723_v57  ;;  %v23755_v57 = vld [vmem:[%s29217_s9 + $0x1104] ss:$112 sps:$4 sm:$0xff]  }
 0xd9a   : > { %v13049_v24 = vadd.f32 %v13041_v38, %v13033_v18  ;;  %v12778_v52 = vpop.f32.mrb[151].mxu0  ;;  %15455 = vmatprep.subr.bf16.mxu0 %v23728_v63  ;;  %v18511_v18 = vlaneseq }
 0xd9b   : > { %v13050_v62 = vadd.f32 %v13042_v41, %v13034_v33  ;;  %v18238_v55 = vpop.f32.mrb[48].mxu1 }
 0xd9c   : > { %v18467_v28 = vrot.slane %v18238_v55, 4  ;;  %v18240_v56 = vpop.f32.mrb[49].mxu1  ;;  %v28784_v33 = vshrl.u32 %v18511_v18, 7  ;;  %vm18570_vm12 = vcmp.lt.s32.totalorder %v18511_v18, 512 }
 0xd9d   : > { %v18468_v7 = vrot.slane %v18240_v56, 4  ;;  %15456 = vmatpush1.bf16.msra.mxu0 %v23726_v30  ;;  %v18242_v39 = vpop.f32.mrb[50].mxu1 }
 0xd9e   : > { %v18475_v25 = vadd.f32 %v18467_v28, %v18459_v40  ;;  %v18243_v26 = vpop.f32.mrb[51].mxu1  ;;  %15457 = vmatprep.subr.bf16.mxu0 %v23731_v9  ;;  %v18521_v61 = vsub.s32 2, %v28784_v33  ;;  %v23750_v40 = vld [vmem:[%s29217_s9 + $0x1020] ss:$112 sps:$4 sm:$0xff]   ;;  %v18525_v53 = vsub.s32 3, %v28784_v33 }
 0xd9f   : > { %v18476_v12 = vadd.f32 %v18468_v7, %v18460_v36  ;;  %v28800_v36 = vld [vmem:[%s29218_s10] sm:$0xf]  ;;  %v23758_v28 = vld [vmem:[%s29217_s9 + $0x1184] ss:$112 sps:$4 sm:$0xff]  }
 0xda0   : > { %v18522_v41 = vrot.slane %v28800_v36, %v18521_v61  ;;  %v23753_v9 = vld [vmem:[%s29217_s9 + $0x1100] ss:$112 sps:$4 sm:$0xff]   ;;  %v23761_v26 = vld [vmem:[%s29217_s9 + $0x1264] ss:$112 sps:$4 sm:$0xff]  }
 0xda1   : > { %15458 = vmatpush1.bf16.msra.mxu0 %v23729_v37  ;;  %v23756_v37 = vld [vmem:[%s29217_s9 + $0x1180] ss:$112 sps:$4 sm:$0xff]   ;;  %v23788_v61 = vld [vmem:[%s29217_s9 + $0x1364] ss:$112 sps:$4 sm:$0xff]  }
 0xda2   : > { %15533 = vmatprep.subr.bf16.mxu0 %v23734_v1 }
 0xda4   : > { %20436 = vmatmul.mubr.msk.bf16.vlgmr.msra.gmra.mrb[196].mxu0 %vm7854_vm11, %v27037_v21 }
 0xda5   : > { %15534 = vmatpush1.bf16.msra.mxu0 %v23732_v10  ;;  %15565 = vmatprep.mubr.bf16.mxu0 %v29231_v23  ;;  %v23759_v10 = vld [vmem:[%s29217_s9 + $0x1260] ss:$112 sps:$4 sm:$0xff]  }
 0xda6   : > { %15535 = vmatprep.subr.bf16.mxu0 %v23737_v32  ;;  %v23764_v32 = vld [vmem:[%s29217_s9 + $0x1344] ss:$112 sps:$4 sm:$0xff]  }
 0xda7   : > { %v12855_v29 = vpop.f32.mrb[152].mxu0 }
 0xda8   : > { %v13057_v51 = vrot.slane %v12855_v29, 5  ;;  %v12857_v2 = vpop.f32.mrb[153].mxu0 }
 0xda9   : > { %v13058_v3 = vrot.slane %v12857_v2, 5  ;;  %v12859_v19 = vpop.f32.mrb[154].mxu0  ;;  %15536 = vmatpush1.bf16.msra.mxu0 %v23735_v50 }
 0xdaa   : > { %v13065_v34 = vadd.f32 %v13057_v51, %v13049_v24  ;;  %v12860_v45 = vpop.f32.mrb[155].mxu0  ;;  %15537 = vmatprep.subr.bf16.mxu0 %v23740_v8  ;;  %v18526_v24 = vrot.slane %v28800_v36, %v18525_v53  ;;  %v23767_v19 = vld [vmem:[%s29217_s9 + $0x1424] ss:$112 sps:$4 sm:$0xff]  }
 0xdab   : > { %v13066_v27 = vadd.f32 %v13058_v3, %v13050_v62  ;;  %v18320_v48 = vpop.f32.mrb[52].mxu1  ;;  %v23768_v45 = vld [vmem:[%s29217_s9 + $0x1190] ss:$112 sps:$4 sm:$0xff]  }
 0xdac   : > { %v18483_v4 = vrot.slane %v18320_v48, 5  ;;  %v18322_v13 = vpop.f32.mrb[53].mxu1  ;;  %v23771_v48 = vld [vmem:[%s29217_s9 + $0x1270] ss:$112 sps:$4 sm:$0xff]  }
 0xdad   : > { %v18484_v5 = vrot.slane %v18322_v13, 5  ;;  %15538 = vmatpush1.bf16.msra.mxu0 %v23738_v35  ;;  %v18324_v31 = vpop.f32.mrb[54].mxu1  ;;  %v23765_v35 = vld [vmem:[%s29217_s9 + $0x1420] ss:$112 sps:$4 sm:$0xff]  }
 0xdae   : > { %v18491_v49 = vadd.f32 %v18483_v4, %v18475_v25  ;;  %v18325_v15 = vpop.f32.mrb[55].mxu1  ;;  %15539 = vmatprep.subr.bf16.mxu0 %v23743_v58  ;;  %v23773_v58 = vld [vmem:[%s29217_s9 + $0x1274] ss:$112 sps:$4 sm:$0xff]  }
 0xdaf   : > { %v18492_v17 = vadd.f32 %v18484_v5, %v18476_v12  ;;  %v23776_v4 = vld [vmem:[%s29217_s9 + $0x1354] ss:$112 sps:$4 sm:$0xff]   ;;  %v23774_v15 = vld [vmem:[%s29217_s9 + $0x1350] ss:$112 sps:$4 sm:$0xff]  }
 0xdb1   : > { %15540 = vmatpush1.bf16.msra.mxu0 %v23741_v59 }
 0xdb2   : > { %15615 = vmatprep.subr.bf16.mxu0 %v23746_v44 }
 0xdb4   : > { %20438 = vmatmul.mubr.msk.bf16.vlgmr.msra.gmra.mrb[200].mxu0 %vm7854_vm11, %v27037_v21 }
 0xdb5   : > { %15616 = vmatpush1.bf16.msra.mxu0 %v23744_v42  ;;  %15647 = vmatprep.mubr.bf16.mxu0 %v29231_v23  ;;  %v23779_v42 = vld [vmem:[%s29217_s9 + $0x1434] ss:$112 sps:$4 sm:$0xff]  }
 0xdb6   : > { %15617 = vmatprep.subr.bf16.mxu0 %v23749_v6 }
 0xdb7   : > { %v12937_v16 = vpop.f32.mrb[156].mxu0 }
 0xdb8   : > { %v13073_v20 = vrot.slane %v12937_v16, 6  ;;  %v12939_v60 = vpop.f32.mrb[157].mxu0  ;;  %v23780_v16 = vld [vmem:[%s29217_s9 + $0x11a0] ss:$112 sps:$4 sm:$0xff]  }
 0xdb9   : > { %v13074_v14 = vrot.slane %v12939_v60, 6  ;;  %v12941_v54 = vpop.f32.mrb[158].mxu0  ;;  %15618 = vmatpush1.bf16.msra.mxu0 %v23747_v46  ;;  %v23777_v46 = vld [vmem:[%s29217_s9 + $0x1430] ss:$112 sps:$4 sm:$0xff]  }
 0xdba   : > { %v12942_v43 = vpop.f32.mrb[159].mxu0  ;;  %15619 = vmatprep.subr.bf16.mxu0 %v23752_v22  ;;  %v13081_v63 = vadd.f32 %v13073_v20, %v13065_v34  ;;  %v23770_v34 = vld [vmem:[%s29217_s9 + $0x1194] ss:$112 sps:$4 sm:$0xff]   ;;  %v23783_v60 = vld [vmem:[%s29217_s9 + $0x1280] ss:$112 sps:$4 sm:$0xff]  }
 0xdbb   : > { %v18402_v47 = vpop.f32.mrb[56].mxu1  ;;  %v13082_v38 = vadd.f32 %v13074_v14, %v13066_v27  ;;  %v29256_v27 = vld [vmem:[#allocation2_spill] sm:$0xff] }
 0xdbc   : > { %v18499_v0 = vrot.slane %v18402_v47, 6  ;;  %v18404_v11 = vpop.f32.mrb[57].mxu1  ;;  %v23782_v22 = vld [vmem:[%s29217_s9 + $0x11a4] ss:$112 sps:$4 sm:$0xff]  }
 0xdbd   : > { %v18500_v30 = vrot.slane %v18404_v11, 6  ;;  %15620 = vmatpush1.bf16.msra.mxu0 %v23750_v40  ;;  %v18406_v52 = vpop.f32.mrb[58].mxu1  ;;  %v23785_v20 = vld [vmem:[%s29217_s9 + $0x1284] ss:$112 sps:$4 sm:$0xff]  }
 0xdbe   : > { %v18507_v62 = vadd.f32 %v18499_v0, %v18491_v49  ;;  %v18407_v55 = vpop.f32.mrb[59].mxu1  ;;  %15621 = vmatprep.subr.bf16.mxu0 %v23755_v57  ;;  %v23786_v57 = vld [vmem:[%s29217_s9 + $0x1360] ss:$112 sps:$4 sm:$0xff]   ;;  %v23794_v11 = vld [vmem:[%s29217_s9 + $0x11b4] ss:$112 sps:$4 sm:$0xff]  }
 0xdbf   : > { %v18508_v56 = vadd.f32 %v18500_v30, %v18492_v17  ;;  %v23792_v30 = vld [vmem:[%s29217_s9 + $0x11b0] ss:$112 sps:$4 sm:$0xff]  }
 0xdc0   : > { %v18533_v7 = vadd.f32 %v18522_v41, %v18507_v62  ;;  %v23789_v41 = vld [vmem:[%s29217_s9 + $0x1440] ss:$112 sps:$4 sm:$0xff]  }
 0xdc1   : > { %v18534_v39 = vadd.f32 %v18526_v24, %v18508_v56  ;;  %15622 = vmatpush1.bf16.msra.mxu0 %v23753_v9  ;;  %v23797_v24 = vld [vmem:[%s29217_s9 + $0x1294] ss:$112 sps:$4 sm:$0xff]   ;;  %v23795_v52 = vld [vmem:[%s29217_s9 + $0x1290] ss:$112 sps:$4 sm:$0xff]  }
 0xdc2   : > { %v18537_v25 = vmax.f32 %v18533_v7, 0.0  ;;  %16482 = vmatprep.subr.bf16.mxu0 %v23758_v28  ;;  %v23800_v9 = vld [vmem:[%s29217_s9 + $0x1374] ss:$112 sps:$4 sm:$0xff]  }
 0xdc3   : > { %v18538_v1 = vmax.f32 %v18534_v39, 0.0  ;;  %v23798_v39 = vld [vmem:[%s29217_s9 + $0x1370] ss:$112 sps:$4 sm:$0xff]  }
 0xdc4   : > { %20440 = vmatmul.mubr.msk.bf16.vlgmr.msra.gmra.mrb[204].mxu0 %vm7854_vm11, %v27037_v21  ;;  %v23762_v21 = vld [vmem:[%s29217_s9 + $0x1340] ss:$112 sps:$4 sm:$0xff]  }
 0xdc5   : > { %v28822_v12 = vcombine.low %v18537_v25, %v18538_v1  ;;  %16483 = vmatpush1.bf16.msra.mxu0 %v23756_v37  ;;  %16514 = vmatprep.mubr.bf16.mxu0 %v29231_v23 }
 0xdc6   : > { %16484 = vmatprep.subr.bf16.mxu0 %v23761_v26  ;;  %v23803_v26 = vld [vmem:[%s29217_s9 + $0x1454] ss:$112 sps:$4 sm:$0xff]  }
 0xdc7   : > { %v13804_v50 = vpop.f32.mrb[160].mxu0 }
 0xdc8   : > { %v14344_v8 = vadd.f32 %v13804_v50, %v13081_v63  ;;  %v13806_v29 = vpop.f32.mrb[161].mxu0  ;;  %v23804_v50 = vld [vmem:[%s29217_s9 + $0x11c0] ss:$112 sps:$4 sm:$0xff]  }
 0xdc9   : > { %v14345_v51 = vadd.f32 %v13806_v29, %v13082_v38  ;;  %v13808_v2 = vpop.f32.mrb[162].mxu0  ;;  %16485 = vmatpush1.bf16.msra.mxu0 %v23759_v10  ;;  %v23791_v38 = vld [vmem:[%s29217_s9 + $0x1444] ss:$112 sps:$4 sm:$0xff]   ;;  %v23801_v10 = vld [vmem:[%s29217_s9 + $0x1450] ss:$112 sps:$4 sm:$0xff]  }
 0xdca   : > { %v13809_v3 = vpop.f32.mrb[163].mxu0  ;;  %16486 = vmatprep.subr.bf16.mxu0 %v23764_v32  ;;  %v23806_v32 = vld [vmem:[%s29217_s9 + $0x11c4] ss:$112 sps:$4 sm:$0xff]   ;;  %v23807_v29 = vld [vmem:[%s29217_s9 + $0x12a0] ss:$112 sps:$4 sm:$0xff]  }
 0xdcd   : > { %16487 = vmatpush1.bf16.msra.mxu0 %v23762_v21 }
 0xdce   : > { %16488 = vmatprep.subr.bf16.mxu0 %v23767_v19 }
 0xdd1   : > { %16489 = vmatpush1.bf16.msra.mxu0 %v23765_v35 }
 0xdd2   : > { %16564 = vmatprep.subr.bf16.mxu0 %v23770_v34  ;;  %v23810_v34 = vld [vmem:[%s29217_s9 + $0x1380] ss:$112 sps:$4 sm:$0xff]  }
 0xdd4   : > { %20666 = vmatmul.mubr.msk.bf16.vlgmr.msra.gmra.mrb[208].mxu0 %vm7854_vm11, %v29256_v27 }
 0xdd5   : > { %16565 = vmatpush1.bf16.msra.mxu0 %v23768_v45  ;;  %16596 = vmatprep.mubr.bf16.mxu0 %v29231_v23 }
 0xdd6   : > { %16566 = vmatprep.subr.bf16.mxu0 %v23773_v58 }
 0xdd7   : > { %v13886_v13 = vpop.f32.mrb[164].mxu0 }
 0xdd8   : > { %v14352_v5 = vrot.slane %v13886_v13, 1  ;;  %v13888_v31 = vpop.f32.mrb[165].mxu0  ;;  %v23813_v13 = vld [vmem:[%s29217_s9 + $0x1460] ss:$112 sps:$4 sm:$0xff]  }
 0xdd9   : > { %v14353_v59 = vrot.slane %v13888_v31, 1  ;;  %v13890_v49 = vpop.f32.mrb[166].mxu0  ;;  %16567 = vmatpush1.bf16.msra.mxu0 %v23771_v48  ;;  %v23815_v48 = vld [vmem:[%s29217_s9 + $0x1464] ss:$112 sps:$4 sm:$0xff]   ;;  %v23816_v31 = vld [vmem:[%s29217_s9 + $0x11d0] ss:$112 sps:$4 sm:$0xff]  }
 0xdda   : > { %v14360_v44 = vadd.f32 %v14352_v5, %v14344_v8  ;;  %v13891_v17 = vpop.f32.mrb[167].mxu0  ;;  %16568 = vmatprep.subr.bf16.mxu0 %v23776_v4  ;;  %v23809_v8 = vld [vmem:[%s29217_s9 + $0x12a4] ss:$112 sps:$4 sm:$0xff]   ;;  %v23819_v49 = vld [vmem:[%s29217_s9 + $0x12b0] ss:$112 sps:$4 sm:$0xff]  }
 0xddb   : > { %v14361_v6 = vadd.f32 %v14353_v59, %v14345_v51  ;;  %v23812_v51 = vld [vmem:[%s29217_s9 + $0x1384] ss:$112 sps:$4 sm:$0xff]  }
 0xddc   : > { %v23818_v5 = vld [vmem:[%s29217_s9 + $0x11d4] ss:$112 sps:$4 sm:$0xff]  }
 0xddd   : > { %16569 = vmatpush1.bf16.msra.mxu0 %v23774_v15  ;;  %v23821_v59 = vld [vmem:[%s29217_s9 + $0x12b4] ss:$112 sps:$4 sm:$0xff]  }
 0xdde   : > { %16570 = vmatprep.subr.bf16.mxu0 %v23779_v42  ;;  %v23824_v15 = vld [vmem:[%s29217_s9 + $0x1394] ss:$112 sps:$4 sm:$0xff]  }
 0xde1   : > { %16571 = vmatpush1.bf16.msra.mxu0 %v23777_v46 }
 0xde2   : > { %16646 = vmatprep.subr.bf16.mxu0 %v23782_v22  ;;  %v23822_v22 = vld [vmem:[%s29217_s9 + $0x1390] ss:$112 sps:$4 sm:$0xff]  }
 0xde4   : > { %20668 = vmatmul.mubr.msk.bf16.vlgmr.msra.gmra.mrb[212].mxu0 %vm7854_vm11, %v29256_v27 }
 0xde5   : > { %16647 = vmatpush1.bf16.msra.mxu0 %v23780_v16  ;;  %16678 = vmatprep.mubr.bf16.mxu0 %v29231_v23 }
 0xde6   : > { %16648 = vmatprep.subr.bf16.mxu0 %v23785_v20 }
 0xde7   : > { %v13968_v40 = vpop.f32.mrb[100].mxu0 }
 0xde8   : > { %v14368_v14 = vrot.slane %v13968_v40, 2  ;;  %v13970_v54 = vpop.f32.mrb[101].mxu0  ;;  %v23825_v40 = vld [vmem:[%s29217_s9 + $0x1470] ss:$112 sps:$4 sm:$0xff]  }
 0xde9   : > { %v14369_v53 = vrot.slane %v13970_v54, 2  ;;  %v13972_v43 = vpop.f32.mrb[102].mxu0  ;;  %16649 = vmatpush1.bf16.msra.mxu0 %v23783_v60  ;;  %v23827_v60 = vld [vmem:[%s29217_s9 + $0x1474] ss:$112 sps:$4 sm:$0xff]   ;;  %v23828_v54 = vld [vmem:[%s29217_s9 + $0x11e0] ss:$112 sps:$4 sm:$0xff]  }
 0xdea   : > { %v14376_v63 = vadd.f32 %v14368_v14, %v14360_v44  ;;  %v13973_v47 = vpop.f32.mrb[103].mxu0  ;;  %16650 = vmatprep.subr.bf16.mxu0 %v23788_v61  ;;  %v23830_v14 = vld [vmem:[%s29217_s9 + $0x11e4] ss:$112 sps:$4 sm:$0xff]   ;;  %v23831_v43 = vld [vmem:[%s29217_s9 + $0x12c0] ss:$112 sps:$4 sm:$0xff]  }
 0xdeb   : > { %v14377_v0 = vadd.f32 %v14369_v53, %v14361_v6  ;;  %v23833_v53 = vld [vmem:[%s29217_s9 + $0x12c4] ss:$112 sps:$4 sm:$0xff]  }
 0xded   : > { %16651 = vmatpush1.bf16.msra.mxu0 %v23786_v57  ;;  %v23836_v57 = vld [vmem:[%s29217_s9 + $0x13a4] ss:$112 sps:$4 sm:$0xff]  }
 0xdee   : > { %16652 = vmatprep.subr.bf16.mxu0 %v23791_v38 }
 0xdf1   : > { %16653 = vmatpush1.bf16.msra.mxu0 %v23789_v41 }
 0xdf2   : > { %16728 = vmatprep.subr.bf16.mxu0 %v23794_v11  ;;  %v23834_v11 = vld [vmem:[%s29217_s9 + $0x13a0] ss:$112 sps:$4 sm:$0xff]  }
 0xdf4   : > { %20670 = vmatmul.mubr.msk.bf16.vlgmr.msra.gmra.mrb[216].mxu0 %vm7854_vm11, %v29256_v27 }
 0xdf5   : > { %16729 = vmatpush1.bf16.msra.mxu0 %v23792_v30  ;;  %16760 = vmatprep.mubr.bf16.mxu0 %v29231_v23 }
 0xdf6   : > { %16730 = vmatprep.subr.bf16.mxu0 %v23797_v24  ;;  %v23839_v24 = vld [vmem:[%s29217_s9 + $0x1484] ss:$112 sps:$4 sm:$0xff]  }
 0xdf7   : > { %v14050_v62 = vpop.f32.mrb[104].mxu0 }
 0xdf8   : > { %v14384_v55 = vrot.slane %v14050_v62, 3  ;;  %v14052_v28 = vpop.f32.mrb[105].mxu0  ;;  %v23837_v62 = vld [vmem:[%s29217_s9 + $0x1480] ss:$112 sps:$4 sm:$0xff]  }
 0xdf9   : > { %v14385_v56 = vrot.slane %v14052_v28, 3  ;;  %v14054_v7 = vpop.f32.mrb[106].mxu0  ;;  %16731 = vmatpush1.bf16.msra.mxu0 %v23795_v52  ;;  %v23840_v28 = vld [vmem:[%s29217_s9 + $0x1500] ss:$112 sps:$4 sm:$0xff]  }
 0xdfa   : > { %v14392_v37 = vadd.f32 %v14384_v55, %v14376_v63  ;;  %v14055_v25 = vpop.f32.mrb[107].mxu0  ;;  %16732 = vmatprep.subr.bf16.mxu0 %v23800_v9  ;;  %v23842_v55 = vld [vmem:[%s29217_s9 + $0x1504] ss:$112 sps:$4 sm:$0xff]   ;;  %v23843_v7 = vld [vmem:[%s29217_s9 + $0x15e0] ss:$112 sps:$4 sm:$0xff]  }
 0xdfb   : > { %v14393_v1 = vadd.f32 %v14385_v56, %v14377_v0  ;;  %v23845_v56 = vld [vmem:[%s29217_s9 + $0x15e4] ss:$112 sps:$4 sm:$0xff]  }
 0xdfd   : > { %16733 = vmatpush1.bf16.msra.mxu0 %v23798_v39  ;;  %v23848_v39 = vld [vmem:[%s29217_s9 + $0x16c4] ss:$112 sps:$4 sm:$0xff]  }
 0xdfe   : > { %16734 = vmatprep.subr.bf16.mxu0 %v23803_v26 }
 0xe01   : > { %16735 = vmatpush1.bf16.msra.mxu0 %v23801_v10 }
 0xe02   : > { %16810 = vmatprep.subr.bf16.mxu0 %v23806_v32 }
 0xe04   : > { %20672 = vmatmul.mubr.msk.bf16.vlgmr.msra.gmra.mrb[220].mxu0 %vm7854_vm11, %v29256_v27 }
 0xe05   : > { %16811 = vmatpush1.bf16.msra.mxu0 %v23804_v50  ;;  %16842 = vmatprep.mubr.bf16.mxu0 %v29231_v23  ;;  %v23851_v50 = vld [vmem:[%s29217_s9 + $0x17a4] ss:$112 sps:$4 sm:$0xff]  }
 0xe06   : > { %16812 = vmatprep.subr.bf16.mxu0 %v23809_v8  ;;  %v23849_v8 = vld [vmem:[%s29217_s9 + $0x17a0] ss:$112 sps:$4 sm:$0xff]  }
 0xe07   : > { %v14132_v2 = vpop.f32.mrb[168].mxu0 }
 0xe08   : > { %v14400_v21 = vrot.slane %v14132_v2, 4  ;;  %v14134_v3 = vpop.f32.mrb[169].mxu0  ;;  %v23857_v2 = vld [vmem:[%s29217_s9 + $0x15f4] ss:$112 sps:$4 sm:$0xff]  }
 0xe09   : > { %v14401_v19 = vrot.slane %v14134_v3, 4  ;;  %v14136_v35 = vpop.f32.mrb[170].mxu0  ;;  %16813 = vmatpush1.bf16.msra.mxu0 %v23807_v29  ;;  %v23854_v29 = vld [vmem:[%s29217_s9 + $0x1514] ss:$112 sps:$4 sm:$0xff]   ;;  %v23855_v3 = vld [vmem:[%s29217_s9 + $0x15f0] ss:$112 sps:$4 sm:$0xff]  }
 0xe0a   : > { %v14408_v45 = vadd.f32 %v14400_v21, %v14392_v37  ;;  %v14137_v58 = vpop.f32.mrb[171].mxu0  ;;  %16814 = vmatprep.subr.bf16.mxu0 %v23812_v51  ;;  %v23852_v51 = vld [vmem:[%s29217_s9 + $0x1510] ss:$112 sps:$4 sm:$0xff]   ;;  %v29257_v21 = vld [vmem:[#allocation3_spill] sm:$0xff] }
 0xe0b   : > { %v14409_v4 = vadd.f32 %v14401_v19, %v14393_v1  ;;  %v23860_v19 = vld [vmem:[%s29217_s9 + $0x16d4] ss:$112 sps:$4 sm:$0xff]  }
 0xe0d   : > { %16815 = vmatpush1.bf16.msra.mxu0 %v23810_v34 }
 0xe0e   : > { %16816 = vmatprep.subr.bf16.mxu0 %v23815_v48 }
 0xe11   : > { %16817 = vmatpush1.bf16.msra.mxu0 %v23813_v13 }
 0xe12   : > { %16892 = vmatprep.subr.bf16.mxu0 %v23818_v5 }
 0xe14   : > { %20674 = vmatmul.mubr.msk.bf16.vlgmr.msra.gmra.mrb[224].mxu0 %vm7854_vm11, %v29256_v27 }
 0xe15   : > { %16893 = vmatpush1.bf16.msra.mxu0 %v23816_v31  ;;  %16924 = vmatprep.mubr.bf16.mxu0 %v29231_v23  ;;  %v23863_v31 = vld [vmem:[%s29217_s9 + $0x17b4] ss:$112 sps:$4 sm:$0xff]  }
 0xe16   : > { %16894 = vmatprep.subr.bf16.mxu0 %v23821_v59 }
 0xe17   : > { %v14214_v44 = vpop.f32.mrb[172].mxu0 }
 0xe18   : > { %v14416_v17 = vrot.slane %v14214_v44, 5  ;;  %v14216_v42 = vpop.f32.mrb[173].mxu0  ;;  %v23864_v44 = vld [vmem:[%s29217_s9 + $0x1520] ss:$112 sps:$4 sm:$0xff]  }
 0xe19   : > { %v14417_v6 = vrot.slane %v14216_v42, 5  ;;  %v14218_v46 = vpop.f32.mrb[174].mxu0  ;;  %16895 = vmatpush1.bf16.msra.mxu0 %v23819_v49  ;;  %v23861_v49 = vld [vmem:[%s29217_s9 + $0x17b0] ss:$112 sps:$4 sm:$0xff]  }
 0xe1a   : > { %v14424_v16 = vadd.f32 %v14416_v17, %v14408_v45  ;;  %v14219_v20 = vpop.f32.mrb[175].mxu0  ;;  %16896 = vmatprep.subr.bf16.mxu0 %v23824_v15  ;;  %v23866_v15 = vld [vmem:[%s29217_s9 + $0x1524] ss:$112 sps:$4 sm:$0xff]   ;;  %v23867_v42 = vld [vmem:[%s29217_s9 + $0x1600] ss:$112 sps:$4 sm:$0xff]  }
 0xe1b   : > { %v14425_v61 = vadd.f32 %v14417_v6, %v14409_v4  ;;  %v23858_v4 = vld [vmem:[%s29217_s9 + $0x16d0] ss:$112 sps:$4 sm:$0xff]   ;;  %v23869_v17 = vld [vmem:[%s29217_s9 + $0x1604] ss:$112 sps:$4 sm:$0xff]  }
 0xe1c   : > { %v23872_v6 = vld [vmem:[%s29217_s9 + $0x16e4] ss:$112 sps:$4 sm:$0xff]  }
 0xe1d   : > { %16897 = vmatpush1.bf16.msra.mxu0 %v23822_v22 }
 0xe1e   : > { %16898 = vmatprep.subr.bf16.mxu0 %v23827_v60 }
 0xe21   : > { %16899 = vmatpush1.bf16.msra.mxu0 %v23825_v40 }
 0xe22   : > { %16974 = vmatprep.subr.bf16.mxu0 %v23830_v14 }
 0xe24   : > { %20676 = vmatmul.mubr.msk.bf16.vlgmr.msra.gmra.mrb[232].mxu0 %vm7854_vm11, %v29256_v27 }
 0xe25   : > { %16975 = vmatpush1.bf16.msra.mxu0 %v23828_v54  ;;  %17006 = vmatprep.mubr.bf16.mxu0 %v29231_v23  ;;  %v23875_v54 = vld [vmem:[%s29217_s9 + $0x17c4] ss:$112 sps:$4 sm:$0xff]  }
 0xe26   : > { %16976 = vmatprep.subr.bf16.mxu0 %v23833_v53 }
 0xe27   : > { %v14296_v63 = vpop.f32.mrb[176].mxu0 }
 0xe28   : > { %v14432_v47 = vrot.slane %v14296_v63, 6  ;;  %v14298_v38 = vpop.f32.mrb[177].mxu0  ;;  %v23876_v63 = vld [vmem:[%s29217_s9 + $0x1530] ss:$112 sps:$4 sm:$0xff]  }
 0xe29   : > { %v14433_v0 = vrot.slane %v14298_v38, 6  ;;  %v14300_v41 = vpop.f32.mrb[178].mxu0  ;;  %16977 = vmatpush1.bf16.msra.mxu0 %v23831_v43  ;;  %v23873_v43 = vld [vmem:[%s29217_s9 + $0x17c0] ss:$112 sps:$4 sm:$0xff]  }
 0xe2a   : > { %v14301_v30 = vpop.f32.mrb[179].mxu0  ;;  %16978 = vmatprep.subr.bf16.mxu0 %v23836_v57  ;;  %v14440_v52 = vadd.f32 %v14432_v47, %v14424_v16  ;;  %v23878_v57 = vld [vmem:[%s29217_s9 + $0x1534] ss:$112 sps:$4 sm:$0xff]   ;;  %v23879_v38 = vld [vmem:[%s29217_s9 + $0x1610] ss:$112 sps:$4 sm:$0xff]  }
 0xe2b   : > { %v14441_v9 = vadd.f32 %v14433_v0, %v14425_v61  ;;  %v23870_v61 = vld [vmem:[%s29217_s9 + $0x16e0] ss:$112 sps:$4 sm:$0xff]   ;;  %v23881_v47 = vld [vmem:[%s29217_s9 + $0x1614] ss:$112 sps:$4 sm:$0xff]  }
 0xe2c   : > { %v23884_v0 = vld [vmem:[%s29217_s9 + $0x16f4] ss:$112 sps:$4 sm:$0xff]  }
 0xe2d   : > { %16979 = vmatpush1.bf16.msra.mxu0 %v23834_v11 }
 0xe2e   : > { %16980 = vmatprep.subr.bf16.mxu0 %v23839_v24 }
 0xe31   : > { %16981 = vmatpush1.bf16.msra.mxu0 %v23837_v62 }
 0xe32   : > { %17835 = vmatprep.subr.bf16.mxu0 %v23842_v55 }
 0xe34   : > { %20678 = vmatmul.mubr.msk.bf16.vlgmr.msra.gmra.mrb[236].mxu0 %vm7854_vm11, %v29256_v27  ;;  %v23846_v27 = vld [vmem:[%s29217_s9 + $0x16c0] ss:$112 sps:$4 sm:$0xff]  }
 0xe35   : > { %17836 = vmatpush1.bf16.msra.mxu0 %v23840_v28  ;;  %17867 = vmatprep.mubr.bf16.mxu0 %v29231_v23  ;;  %v23887_v28 = vld [vmem:[%s29217_s9 + $0x17d4] ss:$112 sps:$4 sm:$0xff]  }
 0xe36   : > { %17837 = vmatprep.subr.bf16.mxu0 %v23845_v56 }
 0xe37   : > { %v15157_v37 = vpop.f32.mrb[180].mxu0 }
 0xe38   : > { %v15697_v25 = vadd.f32 %v15157_v37, %v14440_v52  ;;  %v15159_v26 = vpop.f32.mrb[181].mxu0  ;;  %v23888_v37 = vld [vmem:[%s29217_s9 + $0x1540] ss:$112 sps:$4 sm:$0xff]  }
 0xe39   : > { %v15698_v1 = vadd.f32 %v15159_v26, %v14441_v9  ;;  %v15161_v10 = vpop.f32.mrb[182].mxu0  ;;  %17838 = vmatpush1.bf16.msra.mxu0 %v23843_v7  ;;  %v23882_v9 = vld [vmem:[%s29217_s9 + $0x16f0] ss:$112 sps:$4 sm:$0xff]  }
 0xe3a   : > { %v15162_v32 = vpop.f32.mrb[183].mxu0  ;;  %17839 = vmatprep.subr.bf16.mxu0 %v23848_v39  ;;  %v23885_v7 = vld [vmem:[%s29217_s9 + $0x17d0] ss:$112 sps:$4 sm:$0xff]   ;;  %v23890_v39 = vld [vmem:[%s29217_s9 + $0x1544] ss:$112 sps:$4 sm:$0xff]  }
 0xe3b   : > { %v23891_v26 = vld [vmem:[%s29217_s9 + $0x1620] ss:$112 sps:$4 sm:$0xff]  }
 0xe3d   : > { %17840 = vmatpush1.bf16.msra.mxu0 %v23846_v27 }
 0xe3e   : > { %17841 = vmatprep.subr.bf16.mxu0 %v23851_v50 }
 0xe41   : > { %17842 = vmatpush1.bf16.msra.mxu0 %v23849_v8 }
 0xe42   : > { %17917 = vmatprep.subr.bf16.mxu0 %v23854_v29  ;;  %v23894_v29 = vld [vmem:[%s29217_s9 + $0x1700] ss:$112 sps:$4 sm:$0xff]  }
 0xe44   : > { %20904 = vmatmul.mubr.msk.bf16.vlgmr.msra.gmra.mrb[240].mxu0 %vm7854_vm11, %v29257_v21 }
 0xe45   : > { %17918 = vmatpush1.bf16.msra.mxu0 %v23852_v51  ;;  %17949 = vmatprep.mubr.bf16.mxu0 %v29231_v23 }
 0xe46   : > { %17919 = vmatprep.subr.bf16.mxu0 %v23857_v2 }
 0xe47   : > { %v15239_v35 = vpop.f32.mrb[184].mxu0 }
 0xe48   : > { %v15705_v34 = vrot.slane %v15239_v35, 1  ;;  %v15241_v45 = vpop.f32.mrb[185].mxu0  ;;  %v23897_v35 = vld [vmem:[%s29217_s9 + $0x17e0] ss:$112 sps:$4 sm:$0xff]  }
 0xe49   : > { %v15706_v58 = vrot.slane %v15241_v45, 1  ;;  %v15243_v48 = vpop.f32.mrb[186].mxu0  ;;  %17920 = vmatpush1.bf16.msra.mxu0 %v23855_v3  ;;  %v23899_v3 = vld [vmem:[%s29217_s9 + $0x17e4] ss:$112 sps:$4 sm:$0xff]   ;;  %v23900_v45 = vld [vmem:[%s29217_s9 + $0x1550] ss:$112 sps:$4 sm:$0xff]  }
 0xe4a   : > { %v15713_v13 = vadd.f32 %v15705_v34, %v15697_v25  ;;  %v15244_v5 = vpop.f32.mrb[187].mxu0  ;;  %17921 = vmatprep.subr.bf16.mxu0 %v23860_v19  ;;  %v23893_v25 = vld [vmem:[%s29217_s9 + $0x1624] ss:$112 sps:$4 sm:$0xff]   ;;  %v23903_v48 = vld [vmem:[%s29217_s9 + $0x1630] ss:$112 sps:$4 sm:$0xff]  }
 0xe4b   : > { %v15714_v59 = vadd.f32 %v15706_v58, %v15698_v1  ;;  %v23896_v1 = vld [vmem:[%s29217_s9 + $0x1704] ss:$112 sps:$4 sm:$0xff]  }
 0xe4c   : > { %v23902_v34 = vld [vmem:[%s29217_s9 + $0x1554] ss:$112 sps:$4 sm:$0xff]  }
 0xe4d   : > { %17922 = vmatpush1.bf16.msra.mxu0 %v23858_v4  ;;  %v23905_v58 = vld [vmem:[%s29217_s9 + $0x1634] ss:$112 sps:$4 sm:$0xff]  }
 0xe4e   : > { %17923 = vmatprep.subr.bf16.mxu0 %v23863_v31  ;;  %v23908_v4 = vld [vmem:[%s29217_s9 + $0x1714] ss:$112 sps:$4 sm:$0xff]  }
 0xe51   : > { %17924 = vmatpush1.bf16.msra.mxu0 %v23861_v49 }
 0xe52   : > { %17999 = vmatprep.subr.bf16.mxu0 %v23866_v15  ;;  %v23906_v15 = vld [vmem:[%s29217_s9 + $0x1710] ss:$112 sps:$4 sm:$0xff]  }
 0xe54   : > { %20906 = vmatmul.mubr.msk.bf16.vlgmr.msra.gmra.mrb[244].mxu0 %vm7854_vm11, %v29257_v21 }
 0xe55   : > { %18000 = vmatpush1.bf16.msra.mxu0 %v23864_v44  ;;  %18031 = vmatprep.mubr.bf16.mxu0 %v29231_v23 }
 0xe56   : > { %18001 = vmatprep.subr.bf16.mxu0 %v23869_v17 }
 0xe57   : > { %v15321_v46 = vpop.f32.mrb[188].mxu0 }
 0xe58   : > { %v15721_v22 = vrot.slane %v15321_v46, 2  ;;  %v15323_v16 = vpop.f32.mrb[189].mxu0  ;;  %v23909_v46 = vld [vmem:[%s29217_s9 + $0x17f0] ss:$112 sps:$4 sm:$0xff]  }
 0xe59   : > { %v15722_v20 = vrot.slane %v15323_v16, 2  ;;  %v15325_v60 = vpop.f32.mrb[190].mxu0  ;;  %18002 = vmatpush1.bf16.msra.mxu0 %v23867_v42  ;;  %v23911_v42 = vld [vmem:[%s29217_s9 + $0x17f4] ss:$112 sps:$4 sm:$0xff]   ;;  %v23912_v16 = vld [vmem:[%s29217_s9 + $0x1560] ss:$112 sps:$4 sm:$0xff]  }
 0xe5a   : > { %v15729_v40 = vadd.f32 %v15721_v22, %v15713_v13  ;;  %v15326_v14 = vpop.f32.mrb[191].mxu0  ;;  %18003 = vmatprep.subr.bf16.mxu0 %v23872_v6  ;;  %v23914_v22 = vld [vmem:[%s29217_s9 + $0x1564] ss:$112 sps:$4 sm:$0xff]   ;;  %v23915_v60 = vld [vmem:[%s29217_s9 + $0x1640] ss:$112 sps:$4 sm:$0xff]  }
 0xe5b   : > { %v15730_v53 = vadd.f32 %v15722_v20, %v15714_v59  ;;  %v23917_v20 = vld [vmem:[%s29217_s9 + $0x1644] ss:$112 sps:$4 sm:$0xff]  }
 0xe5d   : > { %18004 = vmatpush1.bf16.msra.mxu0 %v23870_v61  ;;  %v23920_v61 = vld [vmem:[%s29217_s9 + $0x1724] ss:$112 sps:$4 sm:$0xff]  }
 0xe5e   : > { %18005 = vmatprep.subr.bf16.mxu0 %v23875_v54 }
 0xe61   : > { %18006 = vmatpush1.bf16.msra.mxu0 %v23873_v43 }
 0xe62   : > { %18081 = vmatprep.subr.bf16.mxu0 %v23878_v57  ;;  %v23918_v57 = vld [vmem:[%s29217_s9 + $0x1720] ss:$112 sps:$4 sm:$0xff]  }
 0xe64   : > { %20908 = vmatmul.mubr.msk.bf16.vlgmr.msra.gmra.mrb[248].mxu0 %vm7854_vm11, %v29257_v21 }
 0xe65   : > { %18082 = vmatpush1.bf16.msra.mxu0 %v23876_v63  ;;  %18113 = vmatprep.mubr.bf16.mxu0 %v29231_v23 }
 0xe66   : > { %18083 = vmatprep.subr.bf16.mxu0 %v23881_v47 }
 0xe67   : > { %v15403_v41 = vpop.f32.mrb[192].mxu0 }
 0xe68   : > { %v15737_v11 = vrot.slane %v15403_v41, 3  ;;  %v15405_v30 = vpop.f32.mrb[193].mxu0 }
 0xe69   : > { %v15738_v24 = vrot.slane %v15405_v30, 3  ;;  %v15407_v52 = vpop.f32.mrb[194].mxu0  ;;  %18084 = vmatpush1.bf16.msra.mxu0 %v23879_v38 }
 0xe6a   : > { %v15745_v62 = vadd.f32 %v15737_v11, %v15729_v40  ;;  %v15408_v55 = vpop.f32.mrb[195].mxu0  ;;  %18085 = vmatprep.subr.bf16.mxu0 %v23884_v0  ;;  %v23921_v0 = vld [vmem:[%s29217_s9 + $0x1800] ss:$112 sps:$4 sm:$0xff]  }
 0xe6b   : > { %v15746_v56 = vadd.f32 %v15738_v24, %v15730_v53 }
 0xe6d   : > { %18086 = vmatpush1.bf16.msra.mxu0 %v23882_v9 }
 0xe6e   : > { %18087 = vmatprep.subr.bf16.mxu0 %v23887_v28 }
 0xe71   : > { %18088 = vmatpush1.bf16.msra.mxu0 %v23885_v7 }
 0xe72   : > { %18163 = vmatprep.subr.bf16.mxu0 %v23890_v39 }
 0xe74   : > { %20910 = vmatmul.mubr.msk.bf16.vlgmr.msra.gmra.mrb[252].mxu0 %vm7854_vm11, %v29257_v21 }
 0xe75   : > { %18164 = vmatpush1.bf16.msra.mxu0 %v23888_v37  ;;  %18195 = vmatprep.mubr.bf16.mxu0 %v29231_v23 }
 0xe76   : > { %18165 = vmatprep.subr.bf16.mxu0 %v23893_v25 }
 0xe77   : > { %v15485_v10 = vpop.f32.mrb[196].mxu0 }
 0xe78   : > { %v15753_v27 = vrot.slane %v15485_v10, 4  ;;  %v15487_v32 = vpop.f32.mrb[197].mxu0 }
 0xe79   : > { %v15754_v50 = vrot.slane %v15487_v32, 4  ;;  %v15489_v8 = vpop.f32.mrb[198].mxu0  ;;  %18166 = vmatpush1.bf16.msra.mxu0 %v23891_v26 }
 0xe7a   : > { %v15761_v51 = vadd.f32 %v15753_v27, %v15745_v62  ;;  %v15490_v2 = vpop.f32.mrb[199].mxu0  ;;  %18167 = vmatprep.subr.bf16.mxu0 %v23896_v1 }
 0xe7b   : > { %v15762_v19 = vadd.f32 %v15754_v50, %v15746_v56 }
 0xe7d   : > { %18168 = vmatpush1.bf16.msra.mxu0 %v23894_v29 }
 0xe7e   : > { %18169 = vmatprep.subr.bf16.mxu0 %v23899_v3 }
 0xe81   : > { %18170 = vmatpush1.bf16.msra.mxu0 %v23897_v35 }
 0xe82   : > { %18245 = vmatprep.subr.bf16.mxu0 %v23902_v34 }
 0xe84   : > { %20912 = vmatmul.mubr.msk.bf16.vlgmr.msra.gmra.mrb[0].mxu0 %vm7854_vm11, %v29257_v21 }
 0xe85   : > { %18246 = vmatpush1.bf16.msra.mxu0 %v23900_v45  ;;  %18277 = vmatprep.mubr.bf16.mxu0 %v29231_v23 }
 0xe86   : > { %18247 = vmatprep.subr.bf16.mxu0 %v23905_v58 }
 0xe87   : > { %v15567_v13 = vpop.f32.mrb[200].mxu0 }
 0xe88   : > { %v15769_v5 = vrot.slane %v15567_v13, 5  ;;  %v15569_v31 = vpop.f32.mrb[201].mxu0 }
 0xe89   : > { %v15770_v59 = vrot.slane %v15569_v31, 5  ;;  %v15571_v49 = vpop.f32.mrb[202].mxu0  ;;  %18248 = vmatpush1.bf16.msra.mxu0 %v23903_v48 }
 0xe8a   : > { %v15777_v44 = vadd.f32 %v15769_v5, %v15761_v51  ;;  %v15572_v17 = vpop.f32.mrb[203].mxu0  ;;  %18249 = vmatprep.subr.bf16.mxu0 %v23908_v4 }
 0xe8b   : > { %v15778_v6 = vadd.f32 %v15770_v59, %v15762_v19 }
 0xe8d   : > { %18250 = vmatpush1.bf16.msra.mxu0 %v23906_v15 }
 0xe8e   : > { %18251 = vmatprep.subr.bf16.mxu0 %v23911_v42 }
 0xe91   : > { %18252 = vmatpush1.bf16.msra.mxu0 %v23909_v46 }
 0xe92   : > { %18327 = vmatprep.subr.bf16.mxu0 %v23914_v22 }
 0xe94   : > { %20914 = vmatmul.mubr.msk.bf16.vlgmr.msra.gmra.mrb[4].mxu0 %vm7854_vm11, %v29257_v21 }
 0xe95   : > { %18328 = vmatpush1.bf16.msra.mxu0 %v23912_v16  ;;  %18359 = vmatprep.mubr.bf16.mxu0 %v29231_v23  ;;  %v23923_v23 = vld [vmem:[%s29217_s9 + $0x1804] ss:$112 sps:$4 sm:$0xff]  }
 0xe96   : > { %18329 = vmatprep.subr.bf16.mxu0 %v23917_v20 }
 0xe97   : > { %v15649_v40 = vpop.f32.mrb[204].mxu0 }
 0xe98   : > { %v15785_v14 = vrot.slane %v15649_v40, 6  ;;  %v15651_v54 = vpop.f32.mrb[205].mxu0 }
 0xe99   : > { %v15786_v53 = vrot.slane %v15651_v54, 6  ;;  %v15653_v43 = vpop.f32.mrb[206].mxu0  ;;  %18330 = vmatpush1.bf16.msra.mxu0 %v23915_v60 }
 0xe9a   : > { %v15654_v63 = vpop.f32.mrb[207].mxu0  ;;  %18331 = vmatprep.subr.bf16.mxu0 %v23920_v61  ;;  %v15793_v47 = vadd.f32 %v15785_v14, %v15777_v44 }
 0xe9b   : > { %v15794_v38 = vadd.f32 %v15786_v53, %v15778_v6 }
 0xe9d   : > { %18332 = vmatpush1.bf16.msra.mxu0 %v23918_v57 }
 0xe9e   : > { %18333 = vmatprep.subr.bf16.mxu0 %v23923_v23 }
 0xea1   : > { %18334 = vmatpush1.bf16.msra.mxu0 %v23921_v0 }
 0xea4   : > { %20916 = vmatmul.mubr.msk.bf16.vlgmr.msra.gmra.mrb[228].mxu0 %vm7854_vm11, %v29257_v21 }
 0xea7   : > { %v16516_v41 = vpop.f32.mrb[208].mxu0 }
 0xea8   : > { %v17056_v11 = vadd.f32 %v16516_v41, %v15793_v47  ;;  %v16518_v30 = vpop.f32.mrb[209].mxu0 }
 0xea9   : > { %v17057_v24 = vadd.f32 %v16518_v30, %v15794_v38  ;;  %v16520_v52 = vpop.f32.mrb[210].mxu0 }
 0xeaa   : > { %v16521_v9 = vpop.f32.mrb[211].mxu0 }
 0xeb7   : > { %v16598_v62 = vpop.f32.mrb[212].mxu0 }
 0xeb8   : > { %v17064_v55 = vrot.slane %v16598_v62, 1  ;;  %v16600_v28 = vpop.f32.mrb[213].mxu0 }
 0xeb9   : > { %v17065_v56 = vrot.slane %v16600_v28, 1  ;;  %v16602_v7 = vpop.f32.mrb[214].mxu0 }
 0xeba   : > { %v17072_v39 = vadd.f32 %v17064_v55, %v17056_v11  ;;  %v16603_v37 = vpop.f32.mrb[215].mxu0 }
 0xebb   : > { %v17073_v25 = vadd.f32 %v17065_v56, %v17057_v24 }
 0xec7   : > { %v16680_v26 = vpop.f32.mrb[216].mxu0 }
 0xec8   : > { %v17080_v1 = vrot.slane %v16680_v26, 2  ;;  %v16682_v10 = vpop.f32.mrb[217].mxu0 }
 0xec9   : > { %v17081_v27 = vrot.slane %v16682_v10, 2  ;;  %v16684_v32 = vpop.f32.mrb[218].mxu0 }
 0xeca   : > { %v17088_v21 = vadd.f32 %v17080_v1, %v17072_v39  ;;  %v16685_v50 = vpop.f32.mrb[219].mxu0 }
 0xecb   : > { %v17089_v8 = vadd.f32 %v17081_v27, %v17073_v25 }
 0xed7   : > { %v16762_v29 = vpop.f32.mrb[220].mxu0 }
 0xed8   : > { %v17096_v51 = vrot.slane %v16762_v29, 3  ;;  %v16764_v2 = vpop.f32.mrb[221].mxu0 }
 0xed9   : > { %v17097_v3 = vrot.slane %v16764_v2, 3  ;;  %v16766_v19 = vpop.f32.mrb[222].mxu0 }
 0xeda   : > { %v17104_v35 = vadd.f32 %v17096_v51, %v17088_v21  ;;  %v16767_v34 = vpop.f32.mrb[223].mxu0 }
 0xedb   : > { %v17105_v45 = vadd.f32 %v17097_v3, %v17089_v8 }
 0xee7   : > { %v16844_v58 = vpop.f32.mrb[224].mxu0 }
 0xee8   : > { %v17112_v48 = vrot.slane %v16844_v58, 4  ;;  %v16846_v4 = vpop.f32.mrb[225].mxu0 }
 0xee9   : > { %v17113_v13 = vrot.slane %v16846_v4, 4  ;;  %v16848_v5 = vpop.f32.mrb[226].mxu0 }
 0xeea   : > { %v17120_v31 = vadd.f32 %v17112_v48, %v17104_v35  ;;  %v16849_v59 = vpop.f32.mrb[227].mxu0 }
 0xeeb   : > { %v17121_v49 = vadd.f32 %v17113_v13, %v17105_v45 }
 0xef7   : > { %v16926_v15 = vpop.f32.mrb[232].mxu0 }
 0xef8   : > { %v17128_v44 = vrot.slane %v16926_v15, 5  ;;  %v16928_v17 = vpop.f32.mrb[233].mxu0 }
 0xef9   : > { %v17129_v42 = vrot.slane %v16928_v17, 5  ;;  %v16930_v6 = vpop.f32.mrb[234].mxu0  ;;  %v18513_v17 = vsub.s32 0, %v28784_v33 }
 0xefa   : > { %v17136_v46 = vadd.f32 %v17128_v44, %v17120_v31  ;;  %v16931_v22 = vpop.f32.mrb[235].mxu0  ;;  %v23935_v6 = vmov 1966171168  }
 0xefb   : > { %v17137_v16 = vadd.f32 %v17129_v42, %v17121_v49  ;;  %v18517_v42 = vsub.s32 1, %v28784_v33 }
 0xf07   : > { %v17008_v20 = vpop.f32.mrb[236].mxu0 }
 0xf08   : > { %v17144_v60 = vrot.slane %v17008_v20, 6  ;;  %v17010_v61 = vpop.f32.mrb[237].mxu0  ;;  %v18514_v20 = vrot.slane %v28800_v36, %v18513_v17 }
 0xf09   : > { %v17145_v40 = vrot.slane %v17010_v61, 6  ;;  %v17012_v14 = vpop.f32.mrb[238].mxu0 }
 0xf0a   : > { %v17013_v54 = vpop.f32.mrb[239].mxu0  ;;  %v17152_v53 = vadd.f32 %v17144_v60, %v17136_v46  ;;  %v18546_v46 = vunpack.c.l.s4 %v23935_v6 }
 0xf0b   : > { %v17153_v43 = vadd.f32 %v17145_v40, %v17137_v16  ;;  %v18518_v40 = vrot.slane %v28800_v36, %v18517_v42 }
 0xf17   : > { %v17869_v57 = vpop.f32.mrb[240].mxu0 }
 0xf18   : > { %v18409_v63 = vadd.f32 %v17869_v57, %v17152_v53  ;;  %v17871_v23 = vpop.f32.mrb[241].mxu0 }
 0xf19   : > { %v18410_v47 = vadd.f32 %v17871_v23, %v17153_v43  ;;  %v17873_v38 = vpop.f32.mrb[242].mxu0  ;;  %v18547_v43 = vunpack.c.0.s8 %v18546_v46 }
 0xf1a   : > { %v17874_v0 = vpop.f32.mrb[243].mxu0 }
 0xf1b   : > { %v18550_v38 = vsub.s32 %v18547_v43, %v28784_v33 }
 0xf27   : > { %v17951_v41 = vpop.f32.mrb[244].mxu0 }
 0xf28   : > { %v18417_v11 = vrot.slane %v17951_v41, 1  ;;  %v17953_v30 = vpop.f32.mrb[245].mxu0 }
 0xf29   : > { %v18418_v24 = vrot.slane %v17953_v30, 1  ;;  %v17955_v52 = vpop.f32.mrb[246].mxu0 }
 0xf2a   : > { %v18425_v9 = vadd.f32 %v18417_v11, %v18409_v63  ;;  %v17956_v62 = vpop.f32.mrb[247].mxu0  ;;  %v18558_v11 = vrot.slane %v28822_v12, %v18550_v38 }
 0xf2b   : > { %v18426_v55 = vadd.f32 %v18418_v24, %v18410_v47 }
 0xf37   : > { %v18033_v28 = vpop.f32.mrb[248].mxu0 }
 0xf38   : > { %v18433_v56 = vrot.slane %v18033_v28, 2  ;;  %v18035_v7 = vpop.f32.mrb[249].mxu0 }
 0xf39   : > { %v18434_v39 = vrot.slane %v18035_v7, 2  ;;  %v18037_v37 = vpop.f32.mrb[250].mxu0 }
 0xf3a   : > { %v18441_v25 = vadd.f32 %v18433_v56, %v18425_v9  ;;  %v18038_v26 = vpop.f32.mrb[251].mxu0 }
 0xf3b   : > { %v18442_v1 = vadd.f32 %v18434_v39, %v18426_v55 }
 0xf47   : > { %v18115_v10 = vpop.f32.mrb[252].mxu0 }
 0xf48   : > { %v18449_v27 = vrot.slane %v18115_v10, 3  ;;  %v18117_v32 = vpop.f32.mrb[253].mxu0 }
 0xf49   : > { %v18450_v21 = vrot.slane %v18117_v32, 3  ;;  %v18119_v50 = vpop.f32.mrb[254].mxu0 }
 0xf4a   : > { %v18457_v8 = vadd.f32 %v18449_v27, %v18441_v25  ;;  %v18120_v29 = vpop.f32.mrb[255].mxu0 }
 0xf4b   : > { %v18458_v51 = vadd.f32 %v18450_v21, %v18442_v1 }
 0xf57   : > { %v18197_v2 = vpop.f32.mrb[0].mxu0 }
 0xf58   : > { %v18465_v3 = vrot.slane %v18197_v2, 4  ;;  %v18199_v19 = vpop.f32.mrb[1].mxu0 }
 0xf59   : > { %v18466_v35 = vrot.slane %v18199_v19, 4  ;;  %v18201_v34 = vpop.f32.mrb[2].mxu0 }
 0xf5a   : > { %v18473_v45 = vadd.f32 %v18465_v3, %v18457_v8  ;;  %v18202_v58 = vpop.f32.mrb[3].mxu0 }
 0xf5b   : > { %v18474_v48 = vadd.f32 %v18466_v35, %v18458_v51 }
 0xf67   : > { %v18279_v4 = vpop.f32.mrb[4].mxu0 }
 0xf68   : > { %v18481_v13 = vrot.slane %v18279_v4, 5  ;;  %v18281_v5 = vpop.f32.mrb[5].mxu0 }
 0xf69   : > { %v18482_v31 = vrot.slane %v18281_v5, 5  ;;  %v18283_v59 = vpop.f32.mrb[6].mxu0 }
 0xf6a   : > { %v18489_v49 = vadd.f32 %v18481_v13, %v18473_v45  ;;  %v18284_v15 = vpop.f32.mrb[7].mxu0 }
 0xf6b   : > { %v18490_v44 = vadd.f32 %v18482_v31, %v18474_v48 }
 0xf77   : > { %v18361_v22 = vpop.f32.mrb[228].mxu0 }
 0xf78   : > { %v18497_v16 = vrot.slane %v18361_v22, 6  ;;  %v18363_v60 = vpop.f32.mrb[229].mxu0 }
 0xf79   : > { %v18498_v61 = vrot.slane %v18363_v60, 6  ;;  %v18365_v14 = vpop.f32.mrb[230].mxu0 }
 0xf7a   : > { %v18505_v54 = vadd.f32 %v18497_v16, %v18489_v49  ;;  %v18366_v53 = vpop.f32.mrb[231].mxu0 }
 0xf7b   : > { %v18506_v57 = vadd.f32 %v18498_v61, %v18490_v44 }
 0xf7c   : > { %v18531_v63 = vadd.f32 %v18514_v20, %v18505_v54 }
 0xf7d   : > { %v18532_v23 = vadd.f32 %v18518_v40, %v18506_v57 }
 0xf7e   : > { %v18535_v47 = vmax.f32 %v18531_v63, 0.0 }
 0xf7f   : > { %v18536_v0 = vmax.f32 %v18532_v23, 0.0 }
 0xf81   : > { %v18543_v41 = vcombine.low %v18535_v47, %v18536_v0 }
 0xf83   : > { %v18551_v30 = vrot.slane %v18543_v41, %v18550_v38 }
 0xf85   : > { %v18559_v24 = vcombine.low %v18551_v30, %v18558_v11 }
 0xf87   : > { %v18566_v36 = vrot.slane %v18559_v24, %v18550_v38 }
 0xf89   : > { %18572 = vst.msk [vmem:[%s389_s22] sm:$0xf] %vm18570_vm12, %v18566_v36 }
 0xf8a PF: > { %s21_s17 = sadd.s32 1, %s23932_s17  }
 0xf8b   : > { %p18_p5 = scmp.ge.s32.totalorder %s21_s17, 4  }
 0xf8d   :  { %20 = sbr.rel (!%p18_p5) target bundleno = 1 (0x1), region = 100 }

</bundles_post_ra>
